<compile_context>
chip_gen: v7x
topology: tpu7x:2x2x1
jax: 0.10.0
libtpu: 0.0.40
codegen_flags: <defaults>
</compile_context>

<pallas_src>
import functools

import jax
import jax.numpy as jnp
from jax import lax
from jax.experimental import pallas as pl
from jax.experimental.pallas import tpu as pltpu

EPS = 1e-8
_PAIR_CHUNK = 32   # hypothesis-axis chunk for pairwise / attentive-max matching


# ----------------------------------------------------------------------------
# small helpers
# ----------------------------------------------------------------------------
def _mm_nt(a, b):
    """(M, K) @ (N, K)^T -> (M, N), f32 accumulation on the MXU."""
    return lax.dot_general(a, b, (((1,), (1,)), ((), ())),
                           preferred_element_type=jnp.float32)


def _rcp(x):
    """Approximate reciprocal on the EUP (idle slot in the matching kernel)."""
    return pl.reciprocal(x, approx=True)


def _scaled_max(att, v, chunk=_PAIR_CHUNK):
    """out[b, i, h] = max_j att[b, i, j] * v[b, j, h], chunked over j.

    Never materializes a full (S, S, H) temporary.
    """
    _, _, sj = att.shape
    c = min(chunk, sj)
    out = None
    for j0 in range(0, sj, c):
        blk = att[:, :, j0:j0 + c, None] * v[:, None, j0:j0 + c, :]
        m = jnp.max(blk, axis=2)
        out = m if out is None else jnp.maximum(out, m)
    return out


# ----------------------------------------------------------------------------
# Pallas kernel 1: all multi-perspective matching for one batch block
# ----------------------------------------------------------------------------
def _matching_kernel(pfw_ref, pbw_ref, hfw_ref, hbw_ref, w_ref, mvp_ref, mvh_ref):
    lp = w_ref.shape[1] // 4   # padded number of perspectives

    def direction(vp, vh, wsq4, p_anchor, h_anchor):
        bt, s, hd = vp.shape
        wsq_full = wsq4[0 * lp:1 * lp]
        wsq_pair = wsq4[1 * lp:2 * lp]
        wsq_mean = wsq4[2 * lp:3 * lp]
        wsq_amax = wsq4[3 * lp:4 * lp]

        # perspective-weighted norms of vp / vh for all four match types with a
        # single lane-dense (bt*s, 4*lp) matmul per operand (stacked weights).
        nP4 = jnp.sqrt(_mm_nt((vp * vp).reshape(bt * s, hd),
                              wsq4)).reshape(bt, s, 4 * lp)
        nH4 = jnp.sqrt(_mm_nt((vh * vh).reshape(bt * s, hd),
                              wsq4)).reshape(bt, s, 4 * lp)

        def cosine(v1, n1, v2, wsq_k):
            # v1: (bt,s,h), n1: (bt,s,lp), v2: (bt,s,h) or (bt,1,h) broadcast.
            num = _mm_nt((v1 * v2).reshape(bt * s, hd), wsq_k).reshape(bt, s, lp)
            if v2.shape[1] == 1:
                n2 = jnp.sqrt(_mm_nt((v2 * v2).reshape(bt, hd),
                                     wsq_k)).reshape(bt, 1, lp)
            else:
                n2 = jnp.sqrt(_mm_nt((v2 * v2).reshape(bt * s, hd),
                                     wsq_k)).reshape(bt, s, lp)
            # div_with_small_value semantics: clamp the *product* of norms
            return num * _rcp(jnp.maximum(n1 * n2, EPS))

        # (1) full matching against the anchored timestep
        mv_p_full = cosine(vp, nP4[..., 0 * lp:1 * lp], h_anchor, wsq_full)
        mv_h_full = cosine(vh, nH4[..., 0 * lp:1 * lp], p_anchor, wsq_full)

        # (2) max-pooling (pairwise) matching, chunked over the hypothesis axis
        nP_pair = nP4[..., 1 * lp:2 * lp]
        nH_pair = nH4[..., 1 * lp:2 * lp]
        mv_p_max = jnp.full((bt, s, lp), -jnp.inf, jnp.float32)
        mvh_parts = []
        c = min(_PAIR_CHUNK, s)
        for q0 in range(0, s, c):
            cq = min(c, s - q0)
            pair = vp[:, :, None, :] * vh[:, None, q0:q0 + cq, :]   # (bt,s,cq,h)
            num = _mm_nt(pair.reshape(bt * s * cq, hd), wsq_pair)
            num = num.reshape(bt, s, cq, lp)
            den = jnp.maximum(nP_pair[:, :, None, :]
                              * nH_pair[:, None, q0:q0 + cq, :], EPS)
            m = num * _rcp(den)                                      # (bt,s,cq,lp)
            mv_p_max = jnp.maximum(mv_p_max, jnp.max(m, axis=2))
            mvh_parts.append(jnp.max(m, axis=1))                     # (bt,cq,lp)
        mv_h_max = (mvh_parts[0] if len(mvh_parts) == 1
                    else jnp.concatenate(mvh_parts, axis=1))

        # (3) cosine attention (denominators are broadcast multiplies — no K=1
        #     outer-product matmuls); att^T via a second matmul, no transpose.
        np_l = jnp.sqrt(jnp.sum(vp * vp, axis=2))                    # (bt,s)
        nh_l = jnp.sqrt(jnp.sum(vh * vh, axis=2))
        a = jnp.einsum('bph,bqh->bpq', vp, vh,
                       preferred_element_type=jnp.float32)
        a_t = jnp.einsum('bqh,bph->bqp', vh, vp,
                         preferred_element_type=jnp.float32)
        att = a * _rcp(jnp.maximum(np_l[:, :, None] * nh_l[:, None, :], EPS))
        att_t = a_t * _rcp(jnp.maximum(nh_l[:, :, None] * np_l[:, None, :], EPS))

        att_mean_h = (jnp.einsum('bpq,bqh->bph', att, vh,
                                 preferred_element_type=jnp.float32)
                      * _rcp(jnp.maximum(jnp.sum(att, axis=2, keepdims=True), EPS)))
        att_mean_p = (jnp.einsum('bqp,bph->bqh', att_t, vp,
                                 preferred_element_type=jnp.float32)
                      * _rcp(jnp.maximum(jnp.sum(att_t, axis=2, keepdims=True), EPS)))
        att_max_h = _scaled_max(att, vh)                             # (bt,s,h)
        att_max_p = _scaled_max(att_t, vp)

        mv_p_mean = cosine(vp, nP4[..., 2 * lp:3 * lp], att_mean_h, wsq_mean)
        mv_h_mean = cosine(vh, nH4[..., 2 * lp:3 * lp], att_mean_p, wsq_mean)
        mv_p_amax = cosine(vp, nP4[..., 3 * lp:4 * lp], att_max_h, wsq_amax)
        mv_h_amax = cosine(vh, nH4[..., 3 * lp:4 * lp], att_max_p, wsq_amax)

        return ((mv_p_full, mv_p_max, mv_p_mean, mv_p_amax),
                (mv_h_full, mv_h_max, mv_h_mean, mv_h_amax))

    pf = pfw_ref[...]
    pb = pbw_ref[...]
    hfw = hfw_ref[...]
    hbw = hbw_ref[...]
    s = pf.shape[1]

    w_all = w_ref[...]
    wsq_fw = w_all[0] * w_all[0]
    wsq_bw = w_all[1] * w_all[1]

    # Full-matching anchors at the last (fw) / first (bw) timestep, exactly as
    # in the reference.
    fw_p, fw_h = direction(pf, hfw, wsq_fw, pf[:, s - 1:s, :], hfw[:, s - 1:s, :])
    bw_p, bw_h = direction(pb, hbw, wsq_bw, pb[:, 0:1, :], hbw[:, 0:1, :])

    mvp_ref[...] = jnp.concatenate(list(fw_p) + list(bw_p), axis=-1)  # (bt,s,8lp)
    mvh_ref[...] = jnp.concatenate(list(fw_h) + list(bw_h), axis=-1)


def _choose_batch_block(b, s, h, lp, vmem_budget=20 * 1024 * 1024):
    """Largest batch block whose estimated VMEM working set fits the budget.

    Default is a single grid step (v5e/v6e have one TensorCore; extra grid
    steps only shrink the MXU M dimension and add ~600-cycle step overhead).
    On dual-TC v7x, callers can pass batch_block explicitly to split work.
    """
    def nbytes(bt):
        f = 4
        chunk = min(_PAIR_CHUNK, s)
        inputs = 4 * bt * s * h * f * 2              # double-buffered inputs
        outputs = 2 * bt * s * 8 * lp * f * 2        # double-buffered outputs
        att = 2 * bt * s * s * f                     # att + att^T
        pair = bt * s * chunk * (h + lp) * f * 2     # pairwise chunk temporaries
        norms = 2 * bt * s * 4 * lp * f
        return inputs + outputs + att + pair + norms
    bt = b
    while bt > 1 and nbytes(bt) > vmem_budget:
        bt = (bt + 1) // 2
    return bt


def matching_pallas(p_fw, p_bw, h_fw, h_bw, w_stacked, *, batch_block=None):
    b, s, h = p_fw.shape
    lp4 = w_stacked.shape[1]
    lp = lp4 // 4
    if batch_block is None:
        batch_block = _choose_batch_block(b, s, h, lp)
    batch_block = min(batch_block, b)
    nb = pl.cdiv(b, batch_block)
    bp = nb * batch_block
    if bp != b:   # pad batch instead of searching for a divisor
        pad = ((0, bp - b), (0, 0), (0, 0))
        p_fw, p_bw, h_fw, h_bw = (jnp.pad(a, pad)
                                  for a in (p_fw, p_bw, h_fw, h_bw))

    seq_spec = pl.BlockSpec((batch_block, s, h), lambda i: (i, 0, 0))
    w_spec = pl.BlockSpec((2, lp4, h), lambda i: (0, 0, 0))
    out_spec = pl.BlockSpec((batch_block, s, 8 * lp), lambda i: (i, 0, 0))
    mvp, mvh = pl.pallas_call(
        _matching_kernel,
        out_shape=(jax.ShapeDtypeStruct((bp, s, 8 * lp), jnp.float32),
                   jax.ShapeDtypeStruct((bp, s, 8 * lp), jnp.float32)),
        grid=(nb,),
        in_specs=[seq_spec, seq_spec, seq_spec, seq_spec, w_spec],
        out_specs=(out_spec, out_spec),
        compiler_params=pltpu.CompilerParams(
            dimension_semantics=("parallel",),
            vmem_limit_bytes=32 * 1024 * 1024),
    )(p_fw, p_bw, h_fw, h_bw, w_stacked)
    if bp != b:
        mvp, mvh = mvp[:b], mvh[:b]
    return mvp, mvh


# ----------------------------------------------------------------------------
# Bidirectional LSTM — fused fw/bw recurrence
#   gate columns are interleaved per gate type: [i_f,i_b,f_f,f_b,g_f,g_b,o_f,o_b]
#   state is carried as (N, 2H) = [h_f | h_b]; one block-diagonal recurrent
#   matmul per timestep; gate input projections precomputed in XLA with both
#   biases folded in and the backward direction pre-reversed in time.
# ----------------------------------------------------------------------------
def _pack_recurrent(p, hdim):
    """(8H, 2H) gate-interleaved block-diagonal recurrent weight."""
    zero = jnp.zeros((hdim, hdim), jnp.float32)
    rows = []
    for t in range(4):
        wf = p['w_hh_f'][t * hdim:(t + 1) * hdim, :]
        wb = p['w_hh_b'][t * hdim:(t + 1) * hdim, :]
        rows.append(jnp.concatenate([wf, zero], axis=1))
        rows.append(jnp.concatenate([zero, wb], axis=1))
    return jnp.concatenate(rows, axis=0)


def _gate_inputs(x, p, hdim):
    """x: (N, T, Din) -> gx: (T, N, 8H) time-major, gate/direction interleaved.

    Backward columns consume x reversed in time; both LSTM biases are folded in.
    """
    gx_f = (jnp.einsum('nti,gi->tng', x, p['w_ih_f'])
            + (p['b_ih_f'] + p['b_hh_f']))
    gx_b = (jnp.einsum('nti,gi->tng', x, p['w_ih_b'])
            + (p['b_ih_b'] + p['b_hh_b']))
    gx_b = gx_b[::-1]                                  # reverse in time
    parts = []
    for t in range(4):
        parts.append(gx_f[..., t * hdim:(t + 1) * hdim])
        parts.append(gx_b[..., t * hdim:(t + 1) * hdim])
    return jnp.concatenate(parts, axis=-1)             # (T, N, 8H)


def _lstm_gates(g, h2):
    """Packed gate nonlinearities on 2H-wide (fw|bw) slices of the (N,8H) tile."""
    i = jax.nn.sigmoid(g[:, 0 * h2:1 * h2])
    f = jax.nn.sigmoid(g[:, 1 * h2:2 * h2])
    gg = jnp.tanh(g[:, 2 * h2:3 * h2])
    o = jax.nn.sigmoid(g[:, 3 * h2:4 * h2])
    return i, f, gg, o


def _bilstm_seq_kernel(gx_ref, wrec_ref, hsf_ref, hsb_ref):
    """Context BiLSTM: emits batch-major (N, T, H) fw and bw sequences."""
    t_len, n, g8 = gx_ref.shape
    hdim = g8 // 8
    wrec = wrec_ref[...]
    h = jnp.zeros((n, 2 * hdim), jnp.float32)
    c = jnp.zeros((n, 2 * hdim), jnp.float32)
    # Fully unrolled static time loop (short fixed T); (h, c) live in vregs.
    # TODO(synk): for long sequences add a time-chunked grid ("arbitrary") with
    #             (h, c) carried in VMEM scratch so gx streams via BlockSpec
    #             instead of being fully VMEM-resident (v7x 64 MiB budget).
    for t in range(t_len):
        g = gx_ref[t] + _mm_nt(h, wrec)
        i, f, gg, o = _lstm_gates(g, 2 * hdim)
        c = f * c + i * gg
        h = o * jnp.tanh(c)
        hsf_ref[:, t:t + 1, :] = h[:, None, :hdim]                    # time t (fw)
        hsb_ref[:, t_len - 1 - t:t_len - t, :] = h[:, None, hdim:]    # time T-1-t


def bilstm_seq_pallas(x, p):
    """Bidirectional LSTM.  x: (N, T, Din) -> (hs_f, hs_b), each (N, T, H)."""
    n, t_len, _ = x.shape
    hdim = p['w_hh_f'].shape[1]
    gx = _gate_inputs(x, p, hdim)
    wrec = _pack_recurrent(p, hdim)
    return pl.pallas_call(
        _bilstm_seq_kernel,
        out_shape=(jax.ShapeDtypeStruct((n, t_len, hdim), jnp.float32),
                   jax.ShapeDtypeStruct((n, t_len, hdim), jnp.float32)),
    )(gx, wrec)


# ----------------------------------------------------------------------------
# Aggregation BiLSTM + prediction head fused into one kernel
#   (only the final [h_f | h_b] state is needed; fc1->tanh->fc2->softmax runs
#    on the final state in the same kernel -> no extra launch / HBM round trip)
# ----------------------------------------------------------------------------
def _agg_pred_kernel(gx_ref, wrec_ref, w1_ref, b1_ref, w2_ref, b2_ref, probs_ref):
    t_len, n, g8 = gx_ref.shape
    hdim = g8 // 8
    wrec = wrec_ref[...]
    h = jnp.zeros((n, 2 * hdim), jnp.float32)
    c = jnp.zeros((n, 2 * hdim), jnp.float32)
    for t in range(t_len):
        g = gx_ref[t] + _mm_nt(h, wrec)
        i, f, gg, o = _lstm_gates(g, 2 * hdim)
        c = f * c + i * gg
        h = o * jnp.tanh(c)
    # final state h = [h_fw_last | h_bw_last]; rows 0..B-1 premise, B..2B-1 hyp.
    b = n // 2
    x = jnp.concatenate([h[:b], h[b:]], axis=1)                       # (B, 4H)
    hid = jnp.tanh(_mm_nt(x, w1_ref[...]) + b1_ref[...])
    logits = _mm_nt(hid, w2_ref[...]) + b2_ref[...]
    m = jnp.max(logits, axis=-1, keepdims=True)
    e = jnp.exp(logits - m)
    probs_ref[...] = e / jnp.sum(e, axis=-1, keepdims=True)


def _pad_agg_ih(w, l, lp):
    """Zero-pad agg w_ih input columns from 8*l to 8*lp (group-wise)."""
    g4, din = w.shape
    assert din == 8 * l
    return jnp.pad(w.reshape(g4, 8, l),
                   ((0, 0), (0, 0), (0, lp - l))).reshape(g4, 8 * lp)


def agg_pred_pallas(mv, p_agg, l, lp, fc1_w, fc1_b, fc2_w, fc2_b):
    n, _, _ = mv.shape                     # n = 2B (premise | hypothesis)
    hdim = p_agg['w_hh_f'].shape[1]
    p = dict(p_agg)
    p['w_ih_f'] = _pad_agg_ih(p_agg['w_ih_f'], l, lp)
    p['w_ih_b'] = _pad_agg_ih(p_agg['w_ih_b'], l, lp)
    gx = _gate_inputs(mv, p, hdim)
    wrec = _pack_recurrent(p_agg, hdim)
    c = fc2_w.shape[0]
    return pl.pallas_call(
        _agg_pred_kernel,
        out_shape=jax.ShapeDtypeStruct((n // 2, c), jnp.float32),
    )(gx, wrec, fc1_w, fc1_b.reshape(1, -1), fc2_w, fc2_b.reshape(1, -1))


# ----------------------------------------------------------------------------
# full BIMPM forward
# ----------------------------------------------------------------------------
@functools.partial(jax.jit, static_argnames=("padding_length", "l"))
def bimpm_forward(params, input_ids, labels, padding_length, l):
    bsz = input_ids.shape[0]
    q1 = input_ids[:, :padding_length]
    q2 = input_ids[:, padding_length:]
    p_enc = jnp.take(params['emb'], q1, axis=0)
    h_enc = jnp.take(params['emb'], q2, axis=0)
    # dropout(p=0.1) -> identity (eval mode)

    # --- context BiLSTM (premise & hypothesis folded into one Pallas call,
    #     batch-major outputs -> no transposes) -------------------------------
    hs_f, hs_b = bilstm_seq_pallas(jnp.concatenate([p_enc, h_enc], axis=0),
                                   params['ctx'])                   # (2B, T, H)
    con_p_fw, con_h_fw = hs_f[:bsz], hs_f[bsz:]
    con_p_bw, con_h_bw = hs_b[:bsz], hs_b[bsz:]

    # --- stacked & zero-padded perspective weights: (2 directions, 4*Lp, H) ---
    lp = ((l + 31) // 32) * 32

    def padw(w):
        return jnp.pad(w, ((0, lp - l), (0, 0)))

    w_fw = jnp.concatenate([padw(params['mp_w1']), padw(params['mp_w3']),
                            padw(params['mp_w5']), padw(params['mp_w7'])], axis=0)
    w_bw = jnp.concatenate([padw(params['mp_w2']), padw(params['mp_w4']),
                            padw(params['mp_w6']), padw(params['mp_w8'])], axis=0)
    w_stacked = jnp.stack([w_fw, w_bw], axis=0)                     # (2, 4Lp, H)

    # matching stays at the lane-dense padded width 8*Lp (padded columns are
    # exactly zero); the agg LSTM's w_ih is zero-padded to consume it directly.
    mv_p, mv_h = matching_pallas(con_p_fw, con_p_bw, con_h_fw, con_h_bw,
                                 w_stacked)                         # (B, S, 8Lp)

    # --- aggregation BiLSTM + prediction head (fused) -------------------------
    probs = agg_pred_pallas(jnp.concatenate([mv_p, mv_h], axis=0),
                            params['agg'], l, lp,
                            params['fc1_w'], params['fc1_b'],
                            params['fc2_w'], params['fc2_b'])       # (B, C)
    pred = probs[:, 1]
    # fct_loss default 'MSELoss', num_labels == 2 path
    loss = jnp.mean((pred - labels.astype(jnp.float32)) ** 2)
    preds = jnp.argmax(probs, axis=1)
    return {'loss': loss, 'logits': pred, 'preds': preds}


# ----------------------------------------------------------------------------
# deterministic parameter init (shapes per BIMPM.__init__, scaled down)
# ----------------------------------------------------------------------------
def init_params(key, vocab, emb, hid, l, num_labels):
    ks = jax.random.split(key, 16)

    def nrm(k, shape, scale):
        return scale * jax.random.normal(k, shape, jnp.float32)

    def lstm_params(k, in_dim):
        k1, k2, k3, k4 = jax.random.split(k, 4)
        return dict(
            w_ih_f=nrm(k1, (4 * hid, in_dim), (2.0 / in_dim) ** 0.5),
            w_hh_f=nrm(k2, (4 * hid, hid), (1.0 / hid) ** 0.5),
            b_ih_f=jnp.zeros((4 * hid,), jnp.float32),
            b_hh_f=jnp.zeros((4 * hid,), jnp.float32),
            w_ih_b=nrm(k3, (4 * hid, in_dim), (2.0 / in_dim) ** 0.5),
            w_hh_b=nrm(k4, (4 * hid, hid), (1.0 / hid) ** 0.5),
            b_ih_b=jnp.zeros((4 * hid,), jnp.float32),
            b_hh_b=jnp.zeros((4 * hid,), jnp.float32),
        )

    p = {'emb': nrm(ks[0], (vocab, emb), 0.1),
         'ctx': lstm_params(ks[1], emb),
         'agg': lstm_params(ks[2], 8 * l)}
    for i in range(8):
        p[f'mp_w{i + 1}'] = nrm(ks[3 + i], (l, hid), (2.0 / hid) ** 0.5)
    p['fc1_w'] = jax.random.uniform(ks[11], (2 * hid, 4 * hid), jnp.float32,
                                    minval=-0.005, maxval=0.005)
    p['fc1_b'] = jnp.zeros((2 * hid,), jnp.float32)
    p['fc2_w'] = jax.random.uniform(ks[12], (num_labels, 2 * hid), jnp.float32,
                                    minval=-0.005, maxval=0.005)
    p['fc2_b'] = jnp.zeros((num_labels,), jnp.float32)
    return p


if __name__ == "__main__":
    B, SEQ, VOCAB, EMB, HID, L, C = 2, 8, 200, 48, 32, 20, 2

    key = jax.random.PRNGKey(0)
    k_param, k_ids, k_lab = jax.random.split(key, 3)
    params = init_params(k_param, VOCAB, EMB, HID, L, C)

    input_ids = jax.random.randint(k_ids, (B, 2 * SEQ), 0, VOCAB, dtype=jnp.int32)
    labels = jax.random.randint(k_lab, (B,), 0, 2, dtype=jnp.int32)

    out = bimpm_forward(params, input_ids, labels, padding_length=SEQ, l=L)
    jax.block_until_ready(out)
    assert out['logits'].shape == (B,)
    assert out['preds'].shape == (B,)
    print("KERNEL_OK")
</pallas_src>

<mosaic_0001>
module attributes {stable_mosaic.version = 11 : i64} {
  func.func @_bilstm_seq_kernel(%arg0: memref<8x4x256xf32, #tpu.memory_space<vmem>>, %arg1: memref<256x64xf32, #tpu.memory_space<vmem>>, %arg2: memref<4x8x32xf32, #tpu.memory_space<vmem>>, %arg3: memref<4x8x32xf32, #tpu.memory_space<vmem>>) attributes {dimension_semantics = [], scalar_prefetch = 0 : i64, scratch_operands = 0 : i64, tpu.core_type = #tpu.core_type<tc>} {
    %c0 = arith.constant 0 : index
    %c0_0 = arith.constant 0 : index
    %0 = vector.load %arg1[%c0, %c0_0] : memref<256x64xf32, #tpu.memory_space<vmem>>, vector<256x64xf32>
    %cst = arith.constant 0.000000e+00 : f32
    %1 = vector.broadcast %cst : f32 to vector<4x64xf32>
    %cst_1 = arith.constant 0.000000e+00 : f32
    %2 = vector.broadcast %cst_1 : f32 to vector<4x64xf32>
    %c0_2 = arith.constant 0 : index
    %c0_3 = arith.constant 0 : index
    %c0_4 = arith.constant 0 : index
    %3 = vector.load %arg0[%c0_2, %c0_3, %c0_4] : memref<8x4x256xf32, #tpu.memory_space<vmem>>, vector<1x4x256xf32>
    %4 = vector.shape_cast %3 : vector<1x4x256xf32> to vector<4x256xf32>
    %cst_5 = arith.constant dense<0.000000e+00> : vector<4x256xf32>
    %5 = tpu.matmul %1, %0, %cst_5 {dimension_numbers = #tpu.dot_dimension_numbers<[1], [1], [0], [0], [0, 0, 1, 0], [], []>} : vector<4x64xf32>, vector<256x64xf32>, vector<4x256xf32> -> vector<4x256xf32>
    %6 = arith.addf %4, %5 : vector<4x256xf32>
    %7 = vector.extract_strided_slice %6 {offsets = [0, 0], sizes = [4, 64], strides = [1, 1]} : vector<4x256xf32> to vector<4x64xf32>
    %8 = arith.negf %7 : vector<4x64xf32>
    %9 = math.exp %8 : vector<4x64xf32>
    %cst_6 = arith.constant 1.000000e+00 : f32
    %10 = vector.broadcast %cst_6 : f32 to vector<4x64xf32>
    %11 = arith.addf %10, %9 : vector<4x64xf32>
    %12 = arith.divf %10, %11 : vector<4x64xf32>
    %13 = vector.extract_strided_slice %6 {offsets = [0, 64], sizes = [4, 64], strides = [1, 1]} : vector<4x256xf32> to vector<4x64xf32>
    %14 = arith.negf %13 : vector<4x64xf32>
    %15 = math.exp %14 : vector<4x64xf32>
    %cst_7 = arith.constant 1.000000e+00 : f32
    %16 = vector.broadcast %cst_7 : f32 to vector<4x64xf32>
    %17 = arith.addf %16, %15 : vector<4x64xf32>
    %18 = arith.divf %16, %17 : vector<4x64xf32>
    %19 = vector.extract_strided_slice %6 {offsets = [0, 128], sizes = [4, 64], strides = [1, 1]} : vector<4x256xf32> to vector<4x64xf32>
    %20 = math.tanh %19 : vector<4x64xf32>
    %21 = vector.extract_strided_slice %6 {offsets = [0, 192], sizes = [4, 64], strides = [1, 1]} : vector<4x256xf32> to vector<4x64xf32>
    %22 = arith.negf %21 : vector<4x64xf32>
    %23 = math.exp %22 : vector<4x64xf32>
    %cst_8 = arith.constant 1.000000e+00 : f32
    %24 = vector.broadcast %cst_8 : f32 to vector<4x64xf32>
    %25 = arith.addf %24, %23 : vector<4x64xf32>
    %26 = arith.divf %24, %25 : vector<4x64xf32>
    %27 = arith.mulf %18, %2 : vector<4x64xf32>
    %28 = arith.mulf %12, %20 : vector<4x64xf32>
    %29 = arith.addf %27, %28 : vector<4x64xf32>
    %30 = math.tanh %29 : vector<4x64xf32>
    %31 = arith.mulf %26, %30 : vector<4x64xf32>
    %32 = vector.extract_strided_slice %31 {offsets = [0, 0], sizes = [4, 32], strides = [1, 1]} : vector<4x64xf32> to vector<4x32xf32>
    %33 = vector.shape_cast %32 : vector<4x32xf32> to vector<4x1x32xf32>
    %c0_9 = arith.constant 0 : index
    %c0_10 = arith.constant 0 : index
    %c0_11 = arith.constant 0 : index
    %34 = vector.load %arg2[%c0_9, %c0_10, %c0_11] : memref<4x8x32xf32, #tpu.memory_space<vmem>>, vector<4x1x32xf32>
    tpu.vector_store %arg2[%c0_9, %c0_10, %c0_11], %33 {strides = array<i32>} : memref<4x8x32xf32, #tpu.memory_space<vmem>>, vector<4x1x32xf32>,
    %35 = vector.extract_strided_slice %31 {offsets = [0, 32], sizes = [4, 32], strides = [1, 1]} : vector<4x64xf32> to vector<4x32xf32>
    %36 = vector.shape_cast %35 : vector<4x32xf32> to vector<4x1x32xf32>
    %c0_12 = arith.constant 0 : index
    %c7 = arith.constant 7 : index
    %c0_13 = arith.constant 0 : index
    %37 = vector.load %arg3[%c0_12, %c7, %c0_13] : memref<4x8x32xf32, #tpu.memory_space<vmem>>, vector<4x1x32xf32>
    tpu.vector_store %arg3[%c0_12, %c7, %c0_13], %36 {strides = array<i32>} : memref<4x8x32xf32, #tpu.memory_space<vmem>>, vector<4x1x32xf32>,
    %c1 = arith.constant 1 : index
    %c0_14 = arith.constant 0 : index
    %c0_15 = arith.constant 0 : index
    %38 = vector.load %arg0[%c1, %c0_14, %c0_15] : memref<8x4x256xf32, #tpu.memory_space<vmem>>, vector<1x4x256xf32>
    %39 = vector.shape_cast %38 : vector<1x4x256xf32> to vector<4x256xf32>
    %cst_16 = arith.constant dense<0.000000e+00> : vector<4x256xf32>
    %40 = tpu.matmul %31, %0, %cst_16 {dimension_numbers = #tpu.dot_dimension_numbers<[1], [1], [0], [0], [0, 0, 1, 0], [], []>} : vector<4x64xf32>, vector<256x64xf32>, vector<4x256xf32> -> vector<4x256xf32>
    %41 = arith.addf %39, %40 : vector<4x256xf32>
    %42 = vector.extract_strided_slice %41 {offsets = [0, 0], sizes = [4, 64], strides = [1, 1]} : vector<4x256xf32> to vector<4x64xf32>
    %43 = arith.negf %42 : vector<4x64xf32>
    %44 = math.exp %43 : vector<4x64xf32>
    %cst_17 = arith.constant 1.000000e+00 : f32
    %45 = vector.broadcast %cst_17 : f32 to vector<4x64xf32>
    %46 = arith.addf %45, %44 : vector<4x64xf32>
    %47 = arith.divf %45, %46 : vector<4x64xf32>
    %48 = vector.extract_strided_slice %41 {offsets = [0, 64], sizes = [4, 64], strides = [1, 1]} : vector<4x256xf32> to vector<4x64xf32>
    %49 = arith.negf %48 : vector<4x64xf32>
    %50 = math.exp %49 : vector<4x64xf32>
    %cst_18 = arith.constant 1.000000e+00 : f32
    %51 = vector.broadcast %cst_18 : f32 to vector<4x64xf32>
    %52 = arith.addf %51, %50 : vector<4x64xf32>
    %53 = arith.divf %51, %52 : vector<4x64xf32>
    %54 = vector.extract_strided_slice %41 {offsets = [0, 128], sizes = [4, 64], strides = [1, 1]} : vector<4x256xf32> to vector<4x64xf32>
    %55 = math.tanh %54 : vector<4x64xf32>
    %56 = vector.extract_strided_slice %41 {offsets = [0, 192], sizes = [4, 64], strides = [1, 1]} : vector<4x256xf32> to vector<4x64xf32>
    %57 = arith.negf %56 : vector<4x64xf32>
    %58 = math.exp %57 : vector<4x64xf32>
    %cst_19 = arith.constant 1.000000e+00 : f32
    %59 = vector.broadcast %cst_19 : f32 to vector<4x64xf32>
    %60 = arith.addf %59, %58 : vector<4x64xf32>
    %61 = arith.divf %59, %60 : vector<4x64xf32>
    %62 = arith.mulf %53, %29 : vector<4x64xf32>
    %63 = arith.mulf %47, %55 : vector<4x64xf32>
    %64 = arith.addf %62, %63 : vector<4x64xf32>
    %65 = math.tanh %64 : vector<4x64xf32>
    %66 = arith.mulf %61, %65 : vector<4x64xf32>
    %67 = vector.extract_strided_slice %66 {offsets = [0, 0], sizes = [4, 32], strides = [1, 1]} : vector<4x64xf32> to vector<4x32xf32>
    %68 = vector.shape_cast %67 : vector<4x32xf32> to vector<4x1x32xf32>
    %c0_20 = arith.constant 0 : index
    %c1_21 = arith.constant 1 : index
    %c0_22 = arith.constant 0 : index
    %69 = vector.load %arg2[%c0_20, %c1_21, %c0_22] : memref<4x8x32xf32, #tpu.memory_space<vmem>>, vector<4x1x32xf32>
    tpu.vector_store %arg2[%c0_20, %c1_21, %c0_22], %68 {strides = array<i32>} : memref<4x8x32xf32, #tpu.memory_space<vmem>>, vector<4x1x32xf32>,
    %70 = vector.extract_strided_slice %66 {offsets = [0, 32], sizes = [4, 32], strides = [1, 1]} : vector<4x64xf32> to vector<4x32xf32>
    %71 = vector.shape_cast %70 : vector<4x32xf32> to vector<4x1x32xf32>
    %c0_23 = arith.constant 0 : index
    %c6 = arith.constant 6 : index
    %c0_24 = arith.constant 0 : index
    %72 = vector.load %arg3[%c0_23, %c6, %c0_24] : memref<4x8x32xf32, #tpu.memory_space<vmem>>, vector<4x1x32xf32>
    tpu.vector_store %arg3[%c0_23, %c6, %c0_24], %71 {strides = array<i32>} : memref<4x8x32xf32, #tpu.memory_space<vmem>>, vector<4x1x32xf32>,
    %c2 = arith.constant 2 : index
    %c0_25 = arith.constant 0 : index
    %c0_26 = arith.constant 0 : index
    %73 = vector.load %arg0[%c2, %c0_25, %c0_26] : memref<8x4x256xf32, #tpu.memory_space<vmem>>, vector<1x4x256xf32>
    %74 = vector.shape_cast %73 : vector<1x4x256xf32> to vector<4x256xf32>
    %cst_27 = arith.constant dense<0.000000e+00> : vector<4x256xf32>
    %75 = tpu.matmul %66, %0, %cst_27 {dimension_numbers = #tpu.dot_dimension_numbers<[1], [1], [0], [0], [0, 0, 1, 0], [], []>} : vector<4x64xf32>, vector<256x64xf32>, vector<4x256xf32> -> vector<4x256xf32>
    %76 = arith.addf %74, %75 : vector<4x256xf32>
    %77 = vector.extract_strided_slice %76 {offsets = [0, 0], sizes = [4, 64], strides = [1, 1]} : vector<4x256xf32> to vector<4x64xf32>
    %78 = arith.negf %77 : vector<4x64xf32>
    %79 = math.exp %78 : vector<4x64xf32>
    %cst_28 = arith.constant 1.000000e+00 : f32
    %80 = vector.broadcast %cst_28 : f32 to vector<4x64xf32>
    %81 = arith.addf %80, %79 : vector<4x64xf32>
    %82 = arith.divf %80, %81 : vector<4x64xf32>
    %83 = vector.extract_strided_slice %76 {offsets = [0, 64], sizes = [4, 64], strides = [1, 1]} : vector<4x256xf32> to vector<4x64xf32>
    %84 = arith.negf %83 : vector<4x64xf32>
    %85 = math.exp %84 : vector<4x64xf32>
    %cst_29 = arith.constant 1.000000e+00 : f32
    %86 = vector.broadcast %cst_29 : f32 to vector<4x64xf32>
    %87 = arith.addf %86, %85 : vector<4x64xf32>
    %88 = arith.divf %86, %87 : vector<4x64xf32>
    %89 = vector.extract_strided_slice %76 {offsets = [0, 128], sizes = [4, 64], strides = [1, 1]} : vector<4x256xf32> to vector<4x64xf32>
    %90 = math.tanh %89 : vector<4x64xf32>
    %91 = vector.extract_strided_slice %76 {offsets = [0, 192], sizes = [4, 64], strides = [1, 1]} : vector<4x256xf32> to vector<4x64xf32>
    %92 = arith.negf %91 : vector<4x64xf32>
    %93 = math.exp %92 : vector<4x64xf32>
    %cst_30 = arith.constant 1.000000e+00 : f32
    %94 = vector.broadcast %cst_30 : f32 to vector<4x64xf32>
    %95 = arith.addf %94, %93 : vector<4x64xf32>
    %96 = arith.divf %94, %95 : vector<4x64xf32>
    %97 = arith.mulf %88, %64 : vector<4x64xf32>
    %98 = arith.mulf %82, %90 : vector<4x64xf32>
    %99 = arith.addf %97, %98 : vector<4x64xf32>
    %100 = math.tanh %99 : vector<4x64xf32>
    %101 = arith.mulf %96, %100 : vector<4x64xf32>
    %102 = vector.extract_strided_slice %101 {offsets = [0, 0], sizes = [4, 32], strides = [1, 1]} : vector<4x64xf32> to vector<4x32xf32>
    %103 = vector.shape_cast %102 : vector<4x32xf32> to vector<4x1x32xf32>
    %c0_31 = arith.constant 0 : index
    %c2_32 = arith.constant 2 : index
    %c0_33 = arith.constant 0 : index
    %104 = vector.load %arg2[%c0_31, %c2_32, %c0_33] : memref<4x8x32xf32, #tpu.memory_space<vmem>>, vector<4x1x32xf32>
    tpu.vector_store %arg2[%c0_31, %c2_32, %c0_33], %103 {strides = array<i32>} : memref<4x8x32xf32, #tpu.memory_space<vmem>>, vector<4x1x32xf32>,
    %105 = vector.extract_strided_slice %101 {offsets = [0, 32], sizes = [4, 32], strides = [1, 1]} : vector<4x64xf32> to vector<4x32xf32>
    %106 = vector.shape_cast %105 : vector<4x32xf32> to vector<4x1x32xf32>
    %c0_34 = arith.constant 0 : index
    %c5 = arith.constant 5 : index
    %c0_35 = arith.constant 0 : index
    %107 = vector.load %arg3[%c0_34, %c5, %c0_35] : memref<4x8x32xf32, #tpu.memory_space<vmem>>, vector<4x1x32xf32>
    tpu.vector_store %arg3[%c0_34, %c5, %c0_35], %106 {strides = array<i32>} : memref<4x8x32xf32, #tpu.memory_space<vmem>>, vector<4x1x32xf32>,
    %c3 = arith.constant 3 : index
    %c0_36 = arith.constant 0 : index
    %c0_37 = arith.constant 0 : index
    %108 = vector.load %arg0[%c3, %c0_36, %c0_37] : memref<8x4x256xf32, #tpu.memory_space<vmem>>, vector<1x4x256xf32>
    %109 = vector.shape_cast %108 : vector<1x4x256xf32> to vector<4x256xf32>
    %cst_38 = arith.constant dense<0.000000e+00> : vector<4x256xf32>
    %110 = tpu.matmul %101, %0, %cst_38 {dimension_numbers = #tpu.dot_dimension_numbers<[1], [1], [0], [0], [0, 0, 1, 0], [], []>} : vector<4x64xf32>, vector<256x64xf32>, vector<4x256xf32> -> vector<4x256xf32>
    %111 = arith.addf %109, %110 : vector<4x256xf32>
    %112 = vector.extract_strided_slice %111 {offsets = [0, 0], sizes = [4, 64], strides = [1, 1]} : vector<4x256xf32> to vector<4x64xf32>
    %113 = arith.negf %112 : vector<4x64xf32>
    %114 = math.exp %113 : vector<4x64xf32>
    %cst_39 = arith.constant 1.000000e+00 : f32
    %115 = vector.broadcast %cst_39 : f32 to vector<4x64xf32>
    %116 = arith.addf %115, %114 : vector<4x64xf32>
    %117 = arith.divf %115, %116 : vector<4x64xf32>
    %118 = vector.extract_strided_slice %111 {offsets = [0, 64], sizes = [4, 64], strides = [1, 1]} : vector<4x256xf32> to vector<4x64xf32>
    %119 = arith.negf %118 : vector<4x64xf32>
    %120 = math.exp %119 : vector<4x64xf32>
    %cst_40 = arith.constant 1.000000e+00 : f32
    %121 = vector.broadcast %cst_40 : f32 to vector<4x64xf32>
    %122 = arith.addf %121, %120 : vector<4x64xf32>
    %123 = arith.divf %121, %122 : vector<4x64xf32>
    %124 = vector.extract_strided_slice %111 {offsets = [0, 128], sizes = [4, 64], strides = [1, 1]} : vector<4x256xf32> to vector<4x64xf32>
    %125 = math.tanh %124 : vector<4x64xf32>
    %126 = vector.extract_strided_slice %111 {offsets = [0, 192], sizes = [4, 64], strides = [1, 1]} : vector<4x256xf32> to vector<4x64xf32>
    %127 = arith.negf %126 : vector<4x64xf32>
    %128 = math.exp %127 : vector<4x64xf32>
    %cst_41 = arith.constant 1.000000e+00 : f32
    %129 = vector.broadcast %cst_41 : f32 to vector<4x64xf32>
    %130 = arith.addf %129, %128 : vector<4x64xf32>
    %131 = arith.divf %129, %130 : vector<4x64xf32>
    %132 = arith.mulf %123, %99 : vector<4x64xf32>
    %133 = arith.mulf %117, %125 : vector<4x64xf32>
    %134 = arith.addf %132, %133 : vector<4x64xf32>
    %135 = math.tanh %134 : vector<4x64xf32>
    %136 = arith.mulf %131, %135 : vector<4x64xf32>
    %137 = vector.extract_strided_slice %136 {offsets = [0, 0], sizes = [4, 32], strides = [1, 1]} : vector<4x64xf32> to vector<4x32xf32>
    %138 = vector.shape_cast %137 : vector<4x32xf32> to vector<4x1x32xf32>
    %c0_42 = arith.constant 0 : index
    %c3_43 = arith.constant 3 : index
    %c0_44 = arith.constant 0 : index
    %139 = vector.load %arg2[%c0_42, %c3_43, %c0_44] : memref<4x8x32xf32, #tpu.memory_space<vmem>>, vector<4x1x32xf32>
    tpu.vector_store %arg2[%c0_42, %c3_43, %c0_44], %138 {strides = array<i32>} : memref<4x8x32xf32, #tpu.memory_space<vmem>>, vector<4x1x32xf32>,
    %140 = vector.extract_strided_slice %136 {offsets = [0, 32], sizes = [4, 32], strides = [1, 1]} : vector<4x64xf32> to vector<4x32xf32>
    %141 = vector.shape_cast %140 : vector<4x32xf32> to vector<4x1x32xf32>
    %c0_45 = arith.constant 0 : index
    %c4 = arith.constant 4 : index
    %c0_46 = arith.constant 0 : index
    %142 = vector.load %arg3[%c0_45, %c4, %c0_46] : memref<4x8x32xf32, #tpu.memory_space<vmem>>, vector<4x1x32xf32>
    tpu.vector_store %arg3[%c0_45, %c4, %c0_46], %141 {strides = array<i32>} : memref<4x8x32xf32, #tpu.memory_space<vmem>>, vector<4x1x32xf32>,
    %c4_47 = arith.constant 4 : index
    %c0_48 = arith.constant 0 : index
    %c0_49 = arith.constant 0 : index
    %143 = vector.load %arg0[%c4_47, %c0_48, %c0_49] : memref<8x4x256xf32, #tpu.memory_space<vmem>>, vector<1x4x256xf32>
    %144 = vector.shape_cast %143 : vector<1x4x256xf32> to vector<4x256xf32>
    %cst_50 = arith.constant dense<0.000000e+00> : vector<4x256xf32>
    %145 = tpu.matmul %136, %0, %cst_50 {dimension_numbers = #tpu.dot_dimension_numbers<[1], [1], [0], [0], [0, 0, 1, 0], [], []>} : vector<4x64xf32>, vector<256x64xf32>, vector<4x256xf32> -> vector<4x256xf32>
    %146 = arith.addf %144, %145 : vector<4x256xf32>
    %147 = vector.extract_strided_slice %146 {offsets = [0, 0], sizes = [4, 64], strides = [1, 1]} : vector<4x256xf32> to vector<4x64xf32>
    %148 = arith.negf %147 : vector<4x64xf32>
    %149 = math.exp %148 : vector<4x64xf32>
    %cst_51 = arith.constant 1.000000e+00 : f32
    %150 = vector.broadcast %cst_51 : f32 to vector<4x64xf32>
    %151 = arith.addf %150, %149 : vector<4x64xf32>
    %152 = arith.divf %150, %151 : vector<4x64xf32>
    %153 = vector.extract_strided_slice %146 {offsets = [0, 64], sizes = [4, 64], strides = [1, 1]} : vector<4x256xf32> to vector<4x64xf32>
    %154 = arith.negf %153 : vector<4x64xf32>
    %155 = math.exp %154 : vector<4x64xf32>
    %cst_52 = arith.constant 1.000000e+00 : f32
    %156 = vector.broadcast %cst_52 : f32 to vector<4x64xf32>
    %157 = arith.addf %156, %155 : vector<4x64xf32>
    %158 = arith.divf %156, %157 : vector<4x64xf32>
    %159 = vector.extract_strided_slice %146 {offsets = [0, 128], sizes = [4, 64], strides = [1, 1]} : vector<4x256xf32> to vector<4x64xf32>
    %160 = math.tanh %159 : vector<4x64xf32>
    %161 = vector.extract_strided_slice %146 {offsets = [0, 192], sizes = [4, 64], strides = [1, 1]} : vector<4x256xf32> to vector<4x64xf32>
    %162 = arith.negf %161 : vector<4x64xf32>
    %163 = math.exp %162 : vector<4x64xf32>
    %cst_53 = arith.constant 1.000000e+00 : f32
    %164 = vector.broadcast %cst_53 : f32 to vector<4x64xf32>
    %165 = arith.addf %164, %163 : vector<4x64xf32>
    %166 = arith.divf %164, %165 : vector<4x64xf32>
    %167 = arith.mulf %158, %134 : vector<4x64xf32>
    %168 = arith.mulf %152, %160 : vector<4x64xf32>
    %169 = arith.addf %167, %168 : vector<4x64xf32>
    %170 = math.tanh %169 : vector<4x64xf32>
    %171 = arith.mulf %166, %170 : vector<4x64xf32>
    %172 = vector.extract_strided_slice %171 {offsets = [0, 0], sizes = [4, 32], strides = [1, 1]} : vector<4x64xf32> to vector<4x32xf32>
    %173 = vector.shape_cast %172 : vector<4x32xf32> to vector<4x1x32xf32>
    %c0_54 = arith.constant 0 : index
    %c4_55 = arith.constant 4 : index
    %c0_56 = arith.constant 0 : index
    %174 = vector.load %arg2[%c0_54, %c4_55, %c0_56] : memref<4x8x32xf32, #tpu.memory_space<vmem>>, vector<4x1x32xf32>
    tpu.vector_store %arg2[%c0_54, %c4_55, %c0_56], %173 {strides = array<i32>} : memref<4x8x32xf32, #tpu.memory_space<vmem>>, vector<4x1x32xf32>,
    %175 = vector.extract_strided_slice %171 {offsets = [0, 32], sizes = [4, 32], strides = [1, 1]} : vector<4x64xf32> to vector<4x32xf32>
    %176 = vector.shape_cast %175 : vector<4x32xf32> to vector<4x1x32xf32>
    %c0_57 = arith.constant 0 : index
    %c3_58 = arith.constant 3 : index
    %c0_59 = arith.constant 0 : index
    %177 = vector.load %arg3[%c0_57, %c3_58, %c0_59] : memref<4x8x32xf32, #tpu.memory_space<vmem>>, vector<4x1x32xf32>
    tpu.vector_store %arg3[%c0_57, %c3_58, %c0_59], %176 {strides = array<i32>} : memref<4x8x32xf32, #tpu.memory_space<vmem>>, vector<4x1x32xf32>,
    %c5_60 = arith.constant 5 : index
    %c0_61 = arith.constant 0 : index
    %c0_62 = arith.constant 0 : index
    %178 = vector.load %arg0[%c5_60, %c0_61, %c0_62] : memref<8x4x256xf32, #tpu.memory_space<vmem>>, vector<1x4x256xf32>
    %179 = vector.shape_cast %178 : vector<1x4x256xf32> to vector<4x256xf32>
    %cst_63 = arith.constant dense<0.000000e+00> : vector<4x256xf32>
    %180 = tpu.matmul %171, %0, %cst_63 {dimension_numbers = #tpu.dot_dimension_numbers<[1], [1], [0], [0], [0, 0, 1, 0], [], []>} : vector<4x64xf32>, vector<256x64xf32>, vector<4x256xf32> -> vector<4x256xf32>
    %181 = arith.addf %179, %180 : vector<4x256xf32>
    %182 = vector.extract_strided_slice %181 {offsets = [0, 0], sizes = [4, 64], strides = [1, 1]} : vector<4x256xf32> to vector<4x64xf32>
    %183 = arith.negf %182 : vector<4x64xf32>
    %184 = math.exp %183 : vector<4x64xf32>
    %cst_64 = arith.constant 1.000000e+00 : f32
    %185 = vector.broadcast %cst_64 : f32 to vector<4x64xf32>
    %186 = arith.addf %185, %184 : vector<4x64xf32>
    %187 = arith.divf %185, %186 : vector<4x64xf32>
    %188 = vector.extract_strided_slice %181 {offsets = [0, 64], sizes = [4, 64], strides = [1, 1]} : vector<4x256xf32> to vector<4x64xf32>
    %189 = arith.negf %188 : vector<4x64xf32>
    %190 = math.exp %189 : vector<4x64xf32>
    %cst_65 = arith.constant 1.000000e+00 : f32
    %191 = vector.broadcast %cst_65 : f32 to vector<4x64xf32>
    %192 = arith.addf %191, %190 : vector<4x64xf32>
    %193 = arith.divf %191, %192 : vector<4x64xf32>
    %194 = vector.extract_strided_slice %181 {offsets = [0, 128], sizes = [4, 64], strides = [1, 1]} : vector<4x256xf32> to vector<4x64xf32>
    %195 = math.tanh %194 : vector<4x64xf32>
    %196 = vector.extract_strided_slice %181 {offsets = [0, 192], sizes = [4, 64], strides = [1, 1]} : vector<4x256xf32> to vector<4x64xf32>
    %197 = arith.negf %196 : vector<4x64xf32>
    %198 = math.exp %197 : vector<4x64xf32>
    %cst_66 = arith.constant 1.000000e+00 : f32
    %199 = vector.broadcast %cst_66 : f32 to vector<4x64xf32>
    %200 = arith.addf %199, %198 : vector<4x64xf32>
    %201 = arith.divf %199, %200 : vector<4x64xf32>
    %202 = arith.mulf %193, %169 : vector<4x64xf32>
    %203 = arith.mulf %187, %195 : vector<4x64xf32>
    %204 = arith.addf %202, %203 : vector<4x64xf32>
    %205 = math.tanh %204 : vector<4x64xf32>
    %206 = arith.mulf %201, %205 : vector<4x64xf32>
    %207 = vector.extract_strided_slice %206 {offsets = [0, 0], sizes = [4, 32], strides = [1, 1]} : vector<4x64xf32> to vector<4x32xf32>
    %208 = vector.shape_cast %207 : vector<4x32xf32> to vector<4x1x32xf32>
    %c0_67 = arith.constant 0 : index
    %c5_68 = arith.constant 5 : index
    %c0_69 = arith.constant 0 : index
    %209 = vector.load %arg2[%c0_67, %c5_68, %c0_69] : memref<4x8x32xf32, #tpu.memory_space<vmem>>, vector<4x1x32xf32>
    tpu.vector_store %arg2[%c0_67, %c5_68, %c0_69], %208 {strides = array<i32>} : memref<4x8x32xf32, #tpu.memory_space<vmem>>, vector<4x1x32xf32>,
    %210 = vector.extract_strided_slice %206 {offsets = [0, 32], sizes = [4, 32], strides = [1, 1]} : vector<4x64xf32> to vector<4x32xf32>
    %211 = vector.shape_cast %210 : vector<4x32xf32> to vector<4x1x32xf32>
    %c0_70 = arith.constant 0 : index
    %c2_71 = arith.constant 2 : index
    %c0_72 = arith.constant 0 : index
    %212 = vector.load %arg3[%c0_70, %c2_71, %c0_72] : memref<4x8x32xf32, #tpu.memory_space<vmem>>, vector<4x1x32xf32>
    tpu.vector_store %arg3[%c0_70, %c2_71, %c0_72], %211 {strides = array<i32>} : memref<4x8x32xf32, #tpu.memory_space<vmem>>, vector<4x1x32xf32>,
    %c6_73 = arith.constant 6 : index
    %c0_74 = arith.constant 0 : index
    %c0_75 = arith.constant 0 : index
    %213 = vector.load %arg0[%c6_73, %c0_74, %c0_75] : memref<8x4x256xf32, #tpu.memory_space<vmem>>, vector<1x4x256xf32>
    %214 = vector.shape_cast %213 : vector<1x4x256xf32> to vector<4x256xf32>
    %cst_76 = arith.constant dense<0.000000e+00> : vector<4x256xf32>
    %215 = tpu.matmul %206, %0, %cst_76 {dimension_numbers = #tpu.dot_dimension_numbers<[1], [1], [0], [0], [0, 0, 1, 0], [], []>} : vector<4x64xf32>, vector<256x64xf32>, vector<4x256xf32> -> vector<4x256xf32>
    %216 = arith.addf %214, %215 : vector<4x256xf32>
    %217 = vector.extract_strided_slice %216 {offsets = [0, 0], sizes = [4, 64], strides = [1, 1]} : vector<4x256xf32> to vector<4x64xf32>
    %218 = arith.negf %217 : vector<4x64xf32>
    %219 = math.exp %218 : vector<4x64xf32>
    %cst_77 = arith.constant 1.000000e+00 : f32
    %220 = vector.broadcast %cst_77 : f32 to vector<4x64xf32>
    %221 = arith.addf %220, %219 : vector<4x64xf32>
    %222 = arith.divf %220, %221 : vector<4x64xf32>
    %223 = vector.extract_strided_slice %216 {offsets = [0, 64], sizes = [4, 64], strides = [1, 1]} : vector<4x256xf32> to vector<4x64xf32>
    %224 = arith.negf %223 : vector<4x64xf32>
    %225 = math.exp %224 : vector<4x64xf32>
    %cst_78 = arith.constant 1.000000e+00 : f32
    %226 = vector.broadcast %cst_78 : f32 to vector<4x64xf32>
    %227 = arith.addf %226, %225 : vector<4x64xf32>
    %228 = arith.divf %226, %227 : vector<4x64xf32>
    %229 = vector.extract_strided_slice %216 {offsets = [0, 128], sizes = [4, 64], strides = [1, 1]} : vector<4x256xf32> to vector<4x64xf32>
    %230 = math.tanh %229 : vector<4x64xf32>
    %231 = vector.extract_strided_slice %216 {offsets = [0, 192], sizes = [4, 64], strides = [1, 1]} : vector<4x256xf32> to vector<4x64xf32>
    %232 = arith.negf %231 : vector<4x64xf32>
    %233 = math.exp %232 : vector<4x64xf32>
    %cst_79 = arith.constant 1.000000e+00 : f32
    %234 = vector.broadcast %cst_79 : f32 to vector<4x64xf32>
    %235 = arith.addf %234, %233 : vector<4x64xf32>
    %236 = arith.divf %234, %235 : vector<4x64xf32>
    %237 = arith.mulf %228, %204 : vector<4x64xf32>
    %238 = arith.mulf %222, %230 : vector<4x64xf32>
    %239 = arith.addf %237, %238 : vector<4x64xf32>
    %240 = math.tanh %239 : vector<4x64xf32>
    %241 = arith.mulf %236, %240 : vector<4x64xf32>
    %242 = vector.extract_strided_slice %241 {offsets = [0, 0], sizes = [4, 32], strides = [1, 1]} : vector<4x64xf32> to vector<4x32xf32>
    %243 = vector.shape_cast %242 : vector<4x32xf32> to vector<4x1x32xf32>
    %c0_80 = arith.constant 0 : index
    %c6_81 = arith.constant 6 : index
    %c0_82 = arith.constant 0 : index
    %244 = vector.load %arg2[%c0_80, %c6_81, %c0_82] : memref<4x8x32xf32, #tpu.memory_space<vmem>>, vector<4x1x32xf32>
    tpu.vector_store %arg2[%c0_80, %c6_81, %c0_82], %243 {strides = array<i32>} : memref<4x8x32xf32, #tpu.memory_space<vmem>>, vector<4x1x32xf32>,
    %245 = vector.extract_strided_slice %241 {offsets = [0, 32], sizes = [4, 32], strides = [1, 1]} : vector<4x64xf32> to vector<4x32xf32>
    %246 = vector.shape_cast %245 : vector<4x32xf32> to vector<4x1x32xf32>
    %c0_83 = arith.constant 0 : index
    %c1_84 = arith.constant 1 : index
    %c0_85 = arith.constant 0 : index
    %247 = vector.load %arg3[%c0_83, %c1_84, %c0_85] : memref<4x8x32xf32, #tpu.memory_space<vmem>>, vector<4x1x32xf32>
    tpu.vector_store %arg3[%c0_83, %c1_84, %c0_85], %246 {strides = array<i32>} : memref<4x8x32xf32, #tpu.memory_space<vmem>>, vector<4x1x32xf32>,
    %c7_86 = arith.constant 7 : index
    %c0_87 = arith.constant 0 : index
    %c0_88 = arith.constant 0 : index
    %248 = vector.load %arg0[%c7_86, %c0_87, %c0_88] : memref<8x4x256xf32, #tpu.memory_space<vmem>>, vector<1x4x256xf32>
    %249 = vector.shape_cast %248 : vector<1x4x256xf32> to vector<4x256xf32>
    %cst_89 = arith.constant dense<0.000000e+00> : vector<4x256xf32>
    %250 = tpu.matmul %241, %0, %cst_89 {dimension_numbers = #tpu.dot_dimension_numbers<[1], [1], [0], [0], [0, 0, 1, 0], [], []>} : vector<4x64xf32>, vector<256x64xf32>, vector<4x256xf32> -> vector<4x256xf32>
    %251 = arith.addf %249, %250 : vector<4x256xf32>
    %252 = vector.extract_strided_slice %251 {offsets = [0, 0], sizes = [4, 64], strides = [1, 1]} : vector<4x256xf32> to vector<4x64xf32>
    %253 = arith.negf %252 : vector<4x64xf32>
    %254 = math.exp %253 : vector<4x64xf32>
    %cst_90 = arith.constant 1.000000e+00 : f32
    %255 = vector.broadcast %cst_90 : f32 to vector<4x64xf32>
    %256 = arith.addf %255, %254 : vector<4x64xf32>
    %257 = arith.divf %255, %256 : vector<4x64xf32>
    %258 = vector.extract_strided_slice %251 {offsets = [0, 64], sizes = [4, 64], strides = [1, 1]} : vector<4x256xf32> to vector<4x64xf32>
    %259 = arith.negf %258 : vector<4x64xf32>
    %260 = math.exp %259 : vector<4x64xf32>
    %cst_91 = arith.constant 1.000000e+00 : f32
    %261 = vector.broadcast %cst_91 : f32 to vector<4x64xf32>
    %262 = arith.addf %261, %260 : vector<4x64xf32>
    %263 = arith.divf %261, %262 : vector<4x64xf32>
    %264 = vector.extract_strided_slice %251 {offsets = [0, 128], sizes = [4, 64], strides = [1, 1]} : vector<4x256xf32> to vector<4x64xf32>
    %265 = math.tanh %264 : vector<4x64xf32>
    %266 = vector.extract_strided_slice %251 {offsets = [0, 192], sizes = [4, 64], strides = [1, 1]} : vector<4x256xf32> to vector<4x64xf32>
    %267 = arith.negf %266 : vector<4x64xf32>
    %268 = math.exp %267 : vector<4x64xf32>
    %cst_92 = arith.constant 1.000000e+00 : f32
    %269 = vector.broadcast %cst_92 : f32 to vector<4x64xf32>
    %270 = arith.addf %269, %268 : vector<4x64xf32>
    %271 = arith.divf %269, %270 : vector<4x64xf32>
    %272 = arith.mulf %263, %239 : vector<4x64xf32>
    %273 = arith.mulf %257, %265 : vector<4x64xf32>
    %274 = arith.addf %272, %273 : vector<4x64xf32>
    %275 = math.tanh %274 : vector<4x64xf32>
    %276 = arith.mulf %271, %275 : vector<4x64xf32>
    %277 = vector.extract_strided_slice %276 {offsets = [0, 0], sizes = [4, 32], strides = [1, 1]} : vector<4x64xf32> to vector<4x32xf32>
    %278 = vector.shape_cast %277 : vector<4x32xf32> to vector<4x1x32xf32>
    %c0_93 = arith.constant 0 : index
    %c7_94 = arith.constant 7 : index
    %c0_95 = arith.constant 0 : index
    %279 = vector.load %arg2[%c0_93, %c7_94, %c0_95] : memref<4x8x32xf32, #tpu.memory_space<vmem>>, vector<4x1x32xf32>
    tpu.vector_store %arg2[%c0_93, %c7_94, %c0_95], %278 {strides = array<i32>} : memref<4x8x32xf32, #tpu.memory_space<vmem>>, vector<4x1x32xf32>,
    %280 = vector.extract_strided_slice %276 {offsets = [0, 32], sizes = [4, 32], strides = [1, 1]} : vector<4x64xf32> to vector<4x32xf32>
    %281 = vector.shape_cast %280 : vector<4x32xf32> to vector<4x1x32xf32>
    %c0_96 = arith.constant 0 : index
    %c0_97 = arith.constant 0 : index
    %c0_98 = arith.constant 0 : index
    %282 = vector.load %arg3[%c0_96, %c0_97, %c0_98] : memref<4x8x32xf32, #tpu.memory_space<vmem>>, vector<4x1x32xf32>
    tpu.vector_store %arg3[%c0_96, %c0_97, %c0_98], %281 {strides = array<i32>} : memref<4x8x32xf32, #tpu.memory_space<vmem>>, vector<4x1x32xf32>,
    return
  }
}

module attributes {stable_mosaic.version = 11 : i64} {
  func.func @_matching_kernel(%arg0: i32, %arg1: memref<2x8x32xf32, #tpu.memory_space<vmem>>, %arg2: memref<2x8x32xf32, #tpu.memory_space<vmem>>, %arg3: memref<2x8x32xf32, #tpu.memory_space<vmem>>, %arg4: memref<2x8x32xf32, #tpu.memory_space<vmem>>, %arg5: memref<2x128x32xf32, #tpu.memory_space<vmem>>, %arg6: memref<2x8x256xf32, #tpu.memory_space<vmem>>, %arg7: memref<2x8x256xf32, #tpu.memory_space<vmem>>) attributes {dimension_semantics = [#tpu.dimension_semantics<parallel>], iteration_bounds = array<i64: 1>, scalar_prefetch = 0 : i64, scratch_operands = 0 : i64, tpu.core_type = #tpu.core_type<tc>, window_params = [{transform_indices = @transform_0, window_bounds = array<i64: 2, 8, 32>}, {transform_indices = @transform_1, window_bounds = array<i64: 2, 8, 32>}, {transform_indices = @transform_2, window_bounds = array<i64: 2, 8, 32>}, {transform_indices = @transform_3, window_bounds = array<i64: 2, 8, 32>}, {pipeline_mode = #tpu.pipeline_mode<synchronous>, transform_indices = @transform_4, window_bounds = array<i64: 2, 128, 32>}, {transform_indices = @transform_5, window_bounds = array<i64: 2, 8, 256>}, {transform_indices = @transform_6, window_bounds = array<i64: 2, 8, 256>}]} {
    %c0 = arith.constant 0 : index
    %c0_0 = arith.constant 0 : index
    %c0_1 = arith.constant 0 : index
    %0 = vector.load %arg1[%c0, %c0_0, %c0_1] : memref<2x8x32xf32, #tpu.memory_space<vmem>>, vector<2x8x32xf32>
    %c0_2 = arith.constant 0 : index
    %c0_3 = arith.constant 0 : index
    %c0_4 = arith.constant 0 : index
    %1 = vector.load %arg2[%c0_2, %c0_3, %c0_4] : memref<2x8x32xf32, #tpu.memory_space<vmem>>, vector<2x8x32xf32>
    %c0_5 = arith.constant 0 : index
    %c0_6 = arith.constant 0 : index
    %c0_7 = arith.constant 0 : index
    %2 = vector.load %arg3[%c0_5, %c0_6, %c0_7] : memref<2x8x32xf32, #tpu.memory_space<vmem>>, vector<2x8x32xf32>
    %c0_8 = arith.constant 0 : index
    %c0_9 = arith.constant 0 : index
    %c0_10 = arith.constant 0 : index
    %3 = vector.load %arg4[%c0_8, %c0_9, %c0_10] : memref<2x8x32xf32, #tpu.memory_space<vmem>>, vector<2x8x32xf32>
    %c0_11 = arith.constant 0 : index
    %c0_12 = arith.constant 0 : index
    %c0_13 = arith.constant 0 : index
    %4 = vector.load %arg5[%c0_11, %c0_12, %c0_13] : memref<2x128x32xf32, #tpu.memory_space<vmem>>, vector<2x128x32xf32>
    %5 = vector.extract_strided_slice %4 {offsets = [0, 0, 0], sizes = [1, 128, 32], strides = [1, 1, 1]} : vector<2x128x32xf32> to vector<1x128x32xf32>
    %6 = vector.shape_cast %5 : vector<1x128x32xf32> to vector<128x32xf32>
    %7 = vector.extract_strided_slice %4 {offsets = [0, 0, 0], sizes = [1, 128, 32], strides = [1, 1, 1]} : vector<2x128x32xf32> to vector<1x128x32xf32>
    %8 = vector.shape_cast %7 : vector<1x128x32xf32> to vector<128x32xf32>
    %9 = arith.mulf %6, %8 : vector<128x32xf32>
    %10 = vector.extract_strided_slice %4 {offsets = [1, 0, 0], sizes = [1, 128, 32], strides = [1, 1, 1]} : vector<2x128x32xf32> to vector<1x128x32xf32>
    %11 = vector.shape_cast %10 : vector<1x128x32xf32> to vector<128x32xf32>
    %12 = vector.extract_strided_slice %4 {offsets = [1, 0, 0], sizes = [1, 128, 32], strides = [1, 1, 1]} : vector<2x128x32xf32> to vector<1x128x32xf32>
    %13 = vector.shape_cast %12 : vector<1x128x32xf32> to vector<128x32xf32>
    %14 = arith.mulf %11, %13 : vector<128x32xf32>
    %15 = vector.extract_strided_slice %0 {offsets = [0, 7, 0], sizes = [2, 1, 32], strides = [1, 1, 1]} : vector<2x8x32xf32> to vector<2x1x32xf32>
    %16 = vector.extract_strided_slice %2 {offsets = [0, 7, 0], sizes = [2, 1, 32], strides = [1, 1, 1]} : vector<2x8x32xf32> to vector<2x1x32xf32>
    %17 = vector.extract_strided_slice %9 {offsets = [0, 0], sizes = [32, 32], strides = [1, 1]} : vector<128x32xf32> to vector<32x32xf32>
    %18 = vector.extract_strided_slice %9 {offsets = [32, 0], sizes = [32, 32], strides = [1, 1]} : vector<128x32xf32> to vector<32x32xf32>
    %19 = vector.extract_strided_slice %9 {offsets = [64, 0], sizes = [32, 32], strides = [1, 1]} : vector<128x32xf32> to vector<32x32xf32>
    %20 = vector.extract_strided_slice %9 {offsets = [96, 0], sizes = [32, 32], strides = [1, 1]} : vector<128x32xf32> to vector<32x32xf32>
    %21 = arith.mulf %0, %0 : vector<2x8x32xf32>
    %22 = vector.shape_cast %21 : vector<2x8x32xf32> to vector<16x32xf32>
    %cst = arith.constant dense<0.000000e+00> : vector<16x128xf32>
    %23 = tpu.matmul %22, %9, %cst {dimension_numbers = #tpu.dot_dimension_numbers<[1], [1], [0], [0], [0, 0, 1, 0], [], []>} : vector<16x32xf32>, vector<128x32xf32>, vector<16x128xf32> -> vector<16x128xf32>
    %24 = math.sqrt %23 : vector<16x128xf32>
    %25 = vector.shape_cast %24 : vector<16x128xf32> to vector<2x8x128xf32>
    %26 = arith.mulf %2, %2 : vector<2x8x32xf32>
    %27 = vector.shape_cast %26 : vector<2x8x32xf32> to vector<16x32xf32>
    %cst_14 = arith.constant dense<0.000000e+00> : vector<16x128xf32>
    %28 = tpu.matmul %27, %9, %cst_14 {dimension_numbers = #tpu.dot_dimension_numbers<[1], [1], [0], [0], [0, 0, 1, 0], [], []>} : vector<16x32xf32>, vector<128x32xf32>, vector<16x128xf32> -> vector<16x128xf32>
    %29 = math.sqrt %28 : vector<16x128xf32>
    %30 = vector.shape_cast %29 : vector<16x128xf32> to vector<2x8x128xf32>
    %31 = vector.extract_strided_slice %25 {offsets = [0, 0, 0], sizes = [2, 8, 32], strides = [1, 1, 1]} : vector<2x8x128xf32> to vector<2x8x32xf32>
    %32 = vector.broadcast %16 : vector<2x1x32xf32> to vector<2x8x32xf32>
    %33 = arith.mulf %0, %32 : vector<2x8x32xf32>
    %34 = vector.shape_cast %33 : vector<2x8x32xf32> to vector<16x32xf32>
    %cst_15 = arith.constant dense<0.000000e+00> : vector<16x32xf32>
    %35 = tpu.matmul %34, %17, %cst_15 {dimension_numbers = #tpu.dot_dimension_numbers<[1], [1], [0], [0], [0, 0, 1, 0], [], []>} : vector<16x32xf32>, vector<32x32xf32>, vector<16x32xf32> -> vector<16x32xf32>
    %36 = vector.shape_cast %35 : vector<16x32xf32> to vector<2x8x32xf32>
    %37 = arith.mulf %16, %16 : vector<2x1x32xf32>
    %38 = vector.shape_cast %37 : vector<2x1x32xf32> to vector<2x32xf32>
    %cst_16 = arith.constant dense<0.000000e+00> : vector<2x32xf32>
    %39 = tpu.matmul %38, %17, %cst_16 {dimension_numbers = #tpu.dot_dimension_numbers<[1], [1], [0], [0], [0, 0, 1, 0], [], []>} : vector<2x32xf32>, vector<32x32xf32>, vector<2x32xf32> -> vector<2x32xf32>
    %40 = math.sqrt %39 : vector<2x32xf32>
    %41 = vector.shape_cast %40 : vector<2x32xf32> to vector<2x1x32xf32>
    %42 = vector.broadcast %41 : vector<2x1x32xf32> to vector<2x8x32xf32>
    %43 = arith.mulf %31, %42 : vector<2x8x32xf32>
    %cst_17 = arith.constant 9.99999993E-9 : f32
    %44 = vector.broadcast %cst_17 : f32 to vector<2x8x32xf32>
    %45 = arith.maximumf %43, %44 : vector<2x8x32xf32>
    %46 = tpu.reciprocal %45 {approx = true} : vector<2x8x32xf32> -> vector<2x8x32xf32>
    %47 = arith.mulf %36, %46 : vector<2x8x32xf32>
    %48 = vector.extract_strided_slice %30 {offsets = [0, 0, 0], sizes = [2, 8, 32], strides = [1, 1, 1]} : vector<2x8x128xf32> to vector<2x8x32xf32>
    %49 = vector.broadcast %15 : vector<2x1x32xf32> to vector<2x8x32xf32>
    %50 = arith.mulf %2, %49 : vector<2x8x32xf32>
    %51 = vector.shape_cast %50 : vector<2x8x32xf32> to vector<16x32xf32>
    %cst_18 = arith.constant dense<0.000000e+00> : vector<16x32xf32>
    %52 = tpu.matmul %51, %17, %cst_18 {dimension_numbers = #tpu.dot_dimension_numbers<[1], [1], [0], [0], [0, 0, 1, 0], [], []>} : vector<16x32xf32>, vector<32x32xf32>, vector<16x32xf32> -> vector<16x32xf32>
    %53 = vector.shape_cast %52 : vector<16x32xf32> to vector<2x8x32xf32>
    %54 = arith.mulf %15, %15 : vector<2x1x32xf32>
    %55 = vector.shape_cast %54 : vector<2x1x32xf32> to vector<2x32xf32>
    %cst_19 = arith.constant dense<0.000000e+00> : vector<2x32xf32>
    %56 = tpu.matmul %55, %17, %cst_19 {dimension_numbers = #tpu.dot_dimension_numbers<[1], [1], [0], [0], [0, 0, 1, 0], [], []>} : vector<2x32xf32>, vector<32x32xf32>, vector<2x32xf32> -> vector<2x32xf32>
    %57 = math.sqrt %56 : vector<2x32xf32>
    %58 = vector.shape_cast %57 : vector<2x32xf32> to vector<2x1x32xf32>
    %59 = vector.broadcast %58 : vector<2x1x32xf32> to vector<2x8x32xf32>
    %60 = arith.mulf %48, %59 : vector<2x8x32xf32>
    %cst_20 = arith.constant 9.99999993E-9 : f32
    %61 = vector.broadcast %cst_20 : f32 to vector<2x8x32xf32>
    %62 = arith.maximumf %60, %61 : vector<2x8x32xf32>
    %63 = tpu.reciprocal %62 {approx = true} : vector<2x8x32xf32> -> vector<2x8x32xf32>
    %64 = arith.mulf %53, %63 : vector<2x8x32xf32>
    %65 = vector.extract_strided_slice %25 {offsets = [0, 0, 32], sizes = [2, 8, 32], strides = [1, 1, 1]} : vector<2x8x128xf32> to vector<2x8x32xf32>
    %66 = vector.extract_strided_slice %30 {offsets = [0, 0, 32], sizes = [2, 8, 32], strides = [1, 1, 1]} : vector<2x8x128xf32> to vector<2x8x32xf32>
    %cst_21 = arith.constant 0xFF800000 : f32
    %67 = vector.broadcast %cst_21 : f32 to vector<2x8x32xf32>
    %68 = vector.shape_cast %0 : vector<2x8x32xf32> to vector<2x8x1x32xf32>
    %69 = vector.shape_cast %2 : vector<2x8x32xf32> to vector<2x1x8x32xf32>
    %70 = vector.broadcast %68 : vector<2x8x1x32xf32> to vector<2x8x8x32xf32>
    %71 = vector.broadcast %69 : vector<2x1x8x32xf32> to vector<2x8x8x32xf32>
    %72 = arith.mulf %70, %71 : vector<2x8x8x32xf32>
    %73 = vector.shape_cast %72 : vector<2x8x8x32xf32> to vector<128x32xf32>
    %cst_22 = arith.constant dense<0.000000e+00> : vector<128x32xf32>
    %74 = tpu.matmul %73, %18, %cst_22 {dimension_numbers = #tpu.dot_dimension_numbers<[1], [1], [0], [0], [0, 0, 1, 0], [], []>} : vector<128x32xf32>, vector<32x32xf32>, vector<128x32xf32> -> vector<128x32xf32>
    %75 = vector.shape_cast %74 : vector<128x32xf32> to vector<2x8x8x32xf32>
    %76 = vector.shape_cast %65 : vector<2x8x32xf32> to vector<2x8x1x32xf32>
    %77 = vector.shape_cast %66 : vector<2x8x32xf32> to vector<2x1x8x32xf32>
    %78 = vector.broadcast %76 : vector<2x8x1x32xf32> to vector<2x8x8x32xf32>
    %79 = vector.broadcast %77 : vector<2x1x8x32xf32> to vector<2x8x8x32xf32>
    %80 = arith.mulf %78, %79 : vector<2x8x8x32xf32>
    %cst_23 = arith.constant 9.99999993E-9 : f32
    %81 = vector.broadcast %cst_23 : f32 to vector<2x8x8x32xf32>
    %82 = arith.maximumf %80, %81 : vector<2x8x8x32xf32>
    %83 = tpu.reciprocal %82 {approx = true} : vector<2x8x8x32xf32> -> vector<2x8x8x32xf32>
    %84 = arith.mulf %75, %83 : vector<2x8x8x32xf32>
    %cst_24 = arith.constant dense<0xFF800000> : vector<2x8x32xf32>
    %85 = vector.multi_reduction <maximumf>, %84, %cst_24 [2] : vector<2x8x8x32xf32> to vector<2x8x32xf32>
    %86 = arith.maximumf %67, %85 : vector<2x8x32xf32>
    %cst_25 = arith.constant dense<0xFF800000> : vector<2x8x32xf32>
    %87 = vector.multi_reduction <maximumf>, %84, %cst_25 [1] : vector<2x8x8x32xf32> to vector<2x8x32xf32>
    %88 = arith.mulf %0, %0 : vector<2x8x32xf32>
    %cst_26 = arith.constant dense<0.000000e+00> : vector<2x8xf32>
    %89 = vector.multi_reduction <add>, %88, %cst_26 [2] : vector<2x8x32xf32> to vector<2x8xf32>
    %90 = math.sqrt %89 : vector<2x8xf32>
    %91 = arith.mulf %2, %2 : vector<2x8x32xf32>
    %cst_27 = arith.constant dense<0.000000e+00> : vector<2x8xf32>
    %92 = vector.multi_reduction <add>, %91, %cst_27 [2] : vector<2x8x32xf32> to vector<2x8xf32>
    %93 = math.sqrt %92 : vector<2x8xf32>
    "tpu.trace_start"() <{level = 10 : i32, message = "bph,bqh->bpq"}> : () -> ()
    %cst_28 = arith.constant dense<0.000000e+00> : vector<2x8x8xf32>
    %94 = tpu.matmul %0, %2, %cst_28 {dimension_numbers = #tpu.dot_dimension_numbers<[2], [2], [1], [1], [0, 0, 0, 1, 1, 1], [0], [0]>} : vector<2x8x32xf32>, vector<2x8x32xf32>, vector<2x8x8xf32> -> vector<2x8x8xf32>
    "tpu.trace_stop"() : () -> ()
    "tpu.trace_start"() <{level = 10 : i32, message = "bqh,bph->bqp"}> : () -> ()
    %cst_29 = arith.constant dense<0.000000e+00> : vector<2x8x8xf32>
    %95 = tpu.matmul %2, %0, %cst_29 {dimension_numbers = #tpu.dot_dimension_numbers<[2], [2], [1], [1], [0, 0, 0, 1, 1, 1], [0], [0]>} : vector<2x8x32xf32>, vector<2x8x32xf32>, vector<2x8x8xf32> -> vector<2x8x8xf32>
    "tpu.trace_stop"() : () -> ()
    %96 = vector.shape_cast %90 : vector<2x8xf32> to vector<2x8x1xf32>
    %97 = vector.shape_cast %93 : vector<2x8xf32> to vector<2x1x8xf32>
    %98 = vector.broadcast %96 : vector<2x8x1xf32> to vector<2x8x8xf32>
    %99 = vector.broadcast %97 : vector<2x1x8xf32> to vector<2x8x8xf32>
    %100 = arith.mulf %98, %99 : vector<2x8x8xf32>
    %cst_30 = arith.constant 9.99999993E-9 : f32
    %101 = vector.broadcast %cst_30 : f32 to vector<2x8x8xf32>
    %102 = arith.maximumf %100, %101 : vector<2x8x8xf32>
    %103 = tpu.reciprocal %102 {approx = true} : vector<2x8x8xf32> -> vector<2x8x8xf32>
    %104 = arith.mulf %94, %103 : vector<2x8x8xf32>
    %105 = vector.shape_cast %93 : vector<2x8xf32> to vector<2x8x1xf32>
    %106 = vector.shape_cast %90 : vector<2x8xf32> to vector<2x1x8xf32>
    %107 = vector.broadcast %105 : vector<2x8x1xf32> to vector<2x8x8xf32>
    %108 = vector.broadcast %106 : vector<2x1x8xf32> to vector<2x8x8xf32>
    %109 = arith.mulf %107, %108 : vector<2x8x8xf32>
    %cst_31 = arith.constant 9.99999993E-9 : f32
    %110 = vector.broadcast %cst_31 : f32 to vector<2x8x8xf32>
    %111 = arith.maximumf %109, %110 : vector<2x8x8xf32>
    %112 = tpu.reciprocal %111 {approx = true} : vector<2x8x8xf32> -> vector<2x8x8xf32>
    %113 = arith.mulf %95, %112 : vector<2x8x8xf32>
    "tpu.trace_start"() <{level = 10 : i32, message = "bpq,bqh->bph"}> : () -> ()
    %cst_32 = arith.constant dense<0.000000e+00> : vector<2x8x32xf32>
    %114 = tpu.matmul %104, %2, %cst_32 {dimension_numbers = #tpu.dot_dimension_numbers<[2], [1], [1], [2], [0, 0, 0, 1, 1, 2], [0], [0]>} : vector<2x8x8xf32>, vector<2x8x32xf32>, vector<2x8x32xf32> -> vector<2x8x32xf32>
    "tpu.trace_stop"() : () -> ()
    %cst_33 = arith.constant dense<0.000000e+00> : vector<2x8xf32>
    %115 = vector.multi_reduction <add>, %104, %cst_33 [2] : vector<2x8x8xf32> to vector<2x8xf32>
    %116 = vector.shape_cast %115 : vector<2x8xf32> to vector<2x8x1xf32>
    %cst_34 = arith.constant 9.99999993E-9 : f32
    %117 = vector.broadcast %cst_34 : f32 to vector<2x8x1xf32>
    %118 = arith.maximumf %116, %117 : vector<2x8x1xf32>
    %119 = tpu.reciprocal %118 {approx = true} : vector<2x8x1xf32> -> vector<2x8x1xf32>
    %120 = vector.broadcast %119 : vector<2x8x1xf32> to vector<2x8x32xf32>
    %121 = arith.mulf %114, %120 : vector<2x8x32xf32>
    "tpu.trace_start"() <{level = 10 : i32, message = "bqp,bph->bqh"}> : () -> ()
    %cst_35 = arith.constant dense<0.000000e+00> : vector<2x8x32xf32>
    %122 = tpu.matmul %113, %0, %cst_35 {dimension_numbers = #tpu.dot_dimension_numbers<[2], [1], [1], [2], [0, 0, 0, 1, 1, 2], [0], [0]>} : vector<2x8x8xf32>, vector<2x8x32xf32>, vector<2x8x32xf32> -> vector<2x8x32xf32>
    "tpu.trace_stop"() : () -> ()
    %cst_36 = arith.constant dense<0.000000e+00> : vector<2x8xf32>
    %123 = vector.multi_reduction <add>, %113, %cst_36 [2] : vector<2x8x8xf32> to vector<2x8xf32>
    %124 = vector.shape_cast %123 : vector<2x8xf32> to vector<2x8x1xf32>
    %cst_37 = arith.constant 9.99999993E-9 : f32
    %125 = vector.broadcast %cst_37 : f32 to vector<2x8x1xf32>
    %126 = arith.maximumf %124, %125 : vector<2x8x1xf32>
    %127 = tpu.reciprocal %126 {approx = true} : vector<2x8x1xf32> -> vector<2x8x1xf32>
    %128 = vector.broadcast %127 : vector<2x8x1xf32> to vector<2x8x32xf32>
    %129 = arith.mulf %122, %128 : vector<2x8x32xf32>
    %130 = vector.shape_cast %104 : vector<2x8x8xf32> to vector<2x8x8x1xf32>
    %131 = vector.shape_cast %2 : vector<2x8x32xf32> to vector<2x1x8x32xf32>
    %132 = vector.broadcast %130 : vector<2x8x8x1xf32> to vector<2x8x8x32xf32>
    %133 = vector.broadcast %131 : vector<2x1x8x32xf32> to vector<2x8x8x32xf32>
    %134 = arith.mulf %132, %133 : vector<2x8x8x32xf32>
    %cst_38 = arith.constant dense<0xFF800000> : vector<2x8x32xf32>
    %135 = vector.multi_reduction <maximumf>, %134, %cst_38 [2] : vector<2x8x8x32xf32> to vector<2x8x32xf32>
    %136 = vector.shape_cast %113 : vector<2x8x8xf32> to vector<2x8x8x1xf32>
    %137 = vector.shape_cast %0 : vector<2x8x32xf32> to vector<2x1x8x32xf32>
    %138 = vector.broadcast %136 : vector<2x8x8x1xf32> to vector<2x8x8x32xf32>
    %139 = vector.broadcast %137 : vector<2x1x8x32xf32> to vector<2x8x8x32xf32>
    %140 = arith.mulf %138, %139 : vector<2x8x8x32xf32>
    %cst_39 = arith.constant dense<0xFF800000> : vector<2x8x32xf32>
    %141 = vector.multi_reduction <maximumf>, %140, %cst_39 [2] : vector<2x8x8x32xf32> to vector<2x8x32xf32>
    %142 = vector.extract_strided_slice %25 {offsets = [0, 0, 64], sizes = [2, 8, 32], strides = [1, 1, 1]} : vector<2x8x128xf32> to vector<2x8x32xf32>
    %143 = arith.mulf %0, %121 : vector<2x8x32xf32>
    %144 = vector.shape_cast %143 : vector<2x8x32xf32> to vector<16x32xf32>
    %cst_40 = arith.constant dense<0.000000e+00> : vector<16x32xf32>
    %145 = tpu.matmul %144, %19, %cst_40 {dimension_numbers = #tpu.dot_dimension_numbers<[1], [1], [0], [0], [0, 0, 1, 0], [], []>} : vector<16x32xf32>, vector<32x32xf32>, vector<16x32xf32> -> vector<16x32xf32>
    %146 = vector.shape_cast %145 : vector<16x32xf32> to vector<2x8x32xf32>
    %147 = arith.mulf %121, %121 : vector<2x8x32xf32>
    %148 = vector.shape_cast %147 : vector<2x8x32xf32> to vector<16x32xf32>
    %cst_41 = arith.constant dense<0.000000e+00> : vector<16x32xf32>
    %149 = tpu.matmul %148, %19, %cst_41 {dimension_numbers = #tpu.dot_dimension_numbers<[1], [1], [0], [0], [0, 0, 1, 0], [], []>} : vector<16x32xf32>, vector<32x32xf32>, vector<16x32xf32> -> vector<16x32xf32>
    %150 = math.sqrt %149 : vector<16x32xf32>
    %151 = vector.shape_cast %150 : vector<16x32xf32> to vector<2x8x32xf32>
    %152 = arith.mulf %142, %151 : vector<2x8x32xf32>
    %cst_42 = arith.constant 9.99999993E-9 : f32
    %153 = vector.broadcast %cst_42 : f32 to vector<2x8x32xf32>
    %154 = arith.maximumf %152, %153 : vector<2x8x32xf32>
    %155 = tpu.reciprocal %154 {approx = true} : vector<2x8x32xf32> -> vector<2x8x32xf32>
    %156 = arith.mulf %146, %155 : vector<2x8x32xf32>
    %157 = vector.extract_strided_slice %30 {offsets = [0, 0, 64], sizes = [2, 8, 32], strides = [1, 1, 1]} : vector<2x8x128xf32> to vector<2x8x32xf32>
    %158 = arith.mulf %2, %129 : vector<2x8x32xf32>
    %159 = vector.shape_cast %158 : vector<2x8x32xf32> to vector<16x32xf32>
    %cst_43 = arith.constant dense<0.000000e+00> : vector<16x32xf32>
    %160 = tpu.matmul %159, %19, %cst_43 {dimension_numbers = #tpu.dot_dimension_numbers<[1], [1], [0], [0], [0, 0, 1, 0], [], []>} : vector<16x32xf32>, vector<32x32xf32>, vector<16x32xf32> -> vector<16x32xf32>
    %161 = vector.shape_cast %160 : vector<16x32xf32> to vector<2x8x32xf32>
    %162 = arith.mulf %129, %129 : vector<2x8x32xf32>
    %163 = vector.shape_cast %162 : vector<2x8x32xf32> to vector<16x32xf32>
    %cst_44 = arith.constant dense<0.000000e+00> : vector<16x32xf32>
    %164 = tpu.matmul %163, %19, %cst_44 {dimension_numbers = #tpu.dot_dimension_numbers<[1], [1], [0], [0], [0, 0, 1, 0], [], []>} : vector<16x32xf32>, vector<32x32xf32>, vector<16x32xf32> -> vector<16x32xf32>
    %165 = math.sqrt %164 : vector<16x32xf32>
    %166 = vector.shape_cast %165 : vector<16x32xf32> to vector<2x8x32xf32>
    %167 = arith.mulf %157, %166 : vector<2x8x32xf32>
    %cst_45 = arith.constant 9.99999993E-9 : f32
    %168 = vector.broadcast %cst_45 : f32 to vector<2x8x32xf32>
    %169 = arith.maximumf %167, %168 : vector<2x8x32xf32>
    %170 = tpu.reciprocal %169 {approx = true} : vector<2x8x32xf32> -> vector<2x8x32xf32>
    %171 = arith.mulf %161, %170 : vector<2x8x32xf32>
    %172 = vector.extract_strided_slice %25 {offsets = [0, 0, 96], sizes = [2, 8, 32], strides = [1, 1, 1]} : vector<2x8x128xf32> to vector<2x8x32xf32>
    %173 = arith.mulf %0, %135 : vector<2x8x32xf32>
    %174 = vector.shape_cast %173 : vector<2x8x32xf32> to vector<16x32xf32>
    %cst_46 = arith.constant dense<0.000000e+00> : vector<16x32xf32>
    %175 = tpu.matmul %174, %20, %cst_46 {dimension_numbers = #tpu.dot_dimension_numbers<[1], [1], [0], [0], [0, 0, 1, 0], [], []>} : vector<16x32xf32>, vector<32x32xf32>, vector<16x32xf32> -> vector<16x32xf32>
    %176 = vector.shape_cast %175 : vector<16x32xf32> to vector<2x8x32xf32>
    %177 = arith.mulf %135, %135 : vector<2x8x32xf32>
    %178 = vector.shape_cast %177 : vector<2x8x32xf32> to vector<16x32xf32>
    %cst_47 = arith.constant dense<0.000000e+00> : vector<16x32xf32>
    %179 = tpu.matmul %178, %20, %cst_47 {dimension_numbers = #tpu.dot_dimension_numbers<[1], [1], [0], [0], [0, 0, 1, 0], [], []>} : vector<16x32xf32>, vector<32x32xf32>, vector<16x32xf32> -> vector<16x32xf32>
    %180 = math.sqrt %179 : vector<16x32xf32>
    %181 = vector.shape_cast %180 : vector<16x32xf32> to vector<2x8x32xf32>
    %182 = arith.mulf %172, %181 : vector<2x8x32xf32>
    %cst_48 = arith.constant 9.99999993E-9 : f32
    %183 = vector.broadcast %cst_48 : f32 to vector<2x8x32xf32>
    %184 = arith.maximumf %182, %183 : vector<2x8x32xf32>
    %185 = tpu.reciprocal %184 {approx = true} : vector<2x8x32xf32> -> vector<2x8x32xf32>
    %186 = arith.mulf %176, %185 : vector<2x8x32xf32>
    %187 = vector.extract_strided_slice %30 {offsets = [0, 0, 96], sizes = [2, 8, 32], strides = [1, 1, 1]} : vector<2x8x128xf32> to vector<2x8x32xf32>
    %188 = arith.mulf %2, %141 : vector<2x8x32xf32>
    %189 = vector.shape_cast %188 : vector<2x8x32xf32> to vector<16x32xf32>
    %cst_49 = arith.constant dense<0.000000e+00> : vector<16x32xf32>
    %190 = tpu.matmul %189, %20, %cst_49 {dimension_numbers = #tpu.dot_dimension_numbers<[1], [1], [0], [0], [0, 0, 1, 0], [], []>} : vector<16x32xf32>, vector<32x32xf32>, vector<16x32xf32> -> vector<16x32xf32>
    %191 = vector.shape_cast %190 : vector<16x32xf32> to vector<2x8x32xf32>
    %192 = arith.mulf %141, %141 : vector<2x8x32xf32>
    %193 = vector.shape_cast %192 : vector<2x8x32xf32> to vector<16x32xf32>
    %cst_50 = arith.constant dense<0.000000e+00> : vector<16x32xf32>
    %194 = tpu.matmul %193, %20, %cst_50 {dimension_numbers = #tpu.dot_dimension_numbers<[1], [1], [0], [0], [0, 0, 1, 0], [], []>} : vector<16x32xf32>, vector<32x32xf32>, vector<16x32xf32> -> vector<16x32xf32>
    %195 = math.sqrt %194 : vector<16x32xf32>
    %196 = vector.shape_cast %195 : vector<16x32xf32> to vector<2x8x32xf32>
    %197 = arith.mulf %187, %196 : vector<2x8x32xf32>
    %cst_51 = arith.constant 9.99999993E-9 : f32
    %198 = vector.broadcast %cst_51 : f32 to vector<2x8x32xf32>
    %199 = arith.maximumf %197, %198 : vector<2x8x32xf32>
    %200 = tpu.reciprocal %199 {approx = true} : vector<2x8x32xf32> -> vector<2x8x32xf32>
    %201 = arith.mulf %191, %200 : vector<2x8x32xf32>
    %202 = vector.extract_strided_slice %1 {offsets = [0, 0, 0], sizes = [2, 1, 32], strides = [1, 1, 1]} : vector<2x8x32xf32> to vector<2x1x32xf32>
    %203 = vector.extract_strided_slice %3 {offsets = [0, 0, 0], sizes = [2, 1, 32], strides = [1, 1, 1]} : vector<2x8x32xf32> to vector<2x1x32xf32>
    %204 = vector.extract_strided_slice %14 {offsets = [0, 0], sizes = [32, 32], strides = [1, 1]} : vector<128x32xf32> to vector<32x32xf32>
    %205 = vector.extract_strided_slice %14 {offsets = [32, 0], sizes = [32, 32], strides = [1, 1]} : vector<128x32xf32> to vector<32x32xf32>
    %206 = vector.extract_strided_slice %14 {offsets = [64, 0], sizes = [32, 32], strides = [1, 1]} : vector<128x32xf32> to vector<32x32xf32>
    %207 = vector.extract_strided_slice %14 {offsets = [96, 0], sizes = [32, 32], strides = [1, 1]} : vector<128x32xf32> to vector<32x32xf32>
    %208 = arith.mulf %1, %1 : vector<2x8x32xf32>
    %209 = vector.shape_cast %208 : vector<2x8x32xf32> to vector<16x32xf32>
    %cst_52 = arith.constant dense<0.000000e+00> : vector<16x128xf32>
    %210 = tpu.matmul %209, %14, %cst_52 {dimension_numbers = #tpu.dot_dimension_numbers<[1], [1], [0], [0], [0, 0, 1, 0], [], []>} : vector<16x32xf32>, vector<128x32xf32>, vector<16x128xf32> -> vector<16x128xf32>
    %211 = math.sqrt %210 : vector<16x128xf32>
    %212 = vector.shape_cast %211 : vector<16x128xf32> to vector<2x8x128xf32>
    %213 = arith.mulf %3, %3 : vector<2x8x32xf32>
    %214 = vector.shape_cast %213 : vector<2x8x32xf32> to vector<16x32xf32>
    %cst_53 = arith.constant dense<0.000000e+00> : vector<16x128xf32>
    %215 = tpu.matmul %214, %14, %cst_53 {dimension_numbers = #tpu.dot_dimension_numbers<[1], [1], [0], [0], [0, 0, 1, 0], [], []>} : vector<16x32xf32>, vector<128x32xf32>, vector<16x128xf32> -> vector<16x128xf32>
    %216 = math.sqrt %215 : vector<16x128xf32>
    %217 = vector.shape_cast %216 : vector<16x128xf32> to vector<2x8x128xf32>
    %218 = vector.extract_strided_slice %212 {offsets = [0, 0, 0], sizes = [2, 8, 32], strides = [1, 1, 1]} : vector<2x8x128xf32> to vector<2x8x32xf32>
    %219 = vector.broadcast %203 : vector<2x1x32xf32> to vector<2x8x32xf32>
    %220 = arith.mulf %1, %219 : vector<2x8x32xf32>
    %221 = vector.shape_cast %220 : vector<2x8x32xf32> to vector<16x32xf32>
    %cst_54 = arith.constant dense<0.000000e+00> : vector<16x32xf32>
    %222 = tpu.matmul %221, %204, %cst_54 {dimension_numbers = #tpu.dot_dimension_numbers<[1], [1], [0], [0], [0, 0, 1, 0], [], []>} : vector<16x32xf32>, vector<32x32xf32>, vector<16x32xf32> -> vector<16x32xf32>
    %223 = vector.shape_cast %222 : vector<16x32xf32> to vector<2x8x32xf32>
    %224 = arith.mulf %203, %203 : vector<2x1x32xf32>
    %225 = vector.shape_cast %224 : vector<2x1x32xf32> to vector<2x32xf32>
    %cst_55 = arith.constant dense<0.000000e+00> : vector<2x32xf32>
    %226 = tpu.matmul %225, %204, %cst_55 {dimension_numbers = #tpu.dot_dimension_numbers<[1], [1], [0], [0], [0, 0, 1, 0], [], []>} : vector<2x32xf32>, vector<32x32xf32>, vector<2x32xf32> -> vector<2x32xf32>
    %227 = math.sqrt %226 : vector<2x32xf32>
    %228 = vector.shape_cast %227 : vector<2x32xf32> to vector<2x1x32xf32>
    %229 = vector.broadcast %228 : vector<2x1x32xf32> to vector<2x8x32xf32>
    %230 = arith.mulf %218, %229 : vector<2x8x32xf32>
    %cst_56 = arith.constant 9.99999993E-9 : f32
    %231 = vector.broadcast %cst_56 : f32 to vector<2x8x32xf32>
    %232 = arith.maximumf %230, %231 : vector<2x8x32xf32>
    %233 = tpu.reciprocal %232 {approx = true} : vector<2x8x32xf32> -> vector<2x8x32xf32>
    %234 = arith.mulf %223, %233 : vector<2x8x32xf32>
    %235 = vector.extract_strided_slice %217 {offsets = [0, 0, 0], sizes = [2, 8, 32], strides = [1, 1, 1]} : vector<2x8x128xf32> to vector<2x8x32xf32>
    %236 = vector.broadcast %202 : vector<2x1x32xf32> to vector<2x8x32xf32>
    %237 = arith.mulf %3, %236 : vector<2x8x32xf32>
    %238 = vector.shape_cast %237 : vector<2x8x32xf32> to vector<16x32xf32>
    %cst_57 = arith.constant dense<0.000000e+00> : vector<16x32xf32>
    %239 = tpu.matmul %238, %204, %cst_57 {dimension_numbers = #tpu.dot_dimension_numbers<[1], [1], [0], [0], [0, 0, 1, 0], [], []>} : vector<16x32xf32>, vector<32x32xf32>, vector<16x32xf32> -> vector<16x32xf32>
    %240 = vector.shape_cast %239 : vector<16x32xf32> to vector<2x8x32xf32>
    %241 = arith.mulf %202, %202 : vector<2x1x32xf32>
    %242 = vector.shape_cast %241 : vector<2x1x32xf32> to vector<2x32xf32>
    %cst_58 = arith.constant dense<0.000000e+00> : vector<2x32xf32>
    %243 = tpu.matmul %242, %204, %cst_58 {dimension_numbers = #tpu.dot_dimension_numbers<[1], [1], [0], [0], [0, 0, 1, 0], [], []>} : vector<2x32xf32>, vector<32x32xf32>, vector<2x32xf32> -> vector<2x32xf32>
    %244 = math.sqrt %243 : vector<2x32xf32>
    %245 = vector.shape_cast %244 : vector<2x32xf32> to vector<2x1x32xf32>
    %246 = vector.broadcast %245 : vector<2x1x32xf32> to vector<2x8x32xf32>
    %247 = arith.mulf %235, %246 : vector<2x8x32xf32>
    %cst_59 = arith.constant 9.99999993E-9 : f32
    %248 = vector.broadcast %cst_59 : f32 to vector<2x8x32xf32>
    %249 = arith.maximumf %247, %248 : vector<2x8x32xf32>
    %250 = tpu.reciprocal %249 {approx = true} : vector<2x8x32xf32> -> vector<2x8x32xf32>
    %251 = arith.mulf %240, %250 : vector<2x8x32xf32>
    %252 = vector.extract_strided_slice %212 {offsets = [0, 0, 32], sizes = [2, 8, 32], strides = [1, 1, 1]} : vector<2x8x128xf32> to vector<2x8x32xf32>
    %253 = vector.extract_strided_slice %217 {offsets = [0, 0, 32], sizes = [2, 8, 32], strides = [1, 1, 1]} : vector<2x8x128xf32> to vector<2x8x32xf32>
    %cst_60 = arith.constant 0xFF800000 : f32
    %254 = vector.broadcast %cst_60 : f32 to vector<2x8x32xf32>
    %255 = vector.shape_cast %1 : vector<2x8x32xf32> to vector<2x8x1x32xf32>
    %256 = vector.shape_cast %3 : vector<2x8x32xf32> to vector<2x1x8x32xf32>
    %257 = vector.broadcast %255 : vector<2x8x1x32xf32> to vector<2x8x8x32xf32>
    %258 = vector.broadcast %256 : vector<2x1x8x32xf32> to vector<2x8x8x32xf32>
    %259 = arith.mulf %257, %258 : vector<2x8x8x32xf32>
    %260 = vector.shape_cast %259 : vector<2x8x8x32xf32> to vector<128x32xf32>
    %cst_61 = arith.constant dense<0.000000e+00> : vector<128x32xf32>
    %261 = tpu.matmul %260, %205, %cst_61 {dimension_numbers = #tpu.dot_dimension_numbers<[1], [1], [0], [0], [0, 0, 1, 0], [], []>} : vector<128x32xf32>, vector<32x32xf32>, vector<128x32xf32> -> vector<128x32xf32>
    %262 = vector.shape_cast %261 : vector<128x32xf32> to vector<2x8x8x32xf32>
    %263 = vector.shape_cast %252 : vector<2x8x32xf32> to vector<2x8x1x32xf32>
    %264 = vector.shape_cast %253 : vector<2x8x32xf32> to vector<2x1x8x32xf32>
    %265 = vector.broadcast %263 : vector<2x8x1x32xf32> to vector<2x8x8x32xf32>
    %266 = vector.broadcast %264 : vector<2x1x8x32xf32> to vector<2x8x8x32xf32>
    %267 = arith.mulf %265, %266 : vector<2x8x8x32xf32>
    %cst_62 = arith.constant 9.99999993E-9 : f32
    %268 = vector.broadcast %cst_62 : f32 to vector<2x8x8x32xf32>
    %269 = arith.maximumf %267, %268 : vector<2x8x8x32xf32>
    %270 = tpu.reciprocal %269 {approx = true} : vector<2x8x8x32xf32> -> vector<2x8x8x32xf32>
    %271 = arith.mulf %262, %270 : vector<2x8x8x32xf32>
    %cst_63 = arith.constant dense<0xFF800000> : vector<2x8x32xf32>
    %272 = vector.multi_reduction <maximumf>, %271, %cst_63 [2] : vector<2x8x8x32xf32> to vector<2x8x32xf32>
    %273 = arith.maximumf %254, %272 : vector<2x8x32xf32>
    %cst_64 = arith.constant dense<0xFF800000> : vector<2x8x32xf32>
    %274 = vector.multi_reduction <maximumf>, %271, %cst_64 [1] : vector<2x8x8x32xf32> to vector<2x8x32xf32>
    %275 = arith.mulf %1, %1 : vector<2x8x32xf32>
    %cst_65 = arith.constant dense<0.000000e+00> : vector<2x8xf32>
    %276 = vector.multi_reduction <add>, %275, %cst_65 [2] : vector<2x8x32xf32> to vector<2x8xf32>
    %277 = math.sqrt %276 : vector<2x8xf32>
    %278 = arith.mulf %3, %3 : vector<2x8x32xf32>
    %cst_66 = arith.constant dense<0.000000e+00> : vector<2x8xf32>
    %279 = vector.multi_reduction <add>, %278, %cst_66 [2] : vector<2x8x32xf32> to vector<2x8xf32>
    %280 = math.sqrt %279 : vector<2x8xf32>
    "tpu.trace_start"() <{level = 10 : i32, message = "bph,bqh->bpq"}> : () -> ()
    %cst_67 = arith.constant dense<0.000000e+00> : vector<2x8x8xf32>
    %281 = tpu.matmul %1, %3, %cst_67 {dimension_numbers = #tpu.dot_dimension_numbers<[2], [2], [1], [1], [0, 0, 0, 1, 1, 1], [0], [0]>} : vector<2x8x32xf32>, vector<2x8x32xf32>, vector<2x8x8xf32> -> vector<2x8x8xf32>
    "tpu.trace_stop"() : () -> ()
    "tpu.trace_start"() <{level = 10 : i32, message = "bqh,bph->bqp"}> : () -> ()
    %cst_68 = arith.constant dense<0.000000e+00> : vector<2x8x8xf32>
    %282 = tpu.matmul %3, %1, %cst_68 {dimension_numbers = #tpu.dot_dimension_numbers<[2], [2], [1], [1], [0, 0, 0, 1, 1, 1], [0], [0]>} : vector<2x8x32xf32>, vector<2x8x32xf32>, vector<2x8x8xf32> -> vector<2x8x8xf32>
    "tpu.trace_stop"() : () -> ()
    %283 = vector.shape_cast %277 : vector<2x8xf32> to vector<2x8x1xf32>
    %284 = vector.shape_cast %280 : vector<2x8xf32> to vector<2x1x8xf32>
    %285 = vector.broadcast %283 : vector<2x8x1xf32> to vector<2x8x8xf32>
    %286 = vector.broadcast %284 : vector<2x1x8xf32> to vector<2x8x8xf32>
    %287 = arith.mulf %285, %286 : vector<2x8x8xf32>
    %cst_69 = arith.constant 9.99999993E-9 : f32
    %288 = vector.broadcast %cst_69 : f32 to vector<2x8x8xf32>
    %289 = arith.maximumf %287, %288 : vector<2x8x8xf32>
    %290 = tpu.reciprocal %289 {approx = true} : vector<2x8x8xf32> -> vector<2x8x8xf32>
    %291 = arith.mulf %281, %290 : vector<2x8x8xf32>
    %292 = vector.shape_cast %280 : vector<2x8xf32> to vector<2x8x1xf32>
    %293 = vector.shape_cast %277 : vector<2x8xf32> to vector<2x1x8xf32>
    %294 = vector.broadcast %292 : vector<2x8x1xf32> to vector<2x8x8xf32>
    %295 = vector.broadcast %293 : vector<2x1x8xf32> to vector<2x8x8xf32>
    %296 = arith.mulf %294, %295 : vector<2x8x8xf32>
    %cst_70 = arith.constant 9.99999993E-9 : f32
    %297 = vector.broadcast %cst_70 : f32 to vector<2x8x8xf32>
    %298 = arith.maximumf %296, %297 : vector<2x8x8xf32>
    %299 = tpu.reciprocal %298 {approx = true} : vector<2x8x8xf32> -> vector<2x8x8xf32>
    %300 = arith.mulf %282, %299 : vector<2x8x8xf32>
    "tpu.trace_start"() <{level = 10 : i32, message = "bpq,bqh->bph"}> : () -> ()
    %cst_71 = arith.constant dense<0.000000e+00> : vector<2x8x32xf32>
    %301 = tpu.matmul %291, %3, %cst_71 {dimension_numbers = #tpu.dot_dimension_numbers<[2], [1], [1], [2], [0, 0, 0, 1, 1, 2], [0], [0]>} : vector<2x8x8xf32>, vector<2x8x32xf32>, vector<2x8x32xf32> -> vector<2x8x32xf32>
    "tpu.trace_stop"() : () -> ()
    %cst_72 = arith.constant dense<0.000000e+00> : vector<2x8xf32>
    %302 = vector.multi_reduction <add>, %291, %cst_72 [2] : vector<2x8x8xf32> to vector<2x8xf32>
    %303 = vector.shape_cast %302 : vector<2x8xf32> to vector<2x8x1xf32>
    %cst_73 = arith.constant 9.99999993E-9 : f32
    %304 = vector.broadcast %cst_73 : f32 to vector<2x8x1xf32>
    %305 = arith.maximumf %303, %304 : vector<2x8x1xf32>
    %306 = tpu.reciprocal %305 {approx = true} : vector<2x8x1xf32> -> vector<2x8x1xf32>
    %307 = vector.broadcast %306 : vector<2x8x1xf32> to vector<2x8x32xf32>
    %308 = arith.mulf %301, %307 : vector<2x8x32xf32>
    "tpu.trace_start"() <{level = 10 : i32, message = "bqp,bph->bqh"}> : () -> ()
    %cst_74 = arith.constant dense<0.000000e+00> : vector<2x8x32xf32>
    %309 = tpu.matmul %300, %1, %cst_74 {dimension_numbers = #tpu.dot_dimension_numbers<[2], [1], [1], [2], [0, 0, 0, 1, 1, 2], [0], [0]>} : vector<2x8x8xf32>, vector<2x8x32xf32>, vector<2x8x32xf32> -> vector<2x8x32xf32>
    "tpu.trace_stop"() : () -> ()
    %cst_75 = arith.constant dense<0.000000e+00> : vector<2x8xf32>
    %310 = vector.multi_reduction <add>, %300, %cst_75 [2] : vector<2x8x8xf32> to vector<2x8xf32>
    %311 = vector.shape_cast %310 : vector<2x8xf32> to vector<2x8x1xf32>
    %cst_76 = arith.constant 9.99999993E-9 : f32
    %312 = vector.broadcast %cst_76 : f32 to vector<2x8x1xf32>
    %313 = arith.maximumf %311, %312 : vector<2x8x1xf32>
    %314 = tpu.reciprocal %313 {approx = true} : vector<2x8x1xf32> -> vector<2x8x1xf32>
    %315 = vector.broadcast %314 : vector<2x8x1xf32> to vector<2x8x32xf32>
    %316 = arith.mulf %309, %315 : vector<2x8x32xf32>
    %317 = vector.shape_cast %291 : vector<2x8x8xf32> to vector<2x8x8x1xf32>
    %318 = vector.shape_cast %3 : vector<2x8x32xf32> to vector<2x1x8x32xf32>
    %319 = vector.broadcast %317 : vector<2x8x8x1xf32> to vector<2x8x8x32xf32>
    %320 = vector.broadcast %318 : vector<2x1x8x32xf32> to vector<2x8x8x32xf32>
    %321 = arith.mulf %319, %320 : vector<2x8x8x32xf32>
    %cst_77 = arith.constant dense<0xFF800000> : vector<2x8x32xf32>
    %322 = vector.multi_reduction <maximumf>, %321, %cst_77 [2] : vector<2x8x8x32xf32> to vector<2x8x32xf32>
    %323 = vector.shape_cast %300 : vector<2x8x8xf32> to vector<2x8x8x1xf32>
    %324 = vector.shape_cast %1 : vector<2x8x32xf32> to vector<2x1x8x32xf32>
    %325 = vector.broadcast %323 : vector<2x8x8x1xf32> to vector<2x8x8x32xf32>
    %326 = vector.broadcast %324 : vector<2x1x8x32xf32> to vector<2x8x8x32xf32>
    %327 = arith.mulf %325, %326 : vector<2x8x8x32xf32>
    %cst_78 = arith.constant dense<0xFF800000> : vector<2x8x32xf32>
    %328 = vector.multi_reduction <maximumf>, %327, %cst_78 [2] : vector<2x8x8x32xf32> to vector<2x8x32xf32>
    %329 = vector.extract_strided_slice %212 {offsets = [0, 0, 64], sizes = [2, 8, 32], strides = [1, 1, 1]} : vector<2x8x128xf32> to vector<2x8x32xf32>
    %330 = arith.mulf %1, %308 : vector<2x8x32xf32>
    %331 = vector.shape_cast %330 : vector<2x8x32xf32> to vector<16x32xf32>
    %cst_79 = arith.constant dense<0.000000e+00> : vector<16x32xf32>
    %332 = tpu.matmul %331, %206, %cst_79 {dimension_numbers = #tpu.dot_dimension_numbers<[1], [1], [0], [0], [0, 0, 1, 0], [], []>} : vector<16x32xf32>, vector<32x32xf32>, vector<16x32xf32> -> vector<16x32xf32>
    %333 = vector.shape_cast %332 : vector<16x32xf32> to vector<2x8x32xf32>
    %334 = arith.mulf %308, %308 : vector<2x8x32xf32>
    %335 = vector.shape_cast %334 : vector<2x8x32xf32> to vector<16x32xf32>
    %cst_80 = arith.constant dense<0.000000e+00> : vector<16x32xf32>
    %336 = tpu.matmul %335, %206, %cst_80 {dimension_numbers = #tpu.dot_dimension_numbers<[1], [1], [0], [0], [0, 0, 1, 0], [], []>} : vector<16x32xf32>, vector<32x32xf32>, vector<16x32xf32> -> vector<16x32xf32>
    %337 = math.sqrt %336 : vector<16x32xf32>
    %338 = vector.shape_cast %337 : vector<16x32xf32> to vector<2x8x32xf32>
    %339 = arith.mulf %329, %338 : vector<2x8x32xf32>
    %cst_81 = arith.constant 9.99999993E-9 : f32
    %340 = vector.broadcast %cst_81 : f32 to vector<2x8x32xf32>
    %341 = arith.maximumf %339, %340 : vector<2x8x32xf32>
    %342 = tpu.reciprocal %341 {approx = true} : vector<2x8x32xf32> -> vector<2x8x32xf32>
    %343 = arith.mulf %333, %342 : vector<2x8x32xf32>
    %344 = vector.extract_strided_slice %217 {offsets = [0, 0, 64], sizes = [2, 8, 32], strides = [1, 1, 1]} : vector<2x8x128xf32> to vector<2x8x32xf32>
    %345 = arith.mulf %3, %316 : vector<2x8x32xf32>
    %346 = vector.shape_cast %345 : vector<2x8x32xf32> to vector<16x32xf32>
    %cst_82 = arith.constant dense<0.000000e+00> : vector<16x32xf32>
    %347 = tpu.matmul %346, %206, %cst_82 {dimension_numbers = #tpu.dot_dimension_numbers<[1], [1], [0], [0], [0, 0, 1, 0], [], []>} : vector<16x32xf32>, vector<32x32xf32>, vector<16x32xf32> -> vector<16x32xf32>
    %348 = vector.shape_cast %347 : vector<16x32xf32> to vector<2x8x32xf32>
    %349 = arith.mulf %316, %316 : vector<2x8x32xf32>
    %350 = vector.shape_cast %349 : vector<2x8x32xf32> to vector<16x32xf32>
    %cst_83 = arith.constant dense<0.000000e+00> : vector<16x32xf32>
    %351 = tpu.matmul %350, %206, %cst_83 {dimension_numbers = #tpu.dot_dimension_numbers<[1], [1], [0], [0], [0, 0, 1, 0], [], []>} : vector<16x32xf32>, vector<32x32xf32>, vector<16x32xf32> -> vector<16x32xf32>
    %352 = math.sqrt %351 : vector<16x32xf32>
    %353 = vector.shape_cast %352 : vector<16x32xf32> to vector<2x8x32xf32>
    %354 = arith.mulf %344, %353 : vector<2x8x32xf32>
    %cst_84 = arith.constant 9.99999993E-9 : f32
    %355 = vector.broadcast %cst_84 : f32 to vector<2x8x32xf32>
    %356 = arith.maximumf %354, %355 : vector<2x8x32xf32>
    %357 = tpu.reciprocal %356 {approx = true} : vector<2x8x32xf32> -> vector<2x8x32xf32>
    %358 = arith.mulf %348, %357 : vector<2x8x32xf32>
    %359 = vector.extract_strided_slice %212 {offsets = [0, 0, 96], sizes = [2, 8, 32], strides = [1, 1, 1]} : vector<2x8x128xf32> to vector<2x8x32xf32>
    %360 = arith.mulf %1, %322 : vector<2x8x32xf32>
    %361 = vector.shape_cast %360 : vector<2x8x32xf32> to vector<16x32xf32>
    %cst_85 = arith.constant dense<0.000000e+00> : vector<16x32xf32>
    %362 = tpu.matmul %361, %207, %cst_85 {dimension_numbers = #tpu.dot_dimension_numbers<[1], [1], [0], [0], [0, 0, 1, 0], [], []>} : vector<16x32xf32>, vector<32x32xf32>, vector<16x32xf32> -> vector<16x32xf32>
    %363 = vector.shape_cast %362 : vector<16x32xf32> to vector<2x8x32xf32>
    %364 = arith.mulf %322, %322 : vector<2x8x32xf32>
    %365 = vector.shape_cast %364 : vector<2x8x32xf32> to vector<16x32xf32>
    %cst_86 = arith.constant dense<0.000000e+00> : vector<16x32xf32>
    %366 = tpu.matmul %365, %207, %cst_86 {dimension_numbers = #tpu.dot_dimension_numbers<[1], [1], [0], [0], [0, 0, 1, 0], [], []>} : vector<16x32xf32>, vector<32x32xf32>, vector<16x32xf32> -> vector<16x32xf32>
    %367 = math.sqrt %366 : vector<16x32xf32>
    %368 = vector.shape_cast %367 : vector<16x32xf32> to vector<2x8x32xf32>
    %369 = arith.mulf %359, %368 : vector<2x8x32xf32>
    %cst_87 = arith.constant 9.99999993E-9 : f32
    %370 = vector.broadcast %cst_87 : f32 to vector<2x8x32xf32>
    %371 = arith.maximumf %369, %370 : vector<2x8x32xf32>
    %372 = tpu.reciprocal %371 {approx = true} : vector<2x8x32xf32> -> vector<2x8x32xf32>
    %373 = arith.mulf %363, %372 : vector<2x8x32xf32>
    %374 = vector.extract_strided_slice %217 {offsets = [0, 0, 96], sizes = [2, 8, 32], strides = [1, 1, 1]} : vector<2x8x128xf32> to vector<2x8x32xf32>
    %375 = arith.mulf %3, %328 : vector<2x8x32xf32>
    %376 = vector.shape_cast %375 : vector<2x8x32xf32> to vector<16x32xf32>
    %cst_88 = arith.constant dense<0.000000e+00> : vector<16x32xf32>
    %377 = tpu.matmul %376, %207, %cst_88 {dimension_numbers = #tpu.dot_dimension_numbers<[1], [1], [0], [0], [0, 0, 1, 0], [], []>} : vector<16x32xf32>, vector<32x32xf32>, vector<16x32xf32> -> vector<16x32xf32>
    %378 = vector.shape_cast %377 : vector<16x32xf32> to vector<2x8x32xf32>
    %379 = arith.mulf %328, %328 : vector<2x8x32xf32>
    %380 = vector.shape_cast %379 : vector<2x8x32xf32> to vector<16x32xf32>
    %cst_89 = arith.constant dense<0.000000e+00> : vector<16x32xf32>
    %381 = tpu.matmul %380, %207, %cst_89 {dimension_numbers = #tpu.dot_dimension_numbers<[1], [1], [0], [0], [0, 0, 1, 0], [], []>} : vector<16x32xf32>, vector<32x32xf32>, vector<16x32xf32> -> vector<16x32xf32>
    %382 = math.sqrt %381 : vector<16x32xf32>
    %383 = vector.shape_cast %382 : vector<16x32xf32> to vector<2x8x32xf32>
    %384 = arith.mulf %374, %383 : vector<2x8x32xf32>
    %cst_90 = arith.constant 9.99999993E-9 : f32
    %385 = vector.broadcast %cst_90 : f32 to vector<2x8x32xf32>
    %386 = arith.maximumf %384, %385 : vector<2x8x32xf32>
    %387 = tpu.reciprocal %386 {approx = true} : vector<2x8x32xf32> -> vector<2x8x32xf32>
    %388 = arith.mulf %378, %387 : vector<2x8x32xf32>
    %389 = tpu.concatenate %47, %86, %156, %186, %234, %273, %343, %373 in 2 : vector<2x8x32xf32>, vector<2x8x32xf32>, vector<2x8x32xf32>, vector<2x8x32xf32>, vector<2x8x32xf32>, vector<2x8x32xf32>, vector<2x8x32xf32>, vector<2x8x32xf32> -> vector<2x8x256xf32>
    %c0_91 = arith.constant 0 : index
    %c0_92 = arith.constant 0 : index
    %c0_93 = arith.constant 0 : index
    %390 = vector.load %arg6[%c0_91, %c0_92, %c0_93] : memref<2x8x256xf32, #tpu.memory_space<vmem>>, vector<2x8x256xf32>
    tpu.vector_store %arg6[%c0_91, %c0_92, %c0_93], %389 {strides = array<i32>} : memref<2x8x256xf32, #tpu.memory_space<vmem>>, vector<2x8x256xf32>,
    %391 = tpu.concatenate %64, %87, %171, %201, %251, %274, %358, %388 in 2 : vector<2x8x32xf32>, vector<2x8x32xf32>, vector<2x8x32xf32>, vector<2x8x32xf32>, vector<2x8x32xf32>, vector<2x8x32xf32>, vector<2x8x32xf32>, vector<2x8x32xf32> -> vector<2x8x256xf32>
    %c0_94 = arith.constant 0 : index
    %c0_95 = arith.constant 0 : index
    %c0_96 = arith.constant 0 : index
    %392 = vector.load %arg7[%c0_94, %c0_95, %c0_96] : memref<2x8x256xf32, #tpu.memory_space<vmem>>, vector<2x8x256xf32>
    tpu.vector_store %arg7[%c0_94, %c0_95, %c0_96], %391 {strides = array<i32>} : memref<2x8x256xf32, #tpu.memory_space<vmem>>, vector<2x8x256xf32>,
    return
  }
  func.func @transform_0(%arg0: i32) -> (i32, i32, i32) {
    %c0_i32 = arith.constant 0 : i32
    %c0_i32_0 = arith.constant 0 : i32
    %c0_i32_1 = arith.constant 0 : i32
    return %arg0, %c0_i32, %c0_i32_0 : i32, i32, i32
  }
  func.func @transform_1(%arg0: i32) -> (i32, i32, i32) {
    %c0_i32 = arith.constant 0 : i32
    %c0_i32_0 = arith.constant 0 : i32
    %c0_i32_1 = arith.constant 0 : i32
    return %arg0, %c0_i32, %c0_i32_0 : i32, i32, i32
  }
  func.func @transform_2(%arg0: i32) -> (i32, i32, i32) {
    %c0_i32 = arith.constant 0 : i32
    %c0_i32_0 = arith.constant 0 : i32
    %c0_i32_1 = arith.constant 0 : i32
    return %arg0, %c0_i32, %c0_i32_0 : i32, i32, i32
  }
  func.func @transform_3(%arg0: i32) -> (i32, i32, i32) {
    %c0_i32 = arith.constant 0 : i32
    %c0_i32_0 = arith.constant 0 : i32
    %c0_i32_1 = arith.constant 0 : i32
    return %arg0, %c0_i32, %c0_i32_0 : i32, i32, i32
  }
  func.func @transform_4(%arg0: i32) -> (i32, i32, i32) {
    %c0_i32 = arith.constant 0 : i32
    %c0_i32_0 = arith.constant 0 : i32
    %c0_i32_1 = arith.constant 0 : i32
    %c0_i32_2 = arith.constant 0 : i32
    return %c0_i32, %c0_i32_0, %c0_i32_1 : i32, i32, i32
  }
  func.func @transform_5(%arg0: i32) -> (i32, i32, i32) {
    %c0_i32 = arith.constant 0 : i32
    %c0_i32_0 = arith.constant 0 : i32
    %c0_i32_1 = arith.constant 0 : i32
    return %arg0, %c0_i32, %c0_i32_0 : i32, i32, i32
  }
  func.func @transform_6(%arg0: i32) -> (i32, i32, i32) {
    %c0_i32 = arith.constant 0 : i32
    %c0_i32_0 = arith.constant 0 : i32
    %c0_i32_1 = arith.constant 0 : i32
    return %arg0, %c0_i32, %c0_i32_0 : i32, i32, i32
  }
}

module attributes {stable_mosaic.version = 11 : i64} {
  func.func @_agg_pred_kernel(%arg0: memref<8x4x256xf32, #tpu.memory_space<vmem>>, %arg1: memref<256x64xf32, #tpu.memory_space<vmem>>, %arg2: memref<64x128xf32, #tpu.memory_space<vmem>>, %arg3: memref<1x64xf32, #tpu.memory_space<vmem>>, %arg4: memref<2x64xf32, #tpu.memory_space<vmem>>, %arg5: memref<1x2xf32, #tpu.memory_space<vmem>>, %arg6: memref<2x2xf32, #tpu.memory_space<vmem>>) attributes {dimension_semantics = [], scalar_prefetch = 0 : i64, scratch_operands = 0 : i64, tpu.core_type = #tpu.core_type<tc>} {
    %c0 = arith.constant 0 : index
    %c0_0 = arith.constant 0 : index
    %0 = vector.load %arg1[%c0, %c0_0] : memref<256x64xf32, #tpu.memory_space<vmem>>, vector<256x64xf32>
    %cst = arith.constant 0.000000e+00 : f32
    %1 = vector.broadcast %cst : f32 to vector<4x64xf32>
    %cst_1 = arith.constant 0.000000e+00 : f32
    %2 = vector.broadcast %cst_1 : f32 to vector<4x64xf32>
    %c0_2 = arith.constant 0 : index
    %c0_3 = arith.constant 0 : index
    %c0_4 = arith.constant 0 : index
    %3 = vector.load %arg0[%c0_2, %c0_3, %c0_4] : memref<8x4x256xf32, #tpu.memory_space<vmem>>, vector<1x4x256xf32>
    %4 = vector.shape_cast %3 : vector<1x4x256xf32> to vector<4x256xf32>
    %cst_5 = arith.constant dense<0.000000e+00> : vector<4x256xf32>
    %5 = tpu.matmul %1, %0, %cst_5 {dimension_numbers = #tpu.dot_dimension_numbers<[1], [1], [0], [0], [0, 0, 1, 0], [], []>} : vector<4x64xf32>, vector<256x64xf32>, vector<4x256xf32> -> vector<4x256xf32>
    %6 = arith.addf %4, %5 : vector<4x256xf32>
    %7 = vector.extract_strided_slice %6 {offsets = [0, 0], sizes = [4, 64], strides = [1, 1]} : vector<4x256xf32> to vector<4x64xf32>
    %8 = arith.negf %7 : vector<4x64xf32>
    %9 = math.exp %8 : vector<4x64xf32>
    %cst_6 = arith.constant 1.000000e+00 : f32
    %10 = vector.broadcast %cst_6 : f32 to vector<4x64xf32>
    %11 = arith.addf %10, %9 : vector<4x64xf32>
    %12 = arith.divf %10, %11 : vector<4x64xf32>
    %13 = vector.extract_strided_slice %6 {offsets = [0, 64], sizes = [4, 64], strides = [1, 1]} : vector<4x256xf32> to vector<4x64xf32>
    %14 = arith.negf %13 : vector<4x64xf32>
    %15 = math.exp %14 : vector<4x64xf32>
    %cst_7 = arith.constant 1.000000e+00 : f32
    %16 = vector.broadcast %cst_7 : f32 to vector<4x64xf32>
    %17 = arith.addf %16, %15 : vector<4x64xf32>
    %18 = arith.divf %16, %17 : vector<4x64xf32>
    %19 = vector.extract_strided_slice %6 {offsets = [0, 128], sizes = [4, 64], strides = [1, 1]} : vector<4x256xf32> to vector<4x64xf32>
    %20 = math.tanh %19 : vector<4x64xf32>
    %21 = vector.extract_strided_slice %6 {offsets = [0, 192], sizes = [4, 64], strides = [1, 1]} : vector<4x256xf32> to vector<4x64xf32>
    %22 = arith.negf %21 : vector<4x64xf32>
    %23 = math.exp %22 : vector<4x64xf32>
    %cst_8 = arith.constant 1.000000e+00 : f32
    %24 = vector.broadcast %cst_8 : f32 to vector<4x64xf32>
    %25 = arith.addf %24, %23 : vector<4x64xf32>
    %26 = arith.divf %24, %25 : vector<4x64xf32>
    %27 = arith.mulf %18, %2 : vector<4x64xf32>
    %28 = arith.mulf %12, %20 : vector<4x64xf32>
    %29 = arith.addf %27, %28 : vector<4x64xf32>
    %30 = math.tanh %29 : vector<4x64xf32>
    %31 = arith.mulf %26, %30 : vector<4x64xf32>
    %c1 = arith.constant 1 : index
    %c0_9 = arith.constant 0 : index
    %c0_10 = arith.constant 0 : index
    %32 = vector.load %arg0[%c1, %c0_9, %c0_10] : memref<8x4x256xf32, #tpu.memory_space<vmem>>, vector<1x4x256xf32>
    %33 = vector.shape_cast %32 : vector<1x4x256xf32> to vector<4x256xf32>
    %cst_11 = arith.constant dense<0.000000e+00> : vector<4x256xf32>
    %34 = tpu.matmul %31, %0, %cst_11 {dimension_numbers = #tpu.dot_dimension_numbers<[1], [1], [0], [0], [0, 0, 1, 0], [], []>} : vector<4x64xf32>, vector<256x64xf32>, vector<4x256xf32> -> vector<4x256xf32>
    %35 = arith.addf %33, %34 : vector<4x256xf32>
    %36 = vector.extract_strided_slice %35 {offsets = [0, 0], sizes = [4, 64], strides = [1, 1]} : vector<4x256xf32> to vector<4x64xf32>
    %37 = arith.negf %36 : vector<4x64xf32>
    %38 = math.exp %37 : vector<4x64xf32>
    %cst_12 = arith.constant 1.000000e+00 : f32
    %39 = vector.broadcast %cst_12 : f32 to vector<4x64xf32>
    %40 = arith.addf %39, %38 : vector<4x64xf32>
    %41 = arith.divf %39, %40 : vector<4x64xf32>
    %42 = vector.extract_strided_slice %35 {offsets = [0, 64], sizes = [4, 64], strides = [1, 1]} : vector<4x256xf32> to vector<4x64xf32>
    %43 = arith.negf %42 : vector<4x64xf32>
    %44 = math.exp %43 : vector<4x64xf32>
    %cst_13 = arith.constant 1.000000e+00 : f32
    %45 = vector.broadcast %cst_13 : f32 to vector<4x64xf32>
    %46 = arith.addf %45, %44 : vector<4x64xf32>
    %47 = arith.divf %45, %46 : vector<4x64xf32>
    %48 = vector.extract_strided_slice %35 {offsets = [0, 128], sizes = [4, 64], strides = [1, 1]} : vector<4x256xf32> to vector<4x64xf32>
    %49 = math.tanh %48 : vector<4x64xf32>
    %50 = vector.extract_strided_slice %35 {offsets = [0, 192], sizes = [4, 64], strides = [1, 1]} : vector<4x256xf32> to vector<4x64xf32>
    %51 = arith.negf %50 : vector<4x64xf32>
    %52 = math.exp %51 : vector<4x64xf32>
    %cst_14 = arith.constant 1.000000e+00 : f32
    %53 = vector.broadcast %cst_14 : f32 to vector<4x64xf32>
    %54 = arith.addf %53, %52 : vector<4x64xf32>
    %55 = arith.divf %53, %54 : vector<4x64xf32>
    %56 = arith.mulf %47, %29 : vector<4x64xf32>
    %57 = arith.mulf %41, %49 : vector<4x64xf32>
    %58 = arith.addf %56, %57 : vector<4x64xf32>
    %59 = math.tanh %58 : vector<4x64xf32>
    %60 = arith.mulf %55, %59 : vector<4x64xf32>
    %c2 = arith.constant 2 : index
    %c0_15 = arith.constant 0 : index
    %c0_16 = arith.constant 0 : index
    %61 = vector.load %arg0[%c2, %c0_15, %c0_16] : memref<8x4x256xf32, #tpu.memory_space<vmem>>, vector<1x4x256xf32>
    %62 = vector.shape_cast %61 : vector<1x4x256xf32> to vector<4x256xf32>
    %cst_17 = arith.constant dense<0.000000e+00> : vector<4x256xf32>
    %63 = tpu.matmul %60, %0, %cst_17 {dimension_numbers = #tpu.dot_dimension_numbers<[1], [1], [0], [0], [0, 0, 1, 0], [], []>} : vector<4x64xf32>, vector<256x64xf32>, vector<4x256xf32> -> vector<4x256xf32>
    %64 = arith.addf %62, %63 : vector<4x256xf32>
    %65 = vector.extract_strided_slice %64 {offsets = [0, 0], sizes = [4, 64], strides = [1, 1]} : vector<4x256xf32> to vector<4x64xf32>
    %66 = arith.negf %65 : vector<4x64xf32>
    %67 = math.exp %66 : vector<4x64xf32>
    %cst_18 = arith.constant 1.000000e+00 : f32
    %68 = vector.broadcast %cst_18 : f32 to vector<4x64xf32>
    %69 = arith.addf %68, %67 : vector<4x64xf32>
    %70 = arith.divf %68, %69 : vector<4x64xf32>
    %71 = vector.extract_strided_slice %64 {offsets = [0, 64], sizes = [4, 64], strides = [1, 1]} : vector<4x256xf32> to vector<4x64xf32>
    %72 = arith.negf %71 : vector<4x64xf32>
    %73 = math.exp %72 : vector<4x64xf32>
    %cst_19 = arith.constant 1.000000e+00 : f32
    %74 = vector.broadcast %cst_19 : f32 to vector<4x64xf32>
    %75 = arith.addf %74, %73 : vector<4x64xf32>
    %76 = arith.divf %74, %75 : vector<4x64xf32>
    %77 = vector.extract_strided_slice %64 {offsets = [0, 128], sizes = [4, 64], strides = [1, 1]} : vector<4x256xf32> to vector<4x64xf32>
    %78 = math.tanh %77 : vector<4x64xf32>
    %79 = vector.extract_strided_slice %64 {offsets = [0, 192], sizes = [4, 64], strides = [1, 1]} : vector<4x256xf32> to vector<4x64xf32>
    %80 = arith.negf %79 : vector<4x64xf32>
    %81 = math.exp %80 : vector<4x64xf32>
    %cst_20 = arith.constant 1.000000e+00 : f32
    %82 = vector.broadcast %cst_20 : f32 to vector<4x64xf32>
    %83 = arith.addf %82, %81 : vector<4x64xf32>
    %84 = arith.divf %82, %83 : vector<4x64xf32>
    %85 = arith.mulf %76, %58 : vector<4x64xf32>
    %86 = arith.mulf %70, %78 : vector<4x64xf32>
    %87 = arith.addf %85, %86 : vector<4x64xf32>
    %88 = math.tanh %87 : vector<4x64xf32>
    %89 = arith.mulf %84, %88 : vector<4x64xf32>
    %c3 = arith.constant 3 : index
    %c0_21 = arith.constant 0 : index
    %c0_22 = arith.constant 0 : index
    %90 = vector.load %arg0[%c3, %c0_21, %c0_22] : memref<8x4x256xf32, #tpu.memory_space<vmem>>, vector<1x4x256xf32>
    %91 = vector.shape_cast %90 : vector<1x4x256xf32> to vector<4x256xf32>
    %cst_23 = arith.constant dense<0.000000e+00> : vector<4x256xf32>
    %92 = tpu.matmul %89, %0, %cst_23 {dimension_numbers = #tpu.dot_dimension_numbers<[1], [1], [0], [0], [0, 0, 1, 0], [], []>} : vector<4x64xf32>, vector<256x64xf32>, vector<4x256xf32> -> vector<4x256xf32>
    %93 = arith.addf %91, %92 : vector<4x256xf32>
    %94 = vector.extract_strided_slice %93 {offsets = [0, 0], sizes = [4, 64], strides = [1, 1]} : vector<4x256xf32> to vector<4x64xf32>
    %95 = arith.negf %94 : vector<4x64xf32>
    %96 = math.exp %95 : vector<4x64xf32>
    %cst_24 = arith.constant 1.000000e+00 : f32
    %97 = vector.broadcast %cst_24 : f32 to vector<4x64xf32>
    %98 = arith.addf %97, %96 : vector<4x64xf32>
    %99 = arith.divf %97, %98 : vector<4x64xf32>
    %100 = vector.extract_strided_slice %93 {offsets = [0, 64], sizes = [4, 64], strides = [1, 1]} : vector<4x256xf32> to vector<4x64xf32>
    %101 = arith.negf %100 : vector<4x64xf32>
    %102 = math.exp %101 : vector<4x64xf32>
    %cst_25 = arith.constant 1.000000e+00 : f32
    %103 = vector.broadcast %cst_25 : f32 to vector<4x64xf32>
    %104 = arith.addf %103, %102 : vector<4x64xf32>
    %105 = arith.divf %103, %104 : vector<4x64xf32>
    %106 = vector.extract_strided_slice %93 {offsets = [0, 128], sizes = [4, 64], strides = [1, 1]} : vector<4x256xf32> to vector<4x64xf32>
    %107 = math.tanh %106 : vector<4x64xf32>
    %108 = vector.extract_strided_slice %93 {offsets = [0, 192], sizes = [4, 64], strides = [1, 1]} : vector<4x256xf32> to vector<4x64xf32>
    %109 = arith.negf %108 : vector<4x64xf32>
    %110 = math.exp %109 : vector<4x64xf32>
    %cst_26 = arith.constant 1.000000e+00 : f32
    %111 = vector.broadcast %cst_26 : f32 to vector<4x64xf32>
    %112 = arith.addf %111, %110 : vector<4x64xf32>
    %113 = arith.divf %111, %112 : vector<4x64xf32>
    %114 = arith.mulf %105, %87 : vector<4x64xf32>
    %115 = arith.mulf %99, %107 : vector<4x64xf32>
    %116 = arith.addf %114, %115 : vector<4x64xf32>
    %117 = math.tanh %116 : vector<4x64xf32>
    %118 = arith.mulf %113, %117 : vector<4x64xf32>
    %c4 = arith.constant 4 : index
    %c0_27 = arith.constant 0 : index
    %c0_28 = arith.constant 0 : index
    %119 = vector.load %arg0[%c4, %c0_27, %c0_28] : memref<8x4x256xf32, #tpu.memory_space<vmem>>, vector<1x4x256xf32>
    %120 = vector.shape_cast %119 : vector<1x4x256xf32> to vector<4x256xf32>
    %cst_29 = arith.constant dense<0.000000e+00> : vector<4x256xf32>
    %121 = tpu.matmul %118, %0, %cst_29 {dimension_numbers = #tpu.dot_dimension_numbers<[1], [1], [0], [0], [0, 0, 1, 0], [], []>} : vector<4x64xf32>, vector<256x64xf32>, vector<4x256xf32> -> vector<4x256xf32>
    %122 = arith.addf %120, %121 : vector<4x256xf32>
    %123 = vector.extract_strided_slice %122 {offsets = [0, 0], sizes = [4, 64], strides = [1, 1]} : vector<4x256xf32> to vector<4x64xf32>
    %124 = arith.negf %123 : vector<4x64xf32>
    %125 = math.exp %124 : vector<4x64xf32>
    %cst_30 = arith.constant 1.000000e+00 : f32
    %126 = vector.broadcast %cst_30 : f32 to vector<4x64xf32>
    %127 = arith.addf %126, %125 : vector<4x64xf32>
    %128 = arith.divf %126, %127 : vector<4x64xf32>
    %129 = vector.extract_strided_slice %122 {offsets = [0, 64], sizes = [4, 64], strides = [1, 1]} : vector<4x256xf32> to vector<4x64xf32>
    %130 = arith.negf %129 : vector<4x64xf32>
    %131 = math.exp %130 : vector<4x64xf32>
    %cst_31 = arith.constant 1.000000e+00 : f32
    %132 = vector.broadcast %cst_31 : f32 to vector<4x64xf32>
    %133 = arith.addf %132, %131 : vector<4x64xf32>
    %134 = arith.divf %132, %133 : vector<4x64xf32>
    %135 = vector.extract_strided_slice %122 {offsets = [0, 128], sizes = [4, 64], strides = [1, 1]} : vector<4x256xf32> to vector<4x64xf32>
    %136 = math.tanh %135 : vector<4x64xf32>
    %137 = vector.extract_strided_slice %122 {offsets = [0, 192], sizes = [4, 64], strides = [1, 1]} : vector<4x256xf32> to vector<4x64xf32>
    %138 = arith.negf %137 : vector<4x64xf32>
    %139 = math.exp %138 : vector<4x64xf32>
    %cst_32 = arith.constant 1.000000e+00 : f32
    %140 = vector.broadcast %cst_32 : f32 to vector<4x64xf32>
    %141 = arith.addf %140, %139 : vector<4x64xf32>
    %142 = arith.divf %140, %141 : vector<4x64xf32>
    %143 = arith.mulf %134, %116 : vector<4x64xf32>
    %144 = arith.mulf %128, %136 : vector<4x64xf32>
    %145 = arith.addf %143, %144 : vector<4x64xf32>
    %146 = math.tanh %145 : vector<4x64xf32>
    %147 = arith.mulf %142, %146 : vector<4x64xf32>
    %c5 = arith.constant 5 : index
    %c0_33 = arith.constant 0 : index
    %c0_34 = arith.constant 0 : index
    %148 = vector.load %arg0[%c5, %c0_33, %c0_34] : memref<8x4x256xf32, #tpu.memory_space<vmem>>, vector<1x4x256xf32>
    %149 = vector.shape_cast %148 : vector<1x4x256xf32> to vector<4x256xf32>
    %cst_35 = arith.constant dense<0.000000e+00> : vector<4x256xf32>
    %150 = tpu.matmul %147, %0, %cst_35 {dimension_numbers = #tpu.dot_dimension_numbers<[1], [1], [0], [0], [0, 0, 1, 0], [], []>} : vector<4x64xf32>, vector<256x64xf32>, vector<4x256xf32> -> vector<4x256xf32>
    %151 = arith.addf %149, %150 : vector<4x256xf32>
    %152 = vector.extract_strided_slice %151 {offsets = [0, 0], sizes = [4, 64], strides = [1, 1]} : vector<4x256xf32> to vector<4x64xf32>
    %153 = arith.negf %152 : vector<4x64xf32>
    %154 = math.exp %153 : vector<4x64xf32>
    %cst_36 = arith.constant 1.000000e+00 : f32
    %155 = vector.broadcast %cst_36 : f32 to vector<4x64xf32>
    %156 = arith.addf %155, %154 : vector<4x64xf32>
    %157 = arith.divf %155, %156 : vector<4x64xf32>
    %158 = vector.extract_strided_slice %151 {offsets = [0, 64], sizes = [4, 64], strides = [1, 1]} : vector<4x256xf32> to vector<4x64xf32>
    %159 = arith.negf %158 : vector<4x64xf32>
    %160 = math.exp %159 : vector<4x64xf32>
    %cst_37 = arith.constant 1.000000e+00 : f32
    %161 = vector.broadcast %cst_37 : f32 to vector<4x64xf32>
    %162 = arith.addf %161, %160 : vector<4x64xf32>
    %163 = arith.divf %161, %162 : vector<4x64xf32>
    %164 = vector.extract_strided_slice %151 {offsets = [0, 128], sizes = [4, 64], strides = [1, 1]} : vector<4x256xf32> to vector<4x64xf32>
    %165 = math.tanh %164 : vector<4x64xf32>
    %166 = vector.extract_strided_slice %151 {offsets = [0, 192], sizes = [4, 64], strides = [1, 1]} : vector<4x256xf32> to vector<4x64xf32>
    %167 = arith.negf %166 : vector<4x64xf32>
    %168 = math.exp %167 : vector<4x64xf32>
    %cst_38 = arith.constant 1.000000e+00 : f32
    %169 = vector.broadcast %cst_38 : f32 to vector<4x64xf32>
    %170 = arith.addf %169, %168 : vector<4x64xf32>
    %171 = arith.divf %169, %170 : vector<4x64xf32>
    %172 = arith.mulf %163, %145 : vector<4x64xf32>
    %173 = arith.mulf %157, %165 : vector<4x64xf32>
    %174 = arith.addf %172, %173 : vector<4x64xf32>
    %175 = math.tanh %174 : vector<4x64xf32>
    %176 = arith.mulf %171, %175 : vector<4x64xf32>
    %c6 = arith.constant 6 : index
    %c0_39 = arith.constant 0 : index
    %c0_40 = arith.constant 0 : index
    %177 = vector.load %arg0[%c6, %c0_39, %c0_40] : memref<8x4x256xf32, #tpu.memory_space<vmem>>, vector<1x4x256xf32>
    %178 = vector.shape_cast %177 : vector<1x4x256xf32> to vector<4x256xf32>
    %cst_41 = arith.constant dense<0.000000e+00> : vector<4x256xf32>
    %179 = tpu.matmul %176, %0, %cst_41 {dimension_numbers = #tpu.dot_dimension_numbers<[1], [1], [0], [0], [0, 0, 1, 0], [], []>} : vector<4x64xf32>, vector<256x64xf32>, vector<4x256xf32> -> vector<4x256xf32>
    %180 = arith.addf %178, %179 : vector<4x256xf32>
    %181 = vector.extract_strided_slice %180 {offsets = [0, 0], sizes = [4, 64], strides = [1, 1]} : vector<4x256xf32> to vector<4x64xf32>
    %182 = arith.negf %181 : vector<4x64xf32>
    %183 = math.exp %182 : vector<4x64xf32>
    %cst_42 = arith.constant 1.000000e+00 : f32
    %184 = vector.broadcast %cst_42 : f32 to vector<4x64xf32>
    %185 = arith.addf %184, %183 : vector<4x64xf32>
    %186 = arith.divf %184, %185 : vector<4x64xf32>
    %187 = vector.extract_strided_slice %180 {offsets = [0, 64], sizes = [4, 64], strides = [1, 1]} : vector<4x256xf32> to vector<4x64xf32>
    %188 = arith.negf %187 : vector<4x64xf32>
    %189 = math.exp %188 : vector<4x64xf32>
    %cst_43 = arith.constant 1.000000e+00 : f32
    %190 = vector.broadcast %cst_43 : f32 to vector<4x64xf32>
    %191 = arith.addf %190, %189 : vector<4x64xf32>
    %192 = arith.divf %190, %191 : vector<4x64xf32>
    %193 = vector.extract_strided_slice %180 {offsets = [0, 128], sizes = [4, 64], strides = [1, 1]} : vector<4x256xf32> to vector<4x64xf32>
    %194 = math.tanh %193 : vector<4x64xf32>
    %195 = vector.extract_strided_slice %180 {offsets = [0, 192], sizes = [4, 64], strides = [1, 1]} : vector<4x256xf32> to vector<4x64xf32>
    %196 = arith.negf %195 : vector<4x64xf32>
    %197 = math.exp %196 : vector<4x64xf32>
    %cst_44 = arith.constant 1.000000e+00 : f32
    %198 = vector.broadcast %cst_44 : f32 to vector<4x64xf32>
    %199 = arith.addf %198, %197 : vector<4x64xf32>
    %200 = arith.divf %198, %199 : vector<4x64xf32>
    %201 = arith.mulf %192, %174 : vector<4x64xf32>
    %202 = arith.mulf %186, %194 : vector<4x64xf32>
    %203 = arith.addf %201, %202 : vector<4x64xf32>
    %204 = math.tanh %203 : vector<4x64xf32>
    %205 = arith.mulf %200, %204 : vector<4x64xf32>
    %c7 = arith.constant 7 : index
    %c0_45 = arith.constant 0 : index
    %c0_46 = arith.constant 0 : index
    %206 = vector.load %arg0[%c7, %c0_45, %c0_46] : memref<8x4x256xf32, #tpu.memory_space<vmem>>, vector<1x4x256xf32>
    %207 = vector.shape_cast %206 : vector<1x4x256xf32> to vector<4x256xf32>
    %cst_47 = arith.constant dense<0.000000e+00> : vector<4x256xf32>
    %208 = tpu.matmul %205, %0, %cst_47 {dimension_numbers = #tpu.dot_dimension_numbers<[1], [1], [0], [0], [0, 0, 1, 0], [], []>} : vector<4x64xf32>, vector<256x64xf32>, vector<4x256xf32> -> vector<4x256xf32>
    %209 = arith.addf %207, %208 : vector<4x256xf32>
    %210 = vector.extract_strided_slice %209 {offsets = [0, 0], sizes = [4, 64], strides = [1, 1]} : vector<4x256xf32> to vector<4x64xf32>
    %211 = arith.negf %210 : vector<4x64xf32>
    %212 = math.exp %211 : vector<4x64xf32>
    %cst_48 = arith.constant 1.000000e+00 : f32
    %213 = vector.broadcast %cst_48 : f32 to vector<4x64xf32>
    %214 = arith.addf %213, %212 : vector<4x64xf32>
    %215 = arith.divf %213, %214 : vector<4x64xf32>
    %216 = vector.extract_strided_slice %209 {offsets = [0, 64], sizes = [4, 64], strides = [1, 1]} : vector<4x256xf32> to vector<4x64xf32>
    %217 = arith.negf %216 : vector<4x64xf32>
    %218 = math.exp %217 : vector<4x64xf32>
    %cst_49 = arith.constant 1.000000e+00 : f32
    %219 = vector.broadcast %cst_49 : f32 to vector<4x64xf32>
    %220 = arith.addf %219, %218 : vector<4x64xf32>
    %221 = arith.divf %219, %220 : vector<4x64xf32>
    %222 = vector.extract_strided_slice %209 {offsets = [0, 128], sizes = [4, 64], strides = [1, 1]} : vector<4x256xf32> to vector<4x64xf32>
    %223 = math.tanh %222 : vector<4x64xf32>
    %224 = vector.extract_strided_slice %209 {offsets = [0, 192], sizes = [4, 64], strides = [1, 1]} : vector<4x256xf32> to vector<4x64xf32>
    %225 = arith.negf %224 : vector<4x64xf32>
    %226 = math.exp %225 : vector<4x64xf32>
    %cst_50 = arith.constant 1.000000e+00 : f32
    %227 = vector.broadcast %cst_50 : f32 to vector<4x64xf32>
    %228 = arith.addf %227, %226 : vector<4x64xf32>
    %229 = arith.divf %227, %228 : vector<4x64xf32>
    %230 = arith.mulf %221, %203 : vector<4x64xf32>
    %231 = arith.mulf %215, %223 : vector<4x64xf32>
    %232 = arith.addf %230, %231 : vector<4x64xf32>
    %233 = math.tanh %232 : vector<4x64xf32>
    %234 = arith.mulf %229, %233 : vector<4x64xf32>
    %235 = vector.extract_strided_slice %234 {offsets = [0, 0], sizes = [2, 64], strides = [1, 1]} : vector<4x64xf32> to vector<2x64xf32>
    %236 = vector.extract_strided_slice %234 {offsets = [2, 0], sizes = [2, 64], strides = [1, 1]} : vector<4x64xf32> to vector<2x64xf32>
    %237 = tpu.concatenate %235, %236 in 1 : vector<2x64xf32>, vector<2x64xf32> -> vector<2x128xf32>
    %c0_51 = arith.constant 0 : index
    %c0_52 = arith.constant 0 : index
    %238 = vector.load %arg2[%c0_51, %c0_52] : memref<64x128xf32, #tpu.memory_space<vmem>>, vector<64x128xf32>
    %cst_53 = arith.constant dense<0.000000e+00> : vector<2x64xf32>
    %239 = tpu.matmul %237, %238, %cst_53 {dimension_numbers = #tpu.dot_dimension_numbers<[1], [1], [0], [0], [0, 0, 1, 0], [], []>} : vector<2x128xf32>, vector<64x128xf32>, vector<2x64xf32> -> vector<2x64xf32>
    %c0_54 = arith.constant 0 : index
    %c0_55 = arith.constant 0 : index
    %240 = vector.load %arg3[%c0_54, %c0_55] : memref<1x64xf32, #tpu.memory_space<vmem>>, vector<1x64xf32>
    %241 = vector.broadcast %240 : vector<1x64xf32> to vector<2x64xf32>
    %242 = arith.addf %239, %241 : vector<2x64xf32>
    %243 = math.tanh %242 : vector<2x64xf32>
    %c0_56 = arith.constant 0 : index
    %c0_57 = arith.constant 0 : index
    %244 = vector.load %arg4[%c0_56, %c0_57] : memref<2x64xf32, #tpu.memory_space<vmem>>, vector<2x64xf32>
    %cst_58 = arith.constant dense<0.000000e+00> : vector<2x2xf32>
    %245 = tpu.matmul %243, %244, %cst_58 {dimension_numbers = #tpu.dot_dimension_numbers<[1], [1], [0], [0], [0, 0, 1, 0], [], []>} : vector<2x64xf32>, vector<2x64xf32>, vector<2x2xf32> -> vector<2x2xf32>
    %c0_59 = arith.constant 0 : index
    %c0_60 = arith.constant 0 : index
    %246 = vector.load %arg5[%c0_59, %c0_60] : memref<1x2xf32, #tpu.memory_space<vmem>>, vector<1x2xf32>
    %247 = vector.broadcast %246 : vector<1x2xf32> to vector<2x2xf32>
    %248 = arith.addf %245, %247 : vector<2x2xf32>
    %cst_61 = arith.constant dense<0xFF800000> : vector<2xf32>
    %249 = vector.multi_reduction <maximumf>, %248, %cst_61 [1] : vector<2x2xf32> to vector<2xf32>
    %250 = vector.shape_cast %249 : vector<2xf32> to vector<2x1xf32>
    %251 = vector.broadcast %250 : vector<2x1xf32> to vector<2x2xf32>
    %252 = arith.subf %248, %251 : vector<2x2xf32>
    %253 = math.exp %252 : vector<2x2xf32>
    %cst_62 = arith.constant dense<0.000000e+00> : vector<2xf32>
    %254 = vector.multi_reduction <add>, %253, %cst_62 [1] : vector<2x2xf32> to vector<2xf32>
    %255 = vector.shape_cast %254 : vector<2xf32> to vector<2x1xf32>
    %256 = vector.broadcast %255 : vector<2x1xf32> to vector<2x2xf32>
    %257 = arith.divf %253, %256 : vector<2x2xf32>
    %c0_63 = arith.constant 0 : index
    %c0_64 = arith.constant 0 : index
    %258 = vector.load %arg6[%c0_63, %c0_64] : memref<2x2xf32, #tpu.memory_space<vmem>>, vector<2x2xf32>
    tpu.vector_store %arg6[%c0_63, %c0_64], %257 {strides = array<i32>} : memref<2x2xf32, #tpu.memory_space<vmem>>, vector<2x2xf32>,
    return
  }
}

</mosaic_0001>

<bundles_post_ra>
// kernel: reverse
= control target key start
LH: loop header
LB: loop body
LE: loop exit
PB: predicated region body
PF: predicated region fallthrough
CT: control target
= control target key end

     0   :  { %s104_s0 = inlined_call_operand.vmem [shape: f32[8,4,32], index: 0, kind: input, shape index: {}]   ;;  %s105_s1 = inlined_call_operand.vmem [shape: f32[8,4,32], index: 1, kind: output, shape index: {}]  }
   0x1   :  { %v32_v0 = vld [vmem:[%s104_s0 + $0x1c] sm:$0xf]  ;;  %v33_v1 = vld [vmem:[%s104_s0 + $0x18] sm:$0xf]  ;;  %v35_v2 = vld [vmem:[%s104_s0 + $0x14] sm:$0xf] }
   0x2   :  { %4 = vst [vmem:[%s105_s1] sm:$0xf] %v32_v0  ;;  %34 = vst [vmem:[%s105_s1 + $0x4] sm:$0xf] %v33_v1  ;;  %v37_v3 = vld [vmem:[%s104_s0 + $0x10] sm:$0xf] }
   0x3   :  { %36 = vst [vmem:[%s105_s1 + $0x8] sm:$0xf] %v35_v2  ;;  %v39_v4 = vld [vmem:[%s104_s0 + $0xc] sm:$0xf]  ;;  %v41_v5 = vld [vmem:[%s104_s0 + $0x8] sm:$0xf] }
   0x4   :  { %38 = vst [vmem:[%s105_s1 + $0xc] sm:$0xf] %v37_v3  ;;  %40 = vst [vmem:[%s105_s1 + $0x10] sm:$0xf] %v39_v4  ;;  %v43_v6 = vld [vmem:[%s104_s0 + $0x4] sm:$0xf] }
   0x5   :  { %42 = vst [vmem:[%s105_s1 + $0x14] sm:$0xf] %v41_v5  ;;  %v29_v7 = vld [vmem:[%s104_s0] sm:$0xf]  ;;  %44 = vst [vmem:[%s105_s1 + $0x18] sm:$0xf] %v43_v6 }
   0x6   :  { %45 = vst [vmem:[%s105_s1 + $0x1c] sm:$0xf] %v29_v7 }

// kernel: bimpm_forward.5
= control target key start
LH: loop header
LB: loop body
LE: loop exit
PB: predicated region body
PF: predicated region fallthrough
CT: control target
= control target key end

     0   :  { %vm56_vm0 = vcmask 523264   ;;  %v2355_v3 = vmov 0.0   ;;  %s2356_s14 = smov 64   ;;  %vm2358_vm2 = vmmov 0   ;;  %vm1239_vm3 = vcmask 9216   ;;  %s3022_s1 = inlined_call_operand.vmem [shape: f32[256,64], index: 1, kind: input, shape index: {}]   ;;  %s3023_s0 = inlined_call_operand.vmem [shape: f32[8,4,256], index: 0, kind: input, shape index: {}]   ;;  %s3024_s2 = inlined_call_operand.vmem [shape: f32[64,128], index: 2, kind: input, shape index: {}]   ;;  %s3025_s4 = inlined_call_operand.vmem [shape: f32[2,64], index: 4, kind: input, shape index: {}]   ;;  %s3026_s3 = inlined_call_operand.vmem [shape: f32[1,64], index: 3, kind: input, shape index: {}]   ;;  %s3027_s5 = inlined_call_operand.vmem [shape: f32[1,2], index: 5, kind: input, shape index: {}]   ;;  %s3028_s6 = inlined_call_operand.vmem [shape: f32[2,2], index: 6, kind: output, shape index: {}]  }
   0x1   :  { %v39_v0 = vld [vmem:[%s3022_s1 + $0x80] sm:$0xff]  ;;  %v40_v1 = vld [vmem:[%s3022_s1 + $0x88] sm:$0xff]  ;;  %vm2402_vm1 = vmpackc.low %vm56_vm0, %vm56_vm0  ;;  %1578 = vmatprep.mubr.f32.mxu0 %v2355_v3 }
   0x2   :  { %v2407_v4 = vpack.c.bf16 %v40_v1, %v39_v0  ;;  %v23_v5 = vld [vmem:[%s3022_s1] sm:$0xff]  ;;  %v24_v6 = vld [vmem:[%s3022_s1 + $0x8] sm:$0xff]  ;;  %v41_v7 = vld [vmem:[%s3022_s1 + $0x90] sm:$0xff] }
   0x3   :  { %v2418_v8 = vpack.c.bf16 %v24_v6, %v23_v5  ;;  %v42_v9 = vld [vmem:[%s3022_s1 + $0x98] sm:$0xff]  ;;  %v25_v11 = vld [vmem:[%s3022_s1 + $0x10] sm:$0xff]  ;;  %v43_v13 = vld [vmem:[%s3022_s1 + $0xa0] sm:$0xff] }
   0x4   :  { %1855 = vmatprep.subr.msk.bf16.mxu0 %vm2402_vm1, %v2407_v4  ;;  %v2426_v10 = vpack.c.bf16 %v42_v9, %v41_v7  ;;  %1903 = vmatprep.subr.msk.bf16.mxu1 %vm2402_vm1, %v2407_v4  ;;  %v26_v12 = vld [vmem:[%s3022_s1 + $0x18] sm:$0xff]  ;;  %v44_v14 = vld [vmem:[%s3022_s1 + $0xa8] sm:$0xff]  ;;  %v27_v17 = vld [vmem:[%s3022_s1 + $0x20] sm:$0xff] }
   0x5   :  { %1858 = vmatpush3.bf16.xpose.msk.msra.mxu0 %vm2402_vm1, %v2418_v8  ;;  %1906 = vmatpush3.bf16.xpose.msk.msra.mxu1 %vm2402_vm1, %v2418_v8  ;;  %v2455_v15 = vpack.c.bf16 %v26_v12, %v25_v11  ;;  %v2457_v16 = vpack.c.bf16 %v44_v14, %v43_v13  ;;  %v28_v18 = vld [vmem:[%s3022_s1 + $0x28] sm:$0xff]  ;;  %v45_v19 = vld [vmem:[%s3022_s1 + $0xb0] sm:$0xff]  ;;  %v46_v20 = vld [vmem:[%s3022_s1 + $0xb8] sm:$0xff] }
   0x6   :  { %1861 = vmatprep.subr.msk.bf16.mxu0 %vm2402_vm1, %v2426_v10  ;;  %1909 = vmatprep.subr.msk.bf16.mxu1 %vm2402_vm1, %v2426_v10  ;;  %v2483_v21 = vpack.c.bf16 %v28_v18, %v27_v17  ;;  %v2485_v22 = vpack.c.bf16 %v46_v20, %v45_v19  ;;  %v29_v23 = vld [vmem:[%s3022_s1 + $0x30] sm:$0xff]  ;;  %v30_v24 = vld [vmem:[%s3022_s1 + $0x38] sm:$0xff]  ;;  %v47_v25 = vld [vmem:[%s3022_s1 + $0xc0] sm:$0xff] }
   0x7   :  { %v48_v26 = vld [vmem:[%s3022_s1 + $0xc8] sm:$0xff]  ;;  %v2511_v27 = vpack.c.bf16 %v30_v24, %v29_v23  ;;  %v31_v29 = vld [vmem:[%s3022_s1 + $0x40] sm:$0xff]  ;;  %v49_v31 = vld [vmem:[%s3022_s1 + $0xd0] sm:$0xff] }
   0x8   :  { %v2513_v28 = vpack.c.bf16 %v48_v26, %v47_v25  ;;  %v32_v30 = vld [vmem:[%s3022_s1 + $0x48] sm:$0xff]  ;;  %v50_v32 = vld [vmem:[%s3022_s1 + $0xd8] sm:$0xff]  ;;  %v33_v35 = vld [vmem:[%s3022_s1 + $0x50] sm:$0xff] }
   0x9   :  { %v2539_v33 = vpack.c.bf16 %v32_v30, %v31_v29  ;;  %v2541_v34 = vpack.c.bf16 %v50_v32, %v49_v31  ;;  %v34_v36 = vld [vmem:[%s3022_s1 + $0x58] sm:$0xff]  ;;  %v51_v37 = vld [vmem:[%s3022_s1 + $0xe0] sm:$0xff]  ;;  %v52_v38 = vld [vmem:[%s3022_s1 + $0xe8] sm:$0xff] }
   0xa   :  { %v2567_v39 = vpack.c.bf16 %v34_v36, %v33_v35  ;;  %v2569_v40 = vpack.c.bf16 %v52_v38, %v51_v37  ;;  %v35_v41 = vld [vmem:[%s3022_s1 + $0x60] sm:$0xff]  ;;  %v36_v42 = vld [vmem:[%s3022_s1 + $0x68] sm:$0xff]  ;;  %v53_v43 = vld [vmem:[%s3022_s1 + $0xf0] sm:$0xff] }
   0xb   :  { %v54_v44 = vld [vmem:[%s3022_s1 + $0xf8] sm:$0xff]  ;;  %v2595_v45 = vpack.c.bf16 %v36_v42, %v35_v41  ;;  %v37_v47 = vld [vmem:[%s3022_s1 + $0x70] sm:$0xff]  ;;  %v55_v51 = vld [vmem:[%s3023_s0] sm:$0xff] }
   0xc   :  { %v2597_v46 = vpack.c.bf16 %v54_v44, %v53_v43  ;;  %v38_v48 = vld [vmem:[%s3022_s1 + $0x78] sm:$0xff]  ;;  %v1290_v18 = vld [vmem:[%s3023_s0 + $0x8] sm:$0xff] }
   0xd   :  { %1864 = vmatpush3.bf16.xpose.msk.msra.mxu0 %vm2402_vm1, %v2455_v15  ;;  %1912 = vmatpush3.bf16.xpose.msk.msra.mxu1 %vm2402_vm1, %v2455_v15  ;;  %v2617_v49 = vpack.c.bf16 %v38_v48, %v37_v47 }
   0xe   :  { %1867 = vmatprep.subr.msk.bf16.mxu0 %vm2402_vm1, %v2457_v16  ;;  %1915 = vmatprep.subr.msk.bf16.mxu1 %vm2402_vm1, %v2457_v16 }
  0x15   :  { %1870 = vmatpush3.bf16.xpose.msk.msra.mxu0 %vm2402_vm1, %v2483_v21  ;;  %1918 = vmatpush3.bf16.xpose.msk.msra.mxu1 %vm2402_vm1, %v2483_v21 }
  0x16   :  { %1873 = vmatprep.subr.msk.bf16.mxu0 %vm2402_vm1, %v2485_v22  ;;  %1921 = vmatprep.subr.msk.bf16.mxu1 %vm2402_vm1, %v2485_v22 }
  0x1d   :  { %1876 = vmatpush3.bf16.xpose.msk.msra.mxu0 %vm2402_vm1, %v2511_v27  ;;  %1924 = vmatpush3.bf16.xpose.msk.msra.mxu1 %vm2402_vm1, %v2511_v27 }
  0x1e   :  { %1879 = vmatprep.subr.msk.bf16.mxu0 %vm2402_vm1, %v2513_v28  ;;  %1927 = vmatprep.subr.msk.bf16.mxu1 %vm2402_vm1, %v2513_v28 }
  0x25   :  { %1882 = vmatpush3.bf16.xpose.msk.msra.mxu0 %vm2402_vm1, %v2539_v33  ;;  %1930 = vmatpush3.bf16.xpose.msk.msra.mxu1 %vm2402_vm1, %v2539_v33 }
  0x26   :  { %1885 = vmatprep.subr.msk.bf16.mxu0 %vm2402_vm1, %v2541_v34  ;;  %1933 = vmatprep.subr.msk.bf16.mxu1 %vm2402_vm1, %v2541_v34 }
  0x2d   :  { %1888 = vmatpush3.bf16.xpose.msk.msra.mxu0 %vm2402_vm1, %v2567_v39  ;;  %1936 = vmatpush3.bf16.xpose.msk.msra.mxu1 %vm2402_vm1, %v2567_v39 }
  0x2e   :  { %1891 = vmatprep.subr.msk.bf16.mxu0 %vm2402_vm1, %v2569_v40  ;;  %1939 = vmatprep.subr.msk.bf16.mxu1 %vm2402_vm1, %v2569_v40 }
  0x35   :  { %1894 = vmatpush3.bf16.xpose.msk.msra.mxu0 %vm2402_vm1, %v2595_v45  ;;  %1942 = vmatpush3.bf16.xpose.msk.msra.mxu1 %vm2402_vm1, %v2595_v45 }
  0x36   :  { %1897 = vmatprep.subr.msk.bf16.mxu0 %vm2402_vm1, %v2597_v46  ;;  %1945 = vmatprep.subr.msk.bf16.mxu1 %vm2402_vm1, %v2597_v46 }
  0x3d   :  { %1900 = vmatpush3.bf16.xpose.msk.msra.mxu0 %vm2402_vm1, %v2617_v49  ;;  %1948 = vmatpush3.bf16.xpose.msk.msra.mxu1 %vm2402_vm1, %v2617_v49 }
  0x3e   :  { %1951 = vmatprep.subr.msk.bf16.mxu0 %vm2402_vm1, %v2407_v4  ;;  %1999 = vmatprep.subr.msk.bf16.mxu1 %vm2402_vm1, %v2407_v4 }
  0x44   :  { %1579 = vmatmul.mubr.f32.vlgmr.msra.gmra.mrb[0].mxu0 %v2355_v3 }
  0x45   :  { %1954 = vmatpush3.bf16.xpose.msk.msra.mxu0 %vm2402_vm1, %v2418_v8 }
  0x46   :  { %1957 = vmatprep.subr.msk.bf16.mxu0 %vm2402_vm1, %v2426_v10 }
  0x4d   :  { %1960 = vmatpush3.bf16.xpose.msk.msra.mxu0 %vm2402_vm1, %v2455_v15 }
  0x4e   :  { %1963 = vmatprep.subr.msk.bf16.mxu0 %vm2402_vm1, %v2457_v16 }
  0x55   :  { %1966 = vmatpush3.bf16.xpose.msk.msra.mxu0 %vm2402_vm1, %v2483_v21 }
  0x56   :  { %1969 = vmatprep.subr.msk.bf16.mxu0 %vm2402_vm1, %v2485_v22 }
  0x5d   :  { %1972 = vmatpush3.bf16.xpose.msk.msra.mxu0 %vm2402_vm1, %v2511_v27 }
  0x5e   :  { %1975 = vmatprep.subr.msk.bf16.mxu0 %vm2402_vm1, %v2513_v28 }
  0x65   :  { %1978 = vmatpush3.bf16.xpose.msk.msra.mxu0 %vm2402_vm1, %v2539_v33 }
  0x66   :  { %1981 = vmatprep.subr.msk.bf16.mxu0 %vm2402_vm1, %v2541_v34 }
  0x6d   :  { %1984 = vmatpush3.bf16.xpose.msk.msra.mxu0 %vm2402_vm1, %v2567_v39 }
  0x6e   :  { %1987 = vmatprep.subr.msk.bf16.mxu0 %vm2402_vm1, %v2569_v40 }
  0x75   :  { %1990 = vmatpush3.bf16.xpose.msk.msra.mxu0 %vm2402_vm1, %v2595_v45 }
  0x76   :  { %1993 = vmatprep.subr.msk.bf16.mxu0 %vm2402_vm1, %v2597_v46 }
  0x7d   :  { %1996 = vmatpush3.bf16.xpose.msk.msra.mxu0 %vm2402_vm1, %v2617_v49 }
  0x7e   :  { %2047 = vmatprep.subr.msk.bf16.mxu0 %vm2402_vm1, %v2407_v4 }
 0x117   :  { %v222_v50 = vpop.f32.mrb[0].mxu0 }
 0x118   :  { %v224_v52 = vpop.f32.mrb[1].mxu0 }
 0x119   :  { %v229_v53 = vcombine.low %v222_v50, %v224_v52 }
 0x11b   :  { %v231_v54 = vadd.f32 %v229_v53, %v55_v51  ;;  %v1326_v53 = vld [vmem:[%s3023_s0 + $0x10] sm:$0xff] }
 0x11d   :  { %v1288_v55 = vmul.f32 -1.442695, %v231_v54  ;;  %v239_v56 = vrot.slane %v231_v54, 4 }
 0x11f   :  { %2253 = vpow2.f32 %v1288_v55 }
 0x120   :  { %2255 = vtanh.f32 %v239_v56 }
 0x129   :  { %v2254_v57 = vpop.eup %2253 }
 0x12a   :  { %v235_v58 = vadd.f32 1.0, %v2254_v57  ;;  %v2256_v59 = vpop.eup %2255 }
 0x12c   :  { %2257 = vrcp.f32 %v235_v58 }
 0x136   :  { %v2258_v60 = vpop.eup %2257 }
 0x137   :  { %v253_v61 = vmul.f32 %v2258_v60, %v2256_v59  ;;  %v252_v62 = vmul.f32 0.0, %v2258_v60 }
 0x139   :  { %255 = vrot.lane.b32.xlu0 %v253_v61, %s2356_s14 }
 0x13d   :  { %242 = vrot.lane.b32.xlu0 %v231_v54, %s2356_s14 }
 0x1ab   :  { %v256_v63 = vpop.permute.xlu0 %255 }
 0x1ac   :  { %v258_v0 = vadd.f32 %v256_v63, %v252_v62 }
 0x1ae   :  { %2259 = vtanh.f32 %v258_v0 }
 0x1af   :  { %v243_v5 = vpop.permute.xlu0 %242 }
 0x1b0   :  { %v244_v6 = vrot.slane %v243_v5, 4 }
 0x1b2   :  { %v1289_v7 = vmul.f32 -1.442695, %v244_v6 }
 0x1b4   :  { %2261 = vpow2.f32 %v1289_v7 }
 0x1b8   :  { %v2260_v1 = vpop.eup %2259 }
 0x1b9   :  { %261 = vrot.lane.b32.xlu1 %v2260_v1, %s2356_s14 }
 0x1be   :  { %v2262_v9 = vpop.eup %2261 }
 0x1bf   :  { %v249_v11 = vadd.f32 1.0, %v2262_v9 }
 0x1c1   :  { %2263 = vrcp.f32 %v249_v11 }
 0x1cb   :  { %v2264_v12 = vpop.eup %2263 }
 0x22b   :  { %v262_v13 = vpop.permute.xlu1 %261 }
 0x22c   :  { %v264_v14 = vmul.f32 %v2264_v12, %v262_v13 }
 0x22e   :  { %1612 = vmatprep.mubr.msk.f32.mxu1 %vm56_vm0, %v264_v14 }
 0x22f   :  { %1613 = vmatmul.mubr.msk.f32.vlgmr.msra.gmra.mrb[0].mxu1 %vm56_vm0, %v264_v14 }
 0x230   :  { %2002 = vmatpush3.bf16.xpose.msk.msra.mxu1 %vm2402_vm1, %v2418_v8 }
 0x231   :  { %2005 = vmatprep.subr.msk.bf16.mxu1 %vm2402_vm1, %v2426_v10 }
 0x238   :  { %2008 = vmatpush3.bf16.xpose.msk.msra.mxu1 %vm2402_vm1, %v2455_v15 }
 0x239   :  { %2011 = vmatprep.subr.msk.bf16.mxu1 %vm2402_vm1, %v2457_v16 }
 0x240   :  { %2014 = vmatpush3.bf16.xpose.msk.msra.mxu1 %vm2402_vm1, %v2483_v21 }
 0x241   :  { %2017 = vmatprep.subr.msk.bf16.mxu1 %vm2402_vm1, %v2485_v22 }
 0x248   :  { %2020 = vmatpush3.bf16.xpose.msk.msra.mxu1 %vm2402_vm1, %v2511_v27 }
 0x249   :  { %2023 = vmatprep.subr.msk.bf16.mxu1 %vm2402_vm1, %v2513_v28 }
 0x250   :  { %2026 = vmatpush3.bf16.xpose.msk.msra.mxu1 %vm2402_vm1, %v2539_v33 }
 0x251   :  { %2029 = vmatprep.subr.msk.bf16.mxu1 %vm2402_vm1, %v2541_v34 }
 0x258   :  { %2032 = vmatpush3.bf16.xpose.msk.msra.mxu1 %vm2402_vm1, %v2567_v39 }
 0x259   :  { %2035 = vmatprep.subr.msk.bf16.mxu1 %vm2402_vm1, %v2569_v40 }
 0x260   :  { %2038 = vmatpush3.bf16.xpose.msk.msra.mxu1 %vm2402_vm1, %v2595_v45 }
 0x261   :  { %2041 = vmatprep.subr.msk.bf16.mxu1 %vm2402_vm1, %v2597_v46 }
 0x268   :  { %2044 = vmatpush3.bf16.xpose.msk.msra.mxu1 %vm2402_vm1, %v2617_v49 }
 0x269   :  { %2095 = vmatprep.subr.msk.bf16.mxu1 %vm2402_vm1, %v2407_v4 }
 0x302   :  { %v336_v17 = vpop.f32.mrb[0].mxu1 }
 0x303   :  { %v338_v19 = vpop.f32.mrb[1].mxu1 }
 0x304   :  { %v343_v20 = vcombine.low %v336_v17, %v338_v19 }
 0x306   :  { %v345_v23 = vadd.f32 %v1290_v18, %v343_v20  ;;  %v1362_v20 = vld [vmem:[%s3023_s0 + $0x18] sm:$0xff] }
 0x308   :  { %v1324_v24 = vmul.f32 -1.442695, %v345_v23  ;;  %356 = vrot.lane.b32.xlu0 %v345_v23, %s2356_s14  ;;  %v353_v25 = vrot.slane %v345_v23, 4 }
 0x30a   :  { %2265 = vpow2.f32 %v1324_v24 }
 0x30b   :  { %2267 = vtanh.f32 %v353_v25 }
 0x314   :  { %v2266_v26 = vpop.eup %2265 }
 0x315   :  { %v349_v29 = vadd.f32 1.0, %v2266_v26  ;;  %v2268_v30 = vpop.eup %2267 }
 0x317   :  { %2269 = vrcp.f32 %v349_v29 }
 0x321   :  { %v2270_v31 = vpop.eup %2269 }
 0x322   :  { %v367_v32 = vmul.f32 %v2270_v31, %v2268_v30  ;;  %v366_v35 = vmul.f32 %v2270_v31, %v258_v0 }
 0x324   :  { %369 = vrot.lane.b32.xlu1 %v367_v32, %s2356_s14 }
 0x37a   :  { %v357_v41 = vpop.permute.xlu0 %356 }
 0x37b   :  { %v358_v42 = vrot.slane %v357_v41, 4 }
 0x37d   :  { %v1325_v43 = vmul.f32 -1.442695, %v358_v42 }
 0x396   :  { %v370_v36 = vpop.permute.xlu1 %369 }
 0x397   :  { %v372_v37 = vadd.f32 %v370_v36, %v366_v35 }
 0x399   :  { %2271 = vtanh.f32 %v372_v37 }
 0x39a   :  { %2273 = vpow2.f32 %v1325_v43 }
 0x3a3   :  { %v2272_v38 = vpop.eup %2271 }
 0x3a4   :  { %375 = vrot.lane.b32.xlu1 %v2272_v38, %s2356_s14  ;;  %v2274_v44 = vpop.eup %2273 }
 0x3a5   :  { %v363_v47 = vadd.f32 1.0, %v2274_v44 }
 0x3a7   :  { %2275 = vrcp.f32 %v363_v47 }
 0x3b1   :  { %v2276_v48 = vpop.eup %2275 }
 0x416   :  { %v376_v50 = vpop.permute.xlu1 %375 }
 0x417   :  { %v378_v51 = vmul.f32 %v2276_v48, %v376_v50 }
 0x419   :  { %1646 = vmatprep.mubr.msk.f32.mxu0 %vm56_vm0, %v378_v51 }
 0x41a   :  { %1647 = vmatmul.mubr.msk.f32.vlgmr.msra.gmra.mrb[2].mxu0 %vm56_vm0, %v378_v51 }
 0x41b   :  { %2050 = vmatpush3.bf16.xpose.msk.msra.mxu0 %vm2402_vm1, %v2418_v8 }
 0x41c   :  { %2053 = vmatprep.subr.msk.bf16.mxu0 %vm2402_vm1, %v2426_v10 }
 0x423   :  { %2056 = vmatpush3.bf16.xpose.msk.msra.mxu0 %vm2402_vm1, %v2455_v15 }
 0x424   :  { %2059 = vmatprep.subr.msk.bf16.mxu0 %vm2402_vm1, %v2457_v16 }
 0x42b   :  { %2062 = vmatpush3.bf16.xpose.msk.msra.mxu0 %vm2402_vm1, %v2483_v21 }
 0x42c   :  { %2065 = vmatprep.subr.msk.bf16.mxu0 %vm2402_vm1, %v2485_v22 }
 0x433   :  { %2068 = vmatpush3.bf16.xpose.msk.msra.mxu0 %vm2402_vm1, %v2511_v27 }
 0x434   :  { %2071 = vmatprep.subr.msk.bf16.mxu0 %vm2402_vm1, %v2513_v28 }
 0x43b   :  { %2074 = vmatpush3.bf16.xpose.msk.msra.mxu0 %vm2402_vm1, %v2539_v33 }
 0x43c   :  { %2077 = vmatprep.subr.msk.bf16.mxu0 %vm2402_vm1, %v2541_v34 }
 0x443   :  { %2080 = vmatpush3.bf16.xpose.msk.msra.mxu0 %vm2402_vm1, %v2567_v39 }
 0x444   :  { %2083 = vmatprep.subr.msk.bf16.mxu0 %vm2402_vm1, %v2569_v40 }
 0x44b   :  { %2086 = vmatpush3.bf16.xpose.msk.msra.mxu0 %vm2402_vm1, %v2595_v45 }
 0x44c   :  { %2089 = vmatprep.subr.msk.bf16.mxu0 %vm2402_vm1, %v2597_v46 }
 0x453   :  { %2092 = vmatpush3.bf16.xpose.msk.msra.mxu0 %vm2402_vm1, %v2617_v49 }
 0x454   :  { %2143 = vmatprep.subr.msk.bf16.mxu0 %vm2402_vm1, %v2407_v4 }
 0x4ed   :  { %v450_v52 = vpop.f32.mrb[2].mxu0 }
 0x4ee   :  { %v452_v54 = vpop.f32.mrb[3].mxu0 }
 0x4ef   :  { %v457_v55 = vcombine.low %v450_v52, %v452_v54  ;;  %v1398_v54 = vld [vmem:[%s3023_s0 + $0x20] sm:$0xff] }
 0x4f1   :  { %v459_v56 = vadd.f32 %v1326_v53, %v457_v55 }
 0x4f3   :  { %v1360_v57 = vmul.f32 -1.442695, %v459_v56  ;;  %470 = vrot.lane.b32.xlu1 %v459_v56, %s2356_s14  ;;  %v467_v58 = vrot.slane %v459_v56, 4 }
 0x4f5   :  { %2277 = vpow2.f32 %v1360_v57 }
 0x4f6   :  { %2279 = vtanh.f32 %v467_v58 }
 0x4ff   :  { %v2278_v59 = vpop.eup %2277 }
 0x500   :  { %v463_v60 = vadd.f32 1.0, %v2278_v59  ;;  %v2280_v61 = vpop.eup %2279 }
 0x502   :  { %2281 = vrcp.f32 %v463_v60 }
 0x50c   :  { %v2282_v62 = vpop.eup %2281 }
 0x50d   :  { %v481_v63 = vmul.f32 %v2282_v62, %v2280_v61  ;;  %v480_v0 = vmul.f32 %v2282_v62, %v372_v37 }
 0x50f   :  { %483 = vrot.lane.b32.xlu0 %v481_v63, %s2356_s14 }
 0x565   :  { %v471_v7 = vpop.permute.xlu1 %470 }
 0x566   :  { %v472_v9 = vrot.slane %v471_v7, 4 }
 0x568   :  { %v1361_v11 = vmul.f32 -1.442695, %v472_v9 }
 0x581   :  { %v484_v1 = vpop.permute.xlu0 %483 }
 0x582   :  { %v486_v5 = vadd.f32 %v484_v1, %v480_v0 }
 0x584   :  { %2283 = vtanh.f32 %v486_v5 }
 0x585   :  { %2285 = vpow2.f32 %v1361_v11 }
 0x58e   :  { %v2284_v6 = vpop.eup %2283 }
 0x58f   :  { %489 = vrot.lane.b32.xlu0 %v2284_v6, %s2356_s14  ;;  %v2286_v12 = vpop.eup %2285 }
 0x590   :  { %v477_v13 = vadd.f32 1.0, %v2286_v12 }
 0x592   :  { %2287 = vrcp.f32 %v477_v13 }
 0x59c   :  { %v2288_v14 = vpop.eup %2287 }
 0x601   :  { %v490_v17 = vpop.permute.xlu0 %489 }
 0x602   :  { %v492_v18 = vmul.f32 %v2288_v14, %v490_v17 }
 0x604   :  { %1680 = vmatprep.mubr.msk.f32.mxu1 %vm56_vm0, %v492_v18 }
 0x605   :  { %1681 = vmatmul.mubr.msk.f32.vlgmr.msra.gmra.mrb[2].mxu1 %vm56_vm0, %v492_v18 }
 0x606   :  { %2098 = vmatpush3.bf16.xpose.msk.msra.mxu1 %vm2402_vm1, %v2418_v8 }
 0x607   :  { %2101 = vmatprep.subr.msk.bf16.mxu1 %vm2402_vm1, %v2426_v10 }
 0x60e   :  { %2104 = vmatpush3.bf16.xpose.msk.msra.mxu1 %vm2402_vm1, %v2455_v15 }
 0x60f   :  { %2107 = vmatprep.subr.msk.bf16.mxu1 %vm2402_vm1, %v2457_v16 }
 0x616   :  { %2110 = vmatpush3.bf16.xpose.msk.msra.mxu1 %vm2402_vm1, %v2483_v21 }
 0x617   :  { %2113 = vmatprep.subr.msk.bf16.mxu1 %vm2402_vm1, %v2485_v22 }
 0x61e   :  { %2116 = vmatpush3.bf16.xpose.msk.msra.mxu1 %vm2402_vm1, %v2511_v27 }
 0x61f   :  { %2119 = vmatprep.subr.msk.bf16.mxu1 %vm2402_vm1, %v2513_v28 }
 0x626   :  { %2122 = vmatpush3.bf16.xpose.msk.msra.mxu1 %vm2402_vm1, %v2539_v33 }
 0x627   :  { %2125 = vmatprep.subr.msk.bf16.mxu1 %vm2402_vm1, %v2541_v34 }
 0x62e   :  { %2128 = vmatpush3.bf16.xpose.msk.msra.mxu1 %vm2402_vm1, %v2567_v39 }
 0x62f   :  { %2131 = vmatprep.subr.msk.bf16.mxu1 %vm2402_vm1, %v2569_v40 }
 0x636   :  { %2134 = vmatpush3.bf16.xpose.msk.msra.mxu1 %vm2402_vm1, %v2595_v45 }
 0x637   :  { %2137 = vmatprep.subr.msk.bf16.mxu1 %vm2402_vm1, %v2597_v46 }
 0x63e   :  { %2140 = vmatpush3.bf16.xpose.msk.msra.mxu1 %vm2402_vm1, %v2617_v49 }
 0x63f   :  { %2191 = vmatprep.subr.msk.bf16.mxu1 %vm2402_vm1, %v2407_v4 }
 0x6d8   :  { %v564_v19 = vpop.f32.mrb[2].mxu1 }
 0x6d9   :  { %v566_v23 = vpop.f32.mrb[3].mxu1 }
 0x6da   :  { %v571_v24 = vcombine.low %v564_v19, %v566_v23 }
 0x6dc   :  { %v573_v25 = vadd.f32 %v1362_v20, %v571_v24 }
 0x6de   :  { %v1396_v26 = vmul.f32 -1.442695, %v573_v25  ;;  %584 = vrot.lane.b32.xlu0 %v573_v25, %s2356_s14  ;;  %v581_v29 = vrot.slane %v573_v25, 4 }
 0x6e0   :  { %2289 = vpow2.f32 %v1396_v26 }
 0x6e1   :  { %2291 = vtanh.f32 %v581_v29 }
 0x6ea   :  { %v2290_v30 = vpop.eup %2289 }
 0x6eb   :  { %v577_v31 = vadd.f32 1.0, %v2290_v30  ;;  %v2292_v32 = vpop.eup %2291 }
 0x6ed   :  { %2293 = vrcp.f32 %v577_v31 }
 0x6f7   :  { %v2294_v35 = vpop.eup %2293 }
 0x6f8   :  { %v595_v4 = vmul.f32 %v2294_v35, %v2292_v32  ;;  %v594_v36 = vmul.f32 %v2294_v35, %v486_v5  ;;  %v1470_v35 = vld [vmem:[%s3023_s0 + $0x30] sm:$0xff] }
 0x6fa   :  { %597 = vrot.lane.b32.xlu1 %v595_v4, %s2356_s14 }
 0x750   :  { %v585_v42 = vpop.permute.xlu0 %584 }
 0x751   :  { %v586_v43 = vrot.slane %v585_v42, 4 }
 0x753   :  { %v1397_v44 = vmul.f32 -1.442695, %v586_v43 }
 0x76c   :  { %v598_v37 = vpop.permute.xlu1 %597 }
 0x76d   :  { %v600_v38 = vadd.f32 %v598_v37, %v594_v36 }
 0x76f   :  { %2295 = vtanh.f32 %v600_v38 }
 0x770   :  { %2297 = vpow2.f32 %v1397_v44 }
 0x779   :  { %v2296_v41 = vpop.eup %2295 }
 0x77a   :  { %603 = vrot.lane.b32.xlu1 %v2296_v41, %s2356_s14  ;;  %v2298_v47 = vpop.eup %2297 }
 0x77b   :  { %v591_v48 = vadd.f32 1.0, %v2298_v47 }
 0x77d   :  { %2299 = vrcp.f32 %v591_v48 }
 0x787   :  { %v2300_v50 = vpop.eup %2299 }
 0x7ec   :  { %v604_v51 = vpop.permute.xlu1 %603 }
 0x7ed   :  { %v606_v52 = vmul.f32 %v2300_v50, %v604_v51 }
 0x7ef   :  { %1714 = vmatprep.mubr.msk.f32.mxu0 %vm56_vm0, %v606_v52 }
 0x7f0   :  { %1715 = vmatmul.mubr.msk.f32.vlgmr.msra.gmra.mrb[4].mxu0 %vm56_vm0, %v606_v52 }
 0x7f1   :  { %2146 = vmatpush3.bf16.xpose.msk.msra.mxu0 %vm2402_vm1, %v2418_v8 }
 0x7f2   :  { %2149 = vmatprep.subr.msk.bf16.mxu0 %vm2402_vm1, %v2426_v10 }
 0x7f9   :  { %2152 = vmatpush3.bf16.xpose.msk.msra.mxu0 %vm2402_vm1, %v2455_v15 }
 0x7fa   :  { %2155 = vmatprep.subr.msk.bf16.mxu0 %vm2402_vm1, %v2457_v16 }
 0x801   :  { %2158 = vmatpush3.bf16.xpose.msk.msra.mxu0 %vm2402_vm1, %v2483_v21 }
 0x802   :  { %2161 = vmatprep.subr.msk.bf16.mxu0 %vm2402_vm1, %v2485_v22 }
 0x809   :  { %2164 = vmatpush3.bf16.xpose.msk.msra.mxu0 %vm2402_vm1, %v2511_v27 }
 0x80a   :  { %2167 = vmatprep.subr.msk.bf16.mxu0 %vm2402_vm1, %v2513_v28 }
 0x811   :  { %2170 = vmatpush3.bf16.xpose.msk.msra.mxu0 %vm2402_vm1, %v2539_v33 }
 0x812   :  { %2173 = vmatprep.subr.msk.bf16.mxu0 %vm2402_vm1, %v2541_v34 }
 0x819   :  { %2176 = vmatpush3.bf16.xpose.msk.msra.mxu0 %vm2402_vm1, %v2567_v39 }
 0x81a   :  { %2179 = vmatprep.subr.msk.bf16.mxu0 %vm2402_vm1, %v2569_v40 }
 0x821   :  { %2182 = vmatpush3.bf16.xpose.msk.msra.mxu0 %vm2402_vm1, %v2595_v45 }
 0x822   :  { %2185 = vmatprep.subr.msk.bf16.mxu0 %vm2402_vm1, %v2597_v46 }
 0x829   :  { %2188 = vmatpush3.bf16.xpose.msk.msra.mxu0 %vm2402_vm1, %v2617_v49 }
 0x8c3   :  { %v678_v53 = vpop.f32.mrb[4].mxu0 }
 0x8c4   :  { %v680_v55 = vpop.f32.mrb[5].mxu0 }
 0x8c5   :  { %v685_v56 = vcombine.low %v678_v53, %v680_v55 }
 0x8c7   :  { %v687_v57 = vadd.f32 %v1398_v54, %v685_v56 }
 0x8c9   :  { %v1432_v58 = vmul.f32 -1.442695, %v687_v57  ;;  %698 = vrot.lane.b32.xlu1 %v687_v57, %s2356_s14  ;;  %v695_v59 = vrot.slane %v687_v57, 4 }
 0x8cb   :  { %2301 = vpow2.f32 %v1432_v58 }
 0x8cc   :  { %2303 = vtanh.f32 %v695_v59 }
 0x8d5   :  { %v2302_v60 = vpop.eup %2301 }
 0x8d6   :  { %v691_v61 = vadd.f32 1.0, %v2302_v60  ;;  %v2304_v62 = vpop.eup %2303 }
 0x8d8   :  { %2305 = vrcp.f32 %v691_v61 }
 0x8e2   :  { %v2306_v63 = vpop.eup %2305 }
 0x8e3   :  { %v709_v0 = vmul.f32 %v2306_v63, %v2304_v62  ;;  %v708_v1 = vmul.f32 %v2306_v63, %v600_v38  ;;  %v1506_v63 = vld [vmem:[%s3023_s0 + $0x38] sm:$0xff] }
 0x8e5   :  { %711 = vrot.lane.b32.xlu0 %v709_v0, %s2356_s14 }
 0x93b   :  { %v699_v9 = vpop.permute.xlu1 %698 }
 0x93c   :  { %v700_v11 = vrot.slane %v699_v9, 4 }
 0x93e   :  { %v1433_v12 = vmul.f32 -1.442695, %v700_v11 }
 0x957   :  { %v712_v5 = vpop.permute.xlu0 %711 }
 0x958   :  { %v714_v6 = vadd.f32 %v712_v5, %v708_v1 }
 0x95a   :  { %2307 = vtanh.f32 %v714_v6 }
 0x95b   :  { %2309 = vpow2.f32 %v1433_v12 }
 0x964   :  { %v2308_v7 = vpop.eup %2307 }
 0x965   :  { %717 = vrot.lane.b32.xlu0 %v2308_v7, %s2356_s14  ;;  %v2310_v13 = vpop.eup %2309 }
 0x966   :  { %v705_v14 = vadd.f32 1.0, %v2310_v13 }
 0x968   :  { %2311 = vrcp.f32 %v705_v14 }
 0x972   :  { %v2312_v17 = vpop.eup %2311 }
 0x9d7   :  { %v718_v18 = vpop.permute.xlu0 %717 }
 0x9d8   :  { %v720_v19 = vmul.f32 %v2312_v17, %v718_v18 }
 0x9da   :  { %1748 = vmatprep.mubr.msk.f32.mxu1 %vm56_vm0, %v720_v19 }
 0x9db   :  { %1749 = vmatmul.mubr.msk.f32.vlgmr.msra.gmra.mrb[4].mxu1 %vm56_vm0, %v720_v19 }
 0x9dc   :  { %2194 = vmatpush3.bf16.xpose.msk.msra.mxu1 %vm2402_vm1, %v2418_v8 }
 0x9dd   :  { %2197 = vmatprep.subr.msk.bf16.mxu1 %vm2402_vm1, %v2426_v10  ;;  %v1434_v10 = vld [vmem:[%s3023_s0 + $0x28] sm:$0xff] }
 0x9e4   :  { %2200 = vmatpush3.bf16.xpose.msk.msra.mxu1 %vm2402_vm1, %v2455_v15 }
 0x9e5   :  { %2203 = vmatprep.subr.msk.bf16.mxu1 %vm2402_vm1, %v2457_v16 }
 0x9ec   :  { %2206 = vmatpush3.bf16.xpose.msk.msra.mxu1 %vm2402_vm1, %v2483_v21 }
 0x9ed   :  { %2209 = vmatprep.subr.msk.bf16.mxu1 %vm2402_vm1, %v2485_v22 }
 0x9f4   :  { %2212 = vmatpush3.bf16.xpose.msk.msra.mxu1 %vm2402_vm1, %v2511_v27 }
 0x9f5   :  { %2215 = vmatprep.subr.msk.bf16.mxu1 %vm2402_vm1, %v2513_v28 }
 0x9fc   :  { %2218 = vmatpush3.bf16.xpose.msk.msra.mxu1 %vm2402_vm1, %v2539_v33 }
 0x9fd   :  { %2221 = vmatprep.subr.msk.bf16.mxu1 %vm2402_vm1, %v2541_v34 }
 0xa04   :  { %2224 = vmatpush3.bf16.xpose.msk.msra.mxu1 %vm2402_vm1, %v2567_v39 }
 0xa05   :  { %2227 = vmatprep.subr.msk.bf16.mxu1 %vm2402_vm1, %v2569_v40 }
 0xa0c   :  { %2230 = vmatpush3.bf16.xpose.msk.msra.mxu1 %vm2402_vm1, %v2595_v45 }
 0xa0d   :  { %2233 = vmatprep.subr.msk.bf16.mxu1 %vm2402_vm1, %v2597_v46 }
 0xa14   :  { %2236 = vmatpush3.bf16.xpose.msk.msra.mxu1 %vm2402_vm1, %v2617_v49 }
 0xa15   :  { %1848 = vmatprep.subr.mxu1 %v2355_v3 }
 0xaae   :  { %v792_v8 = vpop.f32.mrb[4].mxu1 }
 0xaaf   :  { %v794_v15 = vpop.f32.mrb[5].mxu1 }
 0xab0   :  { %v799_v16 = vcombine.low %v792_v8, %v794_v15  ;;  %v2357_v8 = vmov 0.0|0.0   ;;  %v1070_v15 = vld [vmem:[%s3024_s2 + $0x8] sm:$0xff] }
 0xab1   :  { %2237 = vmatprep.subr.bf16.mxu0 %v2357_v8 }
 0xab2   :  { %v801_v21 = vadd.f32 %v1434_v10, %v799_v16  ;;  %v1069_v10 = vld [vmem:[%s3024_s2] sm:$0xff] }
 0xab3   :  { %v2238_v16 = vpack.c.bf16 %v1070_v15, %v1069_v10 }
 0xab4   :  { %v1468_v22 = vmul.f32 -1.442695, %v801_v21  ;;  %812 = vrot.lane.b32.xlu0 %v801_v21, %s2356_s14  ;;  %v809_v27 = vrot.slane %v801_v21, 4  ;;  %v1071_v21 = vld [vmem:[%s3024_s2 + $0x10] sm:$0xff] }
 0xab6   :  { %2313 = vpow2.f32 %v1468_v22  ;;  %v1072_v22 = vld [vmem:[%s3024_s2 + $0x18] sm:$0xff] }
 0xab7   :  { %2315 = vtanh.f32 %v809_v27 }
 0xac0   :  { %v2314_v28 = vpop.eup %2313 }
 0xac1   :  { %v805_v33 = vadd.f32 1.0, %v2314_v28  ;;  %v2316_v2 = vpop.eup %2315  ;;  %v2241_v28 = vpack.c.bf16 %v1072_v22, %v1071_v21 }
 0xac3   :  { %2317 = vrcp.f32 %v805_v33  ;;  %v1073_v33 = vld [vmem:[%s3024_s2 + $0x20] sm:$0xff] }
 0xacd   :  { %v2318_v34 = vpop.eup %2317 }
 0xace   :  { %v823_v39 = vmul.f32 %v2318_v34, %v2316_v2  ;;  %v822_v40 = vmul.f32 %v2318_v34, %v714_v6  ;;  %v1074_v2 = vld [vmem:[%s3024_s2 + $0x28] sm:$0xff] }
 0xacf   :  { %v2244_v34 = vpack.c.bf16 %v1074_v2, %v1073_v33 }
 0xad0   :  { %825 = vrot.lane.b32.xlu1 %v823_v39, %s2356_s14  ;;  %v1075_v39 = vld [vmem:[%s3024_s2 + $0x30] sm:$0xff] }
 0xb26   :  { %v813_v20 = vpop.permute.xlu0 %812 }
 0xb27   :  { %v814_v23 = vrot.slane %v813_v20, 4 }
 0xb29   :  { %v1469_v24 = vmul.f32 -1.442695, %v814_v23 }
 0xb42   :  { %v826_v45 = vpop.permute.xlu1 %825 }
 0xb43   :  { %v828_v46 = vadd.f32 %v826_v45, %v822_v40  ;;  %v1076_v40 = vld [vmem:[%s3024_s2 + $0x38] sm:$0xff] }
 0xb44   :  { %v2247_v45 = vpack.c.bf16 %v1076_v40, %v1075_v39 }
 0xb45   :  { %2319 = vtanh.f32 %v828_v46 }
 0xb46   :  { %2321 = vpow2.f32 %v1469_v24 }
 0xb4f   :  { %v2320_v49 = vpop.eup %2319 }
 0xb50   :  { %831 = vrot.lane.b32.xlu1 %v2320_v49, %s2356_s14  ;;  %v2322_v25 = vpop.eup %2321 }
 0xb51   :  { %v819_v26 = vadd.f32 1.0, %v2322_v25 }
 0xb53   :  { %2323 = vrcp.f32 %v819_v26 }
 0xb5d   :  { %v2324_v29 = vpop.eup %2323 }
 0xbc2   :  { %v832_v30 = vpop.permute.xlu1 %831 }
 0xbc3   :  { %v834_v31 = vmul.f32 %v2324_v29, %v832_v30 }
 0xbc5   :  { %1782 = vmatprep.mubr.msk.f32.mxu0 %vm56_vm0, %v834_v31 }
 0xbc6   :  { %1783 = vmatmul.mubr.msk.f32.vlgmr.msra.gmra.mrb[6].mxu0 %vm56_vm0, %v834_v31 }
 0xbc7   :  { %2239 = vmatpush3.bf16.xpose.msra.mxu0 %v2238_v16  ;;  %1845 = vmatprep.mubr.msk.f32.mxu0 %vm2358_vm2, %v2355_v3 }
 0xbc8   :  { %2240 = vmatprep.subr.bf16.mxu0 %v2357_v8 }
 0xbcf   :  { %2242 = vmatpush3.bf16.xpose.msra.mxu0 %v2241_v28 }
 0xbd0   :  { %2243 = vmatprep.subr.bf16.mxu0 %v2357_v8 }
 0xbd7   :  { %2245 = vmatpush3.bf16.xpose.msra.mxu0 %v2244_v34 }
 0xbd8   :  { %2246 = vmatprep.subr.bf16.mxu0 %v2357_v8 }
 0xbdf   :  { %2248 = vmatpush3.bf16.xpose.msra.mxu0 %v2247_v45 }
 0xc99   :  { %v906_v32 = vpop.f32.mrb[6].mxu0 }
 0xc9a   :  { %v908_v4 = vpop.f32.mrb[7].mxu0 }
 0xc9b   :  { %v913_v36 = vcombine.low %v906_v32, %v908_v4 }
 0xc9d   :  { %v915_v37 = vadd.f32 %v1470_v35, %v913_v36  ;;  %v1155_v35 = vld [vmem:[%s3025_s4] sm:$0x3] }
 0xc9f   :  { %v1504_v38 = vmul.f32 -1.442695, %v915_v37  ;;  %926 = vrot.lane.b32.xlu1 %v915_v37, %s2356_s14  ;;  %v923_v41 = vrot.slane %v915_v37, 4 }
 0xca1   :  { %2325 = vpow2.f32 %v1504_v38 }
 0xca2   :  { %2327 = vtanh.f32 %v923_v41  ;;  %v1543_v41 = vld [vmem:[%s3027_s5] ss:$0 sm:$0xff] }
 0xcab   :  { %v2326_v42 = vpop.eup %2325 }
 0xcac   :  { %v919_v43 = vadd.f32 1.0, %v2326_v42  ;;  %v2328_v44 = vpop.eup %2327 }
 0xcae   :  { %2329 = vrcp.f32 %v919_v43 }
 0xcb8   :  { %v2330_v47 = vpop.eup %2329 }
 0xcb9   :  { %v937_v48 = vmul.f32 %v2330_v47, %v2328_v44  ;;  %v936_v50 = vmul.f32 %v2330_v47, %v828_v46 }
 0xcbb   :  { %939 = vrot.lane.b32.xlu0 %v937_v48, %s2356_s14 }
 0xd11   :  { %v927_v54 = vpop.permute.xlu1 %926 }
 0xd12   :  { %v928_v55 = vrot.slane %v927_v54, 4 }
 0xd14   :  { %v1505_v56 = vmul.f32 -1.442695, %v928_v55 }
 0xd2d   :  { %v940_v51 = vpop.permute.xlu0 %939 }
 0xd2e   :  { %v942_v52 = vadd.f32 %v940_v51, %v936_v50 }
 0xd30   :  { %2331 = vtanh.f32 %v942_v52 }
 0xd31   :  { %2333 = vpow2.f32 %v1505_v56 }
 0xd3a   :  { %v2332_v53 = vpop.eup %2331 }
 0xd3b   :  { %945 = vrot.lane.b32.xlu0 %v2332_v53, %s2356_s14  ;;  %v2334_v57 = vpop.eup %2333 }
 0xd3c   :  { %v933_v58 = vadd.f32 1.0, %v2334_v57 }
 0xd3e   :  { %2335 = vrcp.f32 %v933_v58 }
 0xd48   :  { %v2336_v59 = vpop.eup %2335 }
 0xdad   :  { %v946_v60 = vpop.permute.xlu0 %945 }
 0xdae   :  { %v948_v61 = vmul.f32 %v2336_v59, %v946_v60 }
 0xdb0   :  { %1816 = vmatprep.mubr.msk.f32.mxu1 %vm56_vm0, %v948_v61 }
 0xdb1   :  { %1817 = vmatmul.mubr.msk.f32.vlgmr.msra.gmra.mrb[6].mxu1 %vm56_vm0, %v948_v61 }
 0xdb2   :  { %1850 = vmatprep.mubr.msk.f32.mxu1 %vm2358_vm2, %v2355_v3  ;;  %1849 = vmatpush3.xpose.msk.msra.mxu1 %vm56_vm0, %v1155_v35  ;;  %v1542_v3 = vld [vmem:[%s3026_s3] ss:$0 sm:$0xff] }
 0xe84   :  { %v1020_v62 = vpop.f32.mrb[6].mxu1 }
 0xe85   :  { %v1022_v0 = vpop.f32.mrb[7].mxu1 }
 0xe86   :  { %v1027_v1 = vcombine.low %v1020_v62, %v1022_v0 }
 0xe88   :  { %v1029_v5 = vadd.f32 %v1506_v63, %v1027_v1 }
 0xe8a   :  { %v1540_v6 = vmul.f32 -1.442695, %v1029_v5  ;;  %1040 = vrot.lane.b32.xlu0 %v1029_v5, %s2356_s14  ;;  %v1037_v7 = vrot.slane %v1029_v5, 4 }
 0xe8c   :  { %2337 = vpow2.f32 %v1540_v6 }
 0xe8d   :  { %2339 = vtanh.f32 %v1037_v7 }
 0xe96   :  { %v2338_v9 = vpop.eup %2337 }
 0xe97   :  { %v1033_v11 = vadd.f32 1.0, %v2338_v9  ;;  %v2340_v12 = vpop.eup %2339 }
 0xe99   :  { %2341 = vrcp.f32 %v1033_v11 }
 0xea3   :  { %v2342_v13 = vpop.eup %2341 }
 0xea4   :  { %v1051_v14 = vmul.f32 %v2342_v13, %v2340_v12  ;;  %v1050_v17 = vmul.f32 %v2342_v13, %v942_v52 }
 0xea6   :  { %1053 = vrot.lane.b32.xlu1 %v1051_v14, %s2356_s14 }
 0xefc   :  { %v1041_v46 = vpop.permute.xlu0 %1040 }
 0xefd   :  { %v1042_v49 = vrot.slane %v1041_v46, 4 }
 0xeff   :  { %v1541_v20 = vmul.f32 -1.442695, %v1042_v49 }
 0xf18   :  { %v1054_v18 = vpop.permute.xlu1 %1053 }
 0xf19   :  { %v1056_v19 = vadd.f32 %v1054_v18, %v1050_v17 }
 0xf1b   :  { %2343 = vtanh.f32 %v1056_v19 }
 0xf1c   :  { %2345 = vpow2.f32 %v1541_v20 }
 0xf25   :  { %v2344_v27 = vpop.eup %2343 }
 0xf26   :  { %1059 = vrot.lane.b32.xlu1 %v2344_v27, %s2356_s14  ;;  %v2346_v23 = vpop.eup %2345 }
 0xf27   :  { %v1047_v24 = vadd.f32 1.0, %v2346_v23 }
 0xf29   :  { %2347 = vrcp.f32 %v1047_v24 }
 0xf33   :  { %v2348_v25 = vpop.eup %2347 }
 0xf98   :  { %v1060_v26 = vpop.permute.xlu1 %1059 }
 0xf99   :  { %v1062_v29 = vmul.f32 %v2348_v25, %v1060_v26 }
 0xf9b   :  { %v1064_v30 = vrot.slane %v1062_v29, 2 }
 0xf9d   :  { %1065 = vrot.lane.b32.xlu0 %v1064_v30, %s2356_s14 }
0x100f   :  { %v1066_v31 = vpop.permute.xlu0 %1065 }
0x1010   :  { %v1068_v32 = vsel %vm56_vm0, %v1062_v29, %v1066_v31 }
0x1011   :  { %1846 = vmatmul.mubr.f32.vlgmr.msra.gmra.mrb[8].mxu0 %v1068_v32 }
0x10e4   :  { %v1150_v4 = vpop.f32.mrb[8].mxu0 }
0x10e5   :  { %v1151_v36 = vadd.f32 %v1542_v3, %v1150_v4  ;;  %v1847_v37 = vpop.f32.mrb[9].mxu0 }
0x10e7   :  { %2349 = vtanh.f32 %v1151_v36 }
0x10f1   :  { %v2350_v38 = vpop.eup %2349 }
0x10f2   :  { %1851 = vmatmul.mubr.msk.f32.vlgmr.msra.gmra.mrb[8].mxu1 %vm56_vm0, %v2350_v38 }
0x11c5   :  { %v1235_v42 = vpop.f32.mrb[8].mxu1 }
0x11c6   :  { %v1236_v43 = vadd.f32 %v1543_v41, %v1235_v42  ;;  %v1852_v44 = vpop.f32.mrb[9].mxu1 }
0x11c8   :  { %v1240_v47 = vsel %vm1239_vm3, %v1236_v43, -inf }
0x11c9   :  { %1241 = vmax.xlane.f32.xlu1 %v1240_v47 }
0x1256   :  { %v1242_v48 = vpop.xlane.xlu1 %1241 }
0x1257   :  { %v1243_v50 = vsub.f32 %v1236_v43, %v1242_v48 }
0x1259   :  { %v1244_v51 = vmul.f32 1.442695, %v1243_v50 }
0x125b   :  { %2351 = vpow2.f32 %v1244_v51 }
0x1265   :  { %v2352_v52 = vpop.eup %2351 }
0x1266   :  { %v1246_v53 = vsel %vm1239_vm3, %v2352_v52, 0.0 }
0x1267   :  { %1247 = vadd.xlane.f32.xlu0 %v1246_v53 }
0x12f4   :  { %v1248_v54 = vpop.xlane.xlu0 %1247 }
0x12f5   :  { %2353 = vrcp.f32 %v1248_v54 }
0x12ff   :  { %v2354_v55 = vpop.eup %2353 }
0x1300   :  { %v1250_v56 = vmul.f32 %v2354_v55, %v2352_v52 }
0x1302   :  { %1251 = vst.msk [vmem:[%s3028_s6] sm:$0x3] %vm1239_vm3, %v1250_v56 }

// kernel: bimpm_forward.3
= control target key start
LH: loop header
LB: loop body
LE: loop exit
PB: predicated region body
PF: predicated region fallthrough
CT: control target
= control target key end

     0   :  { %vm46_vm0 = vcmask 523264   ;;  %v2617_v3 = vmov 0.0   ;;  %s2618_s23 = smov 64   ;;  %vm284_vm2 = vcmask 253952   ;;  %s2620_s13 = smov 96   ;;  %s3716_s1 = inlined_call_operand.vmem [shape: f32[256,64], index: 1, kind: input, shape index: {}]   ;;  %s3717_s0 = inlined_call_operand.vmem [shape: f32[8,4,256], index: 0, kind: input, shape index: {}]   ;;  %s3718_s2 = inlined_call_operand.vmem [shape: f32[4,8,32], index: 2, kind: output, shape index: {0}]   ;;  %s3719_s3 = inlined_call_operand.vmem [shape: f32[4,8,32], index: 3, kind: output, shape index: {1}]  }
   0x1   :  { %v29_v0 = vld [vmem:[%s3716_s1 + $0x80] sm:$0xff]  ;;  %v30_v1 = vld [vmem:[%s3716_s1 + $0x88] sm:$0xff]  ;;  %vm2649_vm1 = vmpackc.low %vm46_vm0, %vm46_vm0  ;;  %1893 = vmatprep.mubr.f32.mxu0 %v2617_v3 }
   0x2   :  { %v2654_v4 = vpack.c.bf16 %v30_v1, %v29_v0  ;;  %v13_v5 = vld [vmem:[%s3716_s1] sm:$0xff]  ;;  %v14_v6 = vld [vmem:[%s3716_s1 + $0x8] sm:$0xff]  ;;  %v31_v7 = vld [vmem:[%s3716_s1 + $0x90] sm:$0xff] }
   0x3   :  { %v2665_v8 = vpack.c.bf16 %v14_v6, %v13_v5  ;;  %v32_v9 = vld [vmem:[%s3716_s1 + $0x98] sm:$0xff]  ;;  %v15_v11 = vld [vmem:[%s3716_s1 + $0x10] sm:$0xff]  ;;  %v33_v13 = vld [vmem:[%s3716_s1 + $0xa0] sm:$0xff] }
   0x4   :  { %2135 = vmatprep.subr.msk.bf16.mxu0 %vm2649_vm1, %v2654_v4  ;;  %v2673_v10 = vpack.c.bf16 %v32_v9, %v31_v7  ;;  %2183 = vmatprep.subr.msk.bf16.mxu1 %vm2649_vm1, %v2654_v4  ;;  %v16_v12 = vld [vmem:[%s3716_s1 + $0x18] sm:$0xff]  ;;  %v34_v14 = vld [vmem:[%s3716_s1 + $0xa8] sm:$0xff]  ;;  %v17_v17 = vld [vmem:[%s3716_s1 + $0x20] sm:$0xff] }
   0x5   :  { %2138 = vmatpush3.bf16.xpose.msk.msra.mxu0 %vm2649_vm1, %v2665_v8  ;;  %2186 = vmatpush3.bf16.xpose.msk.msra.mxu1 %vm2649_vm1, %v2665_v8  ;;  %v2702_v15 = vpack.c.bf16 %v16_v12, %v15_v11  ;;  %v2704_v16 = vpack.c.bf16 %v34_v14, %v33_v13  ;;  %v18_v18 = vld [vmem:[%s3716_s1 + $0x28] sm:$0xff]  ;;  %v35_v19 = vld [vmem:[%s3716_s1 + $0xb0] sm:$0xff]  ;;  %v36_v20 = vld [vmem:[%s3716_s1 + $0xb8] sm:$0xff]  ;;  %v2619_v11 = vmov 1966171168   ;;  %v259_v13 = vlaneseq }
   0x6   :  { %2141 = vmatprep.subr.msk.bf16.mxu0 %vm2649_vm1, %v2673_v10  ;;  %2189 = vmatprep.subr.msk.bf16.mxu1 %vm2649_vm1, %v2673_v10  ;;  %v2730_v21 = vpack.c.bf16 %v18_v18, %v17_v17  ;;  %v2732_v22 = vpack.c.bf16 %v36_v20, %v35_v19  ;;  %v19_v23 = vld [vmem:[%s3716_s1 + $0x30] sm:$0xff]  ;;  %v20_v24 = vld [vmem:[%s3716_s1 + $0x38] sm:$0xff]  ;;  %v37_v25 = vld [vmem:[%s3716_s1 + $0xc0] sm:$0xff]  ;;  %v257_v12 = vunpack.c.l.s4 %v2619_v11 }
   0x7   :  { %v38_v26 = vld [vmem:[%s3716_s1 + $0xc8] sm:$0xff]  ;;  %v2758_v27 = vpack.c.bf16 %v20_v24, %v19_v23  ;;  %v21_v29 = vld [vmem:[%s3716_s1 + $0x40] sm:$0xff]  ;;  %v39_v31 = vld [vmem:[%s3716_s1 + $0xd0] sm:$0xff]  ;;  %v2936_v17 = vshrl.u32 %v259_v13, 7 }
   0x8   :  { %v2760_v28 = vpack.c.bf16 %v38_v26, %v37_v25  ;;  %v22_v30 = vld [vmem:[%s3716_s1 + $0x48] sm:$0xff]  ;;  %v40_v32 = vld [vmem:[%s3716_s1 + $0xd8] sm:$0xff]  ;;  %v23_v35 = vld [vmem:[%s3716_s1 + $0x50] sm:$0xff]  ;;  %v258_v14 = vunpack.c.0.s8 %v257_v12 }
   0x9   :  { %v2786_v33 = vpack.c.bf16 %v22_v30, %v21_v29  ;;  %v2788_v34 = vpack.c.bf16 %v40_v32, %v39_v31  ;;  %v24_v36 = vld [vmem:[%s3716_s1 + $0x58] sm:$0xff]  ;;  %v41_v37 = vld [vmem:[%s3716_s1 + $0xe0] sm:$0xff]  ;;  %v42_v38 = vld [vmem:[%s3716_s1 + $0xe8] sm:$0xff] }
   0xa   :  { %v2814_v39 = vpack.c.bf16 %v24_v36, %v23_v35  ;;  %v2816_v40 = vpack.c.bf16 %v42_v38, %v41_v37  ;;  %v25_v41 = vld [vmem:[%s3716_s1 + $0x60] sm:$0xff]  ;;  %v26_v42 = vld [vmem:[%s3716_s1 + $0x68] sm:$0xff]  ;;  %v43_v43 = vld [vmem:[%s3716_s1 + $0xf0] sm:$0xff]  ;;  %v2939_v18 = vsub.s32 %v258_v14, %v2936_v17 }
   0xb   :  { %v44_v44 = vld [vmem:[%s3716_s1 + $0xf8] sm:$0xff]  ;;  %v2842_v45 = vpack.c.bf16 %v26_v42, %v25_v41  ;;  %v27_v47 = vld [vmem:[%s3716_s1 + $0x70] sm:$0xff]  ;;  %v45_v51 = vld [vmem:[%s3717_s0] sm:$0xff] }
   0xc   :  { %v2844_v46 = vpack.c.bf16 %v44_v44, %v43_v43  ;;  %v28_v48 = vld [vmem:[%s3716_s1 + $0x78] sm:$0xff]  ;;  %v1609_v35 = vld [vmem:[%s3717_s0 + $0x8] sm:$0xff] }
   0xd   :  { %2144 = vmatpush3.bf16.xpose.msk.msra.mxu0 %vm2649_vm1, %v2702_v15  ;;  %2192 = vmatpush3.bf16.xpose.msk.msra.mxu1 %vm2649_vm1, %v2702_v15  ;;  %v2864_v49 = vpack.c.bf16 %v28_v48, %v27_v47 }
   0xe   :  { %2147 = vmatprep.subr.msk.bf16.mxu0 %vm2649_vm1, %v2704_v16  ;;  %2195 = vmatprep.subr.msk.bf16.mxu1 %vm2649_vm1, %v2704_v16 }
  0x15   :  { %2150 = vmatpush3.bf16.xpose.msk.msra.mxu0 %vm2649_vm1, %v2730_v21  ;;  %2198 = vmatpush3.bf16.xpose.msk.msra.mxu1 %vm2649_vm1, %v2730_v21 }
  0x16   :  { %2153 = vmatprep.subr.msk.bf16.mxu0 %vm2649_vm1, %v2732_v22  ;;  %2201 = vmatprep.subr.msk.bf16.mxu1 %vm2649_vm1, %v2732_v22 }
  0x1d   :  { %2156 = vmatpush3.bf16.xpose.msk.msra.mxu0 %vm2649_vm1, %v2758_v27  ;;  %2204 = vmatpush3.bf16.xpose.msk.msra.mxu1 %vm2649_vm1, %v2758_v27 }
  0x1e   :  { %2159 = vmatprep.subr.msk.bf16.mxu0 %vm2649_vm1, %v2760_v28  ;;  %2207 = vmatprep.subr.msk.bf16.mxu1 %vm2649_vm1, %v2760_v28 }
  0x25   :  { %2162 = vmatpush3.bf16.xpose.msk.msra.mxu0 %vm2649_vm1, %v2786_v33  ;;  %2210 = vmatpush3.bf16.xpose.msk.msra.mxu1 %vm2649_vm1, %v2786_v33 }
  0x26   :  { %2165 = vmatprep.subr.msk.bf16.mxu0 %vm2649_vm1, %v2788_v34  ;;  %2213 = vmatprep.subr.msk.bf16.mxu1 %vm2649_vm1, %v2788_v34 }
  0x2d   :  { %2168 = vmatpush3.bf16.xpose.msk.msra.mxu0 %vm2649_vm1, %v2814_v39  ;;  %2216 = vmatpush3.bf16.xpose.msk.msra.mxu1 %vm2649_vm1, %v2814_v39 }
  0x2e   :  { %2171 = vmatprep.subr.msk.bf16.mxu0 %vm2649_vm1, %v2816_v40  ;;  %2219 = vmatprep.subr.msk.bf16.mxu1 %vm2649_vm1, %v2816_v40 }
  0x35   :  { %2174 = vmatpush3.bf16.xpose.msk.msra.mxu0 %vm2649_vm1, %v2842_v45  ;;  %2222 = vmatpush3.bf16.xpose.msk.msra.mxu1 %vm2649_vm1, %v2842_v45 }
  0x36   :  { %2177 = vmatprep.subr.msk.bf16.mxu0 %vm2649_vm1, %v2844_v46  ;;  %2225 = vmatprep.subr.msk.bf16.mxu1 %vm2649_vm1, %v2844_v46 }
  0x3d   :  { %2180 = vmatpush3.bf16.xpose.msk.msra.mxu0 %vm2649_vm1, %v2864_v49  ;;  %2228 = vmatpush3.bf16.xpose.msk.msra.mxu1 %vm2649_vm1, %v2864_v49 }
  0x3e   :  { %2231 = vmatprep.subr.msk.bf16.mxu0 %vm2649_vm1, %v2654_v4  ;;  %2279 = vmatprep.subr.msk.bf16.mxu1 %vm2649_vm1, %v2654_v4 }
  0x44   :  { %1894 = vmatmul.mubr.f32.vlgmr.msra.gmra.mrb[0].mxu0 %v2617_v3 }
  0x45   :  { %2234 = vmatpush3.bf16.xpose.msk.msra.mxu0 %vm2649_vm1, %v2665_v8 }
  0x46   :  { %2237 = vmatprep.subr.msk.bf16.mxu0 %vm2649_vm1, %v2673_v10 }
  0x4d   :  { %2240 = vmatpush3.bf16.xpose.msk.msra.mxu0 %vm2649_vm1, %v2702_v15 }
  0x4e   :  { %2243 = vmatprep.subr.msk.bf16.mxu0 %vm2649_vm1, %v2704_v16 }
  0x55   :  { %2246 = vmatpush3.bf16.xpose.msk.msra.mxu0 %vm2649_vm1, %v2730_v21 }
  0x56   :  { %2249 = vmatprep.subr.msk.bf16.mxu0 %vm2649_vm1, %v2732_v22 }
  0x5d   :  { %2252 = vmatpush3.bf16.xpose.msk.msra.mxu0 %vm2649_vm1, %v2758_v27 }
  0x5e   :  { %2255 = vmatprep.subr.msk.bf16.mxu0 %vm2649_vm1, %v2760_v28 }
  0x65   :  { %2258 = vmatpush3.bf16.xpose.msk.msra.mxu0 %vm2649_vm1, %v2786_v33 }
  0x66   :  { %2261 = vmatprep.subr.msk.bf16.mxu0 %vm2649_vm1, %v2788_v34 }
  0x6d   :  { %2264 = vmatpush3.bf16.xpose.msk.msra.mxu0 %vm2649_vm1, %v2814_v39 }
  0x6e   :  { %2267 = vmatprep.subr.msk.bf16.mxu0 %vm2649_vm1, %v2816_v40 }
  0x75   :  { %2270 = vmatpush3.bf16.xpose.msk.msra.mxu0 %vm2649_vm1, %v2842_v45 }
  0x76   :  { %2273 = vmatprep.subr.msk.bf16.mxu0 %vm2649_vm1, %v2844_v46 }
  0x7d   :  { %2276 = vmatpush3.bf16.xpose.msk.msra.mxu0 %vm2649_vm1, %v2864_v49 }
  0x7e   :  { %2327 = vmatprep.subr.msk.bf16.mxu0 %vm2649_vm1, %v2654_v4 }
 0x117   :  { %v212_v50 = vpop.f32.mrb[0].mxu0 }
 0x118   :  { %v214_v52 = vpop.f32.mrb[1].mxu0 }
 0x119   :  { %v219_v53 = vcombine.low %v212_v50, %v214_v52 }
 0x11b   :  { %v221_v54 = vadd.f32 %v219_v53, %v45_v51 }
 0x11d   :  { %v1607_v55 = vmul.f32 -1.442695, %v221_v54  ;;  %v229_v56 = vrot.slane %v221_v54, 4 }
 0x11f   :  { %2521 = vpow2.f32 %v1607_v55 }
 0x120   :  { %2523 = vtanh.f32 %v229_v56 }
 0x129   :  { %v2522_v57 = vpop.eup %2521 }
 0x12a   :  { %v225_v58 = vadd.f32 1.0, %v2522_v57  ;;  %v2524_v59 = vpop.eup %2523 }
 0x12c   :  { %2525 = vrcp.f32 %v225_v58 }
 0x136   :  { %v2526_v60 = vpop.eup %2525 }
 0x137   :  { %v243_v61 = vmul.f32 %v2526_v60, %v2524_v59  ;;  %v242_v62 = vmul.f32 0.0, %v2526_v60 }
 0x139   :  { %245 = vrot.lane.b32.xlu0 %v243_v61, %s2618_s23 }
 0x13d   :  { %232 = vrot.lane.b32.xlu0 %v221_v54, %s2618_s23 }
 0x1ab   :  { %v246_v63 = vpop.permute.xlu0 %245 }
 0x1ac   :  { %v2932_v0 = vadd.f32 %v246_v63, %v242_v62 }
 0x1ae   :  { %2527 = vtanh.f32 %v2932_v0 }
 0x1af   :  { %v233_v3 = vpop.permute.xlu0 %232 }
 0x1b0   :  { %v234_v5 = vrot.slane %v233_v3, 4 }
 0x1b2   :  { %v1608_v6 = vmul.f32 -1.442695, %v234_v5 }
 0x1b4   :  { %2529 = vpow2.f32 %v1608_v6 }
 0x1b8   :  { %v2528_v1 = vpop.eup %2527 }
 0x1b9   :  { %251 = vrot.lane.b32.xlu1 %v2528_v1, %s2618_s23 }
 0x1be   :  { %v2530_v7 = vpop.eup %2529 }
 0x1bf   :  { %v239_v9 = vadd.f32 1.0, %v2530_v7 }
 0x1c1   :  { %2531 = vrcp.f32 %v239_v9  ;;  %v1645_v9 = vld [vmem:[%s3717_s0 + $0x10] sm:$0xff] }
 0x1cb   :  { %v2532_v19 = vpop.eup %2531 }
 0x22b   :  { %v252_v20 = vpop.permute.xlu1 %251 }
 0x22c   :  { %v254_v23 = vmul.f32 %v2532_v19, %v252_v20 }
 0x22e   :  { %v262_v24 = vrot.slane %v254_v23, %v2939_v18  ;;  %1927 = vmatprep.mubr.msk.f32.mxu1 %vm46_vm0, %v254_v23 }
 0x22f   :  { %1928 = vmatmul.mubr.msk.f32.vlgmr.msra.gmra.mrb[0].mxu1 %vm46_vm0, %v254_v23 }
 0x230   :  { %v263_v25 = vcombine.high %v262_v24, %v262_v24  ;;  %v2945_v26 = vrot.slane %v262_v24, %v2939_v18  ;;  %2282 = vmatpush3.bf16.xpose.msk.msra.mxu1 %vm2649_vm1, %v2665_v8 }
 0x231   :  { %2285 = vmatprep.subr.msk.bf16.mxu1 %vm2649_vm1, %v2673_v10 }
 0x232   :  { %285 = vst.msk [vmem:[%s3718_s2] sm:$0x1] %vm284_vm2, %v2945_v26  ;;  %v2960_v29 = vcombine.high %v2945_v26, %v2945_v26  ;;  %v2963_v30 = vrot.slane %v263_v25, %v2939_v18 }
 0x234   :  { %287 = vst.msk [vmem:[%s3718_s2 + $0x10] sm:$0x1] %vm284_vm2, %v2960_v29  ;;  %286 = vst.msk [vmem:[%s3718_s2 + $0x8] sm:$0x1] %vm284_vm2, %v2963_v30  ;;  %v2977_v31 = vcombine.high %v2963_v30, %v2963_v30 }
 0x236   :  { %288 = vst.msk [vmem:[%s3718_s2 + $0x18] sm:$0x1] %vm284_vm2, %v2977_v31 }
 0x238   :  { %2288 = vmatpush3.bf16.xpose.msk.msra.mxu1 %vm2649_vm1, %v2702_v15 }
 0x239   :  { %2291 = vmatprep.subr.msk.bf16.mxu1 %vm2649_vm1, %v2704_v16 }
 0x240   :  { %2294 = vmatpush3.bf16.xpose.msk.msra.mxu1 %vm2649_vm1, %v2730_v21 }
 0x241   :  { %2297 = vmatprep.subr.msk.bf16.mxu1 %vm2649_vm1, %v2732_v22 }
 0x248   :  { %2300 = vmatpush3.bf16.xpose.msk.msra.mxu1 %vm2649_vm1, %v2758_v27 }
 0x249   :  { %2303 = vmatprep.subr.msk.bf16.mxu1 %vm2649_vm1, %v2760_v28 }
 0x250   :  { %2306 = vmatpush3.bf16.xpose.msk.msra.mxu1 %vm2649_vm1, %v2786_v33 }
 0x251   :  { %2309 = vmatprep.subr.msk.bf16.mxu1 %vm2649_vm1, %v2788_v34 }
 0x258   :  { %2312 = vmatpush3.bf16.xpose.msk.msra.mxu1 %vm2649_vm1, %v2814_v39 }
 0x259   :  { %2315 = vmatprep.subr.msk.bf16.mxu1 %vm2649_vm1, %v2816_v40 }
 0x260   :  { %2318 = vmatpush3.bf16.xpose.msk.msra.mxu1 %vm2649_vm1, %v2842_v45 }
 0x261   :  { %2321 = vmatprep.subr.msk.bf16.mxu1 %vm2649_vm1, %v2844_v46 }
 0x268   :  { %2324 = vmatpush3.bf16.xpose.msk.msra.mxu1 %vm2649_vm1, %v2864_v49 }
 0x269   :  { %2375 = vmatprep.subr.msk.bf16.mxu1 %vm2649_vm1, %v2654_v4 }
 0x302   :  { %v391_v32 = vpop.f32.mrb[0].mxu1 }
 0x303   :  { %v393_v36 = vpop.f32.mrb[1].mxu1 }
 0x304   :  { %v398_v37 = vcombine.low %v391_v32, %v393_v36 }
 0x306   :  { %v400_v38 = vadd.f32 %v1609_v35, %v398_v37 }
 0x308   :  { %v1643_v41 = vmul.f32 -1.442695, %v400_v38  ;;  %411 = vrot.lane.b32.xlu0 %v400_v38, %s2618_s23  ;;  %v408_v42 = vrot.slane %v400_v38, 4 }
 0x30a   :  { %2533 = vpow2.f32 %v1643_v41 }
 0x30b   :  { %2535 = vtanh.f32 %v408_v42 }
 0x314   :  { %v2534_v43 = vpop.eup %2533 }
 0x315   :  { %v404_v44 = vadd.f32 1.0, %v2534_v43  ;;  %v2536_v47 = vpop.eup %2535 }
 0x317   :  { %2537 = vrcp.f32 %v404_v44 }
 0x321   :  { %v2538_v48 = vpop.eup %2537 }
 0x322   :  { %v422_v50 = vmul.f32 %v2538_v48, %v2536_v47  ;;  %v421_v51 = vmul.f32 %v2538_v48, %v2932_v0 }
 0x324   :  { %424 = vrot.lane.b32.xlu1 %v422_v50, %s2618_s23 }
 0x37a   :  { %v412_v55 = vpop.permute.xlu0 %411 }
 0x37b   :  { %v413_v56 = vrot.slane %v412_v55, 4 }
 0x37d   :  { %v1644_v57 = vmul.f32 -1.442695, %v413_v56 }
 0x396   :  { %v425_v52 = vpop.permute.xlu1 %424 }
 0x397   :  { %v427_v53 = vadd.f32 %v425_v52, %v421_v51 }
 0x399   :  { %2539 = vtanh.f32 %v427_v53 }
 0x39a   :  { %2541 = vpow2.f32 %v1644_v57 }
 0x3a3   :  { %v2540_v54 = vpop.eup %2539 }
 0x3a4   :  { %430 = vrot.lane.b32.xlu1 %v2540_v54, %s2618_s23  ;;  %v2542_v58 = vpop.eup %2541 }
 0x3a5   :  { %v418_v59 = vadd.f32 1.0, %v2542_v58 }
 0x3a7   :  { %2543 = vrcp.f32 %v418_v59  ;;  %v1681_v59 = vld [vmem:[%s3717_s0 + $0x18] sm:$0xff] }
 0x3b1   :  { %v2544_v60 = vpop.eup %2543 }
 0x416   :  { %v431_v61 = vpop.permute.xlu1 %430 }
 0x417   :  { %v433_v62 = vmul.f32 %v2544_v60, %v431_v61 }
 0x419   :  { %v441_v63 = vrot.slane %v433_v62, %v2939_v18  ;;  %1961 = vmatprep.mubr.msk.f32.mxu0 %vm46_vm0, %v433_v62 }
 0x41a   :  { %1962 = vmatmul.mubr.msk.f32.vlgmr.msra.gmra.mrb[2].mxu0 %vm46_vm0, %v433_v62 }
 0x41b   :  { %v442_v0 = vcombine.high %v441_v63, %v441_v63  ;;  %v3037_v1 = vrot.slane %v441_v63, %v2939_v18  ;;  %2330 = vmatpush3.bf16.xpose.msk.msra.mxu0 %vm2649_vm1, %v2665_v8 }
 0x41c   :  { %2333 = vmatprep.subr.msk.bf16.mxu0 %vm2649_vm1, %v2673_v10 }
 0x41d   :  { %463 = vst.msk [vmem:[%s3718_s2 + $0x1] sm:$0x1] %vm284_vm2, %v3037_v1  ;;  %v3052_v3 = vcombine.high %v3037_v1, %v3037_v1  ;;  %v3055_v5 = vrot.slane %v442_v0, %v2939_v18 }
 0x41f   :  { %465 = vst.msk [vmem:[%s3718_s2 + $0x11] sm:$0x1] %vm284_vm2, %v3052_v3  ;;  %464 = vst.msk [vmem:[%s3718_s2 + $0x9] sm:$0x1] %vm284_vm2, %v3055_v5  ;;  %v3069_v6 = vcombine.high %v3055_v5, %v3055_v5 }
 0x421   :  { %466 = vst.msk [vmem:[%s3718_s2 + $0x19] sm:$0x1] %vm284_vm2, %v3069_v6 }
 0x423   :  { %2336 = vmatpush3.bf16.xpose.msk.msra.mxu0 %vm2649_vm1, %v2702_v15 }
 0x424   :  { %2339 = vmatprep.subr.msk.bf16.mxu0 %vm2649_vm1, %v2704_v16 }
 0x42b   :  { %2342 = vmatpush3.bf16.xpose.msk.msra.mxu0 %vm2649_vm1, %v2730_v21 }
 0x42c   :  { %2345 = vmatprep.subr.msk.bf16.mxu0 %vm2649_vm1, %v2732_v22 }
 0x433   :  { %2348 = vmatpush3.bf16.xpose.msk.msra.mxu0 %vm2649_vm1, %v2758_v27 }
 0x434   :  { %2351 = vmatprep.subr.msk.bf16.mxu0 %vm2649_vm1, %v2760_v28 }
 0x43b   :  { %2354 = vmatpush3.bf16.xpose.msk.msra.mxu0 %vm2649_vm1, %v2786_v33 }
 0x43c   :  { %2357 = vmatprep.subr.msk.bf16.mxu0 %vm2649_vm1, %v2788_v34 }
 0x443   :  { %2360 = vmatpush3.bf16.xpose.msk.msra.mxu0 %vm2649_vm1, %v2814_v39 }
 0x444   :  { %2363 = vmatprep.subr.msk.bf16.mxu0 %vm2649_vm1, %v2816_v40 }
 0x44b   :  { %2366 = vmatpush3.bf16.xpose.msk.msra.mxu0 %vm2649_vm1, %v2842_v45 }
 0x44c   :  { %2369 = vmatprep.subr.msk.bf16.mxu0 %vm2649_vm1, %v2844_v46 }
 0x453   :  { %2372 = vmatpush3.bf16.xpose.msk.msra.mxu0 %vm2649_vm1, %v2864_v49 }
 0x454   :  { %2423 = vmatprep.subr.msk.bf16.mxu0 %vm2649_vm1, %v2654_v4 }
 0x4ed   :  { %v569_v7 = vpop.f32.mrb[2].mxu0 }
 0x4ee   :  { %v571_v11 = vpop.f32.mrb[3].mxu0 }
 0x4ef   :  { %v576_v12 = vcombine.low %v569_v7, %v571_v11 }
 0x4f1   :  { %v578_v13 = vadd.f32 %v1645_v9, %v576_v12 }
 0x4f3   :  { %v1679_v14 = vmul.f32 -1.442695, %v578_v13  ;;  %589 = vrot.lane.b32.xlu1 %v578_v13, %s2618_s23  ;;  %v586_v19 = vrot.slane %v578_v13, 4 }
 0x4f5   :  { %2545 = vpow2.f32 %v1679_v14 }
 0x4f6   :  { %2547 = vtanh.f32 %v586_v19 }
 0x4ff   :  { %v2546_v20 = vpop.eup %2545 }
 0x500   :  { %v582_v23 = vadd.f32 1.0, %v2546_v20  ;;  %v2548_v24 = vpop.eup %2547 }
 0x502   :  { %2549 = vrcp.f32 %v582_v23 }
 0x50c   :  { %v2550_v25 = vpop.eup %2549 }
 0x50d   :  { %v600_v32 = vmul.f32 %v2550_v25, %v2548_v24  ;;  %v599_v35 = vmul.f32 %v2550_v25, %v427_v53 }
 0x50f   :  { %602 = vrot.lane.b32.xlu0 %v600_v32, %s2618_s23 }
 0x565   :  { %v590_v41 = vpop.permute.xlu1 %589 }
 0x566   :  { %v591_v42 = vrot.slane %v590_v41, 4 }
 0x568   :  { %v1680_v43 = vmul.f32 -1.442695, %v591_v42 }
 0x581   :  { %v603_v36 = vpop.permute.xlu0 %602 }
 0x582   :  { %v605_v37 = vadd.f32 %v603_v36, %v599_v35 }
 0x584   :  { %2551 = vtanh.f32 %v605_v37 }
 0x585   :  { %2553 = vpow2.f32 %v1680_v43 }
 0x58e   :  { %v2552_v38 = vpop.eup %2551 }
 0x58f   :  { %608 = vrot.lane.b32.xlu0 %v2552_v38, %s2618_s23  ;;  %v2554_v44 = vpop.eup %2553 }
 0x590   :  { %v596_v47 = vadd.f32 1.0, %v2554_v44 }
 0x592   :  { %2555 = vrcp.f32 %v596_v47 }
 0x59c   :  { %v2556_v48 = vpop.eup %2555 }
 0x601   :  { %v609_v50 = vpop.permute.xlu0 %608 }
 0x602   :  { %v611_v51 = vmul.f32 %v2556_v48, %v609_v50 }
 0x604   :  { %v619_v52 = vrot.slane %v611_v51, %v2939_v18  ;;  %1995 = vmatprep.mubr.msk.f32.mxu1 %vm46_vm0, %v611_v51 }
 0x605   :  { %1996 = vmatmul.mubr.msk.f32.vlgmr.msra.gmra.mrb[2].mxu1 %vm46_vm0, %v611_v51  ;;  %v1717_v51 = vld [vmem:[%s3717_s0 + $0x20] sm:$0xff] }
 0x606   :  { %v620_v53 = vcombine.high %v619_v52, %v619_v52  ;;  %v3128_v54 = vrot.slane %v619_v52, %v2939_v18  ;;  %2378 = vmatpush3.bf16.xpose.msk.msra.mxu1 %vm2649_vm1, %v2665_v8 }
 0x607   :  { %2381 = vmatprep.subr.msk.bf16.mxu1 %vm2649_vm1, %v2673_v10 }
 0x608   :  { %641 = vst.msk [vmem:[%s3718_s2 + $0x2] sm:$0x1] %vm284_vm2, %v3128_v54  ;;  %v3143_v55 = vcombine.high %v3128_v54, %v3128_v54  ;;  %v3146_v56 = vrot.slane %v620_v53, %v2939_v18 }
 0x60a   :  { %643 = vst.msk [vmem:[%s3718_s2 + $0x12] sm:$0x1] %vm284_vm2, %v3143_v55  ;;  %642 = vst.msk [vmem:[%s3718_s2 + $0xa] sm:$0x1] %vm284_vm2, %v3146_v56  ;;  %v3160_v57 = vcombine.high %v3146_v56, %v3146_v56 }
 0x60c   :  { %644 = vst.msk [vmem:[%s3718_s2 + $0x1a] sm:$0x1] %vm284_vm2, %v3160_v57 }
 0x60e   :  { %2384 = vmatpush3.bf16.xpose.msk.msra.mxu1 %vm2649_vm1, %v2702_v15 }
 0x60f   :  { %2387 = vmatprep.subr.msk.bf16.mxu1 %vm2649_vm1, %v2704_v16 }
 0x616   :  { %2390 = vmatpush3.bf16.xpose.msk.msra.mxu1 %vm2649_vm1, %v2730_v21 }
 0x617   :  { %2393 = vmatprep.subr.msk.bf16.mxu1 %vm2649_vm1, %v2732_v22 }
 0x61e   :  { %2396 = vmatpush3.bf16.xpose.msk.msra.mxu1 %vm2649_vm1, %v2758_v27 }
 0x61f   :  { %2399 = vmatprep.subr.msk.bf16.mxu1 %vm2649_vm1, %v2760_v28 }
 0x626   :  { %2402 = vmatpush3.bf16.xpose.msk.msra.mxu1 %vm2649_vm1, %v2786_v33 }
 0x627   :  { %2405 = vmatprep.subr.msk.bf16.mxu1 %vm2649_vm1, %v2788_v34 }
 0x62e   :  { %2408 = vmatpush3.bf16.xpose.msk.msra.mxu1 %vm2649_vm1, %v2814_v39 }
 0x62f   :  { %2411 = vmatprep.subr.msk.bf16.mxu1 %vm2649_vm1, %v2816_v40 }
 0x636   :  { %2414 = vmatpush3.bf16.xpose.msk.msra.mxu1 %vm2649_vm1, %v2842_v45 }
 0x637   :  { %2417 = vmatprep.subr.msk.bf16.mxu1 %vm2649_vm1, %v2844_v46 }
 0x63e   :  { %2420 = vmatpush3.bf16.xpose.msk.msra.mxu1 %vm2649_vm1, %v2864_v49 }
 0x63f   :  { %2471 = vmatprep.subr.msk.bf16.mxu1 %vm2649_vm1, %v2654_v4 }
 0x6d8   :  { %v747_v58 = vpop.f32.mrb[2].mxu1 }
 0x6d9   :  { %v749_v60 = vpop.f32.mrb[3].mxu1 }
 0x6da   :  { %v754_v61 = vcombine.low %v747_v58, %v749_v60 }
 0x6dc   :  { %v756_v62 = vadd.f32 %v1681_v59, %v754_v61 }
 0x6de   :  { %v1715_v63 = vmul.f32 -1.442695, %v756_v62  ;;  %767 = vrot.lane.b32.xlu0 %v756_v62, %s2618_s23  ;;  %v764_v0 = vrot.slane %v756_v62, 4 }
 0x6e0   :  { %2557 = vpow2.f32 %v1715_v63 }
 0x6e1   :  { %2559 = vtanh.f32 %v764_v0 }
 0x6ea   :  { %v2558_v7 = vpop.eup %2557 }
 0x6eb   :  { %v760_v9 = vadd.f32 1.0, %v2558_v7  ;;  %v2560_v11 = vpop.eup %2559 }
 0x6ed   :  { %2561 = vrcp.f32 %v760_v9 }
 0x6f7   :  { %v2562_v12 = vpop.eup %2561 }
 0x6f8   :  { %v778_v4 = vmul.f32 %v2562_v12, %v2560_v11  ;;  %v777_v13 = vmul.f32 %v2562_v12, %v605_v37 }
 0x6fa   :  { %780 = vrot.lane.b32.xlu1 %v778_v4, %s2618_s23 }
 0x750   :  { %v768_v23 = vpop.permute.xlu0 %767 }
 0x751   :  { %v769_v24 = vrot.slane %v768_v23, 4 }
 0x753   :  { %v1716_v25 = vmul.f32 -1.442695, %v769_v24 }
 0x76c   :  { %v781_v14 = vpop.permute.xlu1 %780 }
 0x76d   :  { %v783_v19 = vadd.f32 %v781_v14, %v777_v13 }
 0x76f   :  { %2563 = vtanh.f32 %v783_v19 }
 0x770   :  { %2565 = vpow2.f32 %v1716_v25 }
 0x779   :  { %v2564_v20 = vpop.eup %2563 }
 0x77a   :  { %786 = vrot.lane.b32.xlu1 %v2564_v20, %s2618_s23  ;;  %v2566_v32 = vpop.eup %2565 }
 0x77b   :  { %v774_v35 = vadd.f32 1.0, %v2566_v32 }
 0x77d   :  { %2567 = vrcp.f32 %v774_v35 }
 0x787   :  { %v2568_v36 = vpop.eup %2567 }
 0x7ec   :  { %v787_v38 = vpop.permute.xlu1 %786 }
 0x7ed   :  { %v789_v41 = vmul.f32 %v2568_v36, %v787_v38 }
 0x7ef   :  { %v797_v42 = vrot.slane %v789_v41, %v2939_v18  ;;  %2029 = vmatprep.mubr.msk.f32.mxu0 %vm46_vm0, %v789_v41 }
 0x7f0   :  { %2030 = vmatmul.mubr.msk.f32.vlgmr.msra.gmra.mrb[4].mxu0 %vm46_vm0, %v789_v41 }
 0x7f1   :  { %v798_v37 = vcombine.high %v797_v42, %v797_v42  ;;  %v3219_v43 = vrot.slane %v797_v42, %v2939_v18  ;;  %2426 = vmatpush3.bf16.xpose.msk.msra.mxu0 %vm2649_vm1, %v2665_v8 }
 0x7f2   :  { %2429 = vmatprep.subr.msk.bf16.mxu0 %vm2649_vm1, %v2673_v10 }
 0x7f3   :  { %819 = vst.msk [vmem:[%s3718_s2 + $0x3] sm:$0x1] %vm284_vm2, %v3219_v43  ;;  %v3234_v44 = vcombine.high %v3219_v43, %v3219_v43  ;;  %v3237_v47 = vrot.slane %v798_v37, %v2939_v18 }
 0x7f5   :  { %821 = vst.msk [vmem:[%s3718_s2 + $0x13] sm:$0x1] %vm284_vm2, %v3234_v44  ;;  %820 = vst.msk [vmem:[%s3718_s2 + $0xb] sm:$0x1] %vm284_vm2, %v3237_v47  ;;  %v3251_v48 = vcombine.high %v3237_v47, %v3237_v47 }
 0x7f7   :  { %822 = vst.msk [vmem:[%s3718_s2 + $0x1b] sm:$0x1] %vm284_vm2, %v3251_v48 }
 0x7f9   :  { %2432 = vmatpush3.bf16.xpose.msk.msra.mxu0 %vm2649_vm1, %v2702_v15 }
 0x7fa   :  { %2435 = vmatprep.subr.msk.bf16.mxu0 %vm2649_vm1, %v2704_v16 }
 0x801   :  { %2438 = vmatpush3.bf16.xpose.msk.msra.mxu0 %vm2649_vm1, %v2730_v21 }
 0x802   :  { %2441 = vmatprep.subr.msk.bf16.mxu0 %vm2649_vm1, %v2732_v22 }
 0x809   :  { %2444 = vmatpush3.bf16.xpose.msk.msra.mxu0 %vm2649_vm1, %v2758_v27 }
 0x80a   :  { %2447 = vmatprep.subr.msk.bf16.mxu0 %vm2649_vm1, %v2760_v28 }
 0x811   :  { %2450 = vmatpush3.bf16.xpose.msk.msra.mxu0 %vm2649_vm1, %v2786_v33 }
 0x812   :  { %2453 = vmatprep.subr.msk.bf16.mxu0 %vm2649_vm1, %v2788_v34 }
 0x819   :  { %2456 = vmatpush3.bf16.xpose.msk.msra.mxu0 %vm2649_vm1, %v2814_v39 }
 0x81a   :  { %2459 = vmatprep.subr.msk.bf16.mxu0 %vm2649_vm1, %v2816_v40 }
 0x821   :  { %2462 = vmatpush3.bf16.xpose.msk.msra.mxu0 %vm2649_vm1, %v2842_v45 }
 0x822   :  { %2465 = vmatprep.subr.msk.bf16.mxu0 %vm2649_vm1, %v2844_v46 }
 0x829   :  { %2468 = vmatpush3.bf16.xpose.msk.msra.mxu0 %vm2649_vm1, %v2864_v49 }
 0x8c3   :  { %v925_v50 = vpop.f32.mrb[4].mxu0 }
 0x8c4   :  { %v927_v52 = vpop.f32.mrb[5].mxu0 }
 0x8c5   :  { %v932_v53 = vcombine.low %v925_v50, %v927_v52 }
 0x8c7   :  { %v934_v58 = vadd.f32 %v1717_v51, %v932_v53 }
 0x8c9   :  { %v1751_v59 = vmul.f32 -1.442695, %v934_v58  ;;  %945 = vrot.lane.b32.xlu1 %v934_v58, %s2618_s23  ;;  %v942_v60 = vrot.slane %v934_v58, 4 }
 0x8cb   :  { %2569 = vpow2.f32 %v1751_v59 }
 0x8cc   :  { %2571 = vtanh.f32 %v942_v60 }
 0x8d5   :  { %v2570_v61 = vpop.eup %2569 }
 0x8d6   :  { %v938_v62 = vadd.f32 1.0, %v2570_v61  ;;  %v2572_v63 = vpop.eup %2571 }
 0x8d8   :  { %2573 = vrcp.f32 %v938_v62 }
 0x8e2   :  { %v2574_v0 = vpop.eup %2573 }
 0x8e3   :  { %v956_v7 = vmul.f32 %v2574_v0, %v2572_v63  ;;  %v955_v9 = vmul.f32 %v2574_v0, %v783_v19 }
 0x8e5   :  { %958 = vrot.lane.b32.xlu0 %v956_v7, %s2618_s23 }
 0x93b   :  { %v946_v13 = vpop.permute.xlu1 %945 }
 0x93c   :  { %v947_v14 = vrot.slane %v946_v13, 4 }
 0x93e   :  { %v1752_v20 = vmul.f32 -1.442695, %v947_v14 }
 0x957   :  { %v959_v11 = vpop.permute.xlu0 %958 }
 0x958   :  { %v961_v12 = vadd.f32 %v959_v11, %v955_v9 }
 0x95a   :  { %2575 = vtanh.f32 %v961_v12 }
 0x95b   :  { %2577 = vpow2.f32 %v1752_v20 }
 0x964   :  { %v2576_v4 = vpop.eup %2575 }
 0x965   :  { %964 = vrot.lane.b32.xlu0 %v2576_v4, %s2618_s23  ;;  %v2578_v23 = vpop.eup %2577  ;;  %v1789_v4 = vld [vmem:[%s3717_s0 + $0x30] sm:$0xff] }
 0x966   :  { %v952_v24 = vadd.f32 1.0, %v2578_v23 }
 0x968   :  { %2579 = vrcp.f32 %v952_v24 }
 0x972   :  { %v2580_v25 = vpop.eup %2579 }
 0x9d7   :  { %v965_v32 = vpop.permute.xlu0 %964 }
 0x9d8   :  { %v967_v35 = vmul.f32 %v2580_v25, %v965_v32 }
 0x9da   :  { %v975_v36 = vrot.slane %v967_v35, %v2939_v18  ;;  %2063 = vmatprep.mubr.msk.f32.mxu1 %vm46_vm0, %v967_v35 }
 0x9db   :  { %2064 = vmatmul.mubr.msk.f32.vlgmr.msra.gmra.mrb[4].mxu1 %vm46_vm0, %v967_v35 }
 0x9dc   :  { %v976_v19 = vcombine.high %v975_v36, %v975_v36  ;;  %v3307_v38 = vrot.slane %v975_v36, %v2939_v18  ;;  %2474 = vmatpush3.bf16.xpose.msk.msra.mxu1 %vm2649_vm1, %v2665_v8 }
 0x9dd   :  { %2477 = vmatprep.subr.msk.bf16.mxu1 %vm2649_vm1, %v2673_v10 }
 0x9de   :  { %997 = vst.msk [vmem:[%s3718_s2 + $0x4] sm:$0x1] %vm284_vm2, %v3307_v38  ;;  %v3322_v41 = vcombine.high %v3307_v38, %v3307_v38  ;;  %v3325_v42 = vrot.slane %v976_v19, %v2939_v18 }
 0x9e0   :  { %999 = vst.msk [vmem:[%s3718_s2 + $0x14] sm:$0x1] %vm284_vm2, %v3322_v41  ;;  %998 = vst.msk [vmem:[%s3718_s2 + $0xc] sm:$0x1] %vm284_vm2, %v3325_v42  ;;  %v3339_v8 = vcombine.high %v3325_v42, %v3325_v42 }
 0x9e2   :  { %1000 = vst.msk [vmem:[%s3718_s2 + $0x1c] sm:$0x1] %vm284_vm2, %v3339_v8 }
 0x9e4   :  { %2480 = vmatpush3.bf16.xpose.msk.msra.mxu1 %vm2649_vm1, %v2702_v15  ;;  %v1753_v15 = vld [vmem:[%s3717_s0 + $0x28] sm:$0xff] }
 0x9e5   :  { %2483 = vmatprep.subr.msk.bf16.mxu1 %vm2649_vm1, %v2704_v16 }
 0x9ec   :  { %2486 = vmatpush3.bf16.xpose.msk.msra.mxu1 %vm2649_vm1, %v2730_v21 }
 0x9ed   :  { %2489 = vmatprep.subr.msk.bf16.mxu1 %vm2649_vm1, %v2732_v22 }
 0x9f4   :  { %2492 = vmatpush3.bf16.xpose.msk.msra.mxu1 %vm2649_vm1, %v2758_v27 }
 0x9f5   :  { %2495 = vmatprep.subr.msk.bf16.mxu1 %vm2649_vm1, %v2760_v28 }
 0x9fc   :  { %2498 = vmatpush3.bf16.xpose.msk.msra.mxu1 %vm2649_vm1, %v2786_v33 }
 0x9fd   :  { %2501 = vmatprep.subr.msk.bf16.mxu1 %vm2649_vm1, %v2788_v34 }
 0xa04   :  { %2504 = vmatpush3.bf16.xpose.msk.msra.mxu1 %vm2649_vm1, %v2814_v39 }
 0xa05   :  { %2507 = vmatprep.subr.msk.bf16.mxu1 %vm2649_vm1, %v2816_v40 }
 0xa0c   :  { %2510 = vmatpush3.bf16.xpose.msk.msra.mxu1 %vm2649_vm1, %v2842_v45 }
 0xa0d   :  { %2513 = vmatprep.subr.msk.bf16.mxu1 %vm2649_vm1, %v2844_v46 }
 0xa14   :  { %2516 = vmatpush3.bf16.xpose.msk.msra.mxu1 %vm2649_vm1, %v2864_v49 }
 0xaae   :  { %v1103_v10 = vpop.f32.mrb[4].mxu1 }
 0xaaf   :  { %v1105_v16 = vpop.f32.mrb[5].mxu1 }
 0xab0   :  { %v1110_v21 = vcombine.low %v1103_v10, %v1105_v16 }
 0xab2   :  { %v1112_v22 = vadd.f32 %v1753_v15, %v1110_v21 }
 0xab4   :  { %v1787_v27 = vmul.f32 -1.442695, %v1112_v22  ;;  %1123 = vrot.lane.b32.xlu0 %v1112_v22, %s2618_s23  ;;  %v1120_v28 = vrot.slane %v1112_v22, 4 }
 0xab6   :  { %2581 = vpow2.f32 %v1787_v27 }
 0xab7   :  { %2583 = vtanh.f32 %v1120_v28 }
 0xac0   :  { %v2582_v33 = vpop.eup %2581 }
 0xac1   :  { %v1116_v34 = vadd.f32 1.0, %v2582_v33  ;;  %v2584_v39 = vpop.eup %2583 }
 0xac3   :  { %2585 = vrcp.f32 %v1116_v34 }
 0xacd   :  { %v2586_v2 = vpop.eup %2585 }
 0xace   :  { %v1134_v40 = vmul.f32 %v2586_v2, %v2584_v39  ;;  %v1133_v45 = vmul.f32 %v2586_v2, %v961_v12 }
 0xad0   :  { %1136 = vrot.lane.b32.xlu1 %v1134_v40, %s2618_s23 }
 0xb26   :  { %v1124_v50 = vpop.permute.xlu0 %1123 }
 0xb27   :  { %v1125_v51 = vrot.slane %v1124_v50, 4 }
 0xb29   :  { %v1788_v52 = vmul.f32 -1.442695, %v1125_v51 }
 0xb42   :  { %v1137_v46 = vpop.permute.xlu1 %1136 }
 0xb43   :  { %v1139_v49 = vadd.f32 %v1137_v46, %v1133_v45 }
 0xb45   :  { %2587 = vtanh.f32 %v1139_v49 }
 0xb46   :  { %2589 = vpow2.f32 %v1788_v52 }
 0xb4f   :  { %v2588_v37 = vpop.eup %2587 }
 0xb50   :  { %1142 = vrot.lane.b32.xlu1 %v2588_v37, %s2618_s23  ;;  %v2590_v53 = vpop.eup %2589 }
 0xb51   :  { %v1130_v58 = vadd.f32 1.0, %v2590_v53  ;;  %v1825_v53 = vld [vmem:[%s3717_s0 + $0x38] sm:$0xff] }
 0xb53   :  { %2591 = vrcp.f32 %v1130_v58 }
 0xb5d   :  { %v2592_v59 = vpop.eup %2591 }
 0xbc2   :  { %v1143_v60 = vpop.permute.xlu1 %1142 }
 0xbc3   :  { %v1145_v61 = vmul.f32 %v2592_v59, %v1143_v60  ;;  %v3470_v60 = vsub.s32 0, %v2936_v17 }
 0xbc5   :  { %v1153_v62 = vrot.slane %v1145_v61, %v2939_v18  ;;  %2097 = vmatprep.mubr.msk.f32.mxu0 %vm46_vm0, %v1145_v61  ;;  %v470_v17 = vrot.slane %v3037_v1, %v3470_v60 }
 0xbc6   :  { %2098 = vmatmul.mubr.msk.f32.vlgmr.msra.gmra.mrb[6].mxu0 %vm46_vm0, %v1145_v61 }
 0xbc7   :  { %v1154_v63 = vcombine.high %v1153_v62, %v1153_v62  ;;  %v3395_v0 = vrot.slane %v1153_v62, %v2939_v18 }
 0xbc9   :  { %1175 = vst.msk [vmem:[%s3718_s2 + $0x5] sm:$0x1] %vm284_vm2, %v3395_v0  ;;  %v3404_v7 = vcombine.high %v3395_v0, %v3395_v0  ;;  %v3407_v9 = vrot.slane %v1154_v63, %v2939_v18  ;;  %v292_v63 = vrot.slane %v2945_v26, %v3470_v60  ;;  %v478_v26 = vrot.slane %v3052_v3, %v3470_v60 }
 0xbca   :  { %v834_v3 = vrot.slane %v3234_v44, %v3470_v60 }
 0xbcb   :  { %1177 = vst.msk [vmem:[%s3718_s2 + $0x15] sm:$0x1] %vm284_vm2, %v3404_v7  ;;  %1176 = vst.msk [vmem:[%s3718_s2 + $0xd] sm:$0x1] %vm284_vm2, %v3407_v9  ;;  %v3421_v11 = vcombine.high %v3407_v9, %v3407_v9  ;;  %v1190_v44 = vrot.slane %v3404_v7, %v3470_v60 }
 0xbcd   :  { %1178 = vst.msk [vmem:[%s3718_s2 + $0x1d] sm:$0x1] %vm284_vm2, %v3421_v11 }
 0xc99   :  { %v1281_v12 = vpop.f32.mrb[6].mxu0 }
 0xc9a   :  { %v1283_v13 = vpop.f32.mrb[7].mxu0 }
 0xc9b   :  { %v1288_v14 = vcombine.low %v1281_v12, %v1283_v13  ;;  %v300_v12 = vrot.slane %v2960_v29, %v3470_v60  ;;  %v648_v29 = vrot.slane %v3128_v54, %v3470_v60  ;;  %v1004_v54 = vrot.slane %v3307_v38, %v3470_v60 }
 0xc9d   :  { %v1290_v20 = vadd.f32 %v1789_v4, %v1288_v14 }
 0xc9f   :  { %v1823_v23 = vmul.f32 -1.442695, %v1290_v20  ;;  %1301 = vrot.lane.b32.xlu1 %v1290_v20, %s2618_s23  ;;  %v1298_v24 = vrot.slane %v1290_v20, 4  ;;  %v656_v20 = vrot.slane %v3143_v55, %v3470_v60  ;;  %v1012_v55 = vrot.slane %v3322_v41, %v3470_v60 }
 0xca1   :  { %2593 = vpow2.f32 %v1823_v23 }
 0xca2   :  { %2595 = vtanh.f32 %v1298_v24 }
 0xcab   :  { %v2594_v25 = vpop.eup %2593 }
 0xcac   :  { %v1294_v32 = vadd.f32 1.0, %v2594_v25  ;;  %v2596_v35 = vpop.eup %2595  ;;  %v826_v25 = vrot.slane %v3219_v43, %v3470_v60  ;;  %v1182_v43 = vrot.slane %v3395_v0, %v3470_v60 }
 0xcae   :  { %2597 = vrcp.f32 %v1294_v32 }
 0xcb8   :  { %v2598_v36 = vpop.eup %2597 }
 0xcb9   :  { %v1312_v19 = vmul.f32 %v2598_v36, %v2596_v35  ;;  %v1311_v10 = vmul.f32 %v2598_v36, %v1139_v49 }
 0xcbb   :  { %1314 = vrot.lane.b32.xlu0 %v1312_v19, %s2618_s23 }
 0xd11   :  { %v1302_v22 = vpop.permute.xlu1 %1301 }
 0xd12   :  { %v1303_v27 = vrot.slane %v1302_v22, 4 }
 0xd14   :  { %v1824_v28 = vmul.f32 -1.442695, %v1303_v27 }
 0xd2d   :  { %v1315_v15 = vpop.permute.xlu0 %1314 }
 0xd2e   :  { %v3433_v16 = vadd.f32 %v1315_v15, %v1311_v10 }
 0xd30   :  { %2599 = vtanh.f32 %v3433_v16 }
 0xd31   :  { %2601 = vpow2.f32 %v1824_v28 }
 0xd3a   :  { %v2600_v21 = vpop.eup %2599 }
 0xd3b   :  { %1320 = vrot.lane.b32.xlu0 %v2600_v21, %s2618_s23  ;;  %v2602_v33 = vpop.eup %2601 }
 0xd3c   :  { %v1308_v34 = vadd.f32 1.0, %v2602_v33 }
 0xd3e   :  { %2603 = vrcp.f32 %v1308_v34 }
 0xd48   :  { %v2604_v39 = vpop.eup %2603 }
 0xdad   :  { %v1321_v2 = vpop.permute.xlu0 %1320 }
 0xdae   :  { %v1323_v40 = vmul.f32 %v2604_v39, %v1321_v2  ;;  %v296_v2 = vrot.slane %v2963_v30, %v3470_v60  ;;  %v474_v30 = vrot.slane %v3055_v5, %v3470_v60  ;;  %v652_v5 = vrot.slane %v3146_v56, %v3470_v60 }
 0xdaf   :  { %v1008_v56 = vrot.slane %v3325_v42, %v3470_v60 }
 0xdb0   :  { %v1331_v45 = vrot.slane %v1323_v40, %v2939_v18  ;;  %2131 = vmatprep.mubr.msk.f32.mxu1 %vm46_vm0, %v1323_v40 }
 0xdb1   :  { %2132 = vmatmul.mubr.msk.f32.vlgmr.msra.gmra.mrb[6].mxu1 %vm46_vm0, %v1323_v40 }
 0xdb2   :  { %v1332_v46 = vcombine.high %v1331_v45, %v1331_v45  ;;  %v1339_v49 = vrot.slane %v1331_v45, %v2939_v18  ;;  %v304_v45 = vrot.slane %v2977_v31, %v3470_v60  ;;  %v482_v31 = vrot.slane %v3069_v6, %v3470_v60 }
 0xdb3   :  { %v830_v6 = vrot.slane %v3237_v47, %v3470_v60  ;;  %v1186_v47 = vrot.slane %v3407_v9, %v3470_v60 }
 0xdb4   :  { %1353 = vst.msk [vmem:[%s3718_s2 + $0x6] sm:$0x1] %vm284_vm2, %v1339_v49  ;;  %v1347_v37 = vcombine.high %v1339_v49, %v1339_v49  ;;  %v3446_v50 = vrot.slane %v1332_v46, %v2939_v18  ;;  %v1360_v32 = vrot.slane %v1339_v49, %v3470_v60 }
 0xdb6   :  { %1355 = vst.msk [vmem:[%s3718_s2 + $0x16] sm:$0x1] %vm284_vm2, %v1347_v37  ;;  %1354 = vst.msk [vmem:[%s3718_s2 + $0xe] sm:$0x1] %vm284_vm2, %v3446_v50  ;;  %v3459_v51 = vcombine.high %v3446_v50, %v3446_v50  ;;  %v1368_v38 = vrot.slane %v1347_v37, %v3470_v60  ;;  %v660_v37 = vrot.slane %v3160_v57, %v3470_v60 }
 0xdb7   :  { %v1016_v57 = vrot.slane %v3339_v8, %v3470_v60  ;;  %v1364_v42 = vrot.slane %v3446_v50, %v3470_v60 }
 0xdb8   :  { %1356 = vst.msk [vmem:[%s3718_s2 + $0x1e] sm:$0x1] %vm284_vm2, %v3459_v51  ;;  %v1372_v8 = vrot.slane %v3459_v51, %v3470_v60 }
 0xe84   :  { %v1459_v52 = vpop.f32.mrb[6].mxu1 }
 0xe85   :  { %v1461_v58 = vpop.f32.mrb[7].mxu1 }
 0xe86   :  { %v1466_v59 = vcombine.low %v1459_v52, %v1461_v58  ;;  %v838_v52 = vrot.slane %v3251_v48, %v3470_v60  ;;  %v1194_v48 = vrot.slane %v3421_v11, %v3470_v60 }
 0xe88   :  { %v1468_v61 = vadd.f32 %v1825_v53, %v1466_v59 }
 0xe8a   :  { %v1859_v62 = vmul.f32 -1.442695, %v1468_v61  ;;  %1479 = vrot.lane.b32.xlu0 %v1468_v61, %s2618_s23  ;;  %v1476_v4 = vrot.slane %v1468_v61, 4 }
 0xe8c   :  { %2605 = vpow2.f32 %v1859_v62 }
 0xe8d   :  { %2607 = vtanh.f32 %v1476_v4 }
 0xe8e   :  { %305 = vrot.lane.b32.xlu0 %v292_v63, %s2620_s13 }
 0xe92   :  { %309 = vrot.lane.b32.xlu0 %v300_v12, %s2620_s13 }
 0xe96   :  { %v2606_v13 = vpop.eup %2605  ;;  %483 = vrot.lane.b32.xlu0 %v470_v17, %s2620_s13 }
 0xe97   :  { %v1472_v14 = vadd.f32 1.0, %v2606_v13  ;;  %v2608_v1 = vpop.eup %2607 }
 0xe99   :  { %2609 = vrcp.f32 %v1472_v14 }
 0xe9a   :  { %487 = vrot.lane.b32.xlu0 %v478_v26, %s2620_s13 }
 0xe9e   :  { %661 = vrot.lane.b32.xlu0 %v648_v29, %s2620_s13 }
 0xea2   :  { %665 = vrot.lane.b32.xlu0 %v656_v20, %s2620_s13 }
 0xea3   :  { %v2610_v23 = vpop.eup %2609 }
 0xea4   :  { %v1490_v24 = vmul.f32 %v2610_v23, %v2608_v1  ;;  %v1489_v15 = vmul.f32 %v2610_v23, %v3433_v16 }
 0xea6   :  { %1492 = vrot.lane.b32.xlu1 %v1490_v24, %s2618_s23  ;;  %839 = vrot.lane.b32.xlu0 %v826_v25, %s2620_s13 }
 0xeaa   :  { %843 = vrot.lane.b32.xlu0 %v834_v3, %s2620_s13 }
 0xeae   :  { %1017 = vrot.lane.b32.xlu0 %v1004_v54, %s2620_s13 }
 0xeb2   :  { %1021 = vrot.lane.b32.xlu0 %v1012_v55, %s2620_s13 }
 0xeb6   :  { %1195 = vrot.lane.b32.xlu0 %v1182_v43, %s2620_s13 }
 0xeba   :  { %1199 = vrot.lane.b32.xlu0 %v1190_v44, %s2620_s13 }
 0xebe   :  { %1373 = vrot.lane.b32.xlu0 %v1360_v32, %s2620_s13 }
 0xec2   :  { %1377 = vrot.lane.b32.xlu0 %v1368_v38, %s2620_s13 }
 0xefc   :  { %v3514_v41 = vpop.permute.xlu0 %1479 }
 0xefd   :  { %v1481_v53 = vrot.slane %v3514_v41, 4 }
 0xeff   :  { %v1860_v9 = vmul.f32 -1.442695, %v1481_v53 }
 0xf00   :  { %v306_v35 = vpop.permute.xlu0 %305 }
 0xf01   :  { %317 = vst.msk [vmem:[%s3719_s3 + $0x7] sm:$0x1] %vm284_vm2, %v306_v35 }
 0xf04   :  { %v310_v0 = vpop.permute.xlu0 %309 }
 0xf05   :  { %319 = vst.msk [vmem:[%s3719_s3 + $0x17] sm:$0x1] %vm284_vm2, %v310_v0 }
 0xf08   :  { %v484_v7 = vpop.permute.xlu0 %483 }
 0xf09   :  { %495 = vst.msk [vmem:[%s3719_s3 + $0x6] sm:$0x1] %vm284_vm2, %v484_v7 }
 0xf0c   :  { %v488_v36 = vpop.permute.xlu0 %487 }
 0xf0d   :  { %497 = vst.msk [vmem:[%s3719_s3 + $0x16] sm:$0x1] %vm284_vm2, %v488_v36 }
 0xf10   :  { %v662_v19 = vpop.permute.xlu0 %661 }
 0xf11   :  { %673 = vst.msk [vmem:[%s3719_s3 + $0x5] sm:$0x1] %vm284_vm2, %v662_v19 }
 0xf14   :  { %v666_v10 = vpop.permute.xlu0 %665 }
 0xf15   :  { %675 = vst.msk [vmem:[%s3719_s3 + $0x15] sm:$0x1] %vm284_vm2, %v666_v10 }
 0xf18   :  { %v1493_v21 = vpop.permute.xlu1 %1492  ;;  %v840_v22 = vpop.permute.xlu0 %839 }
 0xf19   :  { %v1495_v27 = vadd.f32 %v1493_v21, %v1489_v15  ;;  %851 = vst.msk [vmem:[%s3719_s3 + $0x4] sm:$0x1] %vm284_vm2, %v840_v22 }
 0xf1b   :  { %2611 = vtanh.f32 %v1495_v27 }
 0xf1c   :  { %v844_v28 = vpop.permute.xlu0 %843  ;;  %2613 = vpow2.f32 %v1860_v9 }
 0xf1d   :  { %853 = vst.msk [vmem:[%s3719_s3 + $0x14] sm:$0x1] %vm284_vm2, %v844_v28 }
 0xf20   :  { %v1018_v33 = vpop.permute.xlu0 %1017 }
 0xf21   :  { %1029 = vst.msk [vmem:[%s3719_s3 + $0x3] sm:$0x1] %vm284_vm2, %v1018_v33 }
 0xf24   :  { %v1022_v16 = vpop.permute.xlu0 %1021 }
 0xf25   :  { %v2612_v34 = vpop.eup %2611  ;;  %1031 = vst.msk [vmem:[%s3719_s3 + $0x13] sm:$0x1] %vm284_vm2, %v1022_v16 }
 0xf26   :  { %1498 = vrot.lane.b32.xlu1 %v2612_v34, %s2618_s23  ;;  %v2614_v58 = vpop.eup %2613 }
 0xf27   :  { %v1486_v59 = vadd.f32 1.0, %v2614_v58 }
 0xf28   :  { %v1196_v39 = vpop.permute.xlu0 %1195 }
 0xf29   :  { %1207 = vst.msk [vmem:[%s3719_s3 + $0x2] sm:$0x1] %vm284_vm2, %v1196_v39  ;;  %2615 = vrcp.f32 %v1486_v59 }
 0xf2a   :  { %307 = vrot.lane.b32.xlu1 %v296_v2, %s2620_s13 }
 0xf2c   :  { %v1200_v40 = vpop.permute.xlu0 %1199 }
 0xf2d   :  { %1209 = vst.msk [vmem:[%s3719_s3 + $0x12] sm:$0x1] %vm284_vm2, %v1200_v40 }
 0xf2e   :  { %311 = vrot.lane.b32.xlu1 %v304_v45, %s2620_s13 }
 0xf30   :  { %v1374_v46 = vpop.permute.xlu0 %1373 }
 0xf31   :  { %1385 = vst.msk [vmem:[%s3719_s3 + $0x1] sm:$0x1] %vm284_vm2, %v1374_v46 }
 0xf32   :  { %485 = vrot.lane.b32.xlu1 %v474_v30, %s2620_s13 }
 0xf33   :  { %v2616_v11 = vpop.eup %2615 }
 0xf34   :  { %v1378_v49 = vpop.permute.xlu0 %1377 }
 0xf35   :  { %1387 = vst.msk [vmem:[%s3719_s3 + $0x11] sm:$0x1] %vm284_vm2, %v1378_v49 }
 0xf36   :  { %489 = vrot.lane.b32.xlu1 %v482_v31, %s2620_s13 }
 0xf3a   :  { %663 = vrot.lane.b32.xlu1 %v652_v5, %s2620_s13 }
 0xf3e   :  { %667 = vrot.lane.b32.xlu1 %v660_v37, %s2620_s13 }
 0xf42   :  { %841 = vrot.lane.b32.xlu1 %v830_v6, %s2620_s13 }
 0xf46   :  { %845 = vrot.lane.b32.xlu1 %v838_v52, %s2620_s13 }
 0xf4a   :  { %1019 = vrot.lane.b32.xlu1 %v1008_v56, %s2620_s13 }
 0xf4e   :  { %1023 = vrot.lane.b32.xlu1 %v1016_v57, %s2620_s13 }
 0xf52   :  { %1197 = vrot.lane.b32.xlu1 %v1186_v47, %s2620_s13 }
 0xf56   :  { %1201 = vrot.lane.b32.xlu1 %v1194_v48, %s2620_s13 }
 0xf5a   :  { %1375 = vrot.lane.b32.xlu1 %v1364_v42, %s2620_s13 }
 0xf5e   :  { %1379 = vrot.lane.b32.xlu1 %v1372_v8, %s2620_s13 }
 0xf98   :  { %v1499_v61 = vpop.permute.xlu1 %1498 }
 0xf99   :  { %v1501_v62 = vmul.f32 %v2616_v11, %v1499_v61 }
 0xf9b   :  { %v1509_v63 = vrot.slane %v1501_v62, %v2939_v18 }
 0xf9c   :  { %v308_v50 = vpop.permute.xlu1 %307 }
 0xf9d   :  { %v1510_v12 = vcombine.high %v1509_v63, %v1509_v63  ;;  %v1517_v4 = vrot.slane %v1509_v63, %v2939_v18  ;;  %318 = vst.msk [vmem:[%s3719_s3 + $0xf] sm:$0x1] %vm284_vm2, %v308_v50 }
 0xf9f   :  { %v1524_v51 = vrot.slane %v1510_v12, %v2939_v18  ;;  %1531 = vst.msk [vmem:[%s3718_s2 + $0x7] sm:$0x1] %vm284_vm2, %v1517_v4  ;;  %v1538_v17 = vrot.slane %v1517_v4, %v3470_v60  ;;  %v1525_v13 = vcombine.high %v1517_v4, %v1517_v4 }
 0xfa0   :  { %v312_v14 = vpop.permute.xlu1 %311 }
 0xfa1   :  { %1532 = vst.msk [vmem:[%s3718_s2 + $0xf] sm:$0x1] %vm284_vm2, %v1524_v51  ;;  %320 = vst.msk [vmem:[%s3719_s3 + $0x1f] sm:$0x1] %vm284_vm2, %v312_v14  ;;  %1551 = vrot.lane.b32.xlu0 %v1538_v17, %s2620_s13  ;;  %v1542_v18 = vrot.slane %v1524_v51, %v3470_v60  ;;  %v1526_v26 = vcombine.high %v1524_v51, %v1524_v51  ;;  %v1546_v29 = vrot.slane %v1525_v13, %v3470_v60 }
 0xfa2   :  { %1533 = vst.msk [vmem:[%s3718_s2 + $0x17] sm:$0x1] %vm284_vm2, %v1525_v13 }
 0xfa3   :  { %1553 = vrot.lane.b32.xlu1 %v1542_v18, %s2620_s13  ;;  %1534 = vst.msk [vmem:[%s3718_s2 + $0x1f] sm:$0x1] %vm284_vm2, %v1526_v26  ;;  %v1550_v1 = vrot.slane %v1526_v26, %v3470_v60 }
 0xfa4   :  { %v486_v20 = vpop.permute.xlu1 %485 }
 0xfa5   :  { %496 = vst.msk [vmem:[%s3719_s3 + $0xe] sm:$0x1] %vm284_vm2, %v486_v20  ;;  %1555 = vrot.lane.b32.xlu0 %v1546_v29, %s2620_s13 }
 0xfa7   :  { %1557 = vrot.lane.b32.xlu1 %v1550_v1, %s2620_s13 }
 0xfa8   :  { %v490_v23 = vpop.permute.xlu1 %489 }
 0xfa9   :  { %498 = vst.msk [vmem:[%s3719_s3 + $0x1e] sm:$0x1] %vm284_vm2, %v490_v23 }
 0xfac   :  { %v664_v24 = vpop.permute.xlu1 %663 }
 0xfad   :  { %674 = vst.msk [vmem:[%s3719_s3 + $0xd] sm:$0x1] %vm284_vm2, %v664_v24 }
 0xfb0   :  { %v668_v25 = vpop.permute.xlu1 %667 }
 0xfb1   :  { %676 = vst.msk [vmem:[%s3719_s3 + $0x1d] sm:$0x1] %vm284_vm2, %v668_v25 }
 0xfb4   :  { %v842_v60 = vpop.permute.xlu1 %841 }
 0xfb5   :  { %852 = vst.msk [vmem:[%s3719_s3 + $0xc] sm:$0x1] %vm284_vm2, %v842_v60 }
 0xfb8   :  { %v846_v3 = vpop.permute.xlu1 %845 }
 0xfb9   :  { %854 = vst.msk [vmem:[%s3719_s3 + $0x1c] sm:$0x1] %vm284_vm2, %v846_v3 }
 0xfbc   :  { %v1020_v54 = vpop.permute.xlu1 %1019 }
 0xfbd   :  { %1030 = vst.msk [vmem:[%s3719_s3 + $0xb] sm:$0x1] %vm284_vm2, %v1020_v54 }
 0xfc0   :  { %v1024_v55 = vpop.permute.xlu1 %1023 }
 0xfc1   :  { %1032 = vst.msk [vmem:[%s3719_s3 + $0x1b] sm:$0x1] %vm284_vm2, %v1024_v55 }
 0xfc4   :  { %v1198_v43 = vpop.permute.xlu1 %1197 }
 0xfc5   :  { %1208 = vst.msk [vmem:[%s3719_s3 + $0xa] sm:$0x1] %vm284_vm2, %v1198_v43 }
 0xfc8   :  { %v1202_v44 = vpop.permute.xlu1 %1201 }
 0xfc9   :  { %1210 = vst.msk [vmem:[%s3719_s3 + $0x1a] sm:$0x1] %vm284_vm2, %v1202_v44 }
 0xfcc   :  { %v1376_v32 = vpop.permute.xlu1 %1375 }
 0xfcd   :  { %1386 = vst.msk [vmem:[%s3719_s3 + $0x9] sm:$0x1] %vm284_vm2, %v1376_v32 }
 0xfd0   :  { %v1380_v38 = vpop.permute.xlu1 %1379 }
 0xfd1   :  { %1388 = vst.msk [vmem:[%s3719_s3 + $0x19] sm:$0x1] %vm284_vm2, %v1380_v38 }
0x1013   :  { %v1552_v41 = vpop.permute.xlu0 %1551 }
0x1014   :  { %1563 = vst.msk [vmem:[%s3719_s3] sm:$0x1] %vm284_vm2, %v1552_v41 }
0x1015   :  { %v1554_v35 = vpop.permute.xlu1 %1553 }
0x1016   :  { %1564 = vst.msk [vmem:[%s3719_s3 + $0x8] sm:$0x1] %vm284_vm2, %v1554_v35 }
0x1017   :  { %v1556_v0 = vpop.permute.xlu0 %1555 }
0x1018   :  { %1565 = vst.msk [vmem:[%s3719_s3 + $0x10] sm:$0x1] %vm284_vm2, %v1556_v0 }
0x1019   :  { %v1558_v7 = vpop.permute.xlu1 %1557 }
0x101a   :  { %1566 = vst.msk [vmem:[%s3719_s3 + $0x18] sm:$0x1] %vm284_vm2, %v1558_v7 }

// kernel: bimpm_forward.4
= control target key start
LH: loop header
LB: loop body
LE: loop exit
PB: predicated region body
PF: predicated region fallthrough
CT: control target
= control target key end

     0   :  { %vm96_vm0 = vcmask 261120   ;;  %vm430_vm2 = vcmask 1041409   ;;  %v337_v59 = vlaneseq  ;;  %v12172_v62 = vmov 0.0|0.0   ;;  %s9427_s10 = smov 64   ;;  %s9428_s11 = smov 96   ;;  %s12163_s4 = inlined_call_operand.vmem [shape: f32[2,128,32], index: 4, kind: input, shape index: {}]   ;;  %s12164_s0 = inlined_call_operand.vmem [shape: f32[2,8,32], index: 0, kind: input, shape index: {}]   ;;  %s12165_s2 = inlined_call_operand.vmem [shape: f32[2,8,32], index: 2, kind: input, shape index: {}]   ;;  %s12166_s1 = inlined_call_operand.vmem [shape: f32[2,8,32], index: 1, kind: input, shape index: {}]   ;;  %s12167_s3 = inlined_call_operand.vmem [shape: f32[2,8,32], index: 3, kind: input, shape index: {}]   ;;  %s12168_s5 = inlined_call_operand.vmem [shape: f32[2,8,256], index: 5, kind: output, shape index: {0}]   ;;  %s12169_s6 = inlined_call_operand.vmem [shape: f32[2,8,256], index: 6, kind: output, shape index: {1}]  }
   0x1   :  { %v30_v0 = vld [vmem:[%s12163_s4] sm:$0xff]  ;;  %v31_v1 = vld [vmem:[%s12163_s4 + $0x8] sm:$0xff]  ;;  %v32_v4 = vld [vmem:[%s12163_s4 + $0x10] sm:$0xff]  ;;  %vm9424_vm3 = vmmov 0  }
   0x2   :  { %v62_v2 = vmul.f32 %v30_v0, %v30_v0  ;;  %v63_v3 = vmul.f32 %v31_v1, %v31_v1  ;;  %v33_v5 = vld [vmem:[%s12163_s4 + $0x18] sm:$0xff]  ;;  %vm9479_vm1 = vmpackc.low %vm96_vm0, %vm96_vm0  ;;  %v64_v7 = vmul.f32 %v32_v4, %v32_v4  ;;  %v34_v11 = vld [vmem:[%s12163_s4 + $0x20] sm:$0xff]  ;;  %v9674_v60 = vshrl.u32 %v337_v59, 7 }
   0x3   :  { %v65_v8 = vmul.f32 %v33_v5, %v33_v5  ;;  %v35_v12 = vld [vmem:[%s12163_s4 + $0x28] sm:$0xff]  ;;  %v9502_v13 = vld [vmem:[%s12164_s0] sm:$0xff]  ;;  %v66_v17 = vmul.f32 %v34_v11, %v34_v11  ;;  %v36_v29 = vld [vmem:[%s12163_s4 + $0x30] sm:$0xff]  ;;  %v12170_v1 = vmov 0.0  }
   0x4   :  { %v9483_v9 = vpack.c.bf16 %v63_v3, %v62_v2  ;;  %v9513_v14 = vld [vmem:[%s12164_s0 + $0x8] sm:$0xff]  ;;  %v9518_v15 = vld [vmem:[%s12165_s2] sm:$0xff]  ;;  %v67_v18 = vmul.f32 %v35_v12, %v35_v12  ;;  %v94_v19 = vmul.f32 %v9502_v13, %v9502_v13  ;;  %v37_v30 = vld [vmem:[%s12163_s4 + $0x38] sm:$0xff]  ;;  %v68_v35 = vmul.f32 %v36_v29, %v36_v29 }
   0x5   :  { %v9485_v10 = vpack.c.bf16 %v65_v8, %v64_v7  ;;  %v9523_v16 = vld [vmem:[%s12165_s2 + $0x8] sm:$0xff]  ;;  %v240_v20 = vmul.f32 %v9518_v15, %v9518_v15  ;;  %v9537_v21 = vmul.f32 %v9513_v14, %v9513_v14  ;;  %v69_v36 = vmul.f32 %v37_v30, %v37_v30  ;;  %v38_v39 = vld [vmem:[%s12163_s4 + $0x40] sm:$0xff]  ;;  %v40_v44 = vld [vmem:[%s12163_s4 + $0x50] sm:$0xff] }
   0x6   :  { %8701 = vmatprep.subr.msk.bf16.mxu0 %vm9479_vm1, %v9483_v9  ;;  %8749 = vmatprep.subr.msk.bf16.mxu1 %vm9479_vm1, %v9483_v9  ;;  %v9541_v22 = vmul.f32 %v9523_v16, %v9523_v16  ;;  %v643_v23 = vrot.slane %v94_v19, 7  ;;  %v9546_v26 = vpack.c.bf16 %v67_v18, %v66_v17  ;;  %v1589_v33 = vsel %vm96_vm0, %v94_v19, 0.0  ;;  %v39_v40 = vld [vmem:[%s12163_s4 + $0x48] sm:$0xff]  ;;  %v41_v45 = vld [vmem:[%s12163_s4 + $0x58] sm:$0xff]  ;;  %v42_v49 = vld [vmem:[%s12163_s4 + $0x60] sm:$0xff] }
   0x7   :  { %8704 = vmatpush3.bf16.xpose.msk.msra.mxu0 %vm9479_vm1, %v9483_v9  ;;  %8752 = vmatpush3.bf16.xpose.msk.msra.mxu1 %vm9479_vm1, %v9483_v9  ;;  %v428_v24 = vrot.slane %v240_v20, 7  ;;  %v644_v25 = vrot.slane %v9537_v21, 6  ;;  %v1609_v28 = vsel %vm96_vm0, %v240_v20, 0.0  ;;  %v1592_v37 = vsel %vm96_vm0, %v9537_v21, 0.0  ;;  %v43_v50 = vld [vmem:[%s12163_s4 + $0x68] sm:$0xff]  ;;  %v44_v54 = vld [vmem:[%s12163_s4 + $0x70] sm:$0xff] }
   0x8   :  { %8707 = vmatprep.subr.msk.bf16.mxu0 %vm9479_vm1, %v9485_v10  ;;  %8755 = vmatprep.subr.msk.bf16.mxu1 %vm9479_vm1, %v9485_v10  ;;  %v429_v27 = vrot.slane %v9541_v22, 6  ;;  %v1612_v34 = vsel %vm96_vm0, %v9541_v22, 0.0  ;;  %v9579_v38 = vpack.c.bf16 %v69_v36, %v68_v35  ;;  %v70_v41 = vmul.f32 %v38_v39, %v38_v39  ;;  %v45_v55 = vld [vmem:[%s12163_s4 + $0x78] sm:$0xff] }
   0x9   :  { %8183 = vmatprep.mubr.msk.f32.mxu0 %vm96_vm0, %v94_v19  ;;  %8218 = vmatprep.mubr.msk.f32.mxu1 %vm96_vm0, %v240_v20  ;;  %v9557_v31 = vsel %vm430_vm2, %v644_v25, %v643_v23  ;;  %v71_v42 = vmul.f32 %v39_v40, %v39_v40  ;;  %v72_v46 = vmul.f32 %v40_v44, %v40_v44  ;;  %v9677_v61 = vsub.s32 7, %v9674_v60 }
   0xa   :  { %1610 = vadd.xlane.f32.xlu0 %v1609_v28  ;;  %v9560_v32 = vsel %vm430_vm2, %v429_v27, %v428_v24  ;;  %1613 = vadd.xlane.f32.xlu1 %v1612_v34  ;;  %v73_v47 = vmul.f32 %v41_v45, %v41_v45  ;;  %v74_v51 = vmul.f32 %v42_v49, %v42_v49  ;;  %v1922_v29 = vand.u32 127, %v337_v59 }
   0xb   :  { %v9599_v43 = vpack.c.bf16 %v71_v42, %v70_v41  ;;  %v75_v52 = vmul.f32 %v43_v50, %v43_v50  ;;  %v76_v56 = vmul.f32 %v44_v54, %v44_v54  ;;  %v77_v57 = vmul.f32 %v45_v55, %v45_v55 }
   0xc   :  { %v9619_v48 = vpack.c.bf16 %v73_v47, %v72_v46  ;;  %v340_v63 = vrot.slane %v9518_v15, %v9677_v61  ;;  %v344_v2 = vrot.slane %v9523_v16, %v9677_v61  ;;  %v555_v3 = vrot.slane %v9502_v13, %v9677_v61 }
   0xd   :  { %v9639_v53 = vpack.c.bf16 %v75_v52, %v74_v51  ;;  %v9659_v58 = vpack.c.bf16 %v77_v57, %v76_v56  ;;  %v559_v7 = vrot.slane %v9513_v14, %v9677_v61  ;;  %v9811_v35 = vsub.s32 %v1922_v29, %v9674_v60 }
   0xe   :  { %1590 = vadd.xlane.f32.xlu0 %v1589_v33  ;;  %1593 = vadd.xlane.f32.xlu1 %v1592_v37  ;;  %v345_v0 = vmul.f32 %v340_v63, %v9502_v13  ;;  %v346_v4 = vmul.f32 %v344_v2, %v9513_v14  ;;  %v560_v5 = vmul.f32 %v555_v3, %v9518_v15  ;;  %v9426_v56 = vmov 1966171168  }
   0xf   :  { %8710 = vmatpush3.bf16.xpose.msk.msra.mxu0 %vm9479_vm1, %v9485_v10  ;;  %8758 = vmatpush3.bf16.xpose.msk.msra.mxu1 %vm9479_vm1, %v9485_v10  ;;  %v561_v8 = vmul.f32 %v559_v7, %v9523_v16  ;;  %v513_v57 = vunpack.c.l.s4 %v9426_v56  ;;  %v9839_v29 = vsub.s32 1, %v9674_v60 }
  0x10   :  { %8713 = vmatprep.subr.msk.bf16.mxu0 %vm9479_vm1, %v9546_v26  ;;  %8761 = vmatprep.subr.msk.bf16.mxu1 %vm9479_vm1, %v9546_v26 }
  0x11   :  { %v514_v3 = vunpack.c.0.s8 %v513_v57 }
  0x17   :  { %8716 = vmatpush3.bf16.xpose.msk.msra.mxu0 %vm9479_vm1, %v9546_v26  ;;  %8764 = vmatpush3.bf16.xpose.msk.msra.mxu1 %vm9479_vm1, %v9546_v26 }
  0x18   :  { %8719 = vmatprep.subr.msk.bf16.mxu0 %vm9479_vm1, %v9579_v38  ;;  %8767 = vmatprep.subr.msk.bf16.mxu1 %vm9479_vm1, %v9579_v38 }
  0x1f   :  { %8722 = vmatpush3.bf16.xpose.msk.msra.mxu0 %vm9479_vm1, %v9579_v38  ;;  %8770 = vmatpush3.bf16.xpose.msk.msra.mxu1 %vm9479_vm1, %v9579_v38 }
  0x20   :  { %8725 = vmatprep.subr.msk.bf16.mxu0 %vm9479_vm1, %v9599_v43  ;;  %8773 = vmatprep.subr.msk.bf16.mxu1 %vm9479_vm1, %v9599_v43 }
  0x27   :  { %8728 = vmatpush3.bf16.xpose.msk.msra.mxu0 %vm9479_vm1, %v9599_v43  ;;  %8776 = vmatpush3.bf16.xpose.msk.msra.mxu1 %vm9479_vm1, %v9599_v43 }
  0x28   :  { %8731 = vmatprep.subr.msk.bf16.mxu0 %vm9479_vm1, %v9619_v48  ;;  %8779 = vmatprep.subr.msk.bf16.mxu1 %vm9479_vm1, %v9619_v48 }
  0x2f   :  { %8734 = vmatpush3.bf16.xpose.msk.msra.mxu0 %vm9479_vm1, %v9619_v48  ;;  %8782 = vmatpush3.bf16.xpose.msk.msra.mxu1 %vm9479_vm1, %v9619_v48 }
  0x30   :  { %8737 = vmatprep.subr.msk.bf16.mxu0 %vm9479_vm1, %v9639_v53  ;;  %8785 = vmatprep.subr.msk.bf16.mxu1 %vm9479_vm1, %v9639_v53 }
  0x37   :  { %8740 = vmatpush3.bf16.xpose.msk.msra.mxu0 %vm9479_vm1, %v9639_v53  ;;  %8788 = vmatpush3.bf16.xpose.msk.msra.mxu1 %vm9479_vm1, %v9639_v53 }
  0x38   :  { %8743 = vmatprep.subr.msk.bf16.mxu0 %vm9479_vm1, %v9659_v58  ;;  %8791 = vmatprep.subr.msk.bf16.mxu1 %vm9479_vm1, %v9659_v58 }
  0x3f   :  { %8746 = vmatpush3.bf16.xpose.msk.msra.mxu0 %vm9479_vm1, %v9659_v58  ;;  %8794 = vmatpush3.bf16.xpose.msk.msra.mxu1 %vm9479_vm1, %v9659_v58 }
  0x40   :  { %8807 = vmatprep.subr.bf16.mxu1 %v12172_v62  ;;  %8797 = vmatprep.subr.msk.bf16.mxu0 %vm9479_vm1, %v9483_v9 }
  0x46   :  { %8184 = vmatmul.mubr.msk.f32.vlgmr.msra.gmra.mrb[0].mxu0 %vm96_vm0, %v9537_v21  ;;  %8219 = vmatmul.mubr.msk.f32.vlgmr.msra.gmra.mrb[0].mxu1 %vm96_vm0, %v9541_v22 }
  0x47   :  { %8810 = vmatpush3.bf16.xpose.msk.msra.mxu1 %vm9479_vm1, %v9483_v9  ;;  %8240 = vmatprep.mubr.msk.f32.mxu1 %vm9424_vm3, %v12170_v1 }
  0x48   :  { %8811 = vmatprep.subr.bf16.mxu1 %v12172_v62  ;;  %8800 = vmatpush3.bf16.xpose.msk.msra.mxu0 %vm9479_vm1, %v9483_v9 }
  0x49   :  { %8803 = vmatprep.subr.msk.bf16.mxu0 %vm9479_vm1, %v9485_v10  ;;  %8229 = vmatprep.mubr.msk.f32.mxu0 %vm96_vm0, %v345_v0 }
  0x4f   :  { %8814 = vmatpush3.bf16.xpose.msk.msra.mxu1 %vm9479_vm1, %v9485_v10 }
  0x50   :  { %8827 = vmatprep.subr.bf16.mxu1 %v12172_v62  ;;  %8806 = vmatpush3.bf16.xpose.msk.msra.mxu0 %vm9479_vm1, %v9485_v10 }
  0x51   :  { %8817 = vmatprep.subr.msk.bf16.mxu0 %vm9479_vm1, %v9483_v9 }
  0x56   :  { %8241 = vmatmul.mubr.msk.f32.vlgmr.msra.gmra.mrb[2].mxu1 %vm96_vm0, %v9560_v32 }
  0x57   :  { %8830 = vmatpush3.bf16.xpose.msk.msra.mxu1 %vm9479_vm1, %v9483_v9  ;;  %8262 = vmatprep.mubr.msk.f32.mxu1 %vm9424_vm3, %v12170_v1 }
  0x58   :  { %8831 = vmatprep.subr.bf16.mxu1 %v12172_v62  ;;  %8230 = vmatmul.mubr.msk.f32.vlgmr.msra.gmra.mrb[2].mxu0 %vm96_vm0, %v346_v4 }
  0x59   :  { %8820 = vmatpush3.bf16.xpose.msk.msra.mxu0 %vm9479_vm1, %v9483_v9  ;;  %8251 = vmatprep.mubr.msk.f32.mxu0 %vm96_vm0, %v560_v5 }
  0x5a   :  { %8823 = vmatprep.subr.msk.bf16.mxu0 %vm9479_vm1, %v9485_v10 }
  0x5f   :  { %8834 = vmatpush3.bf16.xpose.msk.msra.mxu1 %vm9479_vm1, %v9485_v10 }
  0x60   :  { %8297 = vmatprep.subr.mxu1 %v12170_v1 }
  0x61   :  { %8826 = vmatpush3.bf16.xpose.msk.msra.mxu0 %vm9479_vm1, %v9485_v10 }
  0x62   :  { %8837 = vmatprep.subr.msk.bf16.mxu0 %vm9479_vm1, %v9546_v26 }
  0x66   :  { %8263 = vmatmul.mubr.msk.f32.vlgmr.msra.gmra.mrb[4].mxu1 %vm96_vm0, %v9557_v31 }
  0x67   :  { %8298 = vmatpush3.xpose.msk.msra.mxu1 %vm96_vm0, %v9518_v15  ;;  %8299 = vmatprep.mubr.msk.f32.mxu1 %vm9424_vm3, %v12170_v1 }
  0x68   :  { %8302 = vmatprep.subr.mxu1 %v12170_v1  ;;  %8252 = vmatmul.mubr.msk.f32.vlgmr.msra.gmra.mrb[4].mxu0 %vm96_vm0, %v561_v8 }
  0x69   :  { %8840 = vmatpush3.bf16.xpose.msk.msra.mxu0 %vm9479_vm1, %v9546_v26 }
  0x6a   :  { %8300 = vmatmul.mubr.msk.f32.vlgmr.msra.gmra.mrb[6].mxu1 %vm96_vm0, %v9502_v13  ;;  %8843 = vmatprep.subr.msk.bf16.mxu0 %vm9479_vm1, %v9579_v38 }
  0x6b   :  { %8303 = vmatpush3.xpose.msk.msra.mxu1 %vm96_vm0, %v9523_v16  ;;  %8304 = vmatprep.mubr.msk.f32.mxu1 %vm9424_vm3, %v12170_v1 }
  0x6c   :  { %8307 = vmatprep.subr.mxu1 %v12170_v1 }
  0x6e   :  { %8305 = vmatmul.mubr.msk.f32.vlgmr.msra.gmra.mrb[8].mxu1 %vm96_vm0, %v9513_v14 }
  0x6f   :  { %8308 = vmatpush3.xpose.msk.msra.mxu1 %vm96_vm0, %v9502_v13  ;;  %8309 = vmatprep.mubr.msk.f32.mxu1 %vm9424_vm3, %v12170_v1 }
  0x70   :  { %8312 = vmatprep.subr.mxu1 %v12170_v1 }
  0x71   :  { %8846 = vmatpush3.bf16.xpose.msk.msra.mxu0 %vm9479_vm1, %v9579_v38 }
  0x72   :  { %8310 = vmatmul.mubr.msk.f32.vlgmr.msra.gmra.mrb[10].mxu1 %vm96_vm0, %v9518_v15  ;;  %8849 = vmatprep.subr.msk.bf16.mxu0 %vm9479_vm1, %v9599_v43 }
  0x73   :  { %8313 = vmatpush3.xpose.msk.msra.mxu1 %vm96_vm0, %v9513_v14  ;;  %8314 = vmatprep.mubr.msk.f32.mxu1 %vm9424_vm3, %v12170_v1 }
  0x74   :  { %8317 = vmatprep.subr.mxu1 %v12170_v1 }
  0x76   :  { %8315 = vmatmul.mubr.msk.f32.vlgmr.msra.gmra.mrb[12].mxu1 %vm96_vm0, %v9523_v16 }
  0x77   :  { %8318 = vmatpush3.msra.mxu1 %v9518_v15  ;;  %8319 = vmatprep.mubr.msk.f32.mxu1 %vm9424_vm3, %v12170_v1 }
  0x78   :  { %8322 = vmatprep.subr.mxu1 %v12170_v1 }
  0x97   :  { %v1611_v9 = vpop.xlane.xlu0 %1610  ;;  %v1614_v10 = vpop.xlane.xlu1 %1613 }
  0x98   :  { %9198 = vrsqrt.f32 %v1611_v9  ;;  %vm1617_vm4 = vcmp.eq.f32.partialorder %v1611_v9, inf  ;;  %v1620_v27 = vand.u32 2147483648, %v1611_v9  ;;  %vm1624_vm5 = vcmp.eq.f32.partialorder %v1614_v10, inf }
  0x99   :  { %9200 = vrsqrt.f32 %v1614_v10  ;;  %vm1619_vm6 = vcmp.eq.f32.partialorder %v1611_v9, 0.0  ;;  %v1627_v30 = vand.u32 2147483648, %v1614_v10  ;;  %vm1626_vm7 = vcmp.eq.f32.partialorder %v1614_v10, 0.0 }
  0x9b   :  { %v1591_v11 = vpop.xlane.xlu0 %1590  ;;  %v1594_v12 = vpop.xlane.xlu1 %1593 }
  0x9c   :  { %9202 = vrsqrt.f32 %v1591_v11  ;;  %vm1597_vm8 = vcmp.eq.f32.partialorder %v1591_v11, inf  ;;  %vm1604_vm9 = vcmp.eq.f32.partialorder %v1594_v12, inf  ;;  %vm1599_vm10 = vcmp.eq.f32.partialorder %v1591_v11, 0.0 }
  0x9d   :  { %9204 = vrsqrt.f32 %v1594_v12  ;;  %v1600_v36 = vand.u32 2147483648, %v1591_v11  ;;  %v1607_v37 = vand.u32 2147483648, %v1594_v12  ;;  %vm1606_vm11 = vcmp.eq.f32.partialorder %v1594_v12, 0.0 }
  0xa2   :  { %v9199_v19 = vpop.eup %9198 }
  0xa3   :  { %v9201_v22 = vpop.eup %9200  ;;  %v1616_v23 = vmul.f32 %v9199_v19, %v1611_v9 }
  0xa4   :  { %v1623_v25 = vmul.f32 %v9201_v22, %v1614_v10 }
  0xa5   :  { %v1618_v28 = vsel %vm1617_vm4, %v1611_v9, %v1616_v23 }
  0xa6   :  { %v9203_v24 = vpop.eup %9202  ;;  %v1625_v32 = vsel %vm1624_vm5, %v1614_v10, %v1623_v25  ;;  %v1621_v34 = vsel %vm1619_vm6, %v1620_v27, %v1618_v28  ;;  %v9831_v25 = vsub.s32 0, %v9674_v60  ;;  %vm1991_vm5 = vcmask 64512  }
  0xa7   :  { %v9205_v26 = vpop.eup %9204  ;;  %v1596_v31 = vmul.f32 %v9203_v24, %v1591_v11  ;;  %v1628_v38 = vsel %vm1626_vm7, %v1627_v30, %v1625_v32  ;;  %v1926_v41 = vrot.slane %v1621_v34, %v9811_v35 }
  0xa8   :  { %v1603_v33 = vmul.f32 %v9205_v26, %v1594_v12  ;;  %v1930_v44 = vrot.slane %v1628_v38, %v9811_v35  ;;  %12206 = vst [vmem:[#allocation3_spill] sm:$0xff] %v9831_v25 }
  0xa9   :  { %v1598_v39 = vsel %vm1597_vm8, %v1591_v11, %v1596_v31  ;;  %v9824_v11 = vsub.s32 %v514_v3, %v9674_v60 }
  0xaa   :  { %v1605_v40 = vsel %vm1604_vm9, %v1594_v12, %v1603_v33  ;;  %v1601_v46 = vsel %vm1599_vm10, %v1600_v36, %v1598_v39 }
  0xab   :  { %v1608_v47 = vsel %vm1606_vm11, %v1607_v37, %v1605_v40  ;;  %v1951_v49 = vmul.f32 %v1926_v41, %v1601_v46  ;;  %v1964_v55 = vrot.slane %v1601_v46, %v9811_v35  ;;  %12205 = vst [vmem:[#allocation2_spill] sm:$0xff] %v9824_v11 }
  0xac   :  { %v1952_v52 = vmul.f32 %v1930_v44, %v1608_v47  ;;  %v1968_v63 = vrot.slane %v1608_v47, %v9811_v35 }
  0xad   :  { %v1953_v54 = vmax.f32 %v1951_v49, 1e-08  ;;  %v1983_v0 = vmul.f32 %v1964_v55, %v1621_v34 }
  0xae   :  { %v1954_v59 = vmax.f32 %v1952_v52, 1e-08  ;;  %v1984_v4 = vmul.f32 %v1968_v63, %v1628_v38  ;;  %v9868_v52 = vsub.s32 2, %v9674_v60 }
  0xaf   :  { %v1985_v9 = vmax.f32 %v1983_v0, 1e-08 }
  0xb0   :  { %v1986_v24 = vmax.f32 %v1984_v4, 1e-08 }
 0x119   :  { %v9801_v17 = vpop.f32.mrb[0].mxu0  ;;  %v9803_v18 = vpop.f32.mrb[0].mxu1 }
 0x11a   :  { %v9805_v20 = vpop.f32.mrb[1].mxu0  ;;  %v9807_v21 = vpop.f32.mrb[1].mxu1  ;;  %vm235_vm15 = vcmp.eq.f32.partialorder %v9801_v17, inf  ;;  %v238_v39 = vand.u32 2147483648, %v9801_v17  ;;  %vm237_vm6 = vcmp.eq.f32.partialorder %v9801_v17, 0.0  ;;  %vm332_vm10 = vcmp.eq.f32.partialorder %v9803_v18, inf }
 0x11b   :  { %vm228_vm14 = vcmp.eq.f32.partialorder %v9805_v20, inf  ;;  %v231_v31 = vand.u32 2147483648, %v9805_v20  ;;  %vm230_vm4 = vcmp.eq.f32.partialorder %v9805_v20, 0.0  ;;  %vm325_vm9 = vcmp.eq.f32.partialorder %v9807_v21, inf }
 0x11c   :  { %vm327_vm11 = vcmp.eq.f32.partialorder %v9807_v21, 0.0 }
 0x129   :  { %v500_v42 = vpop.f32.mrb[2].mxu1 }
 0x12a   :  { %9206 = vrsqrt.f32 %v500_v42  ;;  %v8242_v45 = vpop.f32.mrb[3].mxu1  ;;  %vm506_vm12 = vcmp.eq.f32.partialorder %v500_v42, inf  ;;  %v509_v8 = vand.u32 2147483648, %v500_v42  ;;  %vm508_vm13 = vcmp.eq.f32.partialorder %v500_v42, 0.0 }
 0x12b   :  { %v9815_v50 = vpop.f32.mrb[2].mxu0  ;;  %9208 = vrsqrt.f32 %v9805_v20 }
 0x12c   :  { %v9818_v51 = vpop.f32.mrb[3].mxu0  ;;  %9210 = vrsqrt.f32 %v9801_v17 }
 0x12d   :  { %9212 = vrcp.f32 %v1953_v54 }
 0x12e   :  { %9214 = vrcp.f32 %v1954_v59 }
 0x12f   :  { %9216 = vrsqrt.f32 %v9807_v21 }
 0x134   :  { %v9207_v2 = vpop.eup %9206 }
 0x135   :  { %v9209_v5 = vpop.eup %9208  ;;  %v505_v7 = vmul.f32 %v9207_v2, %v500_v42 }
 0x136   :  { %v9211_v10 = vpop.eup %9210  ;;  %v227_v19 = vmul.f32 %v9209_v5, %v9805_v20  ;;  %v9886_v5 = vsub.s32 3, %v9674_v60 }
 0x137   :  { %v507_v12 = vsel %vm506_vm12, %v500_v42, %v505_v7  ;;  %v234_v28 = vmul.f32 %v9211_v10, %v9801_v17  ;;  %v9213_v36 = vpop.eup %9212  ;;  %vm334_vm12 = vcmp.eq.f32.partialorder %v9803_v18, 0.0 }
 0x138   :  { %v510_v22 = vsel %vm508_vm13, %v509_v8, %v507_v12  ;;  %v229_v37 = vsel %vm228_vm14, %v9805_v20, %v227_v19  ;;  %v9215_v45 = vpop.eup %9214  ;;  %vm1931_vm13 = vcmask 1042434   ;;  %vm1933_vm14 = vcmask 1043459  }
 0x139   :  { %v9828_v23 = vpop.f32.mrb[4].mxu1  ;;  %v518_v26 = vrot.slane %v510_v22, %v9824_v11  ;;  %v236_v46 = vsel %vm235_vm15, %v9801_v17, %v234_v28  ;;  %v9859_v20 = vsel %vm230_vm4, %v231_v31, %v229_v37  ;;  %v9217_v63 = vpop.eup %9216  ;;  %vm1935_vm15 = vcmask 1044484  }
 0x13a   :  { %9218 = vrsqrt.f32 %v9828_v23  ;;  %v8264_v27 = vpop.f32.mrb[5].mxu1  ;;  %12207 = vst [vmem:[#allocation4_spill] sm:$0xff] %v9859_v20  ;;  %v9873_v56 = vsel %vm237_vm6, %v238_v39, %v236_v46  ;;  %vm720_vm7 = vcmp.eq.f32.partialorder %v9828_v23, inf  ;;  %v723_v19 = vand.u32 2147483648, %v9828_v23 }
 0x13b   :  { %9220 = vrcp.f32 %v1985_v9  ;;  %v9841_v30 = vpop.f32.mrb[4].mxu0  ;;  %v519_v32 = vcombine.high %v518_v26, %v518_v26  ;;  %v526_v33 = vrot.slane %v518_v26, %v9824_v11  ;;  %12208 = vst [vmem:[#allocation5_spill] sm:$0xff] %v9873_v56  ;;  %v324_v27 = vmul.f32 %v9217_v63, %v9807_v21 }
 0x13c   :  { %9222 = vrsqrt.f32 %v9803_v18  ;;  %v9846_v34 = vpop.f32.mrb[5].mxu0  ;;  %vm722_vm8 = vcmp.eq.f32.partialorder %v9828_v23, 0.0  ;;  %vm12184_vm4 = vcmask 1045509   ;;  %vm12183_vm6 = vcmask 1046534  }
 0x13d   :  { %v1700_v38 = vpop.f32.mrb[6].mxu1  ;;  %9224 = vrcp.f32 %v1986_v24  ;;  %v533_v42 = vrot.slane %v519_v32, %v9824_v11  ;;  %v537_v44 = vrot.slane %v526_v33, %v9831_v25  ;;  %v9905_v33 = vsub.s32 4, %v9674_v60 }
 0x13e   :  { %v9851_v40 = vmul.f32 %v9213_v36, %v1700_v38  ;;  %v8301_v41 = vpop.f32.mrb[7].mxu1 }
 0x13f   :  { %v541_v17 = vrot.slane %v533_v42, %v9831_v25  ;;  %v544_v55 = vmul.f32 %v537_v44, %v9859_v20  ;;  %v326_v41 = vsel %vm325_vm9, %v9807_v21, %v324_v27 }
 0x140   :  { %8320 = vmatmul.mubr.msk.f32.vlgmr.msra.gmra.mrb[14].mxu1 %vm1991_vm5, %v9851_v40  ;;  %v2138_v47 = vsel %vm1991_vm5, %v9851_v40, 0.0  ;;  %v2318_v49 = vrot.slane %v9851_v40, %v9839_v29  ;;  %v2325_v4 = vrot.slane %v9851_v40, %v9868_v52  ;;  %v2332_v32 = vrot.slane %v9851_v40, %v9886_v5 }
 0x141   :  { %2139 = vadd.xlane.f32.xlu0 %v2138_v47  ;;  %v1775_v54 = vpop.f32.mrb[8].mxu1  ;;  %8323 = vmatpush3.msra.mxu1 %v9523_v16  ;;  %v545_v0 = vmul.f32 %v541_v17, %v9873_v56  ;;  %v546_v2 = vmax.f32 %v544_v55, 1e-08  ;;  %v2339_v46 = vrot.slane %v9851_v40, %v9905_v33  ;;  %v9925_v47 = vsub.s32 5, %v9674_v60 }
 0x142   :  { %v9875_v57 = vmul.f32 %v9215_v45, %v1775_v54  ;;  %2320 = vbcast.lane.b32.xlu1 %v2318_v49, 256  ;;  %8324 = vmatprep.mubr.msk.f32.mxu1 %vm9424_vm3, %v12170_v1  ;;  %v8306_v59 = vpop.f32.mrb[9].mxu1  ;;  %v328_v45 = vand.u32 2147483648, %v9807_v21  ;;  %v335_v55 = vand.u32 2147483648, %v9803_v18 }
 0x143   :  { %8327 = vmatprep.subr.mxu1 %v12170_v1  ;;  %v547_v10 = vmax.f32 %v545_v0, 1e-08  ;;  %9226 = vrcp.f32 %v546_v2 }
 0x144   :  { %v9219_v3 = vpop.eup %9218  ;;  %8325 = vmatmul.mubr.msk.f32.vlgmr.msra.gmra.mrb[16].mxu1 %vm1991_vm5, %v9875_v57  ;;  %v9934_v59 = vsel %vm327_vm11, %v328_v45, %v326_v41 }
 0x145   :  { %v9221_v7 = vpop.eup %9220  ;;  %v719_v8 = vmul.f32 %v9219_v3, %v9828_v23  ;;  %v1845_v9 = vpop.f32.mrb[10].mxu1  ;;  %8328 = vmatpush3.msra.mxu1 %v9502_v13  ;;  %8329 = vmatprep.mubr.msk.f32.mxu1 %vm9424_vm3, %v12170_v1  ;;  %9228 = vrcp.f32 %v547_v10  ;;  %12209 = vst [vmem:[#allocation6_spill] sm:$0xff] %v9934_v59 }
 0x146   :  { %v9223_v12 = vpop.eup %9222  ;;  %v9894_v22 = vmul.f32 %v9221_v7, %v1845_v9  ;;  %2327 = vbcast.lane.b32.xlu1 %v2325_v4, 256  ;;  %v8311_v24 = vpop.f32.mrb[11].mxu1  ;;  %8332 = vmatprep.subr.mxu1 %v12170_v1  ;;  %v2346_v4 = vrot.slane %v9851_v40, %v9925_v47  ;;  %v9947_v7 = vsub.s32 6, %v9674_v60 }
 0x147   :  { %v9225_v26 = vpop.eup %9224  ;;  %v721_v28 = vsel %vm720_vm7, %v9828_v23, %v719_v8  ;;  %v331_v36 = vmul.f32 %v9223_v12, %v9803_v18  ;;  %v2311_v12 = vrot.slane %v9851_v40, %v9831_v25  ;;  %v2360_v24 = vrot.slane %v9851_v40, %v9677_v61 }
 0x148   :  { %v724_v31 = vsel %vm722_vm8, %v723_v19, %v721_v28  ;;  %8330 = vmatmul.mubr.msk.f32.vlgmr.msra.gmra.mrb[18].mxu1 %vm1991_vm5, %v9894_v22  ;;  %v2353_v60 = vrot.slane %v9851_v40, %v9947_v7  ;;  %v2374_v19 = vrot.slane %v9875_v57, %v9839_v29  ;;  %v2388_v40 = vrot.slane %v9875_v57, %v9886_v5 }
 0x149   :  { %v732_v37 = vrot.slane %v724_v31, %v9824_v11  ;;  %v1915_v38 = vpop.f32.mrb[12].mxu1  ;;  %8333 = vmatpush3.msra.mxu1 %v9513_v14  ;;  %8334 = vmatprep.mubr.msk.f32.mxu1 %vm9424_vm3, %v12170_v1  ;;  %v333_v49 = vsel %vm332_vm10, %v9803_v18, %v331_v36  ;;  %v2402_v36 = vrot.slane %v9875_v57, %v9925_v47  ;;  %vm12182_vm7 = vcmask 1047559  }
 0x14a   :  { %2334 = vbcast.lane.b32.xlu1 %v2332_v32, 256  ;;  %v9913_v23 = vmul.f32 %v9225_v26, %v1915_v38  ;;  %v8316_v39 = vpop.f32.mrb[13].mxu1  ;;  %8861 = vmatprep.subr.msk.bf16.mxu1 %vm9479_vm1, %v9599_v43  ;;  %v9939_v3 = vsel %vm334_vm12, %v335_v55, %v333_v49  ;;  %v2395_v32 = vrot.slane %v9875_v57, %v9905_v33 }
 0x14b   :  { %v733_v42 = vcombine.high %v732_v37, %v732_v37  ;;  %v740_v44 = vrot.slane %v732_v37, %v9824_v11  ;;  %12210 = vst [vmem:[#allocation7_spill] sm:$0xff] %v9939_v3  ;;  %v775_v37 = vrot.slane %v9502_v13, %v9824_v11  ;;  %v768_v39 = vcombine.high %v9502_v13, %v9502_v13 }
 0x14c   :  { %8335 = vmatmul.mubr.msk.f32.vlgmr.msra.gmra.mrb[20].mxu1 %vm1991_vm5, %v9913_v23  ;;  %v824_v49 = vrot.slane %v9513_v14, %v9824_v11 }
 0x14d   :  { %v747_v54 = vrot.slane %v733_v42, %v9824_v11  ;;  %v751_v17 = vrot.slane %v740_v44, %v9831_v25  ;;  %v9227_v63 = vpop.eup %9226  ;;  %v783_v38 = vcombine.high %v775_v37, %v775_v37  ;;  %v782_v45 = vrot.slane %v768_v39, %v9824_v11 }
 0x14e   :  { %2341 = vbcast.lane.b32.xlu1 %v2339_v46, 256  ;;  %v9942_v21 = vmul.f32 %v9227_v63, %v9818_v51  ;;  %v2141_v46 = vsel %vm1991_vm5, %v9875_v57, 0.0  ;;  %v2296_v39 = vsel %vm1991_vm5, %v9894_v22, 0.0 }
 0x14f   :  { %v755_v0 = vrot.slane %v747_v54, %v9831_v25  ;;  %v758_v2 = vmul.f32 %v751_v17, %v9934_v59  ;;  %v9229_v18 = vpop.eup %9228  ;;  %v805_v42 = vrot.slane %v783_v38, %v9824_v11  ;;  %v798_v63 = vrot.slane %v782_v45, %v9824_v11 }
 0x150   :  { %12211 = vst [vmem:[#allocation8_spill] sm:$0xff] %v9942_v21  ;;  %8864 = vmatpush3.bf16.xpose.msk.msra.mxu1 %vm9479_vm1, %v9599_v43  ;;  %v9957_v51 = vmul.f32 %v9229_v18, %v9815_v50  ;;  %v2381_v50 = vrot.slane %v9875_v57, %v9868_v52 }
 0x151   :  { %v759_v8 = vmul.f32 %v755_v0, %v9939_v3  ;;  %v760_v9 = vmax.f32 %v758_v2, 1e-08  ;;  %8867 = vmatprep.subr.msk.bf16.mxu1 %vm9479_vm1, %v9619_v48  ;;  %v873_v17 = vrot.slane %v805_v42, %v9831_v25  ;;  %v815_v55 = vcombine.high %v805_v42, %v805_v42 }
 0x152   :  { %12212 = vst [vmem:[#allocation9_spill] sm:$0xff] %v9957_v51  ;;  %2348 = vbcast.lane.b32.xlu1 %v2346_v4, 256  ;;  %v784_v0 = vcombine.high %v782_v45, %v782_v45  ;;  %v817_v45 = vcombine.high %v9513_v14, %v9513_v14 }
 0x153   :  { %v761_v10 = vmax.f32 %v759_v8, 1e-08  ;;  %9230 = vrcp.f32 %v760_v9  ;;  %v947_v2 = vmul.f32 %v873_v17, %v9518_v15  ;;  %v881_v18 = vrot.slane %v815_v55, %v9831_v25 }
 0x154   :  { %v885_v8 = vrot.slane %v798_v63, %v9831_v25  ;;  %v812_v9 = vrot.slane %v784_v0, %v9824_v11  ;;  %v831_v17 = vrot.slane %v817_v45, %v9824_v11  ;;  %v2607_v45 = vrot.slane %v9913_v23, %v9831_v25 }
 0x155   :  { %9232 = vrcp.f32 %v761_v10  ;;  %v814_v10 = vcombine.high %v798_v63, %v798_v63 }
 0x156   :  { %2355 = vbcast.lane.b32.xlu1 %v2353_v60, 256  ;;  %v949_v60 = vmul.f32 %v881_v18, %v9518_v15  ;;  %v833_v14 = vcombine.high %v831_v17, %v831_v17  ;;  %v847_v0 = vrot.slane %v831_v17, %v9824_v11  ;;  %v2558_v18 = vrot.slane %v9894_v22, %v9839_v29 }
 0x157   :  { %2313 = vbcast.lane.b32.xlu0 %v2311_v12, 256  ;;  %v840_v12 = vrot.slane %v824_v49, %v9824_v11 }
 0x158   :  { %8870 = vmatpush3.bf16.xpose.msk.msra.mxu1 %vm9479_vm1, %v9619_v48 }
 0x159   :  { %8885 = vmatprep.subr.msk.bf16.mxu1 %vm9479_vm1, %v9599_v43 }
 0x15a   :  { %2362 = vbcast.lane.b32.xlu1 %v2360_v24, 256  ;;  %v889_v24 = vrot.slane %v812_v9, %v9831_v25 }
 0x15b   :  { %2376 = vbcast.lane.b32.xlu0 %v2374_v19, 256  ;;  %v950_v19 = vmul.f32 %v885_v8, %v9518_v15 }
 0x15d   :  { %v9231_v26 = vpop.eup %9230 }
 0x15e   :  { %v9976_v27 = vmul.f32 %v9231_v26, %v9846_v34  ;;  %v2409_v34 = vrot.slane %v9875_v57, %v9947_v7  ;;  %v816_v26 = vcombine.high %v812_v9, %v812_v9 }
 0x15f   :  { %v9233_v28 = vpop.eup %9232  ;;  %2383 = vbcast.lane.b32.xlu0 %v2381_v50, 256  ;;  %v893_v50 = vrot.slane %v814_v10, %v9831_v25  ;;  %v863_v10 = vcombine.high %v847_v0, %v847_v0 }
 0x160   :  { %12213 = vst [vmem:[#allocation10_spill] sm:$0xff] %v9976_v27  ;;  %v9981_v31 = vmul.f32 %v9233_v28, %v9841_v30  ;;  %v791_v30 = vrot.slane %v775_v37, %v9824_v11  ;;  %v951_v28 = vmul.f32 %v889_v24, %v9518_v15  ;;  %v832_v37 = vcombine.high %v824_v49, %v824_v49 }
 0x161   :  { %v925_v24 = vrot.slane %v863_v10, %v9831_v25 }
 0x162   :  { %12214 = vst [vmem:[#allocation11_spill] sm:$0xff] %v9981_v31  ;;  %v869_v41 = vrot.slane %v791_v30, %v9831_v25  ;;  %v813_v44 = vcombine.high %v791_v30, %v791_v30  ;;  %v854_v30 = vrot.slane %v832_v37, %v9824_v11  ;;  %v2621_v37 = vrot.slane %v9913_v23, %v9868_v52 }
 0x163   :  { %2390 = vbcast.lane.b32.xlu0 %v2388_v40, 256  ;;  %v897_v40 = vrot.slane %v816_v26, %v9831_v25  ;;  %v960_v26 = vmul.f32 %v925_v24, %v9523_v16 }
 0x164   :  { %v946_v54 = vmul.f32 %v869_v41, %v9518_v15  ;;  %v877_v13 = vrot.slane %v813_v44, %v9831_v25  ;;  %v2367_v41 = vrot.slane %v9875_v57, %v9831_v25  ;;  %v905_v42 = vrot.slane %v854_v30, %v9831_v25 }
 0x165   :  { %v862_v44 = vcombine.high %v840_v12, %v840_v12 }
 0x166   :  { %8273 = vmatprep.mubr.msk.f32.mxu0 %vm96_vm0, %v946_v54  ;;  %v948_v4 = vmul.f32 %v877_v13, %v9518_v15  ;;  %v864_v54 = vcombine.high %v854_v30, %v854_v30  ;;  %v2416_v13 = vrot.slane %v9875_v57, %v9677_v61  ;;  %v917_v57 = vrot.slane %v847_v0, %v9831_v25 }
 0x167   :  { %2397 = vbcast.lane.b32.xlu0 %v2395_v32, 256  ;;  %8274 = vmatmul.mubr.msk.f32.vlgmr.msra.gmra.mrb[6].mxu0 %vm96_vm0, %v947_v2  ;;  %v952_v32 = vmul.f32 %v893_v50, %v9518_v15  ;;  %v909_v49 = vrot.slane %v862_v44, %v9831_v25  ;;  %v2635_v30 = vrot.slane %v9913_v23, %v9905_v33 }
 0x168   :  { %8276 = vmatprep.mubr.msk.f32.mxu0 %vm96_vm0, %v948_v4  ;;  %8852 = vmatpush3.bf16.xpose.msk.msra.mxu0 %vm9479_vm1, %v9599_v43  ;;  %v913_v63 = vrot.slane %v864_v54, %v9831_v25  ;;  %v861_v4 = vrot.slane %v833_v14, %v9824_v11  ;;  %v958_v9 = vmul.f32 %v917_v57, %v9523_v16 }
 0x169   :  { %8855 = vmatprep.subr.msk.bf16.mxu0 %vm9479_vm1, %v9619_v48  ;;  %v956_v55 = vmul.f32 %v909_v49, %v9523_v16  ;;  %v2593_v44 = vrot.slane %v9894_v22, %v9947_v7  ;;  %v2656_v49 = vrot.slane %v9913_v23, %v9677_v61 }
 0x16a   :  { %v957_v2 = vmul.f32 %v913_v63, %v9523_v16  ;;  %v921_v8 = vrot.slane %v861_v4, %v9831_v25 }
 0x16b   :  { %2404 = vbcast.lane.b32.xlu0 %v2402_v36, 256  ;;  %8277 = vmatmul.mubr.msk.f32.gmra.mrb[8].mxu0 %vm96_vm0, %v949_v60  ;;  %v901_v36 = vrot.slane %v840_v12, %v9831_v25  ;;  %v865_v12 = vcombine.high %v861_v4, %v861_v4 }
 0x16c   :  { %8279 = vmatprep.mubr.msk.f32.mxu0 %vm96_vm0, %v950_v19  ;;  %v959_v60 = vmul.f32 %v921_v8, %v9523_v16  ;;  %v2572_v19 = vrot.slane %v9894_v22, %v9886_v5 }
 0x16d   :  { %v954_v38 = vmul.f32 %v901_v36, %v9523_v16  ;;  %v929_v50 = vrot.slane %v865_v12, %v9831_v25  ;;  %v2551_v36 = vrot.slane %v9894_v22, %v9831_v25 }
 0x16f   :  { %2411 = vbcast.lane.b32.xlu0 %v2409_v34, 256  ;;  %8280 = vmatmul.mubr.msk.f32.gmra.mrb[10].mxu0 %vm96_vm0, %v951_v28  ;;  %v953_v34 = vmul.f32 %v897_v40, %v9518_v15  ;;  %v961_v28 = vmul.f32 %v929_v50, %v9523_v16  ;;  %v2579_v40 = vrot.slane %v9894_v22, %v9905_v33 }
 0x170   :  { %8282 = vmatprep.mubr.msk.f32.mxu0 %vm96_vm0, %v952_v32  ;;  %8858 = vmatpush3.bf16.xpose.msk.msra.mxu0 %vm9479_vm1, %v9619_v48  ;;  %v2586_v32 = vrot.slane %v9894_v22, %v9925_v47 }
 0x171   :  { %8873 = vmatprep.subr.msk.bf16.mxu0 %vm9479_vm1, %v9599_v43 }
 0x173   :  { %8283 = vmatmul.mubr.msk.f32.gmra.mrb[12].mxu0 %vm96_vm0, %v953_v34  ;;  %v2565_v34 = vrot.slane %v9894_v22, %v9868_v52 }
 0x174   :  { %8285 = vmatprep.mubr.msk.f32.mxu0 %vm96_vm0, %v954_v38  ;;  %v2628_v38 = vrot.slane %v9913_v23, %v9886_v5 }
 0x17e   :  { %2142 = vadd.xlane.f32.xlu1 %v2141_v46  ;;  %v955_v46 = vmul.f32 %v905_v42, %v9523_v16  ;;  %v2614_v16 = vrot.slane %v9913_v23, %v9839_v29  ;;  %v2299_v42 = vsel %vm1991_vm5, %v9913_v23, 0.0 }
 0x180   :  { %8286 = vmatmul.mubr.msk.f32.gmra.mrb[14].mxu0 %vm96_vm0, %v955_v46  ;;  %v2600_v46 = vrot.slane %v9894_v22, %v9677_v61 }
 0x181   :  { %8288 = vmatprep.mubr.msk.f32.mxu0 %vm96_vm0, %v956_v55 }
 0x184   :  { %8289 = vmatmul.mubr.msk.f32.gmra.mrb[16].mxu0 %vm96_vm0, %v957_v2 }
 0x185   :  { %8291 = vmatprep.mubr.msk.f32.mxu0 %vm96_vm0, %v958_v9 }
 0x188   :  { %8292 = vmatmul.mubr.msk.f32.gmra.mrb[18].mxu0 %vm96_vm0, %v959_v60 }
 0x189   :  { %8294 = vmatprep.mubr.msk.f32.mxu0 %vm96_vm0, %v960_v26  ;;  %v10124_v26 = vld [vmem:[%s12164_s0] sm:$0xff] }
 0x18c   :  { %8295 = vmatmul.mubr.msk.f32.gmra.mrb[20].mxu0 %vm96_vm0, %v961_v28 }
 0x18e   :  { %2297 = vadd.xlane.f32.xlu0 %v2296_v39  ;;  %v2642_v39 = vrot.slane %v9913_v23, %v9925_v47 }
 0x18f   :  { %2369 = vbcast.lane.b32.xlu1 %v2367_v41, 256  ;;  %v2649_v41 = vrot.slane %v9913_v23, %v9947_v7 }
 0x193   :  { %2418 = vbcast.lane.b32.xlu1 %v2416_v13, 256 }
 0x197   :  { %2560 = vbcast.lane.b32.xlu1 %v2558_v18, 256 }
 0x19b   :  { %2574 = vbcast.lane.b32.xlu1 %v2572_v19, 256 }
 0x19f   :  { %2581 = vbcast.lane.b32.xlu1 %v2579_v40, 256 }
 0x1a3   :  { %2588 = vbcast.lane.b32.xlu1 %v2586_v32, 256 }
 0x1a4   :  { %2553 = vbcast.lane.b32.xlu0 %v2551_v36, 256 }
 0x1a8   :  { %2567 = vbcast.lane.b32.xlu0 %v2565_v34, 256 }
 0x1ac   :  { %2616 = vbcast.lane.b32.xlu0 %v2614_v16, 256 }
 0x1b0   :  { %2623 = vbcast.lane.b32.xlu0 %v2621_v37, 256 }
 0x1b4   :  { %2630 = vbcast.lane.b32.xlu0 %v2628_v38, 256  ;;  %v2321_v54 = vpop.permute.xlu1 %2320 }
 0x1b5   :  { %v2421_v32 = vmul.f32 %v2321_v54, %v9518_v15 }
 0x1b8   :  { %2637 = vbcast.lane.b32.xlu0 %v2635_v30, 256  ;;  %v2328_v17 = vpop.permute.xlu1 %2327  ;;  %v10136_v30 = vld [vmem:[%s12165_s2] sm:$0xff] }
 0x1b9   :  { %v2422_v36 = vmul.f32 %v2328_v17, %v9518_v15  ;;  %v2443_v15 = vsel %vm96_vm0, %v2421_v32, -inf }
 0x1bc   :  { %2644 = vbcast.lane.b32.xlu0 %v2642_v39, 256  ;;  %v2335_v55 = vpop.permute.xlu1 %2334 }
 0x1bd   :  { %v2423_v39 = vmul.f32 %v10136_v30, %v2335_v55 }
 0x1c0   :  { %2651 = vbcast.lane.b32.xlu0 %v2649_v41, 256  ;;  %v2342_v14 = vpop.permute.xlu1 %2341 }
 0x1c1   :  { %v2424_v41 = vmul.f32 %v10136_v30, %v2342_v14  ;;  %v2457_v14 = vsel %vm96_vm0, %v2423_v39, -inf }
 0x1c4   :  { %v2349_v2 = vpop.permute.xlu1 %2348 }
 0x1c7   :  { %2300 = vadd.xlane.f32.xlu1 %v2299_v42 }
 0x1c8   :  { %v2356_v18 = vpop.permute.xlu1 %2355 }
 0x1cc   :  { %v10115_v22 = vpop.permute.xlu1 %2362 }
 0x1ce   :  { %v2140_v13 = vpop.xlane.xlu0 %2139 }
 0x1cf   :  { %v2144_v57 = vmax.f32 %v2140_v13, 1e-08 }
 0x1d1   :  { %9234 = vrcp.f32 %v2144_v57  ;;  %v2464_v57 = vsel %vm96_vm0, %v2424_v41, -inf }
 0x1d2   :  { %v2314_v63 = vpop.permute.xlu0 %2313 }
 0x1d3   :  { %v2420_v54 = vmul.f32 %v10136_v30, %v2314_v63  ;;  %v2458_v63 = vrot.slane %v2457_v14, 4 }
 0x1d6   :  { %v10109_v0 = vpop.permute.xlu0 %2376 }
 0x1d8   :  { %2595 = vbcast.lane.b32.xlu1 %v2593_v44, 256  ;;  %v2450_v44 = vsel %vm96_vm0, %v2422_v36, -inf }
 0x1da   :  { %v10111_v4 = vpop.permute.xlu0 %2383 }
 0x1db   :  { %v9235_v12 = vpop.eup %9234 }
 0x1dc   :  { %2609 = vbcast.lane.b32.xlu1 %v2607_v45, 256  ;;  %v10145_v45 = vld [vmem:[%s12164_s0 + $0x8] sm:$0xff] }
 0x1de   :  { %v10113_v8 = vpop.permute.xlu0 %2390 }
 0x1e0   :  { %2602 = vbcast.lane.b32.xlu1 %v2600_v46, 256 }
 0x1e2   :  { %v10117_v23 = vpop.permute.xlu0 %2397 }
 0x1e4   :  { %2658 = vbcast.lane.b32.xlu1 %v2656_v49, 256 }
 0x1e6   :  { %v10119_v60 = vpop.permute.xlu0 %2404 }
 0x1ea   :  { %v10129_v34 = vpop.permute.xlu0 %2411 }
 0x20b   :  { %v2143_v9 = vpop.xlane.xlu1 %2142 }
 0x20c   :  { %v2145_v10 = vmax.f32 %v2143_v9, 1e-08 }
 0x20e   :  { %9236 = vrcp.f32 %v2145_v10  ;;  %v2444_v10 = vrot.slane %v2443_v15, 4 }
 0x213   :  { %v2061_v19 = vpop.f32.mrb[14].mxu1 }
 0x214   :  { %v2148_v24 = vmul.f32 %v9235_v12, %v2061_v19  ;;  %v8321_v50 = vpop.f32.mrb[15].mxu1  ;;  %v2451_v12 = vrot.slane %v2450_v44, 4  ;;  %v2425_v19 = vmul.f32 %v10136_v30, %v2349_v2 }
 0x215   :  { %v2436_v50 = vsel %vm96_vm0, %v2420_v54, -inf }
 0x216   :  { %v2788_v28 = vmul.f32 %v10124_v26, %v2148_v24  ;;  %v2871_v40 = vmul.f32 %v2148_v24, %v2148_v24  ;;  %v2465_v24 = vrot.slane %v2464_v57, 4  ;;  %v2452_v32 = vmax.f32 %v2450_v44, %v2451_v12 }
 0x217   :  { %v2134_v16 = vpop.f32.mrb[16].mxu1  ;;  %v2471_v36 = vsel %vm96_vm0, %v2425_v19, -inf }
 0x218   :  { %v9237_v37 = vpop.eup %9236  ;;  %8345 = vmatprep.mubr.msk.f32.mxu0 %vm96_vm0, %v2788_v28  ;;  %8356 = vmatprep.mubr.msk.f32.mxu1 %vm96_vm0, %v2871_v40  ;;  %v8326_v38 = vpop.f32.mrb[17].mxu1  ;;  %v2445_v40 = vmax.f32 %v2443_v15, %v2444_v10  ;;  %v2466_v39 = vmax.f32 %v2464_v57, %v2465_v24  ;;  %v2472_v41 = vrot.slane %v2471_v36, 4  ;;  %v2453_v54 = vrot.slane %v2452_v32, 2 }
 0x219   :  { %v2149_v42 = vmul.f32 %v9237_v37, %v2134_v16  ;;  %v2426_v16 = vmul.f32 %v10136_v30, %v2356_v18  ;;  %v2437_v37 = vrot.slane %v2436_v50, 4  ;;  %v2459_v38 = vmax.f32 %v2457_v14, %v2458_v63 }
 0x21a   :  { %v2467_v14 = vrot.slane %v2466_v39, 2  ;;  %v2473_v57 = vmax.f32 %v2471_v36, %v2472_v41  ;;  %v2427_v63 = vmul.f32 %v10136_v30, %v10115_v22 }
 0x21b   :  { %v2789_v46 = vmul.f32 %v10145_v45, %v2149_v42  ;;  %v2298_v49 = vpop.xlane.xlu0 %2297  ;;  %v2872_v17 = vmul.f32 %v2149_v42, %v2149_v42  ;;  %v2219_v55 = vpop.f32.mrb[18].mxu1  ;;  %v10174_v42 = vld [vmem:[%s12165_s2 + $0x8] sm:$0xff]  ;;  %v2478_v15 = vsel %vm96_vm0, %v2426_v16, -inf  ;;  %v2438_v18 = vmax.f32 %v2436_v50, %v2437_v37 }
 0x21c   :  { %v2302_v13 = vmax.f32 %v2298_v49, 1e-08  ;;  %v8331_v9 = vpop.f32.mrb[19].mxu1  ;;  %v2446_v49 = vrot.slane %v2445_v40, 2  ;;  %v2429_v44 = vmul.f32 %v10174_v42, %v10109_v0  ;;  %v2479_v19 = vrot.slane %v2478_v15, 4 }
 0x21d   :  { %8346 = vmatmul.mubr.msk.f32.vlgmr.msra.gmra.mrb[22].mxu0 %vm96_vm0, %v2789_v46  ;;  %8357 = vmatmul.mubr.msk.f32.vlgmr.msra.gmra.mrb[22].mxu1 %vm96_vm0, %v2872_v17  ;;  %v2430_v9 = vmul.f32 %v10174_v42, %v10111_v4  ;;  %v2439_v24 = vrot.slane %v2438_v18, 2  ;;  %v2431_v4 = vmul.f32 %v10174_v42, %v10113_v8  ;;  %v2468_v41 = vmax.f32 %v2466_v39, %v2467_v14 }
 0x21e   :  { %9238 = vrcp.f32 %v2302_v13  ;;  %8876 = vmatpush3.bf16.xpose.msk.msra.mxu0 %vm9479_vm1, %v9599_v43  ;;  %8888 = vmatpush3.bf16.xpose.msk.msra.mxu1 %vm9479_vm1, %v9599_v43  ;;  %v2370_v43 = vpop.permute.xlu1 %2369  ;;  %v2460_v13 = vrot.slane %v2459_v38, 2  ;;  %v2447_v12 = vmax.f32 %v2445_v40, %v2446_v49  ;;  %v2499_v50 = vsel %vm96_vm0, %v2429_v44, -inf }
 0x21f   :  { %8879 = vmatprep.subr.msk.bf16.mxu0 %vm9479_vm1, %v9619_v48  ;;  %v10164_v2 = vpop.f32.mrb[20].mxu1  ;;  %8891 = vmatprep.subr.msk.bf16.mxu1 %vm9479_vm1, %v9619_v48  ;;  %v2428_v46 = vmul.f32 %v10174_v42, %v2370_v43  ;;  %v2506_v40 = vsel %vm96_vm0, %v2430_v9, -inf  ;;  %v2440_v44 = vmax.f32 %v2438_v18, %v2439_v24  ;;  %v2513_v39 = vsel %vm96_vm0, %v2431_v4, -inf }
 0x220   :  { %v8336_v28 = vpop.f32.mrb[21].mxu1  ;;  %v2461_v36 = vmax.f32 %v2459_v38, %v2460_v13  ;;  %v2448_v22 = vrot.slane %v2447_v12, 1  ;;  %v2432_v38 = vmul.f32 %v10174_v42, %v10117_v23  ;;  %v2469_v14 = vrot.slane %v2468_v41, 1 }
 0x221   :  { %v2492_v0 = vsel %vm96_vm0, %v2428_v46, -inf  ;;  %v2500_v46 = vrot.slane %v2499_v50, 4  ;;  %v2514_v18 = vrot.slane %v2513_v39, 4 }
 0x222   :  { %v2419_v28 = vpop.permute.xlu1 %2418  ;;  %v2493_v37 = vrot.slane %v2492_v0, 4  ;;  %v2462_v8 = vrot.slane %v2461_v36, 1 }
 0x223   :  { %v2501_v1 = vmax.f32 %v2499_v50, %v2500_v46 }
 0x224   :  { %v2494_v13 = vmax.f32 %v2492_v0, %v2493_v37  ;;  %v10211_v24 = vmax.f32 %v2461_v36, %v2462_v8  ;;  %v10213_v0 = vmax.f32 %v2468_v41, %v2469_v14  ;;  %v2515_v36 = vmax.f32 %v2513_v39, %v2514_v18 }
 0x225   :  { %v2502_v50 = vrot.slane %v2501_v1, 2 }
 0x226   :  { %8882 = vmatpush3.bf16.xpose.msk.msra.mxu0 %vm9479_vm1, %v9619_v48  ;;  %8894 = vmatpush3.bf16.xpose.msk.msra.mxu1 %vm9479_vm1, %v9619_v48  ;;  %v2454_v48 = vmax.f32 %v2452_v32, %v2453_v54  ;;  %v2485_v32 = vsel %vm96_vm0, %v2427_v63, -inf  ;;  %v2480_v54 = vmax.f32 %v2478_v15, %v2479_v19  ;;  %v2433_v63 = vmul.f32 %v10174_v42, %v10119_v60 }
 0x227   :  { %8897 = vmatprep.subr.msk.bf16.mxu0 %vm9479_vm1, %v9639_v53  ;;  %8909 = vmatprep.subr.msk.bf16.mxu1 %vm9479_vm1, %v9639_v53  ;;  %v2441_v15 = vrot.slane %v2440_v44, 1  ;;  %v2520_v19 = vsel %vm96_vm0, %v2432_v38, -inf  ;;  %v2495_v4 = vrot.slane %v2494_v13, 2  ;;  %v10220_v41 = vmul.f32 %v10211_v24, %v10211_v24 }
 0x228   :  { %v9239_v17 = vpop.eup %9238  ;;  %v2455_v49 = vrot.slane %v2454_v48, 1  ;;  %v2481_v62 = vrot.slane %v2480_v54, 2  ;;  %v2527_v60 = vsel %vm96_vm0, %v2433_v63, -inf }
 0x229   :  { %v2306_v10 = vmul.f32 %v9239_v17, %v2219_v55  ;;  %v2474_v55 = vrot.slane %v2473_v57, 2  ;;  %v2507_v17 = vrot.slane %v2506_v40, 4  ;;  %v2496_v8 = vmax.f32 %v2494_v13, %v2495_v4 }
 0x22a   :  { %v2456_v23 = vmax.f32 %v2454_v48, %v2455_v49  ;;  %v2482_v38 = vmax.f32 %v2480_v54, %v2481_v62  ;;  %v2442_v48 = vmax.f32 %v2440_v44, %v2441_v15  ;;  %v2435_v62 = vmul.f32 %v10174_v42, %v2419_v28 }
 0x22b   :  { %v2992_v43 = vmul.f32 %v10136_v30, %v2306_v10  ;;  %v3075_v16 = vmul.f32 %v2306_v10, %v2306_v10  ;;  %v2475_v9 = vmax.f32 %v2473_v57, %v2474_v55  ;;  %v2486_v10 = vrot.slane %v2485_v32, 4 }
 0x22c   :  { %v2508_v27 = vmax.f32 %v2506_v40, %v2507_v17  ;;  %v2521_v55 = vrot.slane %v2520_v19, 4  ;;  %v3313_v49 = vmul.f32 %v2456_v23, %v2456_v23  ;;  %v10224_v17 = vmul.f32 %v10213_v0, %v10213_v0 }
 0x22d   :  { %8367 = vmatprep.mubr.msk.f32.mxu0 %vm96_vm0, %v2992_v43  ;;  %8378 = vmatprep.mubr.msk.f32.mxu1 %vm96_vm0, %v3075_v16  ;;  %v2561_v43 = vpop.permute.xlu1 %2560  ;;  %v2449_v16 = vmax.f32 %v2447_v12, %v2448_v22  ;;  %v2476_v57 = vrot.slane %v2475_v9, 1  ;;  %v2487_v37 = vmax.f32 %v2485_v32, %v2486_v10  ;;  %v2554_v12 = vpop.permute.xlu0 %2553  ;;  %v2434_v22 = vmul.f32 %v10174_v42, %v10129_v34 }
 0x22e   :  { %v2509_v32 = vrot.slane %v2508_v27, 2  ;;  %v2528_v34 = vrot.slane %v2527_v60, 4  ;;  %v2503_v44 = vmax.f32 %v2501_v1, %v2502_v50  ;;  %v2522_v39 = vmax.f32 %v2520_v19, %v2521_v55 }
 0x22f   :  { %v3312_v46 = vmul.f32 %v2449_v16, %v2449_v16  ;;  %v10226_v14 = vmax.f32 %v2475_v9, %v2476_v57  ;;  %v2488_v54 = vrot.slane %v2487_v37, 2  ;;  %v2534_v10 = vsel %vm96_vm0, %v2434_v22, -inf }
 0x230   :  { %v2483_v63 = vrot.slane %v2482_v38, 1  ;;  %v3212_v15 = vsel %vm430_vm2, %v2449_v16, %v2442_v48  ;;  %v3311_v18 = vmul.f32 %v2442_v48, %v2442_v48  ;;  %v2516_v13 = vrot.slane %v2515_v36, 2 }
 0x231   :  { %v2575_v40 = vpop.permute.xlu1 %2574  ;;  %v2568_v4 = vpop.permute.xlu0 %2567  ;;  %v2510_v31 = vmax.f32 %v2508_v27, %v2509_v32  ;;  %v2497_v21 = vrot.slane %v2496_v8, 1  ;;  %v2661_v9 = vmul.f32 %v10124_v26, %v2561_v43  ;;  %v2660_v57 = vmul.f32 %v10124_v26, %v2554_v12 }
 0x232   :  { %v2529_v51 = vmax.f32 %v2527_v60, %v2528_v34  ;;  %v2535_v28 = vrot.slane %v2534_v10, 4  ;;  %v2541_v1 = vsel %vm96_vm0, %v2435_v62, -inf  ;;  %v2663_v19 = vmul.f32 %v10124_v26, %v2575_v40 }
 0x233   :  { %v10237_v16 = vmul.f32 %v10226_v14, %v10226_v14  ;;  %v2489_v55 = vmax.f32 %v2487_v37, %v2488_v54  ;;  %v2504_v22 = vrot.slane %v2503_v44, 1  ;;  %v2523_v27 = vrot.slane %v2522_v39, 2 }
 0x234   :  { %v2484_v48 = vmax.f32 %v2482_v38, %v2483_v63  ;;  %v3213_v43 = vsel %vm1931_vm13, %v2456_v23, %v3212_v15  ;;  %v3343_v12 = vsel %vm430_vm2, %v3312_v46, %v3311_v18  ;;  %v2517_v60 = vmax.f32 %v2515_v36, %v2516_v13 }
 0x235   :  { %v2582_v50 = vpop.permute.xlu1 %2581  ;;  %v10241_v32 = vmax.f32 %v2496_v8, %v2497_v21  ;;  %v2542_v34 = vrot.slane %v2541_v1, 4  ;;  %v2683_v40 = vsel %vm96_vm0, %v2661_v9, -inf  ;;  %v2676_v62 = vsel %vm96_vm0, %v2660_v57, -inf  ;;  %v2617_v54 = vpop.permute.xlu0 %2616 }
 0x236   :  { %v2511_v3 = vrot.slane %v2510_v31, 1  ;;  %v2530_v56 = vrot.slane %v2529_v51, 2  ;;  %v2536_v59 = vmax.f32 %v2534_v10, %v2535_v28  ;;  %v2697_v37 = vsel %vm96_vm0, %v2663_v19, -inf }
 0x237   :  { %v2490_v38 = vrot.slane %v2489_v55, 1  ;;  %v2505_v63 = vmax.f32 %v2503_v44, %v2504_v22  ;;  %v2524_v23 = vmax.f32 %v2522_v39, %v2523_v27  ;;  %v3214_v46 = vsel %vm1933_vm14, %v10211_v24, %v3213_v43 }
 0x238   :  { %v2684_v21 = vrot.slane %v2683_v40, 4  ;;  %v2664_v36 = vmul.f32 %v10124_v26, %v2582_v50  ;;  %v2677_v8 = vrot.slane %v2676_v62, 4  ;;  %v3344_v18 = vsel %vm1931_vm13, %v3313_v49, %v3343_v12 }
 0x239   :  { %v2589_v15 = vpop.permute.xlu1 %2588  ;;  %v2518_v13 = vrot.slane %v2517_v60, 1  ;;  %v3219_v10 = vsel %vm430_vm2, %v2505_v63, %v10241_v32  ;;  %v2543_v9 = vmax.f32 %v2541_v1, %v2542_v34  ;;  %v2698_v57 = vrot.slane %v2697_v37, 4 }
 0x23a   :  { %v2512_v28 = vmax.f32 %v2510_v31, %v2511_v3  ;;  %v2531_v44 = vmax.f32 %v2529_v51, %v2530_v56  ;;  %v2537_v39 = vrot.slane %v2536_v59, 2  ;;  %v3215_v24 = vsel %vm1935_vm15, %v10213_v0, %v3214_v46  ;;  %v2624_v3 = vpop.permute.xlu0 %2623 }
 0x23b   :  { %v2525_v19 = vrot.slane %v2524_v23, 1  ;;  %v2665_v50 = vmul.f32 %v10124_v26, %v2589_v15  ;;  %v2662_v22 = vmul.f32 %v10124_v26, %v2568_v4  ;;  %v3345_v49 = vsel %vm1933_vm14, %v10220_v41, %v3344_v18 }
 0x23c   :  { %v3220_v27 = vsel %vm1931_vm13, %v2512_v28, %v3219_v10  ;;  %v2685_v43 = vmax.f32 %v2683_v40, %v2684_v21  ;;  %v2704_v1 = vsel %vm96_vm0, %v2664_v36, -inf  ;;  %v2678_v12 = vmax.f32 %v2676_v62, %v2677_v8 }
 0x23d   :  { %v2519_v56 = vmax.f32 %v2517_v60, %v2518_v13  ;;  %v2544_v51 = vrot.slane %v2543_v9, 2  ;;  %v2699_v31 = vmax.f32 %v2697_v37, %v2698_v57  ;;  %v3216_v0 = vsel %vm12184_vm4, %v10226_v14, %v3215_v24 }
 0x23e   :  { %v2491_v34 = vmax.f32 %v2489_v55, %v2490_v38  ;;  %v2532_v46 = vrot.slane %v2531_v44, 1  ;;  %v2538_v15 = vmax.f32 %v2536_v59, %v2537_v39  ;;  %v3346_v4 = vsel %vm1935_vm15, %v10224_v17, %v3345_v49  ;;  %v2631_v10 = vpop.permute.xlu0 %2630 }
 0x23f   :  { %v3221_v41 = vsel %vm1933_vm14, %v2519_v56, %v3220_v27  ;;  %v2705_v18 = vrot.slane %v2704_v1, 4  ;;  %v2711_v40 = vsel %vm96_vm0, %v2665_v50, -inf  ;;  %v2690_v62 = vsel %vm96_vm0, %v2662_v22, -inf }
 0x240   :  { %v2526_v21 = vmax.f32 %v2524_v23, %v2525_v19  ;;  %v2686_v60 = vrot.slane %v2685_v43, 2  ;;  %v2679_v36 = vrot.slane %v2678_v12, 2  ;;  %v3217_v37 = vsel %vm12183_vm6, %v2484_v48, %v3216_v0 }
 0x241   :  { %v2545_v8 = vmax.f32 %v2543_v9, %v2544_v51  ;;  %v2700_v14 = vrot.slane %v2699_v31, 2  ;;  %v3317_v55 = vmul.f32 %v2484_v48, %v2484_v48  ;;  %v3347_v59 = vsel %vm12184_vm4, %v10237_v16, %v3346_v4 }
 0x242   :  { %v2539_v38 = vrot.slane %v2538_v15, 1  ;;  %v2712_v17 = vrot.slane %v2711_v40, 4  ;;  %v2691_v13 = vrot.slane %v2690_v62, 4  ;;  %v3222_v57 = vsel %vm1935_vm15, %v2526_v21, %v3221_v41 }
 0x243   :  { %v2533_v39 = vmax.f32 %v2531_v44, %v2532_v46  ;;  %v2706_v24 = vmax.f32 %v2704_v1, %v2705_v18  ;;  %v3218_v23 = vsel %vm12182_vm7, %v2491_v34, %v3217_v37  ;;  %v3318_v19 = vmul.f32 %v2491_v34, %v2491_v34  ;;  %v2638_v46 = vpop.permute.xlu0 %2637 }
 0x244   :  { %v2687_v50 = vmax.f32 %v2685_v43, %v2686_v60  ;;  %v2680_v22 = vmax.f32 %v2678_v12, %v2679_v36  ;;  %v2669_v9 = vmul.f32 %v10145_v45, %v2617_v54  ;;  %v3348_v48 = vsel %vm12183_vm6, %v3317_v55, %v3347_v59 }
 0x245   :  { %v3320_v49 = vmul.f32 %v2505_v63, %v2505_v63  ;;  %v2546_v27 = vrot.slane %v2545_v8, 1  ;;  %v2701_v16 = vmax.f32 %v2699_v31, %v2700_v14  ;;  %v3223_v51 = vsel %vm12184_vm4, %v2533_v39, %v3222_v57  ;;  %v46_v14 = vld [vmem:[%s12163_s4 + $0x80] sm:$0xff] }
 0x246   :  { %v2540_v0 = vmax.f32 %v2538_v15, %v2539_v38  ;;  %v2713_v4 = vmax.f32 %v2711_v40, %v2712_v17  ;;  %v2692_v20 = vmax.f32 %v2690_v62, %v2691_v13  ;;  %v10276_v44 = vmul.f32 %v10124_v26, %v3218_v23 }
 0x247   :  { %v3321_v1 = vmul.f32 %v2512_v28, %v2512_v28  ;;  %v3319_v43 = vmul.f32 %v10241_v32, %v10241_v32  ;;  %v2707_v12 = vrot.slane %v2706_v24, 2  ;;  %v10281_v54 = vsel %vm12182_vm7, %v3318_v19, %v3348_v48 }
 0x248   :  { %v2688_v34 = vrot.slane %v2687_v50, 1  ;;  %v2681_v63 = vrot.slane %v2680_v22, 1  ;;  %v2739_v31 = vsel %vm96_vm0, %v2669_v9, -inf  ;;  %v3224_v15 = vsel %vm12183_vm6, %v2540_v0, %v3223_v51 }
 0x249   :  { %v3322_v41 = vmul.f32 %v2519_v56, %v2519_v56  ;;  %v2547_v18 = vmax.f32 %v2545_v8, %v2546_v27  ;;  %v2702_v40 = vrot.slane %v2701_v16, 1  ;;  %v2670_v62 = vmul.f32 %v10145_v45, %v2624_v3 }
 0x24a   :  { %v3323_v60 = vmul.f32 %v2526_v21, %v2526_v21  ;;  %v2714_v36 = vrot.slane %v2713_v4, 2  ;;  %v2693_v32 = vrot.slane %v2692_v20, 2  ;;  %v10289_v55 = vmul.f32 %v2533_v39, %v2533_v39 }
 0x24b   :  { %v2708_v59 = vmax.f32 %v2706_v24, %v2707_v12  ;;  %v2740_v38 = vrot.slane %v2739_v31, 4  ;;  %v3225_v17 = vsel %vm12182_vm7, %v2547_v18, %v3224_v15  ;;  %v3350_v56 = vsel %vm430_vm2, %v3320_v49, %v3319_v43  ;;  %v2645_v24 = vpop.permute.xlu0 %2644 }
 0x24c   :  { %v2689_v8 = vmax.f32 %v2687_v50, %v2688_v34  ;;  %v2682_v13 = vmax.f32 %v2680_v22, %v2681_v63  ;;  %v10293_v3 = vmul.f32 %v2540_v0, %v2540_v0  ;;  %v10295_v21 = vmax.f32 %v2701_v16, %v2702_v40 }
 0x24d   :  { %v2746_v57 = vsel %vm96_vm0, %v2670_v62, -inf  ;;  %v10298_v19 = vmul.f32 %v46_v14, %v46_v14  ;;  %v2715_v39 = vmax.f32 %v2713_v4, %v2714_v36  ;;  %v2694_v9 = vmax.f32 %v2692_v20, %v2693_v32 }
 0x24e   :  { %v10302_v27 = vmul.f32 %v10145_v45, %v3225_v17  ;;  %v2709_v50 = vrot.slane %v2708_v59, 1  ;;  %v2741_v22 = vmax.f32 %v2739_v31, %v2740_v38  ;;  %v2671_v49 = vmul.f32 %v10145_v45, %v2631_v10 }
 0x24f   :  { %v3351_v16 = vsel %vm1931_vm13, %v3321_v1, %v3350_v56  ;;  %v3590_v51 = vmul.f32 %v2689_v8, %v2689_v8  ;;  %v3589_v0 = vmul.f32 %v2682_v13, %v2682_v13  ;;  %v2747_v43 = vrot.slane %v2746_v57, 4 }
 0x250   :  { %v10309_v20 = vmul.f32 %v10295_v21, %v10295_v21  ;;  %v2672_v4 = vmul.f32 %v10145_v45, %v2638_v46  ;;  %v10312_v15 = vmul.f32 %v2547_v18, %v2547_v18  ;;  %v2716_v31 = vrot.slane %v2715_v39, 1  ;;  %v2652_v18 = vpop.permute.xlu0 %2651 }
 0x251   :  { %v2695_v40 = vrot.slane %v2694_v9, 1  ;;  %v3352_v1 = vsel %vm1933_vm14, %v3322_v41, %v3351_v16  ;;  %v10316_v62 = vmax.f32 %v2708_v59, %v2709_v50  ;;  %v2753_v36 = vsel %vm96_vm0, %v2671_v49, -inf }
 0x252   :  { %v10321_v46 = vsel %vm430_vm2, %v3590_v51, %v3589_v0  ;;  %v2748_v14 = vmax.f32 %v2746_v57, %v2747_v43  ;;  %v2760_v17 = vsel %vm96_vm0, %v2672_v4, -inf  ;;  %v2673_v56 = vmul.f32 %v10145_v45, %v2645_v24 }
 0x253   :  { %v10329_v49 = vmax.f32 %v2715_v39, %v2716_v31 }
 0x254   :  { %v2301_v28 = vpop.xlane.xlu1 %2300  ;;  %v2749_v4 = vrot.slane %v2748_v14, 2 }
 0x255   :  { %v2303_v37 = vmax.f32 %v2301_v28, 1e-08  ;;  %v2742_v28 = vrot.slane %v2741_v22, 2 }
 0x257   :  { %9240 = vrcp.f32 %v2303_v37  ;;  %v3490_v37 = vsel %vm430_vm2, %v2689_v8, %v2682_v13  ;;  %v2696_v8 = vmax.f32 %v2694_v9, %v2695_v40  ;;  %v2754_v13 = vrot.slane %v2753_v36, 4 }
 0x258   :  { %v2596_v23 = vpop.permute.xlu1 %2595  ;;  %v2743_v51 = vmax.f32 %v2741_v22, %v2742_v28  ;;  %v2767_v9 = vsel %vm96_vm0, %v2673_v56, -inf }
 0x259   :  { %v2666_v48 = vmul.f32 %v10124_v26, %v2596_v23  ;;  %v3353_v23 = vsel %vm1935_vm15, %v3323_v60, %v3352_v1  ;;  %v2761_v60 = vrot.slane %v2760_v17, 4  ;;  %v2755_v1 = vmax.f32 %v2753_v36, %v2754_v13 }
 0x25a   :  { %v2744_v56 = vrot.slane %v2743_v51, 1  ;;  %v2750_v36 = vmax.f32 %v2748_v14, %v2749_v4 }
 0x25b   :  { %v2718_v12 = vsel %vm96_vm0, %v2666_v48, -inf  ;;  %v10327_v48 = vpop.f32.mrb[6].mxu0 }
 0x25c   :  { %v2719_v34 = vrot.slane %v2718_v12, 4  ;;  %v2610_v63 = vpop.permute.xlu1 %2609  ;;  %12215 = vst [vmem:[#allocation12_spill] sm:$0xff] %v10327_v48  ;;  %v10332_v16 = vpop.f32.mrb[7].mxu0 }
 0x25d   :  { %v2668_v10 = vmul.f32 %v10145_v45, %v2610_v63 }
 0x25e   :  { %v2720_v32 = vmax.f32 %v2718_v12, %v2719_v34  ;;  %v10335_v12 = vpop.f32.mrb[8].mxu0  ;;  %v2674_v34 = vmul.f32 %v10145_v45, %v2652_v18 }
 0x25f   :  { %v2732_v38 = vsel %vm96_vm0, %v2668_v10, -inf  ;;  %12216 = vst [vmem:[#allocation13_spill] sm:$0xff] %v10335_v12  ;;  %v10339_v63 = vpop.f32.mrb[9].mxu0  ;;  %v3491_v10 = vsel %vm1931_vm13, %v2696_v8, %v3490_v37  ;;  %v2768_v12 = vrot.slane %v2767_v9, 4 }
 0x260   :  { %v2733_v41 = vrot.slane %v2732_v38, 4  ;;  %v2603_v59 = vpop.permute.xlu1 %2602  ;;  %v2721_v43 = vrot.slane %v2720_v32, 2  ;;  %v2774_v48 = vsel %vm96_vm0, %v2674_v34, -inf }
 0x261   :  { %v9241_v50 = vpop.eup %9240  ;;  %v2667_v57 = vmul.f32 %v10124_v26, %v2603_v59  ;;  %v2769_v34 = vmax.f32 %v2767_v9, %v2768_v12 }
 0x262   :  { %v2307_v0 = vmul.f32 %v9241_v50, %v10164_v2  ;;  %v2734_v24 = vmax.f32 %v2732_v38, %v2733_v41  ;;  %v10343_v2 = vpop.f32.mrb[10].mxu0  ;;  %v3591_v41 = vmul.f32 %v2696_v8, %v2696_v8  ;;  %v2722_v59 = vmax.f32 %v2720_v32, %v2721_v43 }
 0x263   :  { %v2725_v39 = vsel %vm96_vm0, %v2667_v57, -inf  ;;  %12217 = vst [vmem:[#allocation14_spill] sm:$0xff] %v10343_v2  ;;  %v10347_v18 = vpop.f32.mrb[11].mxu0  ;;  %v2762_v32 = vmax.f32 %v2760_v17, %v2761_v60  ;;  %v3354_v8 = vsel %vm12184_vm4, %v10289_v55, %v3353_v23  ;;  %v2756_v43 = vrot.slane %v2755_v1, 2 }
 0x264   :  { %v2735_v26 = vrot.slane %v2734_v24, 2  ;;  %v2726_v31 = vrot.slane %v2725_v39, 4  ;;  %v2659_v40 = vpop.permute.xlu1 %2658  ;;  %v2993_v22 = vmul.f32 %v10174_v42, %v2307_v0  ;;  %v3076_v38 = vmul.f32 %v2307_v0, %v2307_v0 }
 0x265   :  { %v2675_v28 = vmul.f32 %v10145_v45, %v2659_v40  ;;  %v10356_v45 = vpop.f32.mrb[12].mxu0  ;;  %v3492_v0 = vsel %vm1933_vm14, %v10295_v21, %v3491_v10  ;;  %v2723_v4 = vrot.slane %v2722_v59, 1  ;;  %v3622_v21 = vsel %vm1931_vm13, %v3591_v41, %v10321_v46 }
 0x266   :  { %v2736_v50 = vmax.f32 %v2734_v24, %v2735_v26  ;;  %v2727_v57 = vmax.f32 %v2725_v39, %v2726_v31  ;;  %8368 = vmatmul.mubr.msk.f32.vlgmr.msra.gmra.mrb[24].mxu0 %vm96_vm0, %v2993_v22  ;;  %8379 = vmatmul.mubr.msk.f32.vlgmr.msra.gmra.mrb[24].mxu1 %vm96_vm0, %v3076_v38  ;;  %12218 = vst [vmem:[#allocation15_spill] sm:$0xff] %v10356_v45  ;;  %v10365_v13 = vpop.f32.mrb[13].mxu0  ;;  %v2751_v31 = vrot.slane %v2750_v36, 1  ;;  %v2763_v40 = vrot.slane %v2762_v32, 2 }
 0x267   :  { %v2781_v2 = vsel %vm96_vm0, %v2675_v28, -inf  ;;  %8900 = vmatpush3.bf16.xpose.msk.msra.mxu0 %vm9479_vm1, %v9639_v53  ;;  %8912 = vmatpush3.bf16.xpose.msk.msra.mxu1 %vm9479_vm1, %v9639_v53  ;;  %v10374_v17 = vpop.f32.mrb[14].mxu0  ;;  %v2745_v60 = vmax.f32 %v2743_v51, %v2744_v56  ;;  %v3355_v39 = vsel %vm12183_vm6, %v10293_v3, %v3354_v8  ;;  %v3493_v10 = vsel %vm1935_vm15, %v10316_v62, %v3492_v0 }
 0x268   :  { %v2728_v37 = vrot.slane %v2727_v57, 2  ;;  %8389 = vmatprep.mubr.msk.f32.mxu0 %vm96_vm0, %v10276_v44  ;;  %v2737_v24 = vrot.slane %v2736_v50, 1  ;;  %v2782_v14 = vrot.slane %v2781_v2, 4  ;;  %8400 = vmatprep.mubr.msk.f32.mxu1 %vm96_vm0, %v10281_v54  ;;  %12219 = vst [vmem:[#allocation16_spill] sm:$0xff] %v10374_v17  ;;  %v2775_v44 = vrot.slane %v2774_v48, 4  ;;  %v10381_v23 = vpop.f32.mrb[15].mxu0 }
 0x269   :  { %8903 = vmatprep.subr.msk.bf16.mxu0 %vm9479_vm1, %v9659_v58  ;;  %8915 = vmatprep.subr.msk.bf16.mxu1 %vm9479_vm1, %v9659_v58  ;;  %v3593_v54 = vmul.f32 %v10316_v62, %v10316_v62  ;;  %v10387_v26 = vpop.f32.mrb[16].mxu0  ;;  %v2757_v46 = vmax.f32 %v2755_v1, %v2756_v43  ;;  %v3623_v51 = vsel %vm1933_vm14, %v10309_v20, %v3622_v21  ;;  %v10404_v62 = vld [vmem:[%s12166_s1] sm:$0xff] }
 0x26a   :  { %v2729_v55 = vmax.f32 %v2727_v57, %v2728_v37  ;;  %12220 = vst [vmem:[#allocation17_spill] sm:$0xff] %v10387_v26  ;;  %v10391_v28 = vpop.f32.mrb[17].mxu0  ;;  %v2738_v38 = vmax.f32 %v2736_v50, %v2737_v24  ;;  %v2783_v41 = vmax.f32 %v2781_v2, %v2782_v14  ;;  %v3594_v3 = vmul.f32 %v10329_v49, %v10329_v49 }
 0x26b   :  { %12221 = vst [vmem:[#allocation18_spill] sm:$0xff] %v10391_v28  ;;  %v10395_v12 = vpop.f32.mrb[18].mxu0  ;;  %v2776_v9 = vmax.f32 %v2774_v48, %v2775_v44  ;;  %v2724_v57 = vmax.f32 %v2722_v59, %v2723_v4  ;;  %v3356_v56 = vsel %vm12182_vm7, %v10312_v15, %v3355_v39  ;;  %v3598_v2 = vmul.f32 %v2745_v60, %v2745_v60  ;;  %v10416_v15 = vld [vmem:[%s12167_s3] sm:$0xff]  ;;  %v10439_v4 = vld [vmem:[%s12167_s3 + $0x8] sm:$0xff] }
 0x26c   :  { %v2730_v22 = vrot.slane %v2729_v55, 1  ;;  %12222 = vst [vmem:[#allocation19_spill] sm:$0xff] %v10395_v12  ;;  %v10406_v1 = vpop.f32.mrb[19].mxu0  ;;  %v2770_v50 = vrot.slane %v2769_v34, 2  ;;  %v3494_v48 = vsel %vm12184_vm4, %v10329_v49, %v3493_v10  ;;  %v2752_v59 = vmax.f32 %v2750_v36, %v2751_v31 }
 0x26d   :  { %12223 = vst [vmem:[#allocation20_spill] sm:$0xff] %v10406_v1  ;;  %v2764_v37 = vmax.f32 %v2762_v32, %v2763_v40  ;;  %v3624_v8 = vsel %vm1935_vm15, %v3593_v54, %v3623_v51  ;;  %v2758_v0 = vrot.slane %v2757_v46, 1  ;;  %v3497_v49 = vsel %vm430_vm2, %v2745_v60, %v2738_v38  ;;  %v10433_v32 = vpop.f32.mrb[20].mxu0 }
 0x26e   :  { %v2731_v20 = vmax.f32 %v2729_v55, %v2730_v22  ;;  %v2784_v43 = vrot.slane %v2783_v41, 2  ;;  %v10431_v36 = vmul.f32 %v10404_v62, %v10404_v62  ;;  %12224 = vst [vmem:[#allocation21_spill] sm:$0xff] %v10433_v32  ;;  %v2777_v24 = vrot.slane %v2776_v9, 2  ;;  %v10445_v21 = vpop.f32.mrb[21].mxu0 }
 0x26f   :  { %8906 = vmatpush3.bf16.xpose.msk.msra.mxu0 %vm9479_vm1, %v9659_v58  ;;  %8918 = vmatpush3.bf16.xpose.msk.msra.mxu1 %vm9479_vm1, %v9659_v58  ;;  %v3597_v14 = vmul.f32 %v2738_v38, %v2738_v38  ;;  %v3495_v44 = vsel %vm12183_vm6, %v2724_v57, %v3494_v48  ;;  %v10443_v55 = vmul.f32 %v10416_v15, %v10416_v15  ;;  %v2765_v40 = vrot.slane %v2764_v37, 1 }
 0x270   :  { %8921 = vmatprep.subr.msk.bf16.mxu0 %vm9479_vm1, %v9639_v53  ;;  %8933 = vmatprep.subr.msk.bf16.mxu1 %vm9479_vm1, %v9639_v53  ;;  %12225 = vst [vmem:[#allocation22_spill] sm:$0xff] %v10445_v21  ;;  %v2771_v54 = vmax.f32 %v2769_v34, %v2770_v50  ;;  %v3496_v60 = vsel %vm12182_vm7, %v2731_v20, %v3495_v44  ;;  %v5243_v31 = vsel %vm96_vm0, %v10431_v36, 0.0  ;;  %v47_v34 = vld [vmem:[%s12163_s4 + $0x88] sm:$0xff] }
 0x271   :  { %v3595_v39 = vmul.f32 %v2724_v57, %v2724_v57  ;;  %v3498_v22 = vsel %vm1931_vm13, %v2752_v59, %v3497_v49  ;;  %v3596_v10 = vmul.f32 %v2731_v20, %v2731_v20  ;;  %5244 = vadd.xlane.f32.xlu1 %v5243_v31  ;;  %v5263_v38 = vsel %vm96_vm0, %v10443_v55, 0.0 }
 0x272   :  { %v2759_v51 = vmax.f32 %v2757_v46, %v2758_v0  ;;  %v2785_v48 = vmax.f32 %v2783_v41, %v2784_v43  ;;  %v3625_v32 = vsel %vm12184_vm4, %v3594_v3, %v3624_v8  ;;  %v10459_v57 = vmul.f32 %v10439_v4, %v10439_v4  ;;  %5264 = vadd.xlane.f32.xlu0 %v5263_v38  ;;  %v10468_v41 = vld [vmem:[%s12166_s1 + $0x8] sm:$0xff] }
 0x273   :  { %v3599_v50 = vmul.f32 %v2752_v59, %v2752_v59  ;;  %v2778_v49 = vmax.f32 %v2776_v9, %v2777_v24  ;;  %v3628_v20 = vsel %vm430_vm2, %v3598_v2, %v3597_v14  ;;  %v3506_v46 = vmul.f32 %v10136_v30, %v3496_v60 }
 0x274   :  { %v2772_v3 = vrot.slane %v2771_v54, 1  ;;  %v3499_v8 = vsel %vm1933_vm14, %v2759_v51, %v3498_v22  ;;  %v3626_v9 = vsel %vm12183_vm6, %v3595_v39, %v3625_v32  ;;  %v2766_v30 = vmax.f32 %v2764_v37, %v2765_v40  ;;  %v48_v39 = vld [vmem:[%s12163_s4 + $0x90] sm:$0xff] }
 0x275   :  { %v3627_v2 = vsel %vm12182_vm7, %v3596_v10, %v3626_v9  ;;  %v79_v59 = vmul.f32 %v47_v34, %v47_v34  ;;  %v3629_v0 = vsel %vm1931_vm13, %v3599_v50, %v3628_v20  ;;  %v10490_v37 = vmul.f32 %v10468_v41, %v10468_v41  ;;  %v50_v9 = vld [vmem:[%s12163_s4 + $0xa0] sm:$0xff] }
 0x276   :  { %8390 = vmatmul.mubr.msk.f32.vlgmr.msra.gmra.mrb[26].mxu0 %vm96_vm0, %v10302_v27  ;;  %8401 = vmatmul.mubr.msk.f32.vlgmr.msra.gmra.mrb[26].mxu1 %vm96_vm0, %v3356_v56  ;;  %v5266_v27 = vsel %vm96_vm0, %v10459_v57, 0.0  ;;  %v2786_v56 = vrot.slane %v2785_v48, 1  ;;  %v3600_v43 = vmul.f32 %v2759_v51, %v2759_v51  ;;  %v2779_v32 = vrot.slane %v2778_v49, 1 }
 0x277   :  { %8924 = vmatpush3.bf16.xpose.msk.msra.mxu0 %vm9479_vm1, %v9639_v53  ;;  %8411 = vmatprep.mubr.msk.f32.mxu0 %vm96_vm0, %v3506_v46  ;;  %v2773_v24 = vmax.f32 %v2771_v54, %v2772_v3  ;;  %v5246_v14 = vsel %vm96_vm0, %v10490_v37, 0.0  ;;  %v10500_v60 = vpack.c.bf16 %v79_v59, %v10298_v19  ;;  %v3601_v31 = vmul.f32 %v2766_v30, %v2766_v30  ;;  %v49_v54 = vld [vmem:[%s12163_s4 + $0x98] sm:$0xff] }
 0x278   :  { %8936 = vmatpush3.bf16.xpose.msk.msra.mxu1 %vm9479_vm1, %v9639_v53  ;;  %8422 = vmatprep.mubr.msk.f32.mxu1 %vm96_vm0, %v3627_v2  ;;  %v3500_v53 = vsel %vm1935_vm15, %v2766_v30, %v3499_v8  ;;  %v3630_v44 = vsel %vm1933_vm14, %v3600_v43, %v3629_v0  ;;  %v2787_v40 = vmax.f32 %v2785_v48, %v2786_v56  ;;  %v52_v56 = vld [vmem:[%s12163_s4 + $0xb0] sm:$0xff]  ;;  %v53_v0 = vld [vmem:[%s12163_s4 + $0xb8] sm:$0xff] }
 0x279   :  { %8927 = vmatprep.subr.msk.bf16.mxu0 %vm9479_vm1, %v9659_v58  ;;  %8939 = vmatprep.subr.msk.bf16.mxu1 %vm9479_vm1, %v9659_v58  ;;  %v3501_v22 = vsel %vm12184_vm4, %v2773_v24, %v3500_v53  ;;  %v2780_v10 = vmax.f32 %v2778_v49, %v2779_v32  ;;  %v3631_v19 = vsel %vm1935_vm15, %v3601_v31, %v3630_v44 }
 0x27a   :  { %5267 = vadd.xlane.f32.xlu0 %v5266_v27  ;;  %v80_v38 = vmul.f32 %v48_v39, %v48_v39  ;;  %v3602_v51 = vmul.f32 %v2773_v24, %v2773_v24  ;;  %v81_v34 = vmul.f32 %v49_v54, %v49_v54  ;;  %v3604_v49 = vmul.f32 %v2787_v40, %v2787_v40  ;;  %v51_v27 = vld [vmem:[%s12163_s4 + $0xa8] sm:$0xff]  ;;  %v54_v24 = vld [vmem:[%s12163_s4 + $0xc0] sm:$0xff] }
 0x27b   :  { %v3502_v48 = vsel %vm12183_vm6, %v2780_v10, %v3501_v22  ;;  %v3603_v46 = vmul.f32 %v2780_v10, %v2780_v10  ;;  %v83_v2 = vmul.f32 %v51_v27, %v51_v27  ;;  %v84_v43 = vmul.f32 %v52_v56, %v52_v56  ;;  %v57_v22 = vld [vmem:[%s12163_s4 + $0xd8] sm:$0xff] }
 0x27c   :  { %v3503_v50 = vsel %vm12182_vm7, %v2787_v40, %v3502_v48  ;;  %v3632_v20 = vsel %vm12184_vm4, %v3602_v51, %v3631_v19  ;;  %v85_v32 = vmul.f32 %v53_v0, %v53_v0  ;;  %v86_v44 = vmul.f32 %v54_v24, %v54_v24  ;;  %v56_v40 = vld [vmem:[%s12163_s4 + $0xd0] sm:$0xff]  ;;  %v59_v51 = vld [vmem:[%s12163_s4 + $0xe8] sm:$0xff] }
 0x27d   :  { %v3507_v3 = vmul.f32 %v10174_v42, %v3503_v50  ;;  %v3633_v8 = vsel %vm12183_vm6, %v3603_v46, %v3632_v20  ;;  %v82_v42 = vmul.f32 %v50_v9, %v50_v9  ;;  %v88_v54 = vmul.f32 %v56_v40, %v56_v40  ;;  %v61_v20 = vld [vmem:[%s12163_s4 + $0xf8] sm:$0xff] }
 0x27e   :  { %5247 = vadd.xlane.f32.xlu0 %v5246_v14  ;;  %v3634_v30 = vsel %vm12182_vm7, %v3604_v49, %v3633_v8  ;;  %v10574_v53 = vpack.c.bf16 %v85_v32, %v84_v43  ;;  %v55_v14 = vld [vmem:[%s12163_s4 + $0xc8] sm:$0xff]  ;;  %v89_v10 = vmul.f32 %v57_v22, %v57_v22  ;;  %v60_v49 = vld [vmem:[%s12163_s4 + $0xf0] sm:$0xff]  ;;  %v12226_v9 = vmov 0.0|0.0  }
 0x27f   :  { %8930 = vmatpush3.bf16.xpose.msk.msra.mxu0 %vm9479_vm1, %v9659_v58  ;;  %v10554_v59 = vpack.c.bf16 %v83_v2, %v82_v42  ;;  %v87_v39 = vmul.f32 %v55_v14, %v55_v14  ;;  %v92_v46 = vmul.f32 %v60_v49, %v60_v49  ;;  %v3997_v27 = vrot.slane %v10416_v15, %v9831_v25 }
 0x280   :  { %8942 = vmatpush3.bf16.xpose.msk.msra.mxu1 %vm9479_vm1, %v9659_v58  ;;  %8945 = vmatprep.subr.msk.bf16.mxu0 %vm9479_vm1, %v10500_v60  ;;  %v10526_v58 = vpack.c.bf16 %v81_v34, %v80_v38  ;;  %v10614_v19 = vpack.c.bf16 %v89_v10, %v88_v54  ;;  %v58_v38 = vld [vmem:[%s12163_s4 + $0xe0] sm:$0xff]  ;;  %v91_v34 = vmul.f32 %v59_v51, %v59_v51  ;;  %v12227_v42 = vmov 0.0  }
 0x281   :  { %8993 = vmatprep.subr.msk.bf16.mxu1 %vm9479_vm1, %v10500_v60  ;;  %v10594_v31 = vpack.c.bf16 %v87_v39, %v86_v44  ;;  %v90_v48 = vmul.f32 %v58_v38, %v58_v38  ;;  %v4001_v2 = vrot.slane %v10439_v4, %v9831_v25  ;;  %v4085_v56 = vrot.slane %v10459_v57, 7 }
 0x282   :  { %v4210_v43 = vrot.slane %v10404_v62, %v9831_v25 }
 0x283   :  { %v10634_v50 = vpack.c.bf16 %v91_v34, %v90_v48  ;;  %v4003_v0 = vmul.f32 %v4001_v2, %v10468_v41  ;;  %v4086_v32 = vsel %vm430_vm2, %v4085_v56, %v10443_v55 }
 0x284   :  { %v4215_v24 = vmul.f32 %v4210_v43, %v10416_v15 }
 0x286   :  { %8412 = vmatmul.mubr.msk.f32.vlgmr.msra.gmra.mrb[28].mxu0 %vm96_vm0, %v3507_v3  ;;  %v93_v3 = vmul.f32 %v61_v20, %v61_v20 }
 0x287   :  { %8423 = vmatmul.mubr.msk.f32.vlgmr.msra.gmra.mrb[28].mxu1 %vm96_vm0, %v3634_v30  ;;  %8948 = vmatpush3.bf16.xpose.msk.msra.mxu0 %vm9479_vm1, %v10500_v60  ;;  %v4002_v30 = vmul.f32 %v3997_v27, %v10404_v62 }
 0x288   :  { %8996 = vmatpush3.bf16.xpose.msk.msra.mxu1 %vm9479_vm1, %v10500_v60  ;;  %8951 = vmatprep.subr.msk.bf16.mxu0 %vm9479_vm1, %v10526_v58  ;;  %v10654_v8 = vpack.c.bf16 %v93_v3, %v92_v46 }
 0x289   :  { %8999 = vmatprep.subr.msk.bf16.mxu1 %vm9479_vm1, %v10526_v58  ;;  %8457 = vmatprep.mubr.msk.f32.mxu0 %vm96_vm0, %v10431_v36 }
 0x28a   :  { %8492 = vmatprep.mubr.msk.f32.mxu1 %vm96_vm0, %v10443_v55  ;;  %v4214_v55 = vrot.slane %v10468_v41, %v9831_v25 }
 0x28f   :  { %8954 = vmatpush3.bf16.xpose.msk.msra.mxu0 %vm9479_vm1, %v10526_v58 }
 0x290   :  { %9002 = vmatpush3.bf16.xpose.msk.msra.mxu1 %vm9479_vm1, %v10526_v58  ;;  %8957 = vmatprep.subr.msk.bf16.mxu0 %vm9479_vm1, %v10554_v59 }
 0x291   :  { %9005 = vmatprep.subr.msk.bf16.mxu1 %vm9479_vm1, %v10554_v59 }
 0x297   :  { %8960 = vmatpush3.bf16.xpose.msk.msra.mxu0 %vm9479_vm1, %v10554_v59 }
 0x298   :  { %9008 = vmatpush3.bf16.xpose.msk.msra.mxu1 %vm9479_vm1, %v10554_v59  ;;  %8963 = vmatprep.subr.msk.bf16.mxu0 %vm9479_vm1, %v10574_v53 }
 0x299   :  { %9011 = vmatprep.subr.msk.bf16.mxu1 %vm9479_vm1, %v10574_v53 }
 0x29f   :  { %8966 = vmatpush3.bf16.xpose.msk.msra.mxu0 %vm9479_vm1, %v10574_v53 }
 0x2a0   :  { %9014 = vmatpush3.bf16.xpose.msk.msra.mxu1 %vm9479_vm1, %v10574_v53  ;;  %8969 = vmatprep.subr.msk.bf16.mxu0 %vm9479_vm1, %v10594_v31 }
 0x2a1   :  { %9017 = vmatprep.subr.msk.bf16.mxu1 %vm9479_vm1, %v10594_v31 }
 0x2a7   :  { %8972 = vmatpush3.bf16.xpose.msk.msra.mxu0 %vm9479_vm1, %v10594_v31 }
 0x2a8   :  { %9020 = vmatpush3.bf16.xpose.msk.msra.mxu1 %vm9479_vm1, %v10594_v31  ;;  %8975 = vmatprep.subr.msk.bf16.mxu0 %vm9479_vm1, %v10614_v19 }
 0x2a9   :  { %9023 = vmatprep.subr.msk.bf16.mxu1 %vm9479_vm1, %v10614_v19 }
 0x2af   :  { %8978 = vmatpush3.bf16.xpose.msk.msra.mxu0 %vm9479_vm1, %v10614_v19 }
 0x2b0   :  { %9026 = vmatpush3.bf16.xpose.msk.msra.mxu1 %vm9479_vm1, %v10614_v19  ;;  %8981 = vmatprep.subr.msk.bf16.mxu0 %vm9479_vm1, %v10634_v50 }
 0x2b1   :  { %9029 = vmatprep.subr.msk.bf16.mxu1 %vm9479_vm1, %v10634_v50 }
 0x2b7   :  { %8984 = vmatpush3.bf16.xpose.msk.msra.mxu0 %vm9479_vm1, %v10634_v50 }
 0x2b8   :  { %9032 = vmatpush3.bf16.xpose.msk.msra.mxu1 %vm9479_vm1, %v10634_v50  ;;  %8987 = vmatprep.subr.msk.bf16.mxu0 %vm9479_vm1, %v10654_v8 }
 0x2b9   :  { %9035 = vmatprep.subr.msk.bf16.mxu1 %vm9479_vm1, %v10654_v8 }
 0x2bf   :  { %8990 = vmatpush3.bf16.xpose.msk.msra.mxu0 %vm9479_vm1, %v10654_v8 }
 0x2c0   :  { %9038 = vmatpush3.bf16.xpose.msk.msra.mxu1 %vm9479_vm1, %v10654_v8  ;;  %9041 = vmatprep.subr.msk.bf16.mxu0 %vm9479_vm1, %v10500_v60 }
 0x2c1   :  { %9051 = vmatprep.subr.bf16.mxu1 %v12226_v9 }
 0x2c6   :  { %8458 = vmatmul.mubr.msk.f32.vlgmr.msra.gmra.mrb[30].mxu0 %vm96_vm0, %v10490_v37 }
 0x2c7   :  { %8493 = vmatmul.mubr.msk.f32.vlgmr.msra.gmra.mrb[30].mxu1 %vm96_vm0, %v10459_v57  ;;  %9044 = vmatpush3.bf16.xpose.msk.msra.mxu0 %vm9479_vm1, %v10500_v60  ;;  %v4298_v57 = vrot.slane %v10490_v37, 7 }
 0x2c8   :  { %9054 = vmatpush3.bf16.xpose.msk.msra.mxu1 %vm9479_vm1, %v10500_v60  ;;  %8514 = vmatprep.mubr.msk.f32.mxu1 %vm9424_vm3, %v12227_v42 }
 0x2c9   :  { %9055 = vmatprep.subr.bf16.mxu1 %v12226_v9  ;;  %9047 = vmatprep.subr.msk.bf16.mxu0 %vm9479_vm1, %v10526_v58  ;;  %v4299_v14 = vsel %vm430_vm2, %v4298_v57, %v10431_v36 }
 0x2ca   :  { %8503 = vmatprep.mubr.msk.f32.mxu0 %vm96_vm0, %v4002_v30 }
 0x2cf   :  { %9050 = vmatpush3.bf16.xpose.msk.msra.mxu0 %vm9479_vm1, %v10526_v58 }
 0x2d0   :  { %9058 = vmatpush3.bf16.xpose.msk.msra.mxu1 %vm9479_vm1, %v10526_v58  ;;  %9061 = vmatprep.subr.msk.bf16.mxu0 %vm9479_vm1, %v10500_v60 }
 0x2d1   :  { %9071 = vmatprep.subr.bf16.mxu1 %v12226_v9 }
 0x2d6   :  { %8504 = vmatmul.mubr.msk.f32.vlgmr.msra.gmra.mrb[32].mxu0 %vm96_vm0, %v4003_v0 }
 0x2d7   :  { %8515 = vmatmul.mubr.msk.f32.vlgmr.msra.gmra.mrb[32].mxu1 %vm96_vm0, %v4086_v32  ;;  %9064 = vmatpush3.bf16.xpose.msk.msra.mxu0 %vm9479_vm1, %v10500_v60 }
 0x2d8   :  { %9074 = vmatpush3.bf16.xpose.msk.msra.mxu1 %vm9479_vm1, %v10500_v60  ;;  %8536 = vmatprep.mubr.msk.f32.mxu1 %vm9424_vm3, %v12227_v42  ;;  %v4216_v60 = vmul.f32 %v4214_v55, %v10439_v4 }
 0x2d9   :  { %9075 = vmatprep.subr.bf16.mxu1 %v12226_v9  ;;  %9067 = vmatprep.subr.msk.bf16.mxu0 %vm9479_vm1, %v10526_v58 }
 0x2da   :  { %8525 = vmatprep.mubr.msk.f32.mxu0 %vm96_vm0, %v4215_v24 }
 0x2df   :  { %9070 = vmatpush3.bf16.xpose.msk.msra.mxu0 %vm9479_vm1, %v10526_v58 }
 0x2e0   :  { %9078 = vmatpush3.bf16.xpose.msk.msra.mxu1 %vm9479_vm1, %v10526_v58  ;;  %9081 = vmatprep.subr.msk.bf16.mxu0 %vm9479_vm1, %v10554_v59 }
 0x2e1   :  { %8571 = vmatprep.subr.mxu1 %v12227_v42 }
 0x2e6   :  { %8526 = vmatmul.mubr.msk.f32.vlgmr.msra.gmra.mrb[34].mxu0 %vm96_vm0, %v4216_v60 }
 0x2e7   :  { %8537 = vmatmul.mubr.msk.f32.vlgmr.msra.gmra.mrb[34].mxu1 %vm96_vm0, %v4299_v14  ;;  %9084 = vmatpush3.bf16.xpose.msk.msra.mxu0 %vm9479_vm1, %v10554_v59 }
 0x2e8   :  { %8572 = vmatpush3.xpose.msk.msra.mxu1 %vm96_vm0, %v10416_v15  ;;  %8573 = vmatprep.mubr.msk.f32.mxu1 %vm9424_vm3, %v12227_v42 }
 0x2e9   :  { %8576 = vmatprep.subr.mxu1 %v12227_v42  ;;  %9087 = vmatprep.subr.msk.bf16.mxu0 %vm9479_vm1, %v10574_v53 }
 0x2eb   :  { %8574 = vmatmul.mubr.msk.f32.vlgmr.msra.gmra.mrb[36].mxu1 %vm96_vm0, %v10404_v62 }
 0x2ec   :  { %8577 = vmatpush3.xpose.msk.msra.mxu1 %vm96_vm0, %v10439_v4  ;;  %8578 = vmatprep.mubr.msk.f32.mxu1 %vm9424_vm3, %v12227_v42 }
 0x2ed   :  { %8581 = vmatprep.subr.mxu1 %v12227_v42 }
 0x2ef   :  { %8579 = vmatmul.mubr.msk.f32.vlgmr.msra.gmra.mrb[38].mxu1 %vm96_vm0, %v10468_v41  ;;  %9090 = vmatpush3.bf16.xpose.msk.msra.mxu0 %vm9479_vm1, %v10574_v53 }
 0x2f0   :  { %8582 = vmatpush3.xpose.msk.msra.mxu1 %vm96_vm0, %v10404_v62  ;;  %v10775_v36 = vpop.f32.mrb[22].mxu0  ;;  %8583 = vmatprep.mubr.msk.f32.mxu1 %vm9424_vm3, %v12227_v42  ;;  %v10779_v37 = vpop.f32.mrb[22].mxu1 }
 0x2f1   :  { %12228 = vst [vmem:[#allocation23_spill] sm:$0xff] %v10775_v36  ;;  %v10781_v58 = vpop.f32.mrb[23].mxu0  ;;  %8586 = vmatprep.subr.mxu1 %v12227_v42  ;;  %9093 = vmatprep.subr.msk.bf16.mxu0 %vm9479_vm1, %v10594_v31  ;;  %v10787_v59 = vpop.f32.mrb[23].mxu1 }
 0x2f2   :  { %12229 = vst [vmem:[#allocation24_spill] sm:$0xff] %v10781_v58 }
 0x2f3   :  { %8584 = vmatmul.mubr.msk.f32.vlgmr.msra.gmra.mrb[40].mxu1 %vm96_vm0, %v10416_v15 }
 0x2f4   :  { %8587 = vmatpush3.xpose.msk.msra.mxu1 %vm96_vm0, %v10468_v41  ;;  %8588 = vmatprep.mubr.msk.f32.mxu1 %vm9424_vm3, %v12227_v42 }
 0x2f5   :  { %8591 = vmatprep.subr.mxu1 %v12227_v42 }
 0x2f7   :  { %8589 = vmatmul.mubr.msk.f32.vlgmr.msra.gmra.mrb[42].mxu1 %vm96_vm0, %v10439_v4 }
 0x2f8   :  { %8592 = vmatpush3.msra.mxu1 %v10416_v15  ;;  %8593 = vmatprep.mubr.msk.f32.mxu1 %vm9424_vm3, %v12227_v42 }
 0x2f9   :  { %8596 = vmatprep.subr.mxu1 %v12227_v42 }
 0x2fe   :  { %v5245_v3 = vpop.xlane.xlu1 %5244 }
 0x2ff   :  { %v5265_v20 = vpop.xlane.xlu0 %5264  ;;  %vm5251_vm12 = vcmp.eq.f32.partialorder %v5245_v3, inf  ;;  %vm5253_vm6 = vcmp.eq.f32.partialorder %v5245_v3, 0.0 }
 0x300   :  { %9242 = vrsqrt.f32 %v5265_v20  ;;  %vm5271_vm8 = vcmp.eq.f32.partialorder %v5265_v20, inf  ;;  %v5274_v60 = vand.u32 2147483648, %v5265_v20  ;;  %vm5273_vm10 = vcmp.eq.f32.partialorder %v5265_v20, 0.0 }
 0x307   :  { %v5268_v46 = vpop.xlane.xlu0 %5267 }
 0x308   :  { %9244 = vrsqrt.f32 %v5268_v46  ;;  %vm5278_vm9 = vcmp.eq.f32.partialorder %v5268_v46, inf  ;;  %vm5280_vm11 = vcmp.eq.f32.partialorder %v5268_v46, 0.0 }
 0x309   :  { %9246 = vrsqrt.f32 %v5245_v3 }
 0x30a   :  { %v9243_v56 = vpop.eup %9242 }
 0x30b   :  { %v5248_v9 = vpop.xlane.xlu0 %5247  ;;  %v5270_v32 = vmul.f32 %v9243_v56, %v5265_v20 }
 0x30c   :  { %9248 = vrsqrt.f32 %v5248_v9  ;;  %vm5258_vm7 = vcmp.eq.f32.partialorder %v5248_v9, inf  ;;  %v5261_v58 = vand.u32 2147483648, %v5248_v9  ;;  %vm5260_vm4 = vcmp.eq.f32.partialorder %v5248_v9, 0.0 }
 0x30d   :  { %v5272_v14 = vsel %vm5271_vm8, %v5265_v20, %v5270_v32 }
 0x312   :  { %v9245_v43 = vpop.eup %9244 }
 0x313   :  { %v9247_v24 = vpop.eup %9246  ;;  %v5277_v55 = vmul.f32 %v9245_v43, %v5268_v46 }
 0x316   :  { %v9249_v57 = vpop.eup %9248 }
 0x339   :  { %v10802_v53 = vpop.f32.mrb[24].mxu0  ;;  %v10804_v44 = vpop.f32.mrb[24].mxu1 }
 0x33a   :  { %12230 = vst [vmem:[#allocation25_spill] sm:$0xff] %v10802_v53  ;;  %v10806_v39 = vpop.f32.mrb[25].mxu0  ;;  %v10808_v40 = vpop.f32.mrb[25].mxu1  ;;  %v5254_v53 = vand.u32 2147483648, %v5245_v3 }
 0x33b   :  { %12231 = vst [vmem:[#allocation26_spill] sm:$0xff] %v10806_v39  ;;  %v5275_v39 = vsel %vm5273_vm10, %v5274_v60, %v5272_v14 }
 0x33c   :  { %v5578_v43 = vrot.slane %v5275_v39, %v9811_v35 }
 0x349   :  { %v10810_v22 = vpop.f32.mrb[26].mxu0  ;;  %v10812_v54 = vpop.f32.mrb[26].mxu1 }
 0x34a   :  { %12232 = vst [vmem:[#allocation27_spill] sm:$0xff] %v10810_v22  ;;  %v10814_v10 = vpop.f32.mrb[27].mxu0  ;;  %v10816_v38 = vpop.f32.mrb[27].mxu1  ;;  %v5257_v22 = vmul.f32 %v9249_v57, %v5248_v9 }
 0x34b   :  { %12233 = vst [vmem:[#allocation28_spill] sm:$0xff] %v10814_v10  ;;  %v5279_v10 = vsel %vm5278_vm9, %v5268_v46, %v5277_v55 }
 0x34c   :  { %v5259_v21 = vsel %vm5258_vm7, %v5248_v9, %v5257_v22 }
 0x34d   :  { %v5262_v57 = vsel %vm5260_vm4, %v5261_v58, %v5259_v21 }
 0x359   :  { %v10818_v51 = vpop.f32.mrb[28].mxu0 }
 0x35a   :  { %12234 = vst [vmem:[#allocation29_spill] sm:$0xff] %v10818_v51  ;;  %v10820_v48 = vpop.f32.mrb[28].mxu1  ;;  %v10822_v34 = vpop.f32.mrb[29].mxu0  ;;  %v5250_v51 = vmul.f32 %v9247_v24, %v5245_v3 }
 0x35b   :  { %12235 = vst [vmem:[#allocation30_spill] sm:$0xff] %v10822_v34  ;;  %v10824_v49 = vpop.f32.mrb[29].mxu1  ;;  %v5281_v34 = vand.u32 2147483648, %v5268_v46 }
 0x35c   :  { %v5252_v36 = vsel %vm5251_vm12, %v5245_v3, %v5250_v51 }
 0x35d   :  { %v5282_v56 = vsel %vm5280_vm11, %v5281_v34, %v5279_v10  ;;  %v5255_v55 = vsel %vm5253_vm6, %v5254_v53, %v5252_v36  ;;  %v5614_v34 = vrot.slane %v5262_v57, %v9811_v35 }
 0x35e   :  { %v5582_v32 = vrot.slane %v5282_v56, %v9811_v35  ;;  %v5597_v60 = vmul.f32 %v5578_v43, %v5255_v55  ;;  %v5610_v22 = vrot.slane %v5255_v55, %v9811_v35 }
 0x360   :  { %v5598_v14 = vmul.f32 %v5582_v32, %v5262_v57  ;;  %v5599_v10 = vmax.f32 %v5597_v60, 1e-08  ;;  %v5629_v3 = vmul.f32 %v5610_v22, %v5275_v39 }
 0x362   :  { %v5600_v51 = vmax.f32 %v5598_v14, 1e-08  ;;  %v5631_v36 = vmax.f32 %v5629_v3, 1e-08 }
 0x399   :  { %v10826_v27 = vpop.f32.mrb[30].mxu0 }
 0x39a   :  { %v10828_v30 = vpop.f32.mrb[30].mxu1  ;;  %v10830_v2 = vpop.f32.mrb[31].mxu0  ;;  %vm3892_vm8 = vcmp.eq.f32.partialorder %v10826_v27, inf  ;;  %vm3894_vm10 = vcmp.eq.f32.partialorder %v10826_v27, 0.0 }
 0x39b   :  { %v10832_v0 = vpop.f32.mrb[31].mxu1  ;;  %vm3885_vm7 = vcmp.eq.f32.partialorder %v10830_v2, inf  ;;  %vm3887_vm9 = vcmp.eq.f32.partialorder %v10830_v2, 0.0 }
 0x3a9   :  { %v10835_v12 = vpop.f32.mrb[32].mxu0 }
 0x3aa   :  { %v4155_v20 = vpop.f32.mrb[32].mxu1  ;;  %v10838_v24 = vpop.f32.mrb[33].mxu0 }
 0x3ab   :  { %v8516_v46 = vpop.f32.mrb[33].mxu1  ;;  %9250 = vrsqrt.f32 %v4155_v20  ;;  %vm4161_vm4 = vcmp.eq.f32.partialorder %v4155_v20, inf  ;;  %v4164_v43 = vand.u32 2147483648, %v4155_v20  ;;  %vm4163_vm6 = vcmp.eq.f32.partialorder %v4155_v20, 0.0 }
 0x3ac   :  { %9252 = vrsqrt.f32 %v10830_v2  ;;  %v5630_v46 = vmul.f32 %v5614_v34, %v5282_v56 }
 0x3ad   :  { %9254 = vrsqrt.f32 %v10826_v27 }
 0x3ae   :  { %9256 = vrcp.f32 %v5599_v10  ;;  %v5632_v60 = vmax.f32 %v5630_v46, 1e-08 }
 0x3af   :  { %9258 = vrcp.f32 %v5600_v51 }
 0x3b0   :  { %9260 = vrsqrt.f32 %v10832_v0 }
 0x3b5   :  { %v9251_v9 = vpop.eup %9250 }
 0x3b6   :  { %v9253_v21 = vpop.eup %9252  ;;  %v4160_v58 = vmul.f32 %v9251_v9, %v4155_v20 }
 0x3b7   :  { %v9255_v35 = vpop.eup %9254  ;;  %v3884_v56 = vmul.f32 %v9253_v21, %v10830_v2 }
 0x3b8   :  { %v4162_v57 = vsel %vm4161_vm4, %v4155_v20, %v4160_v58  ;;  %v9257_v22 = vpop.eup %9256  ;;  %v3891_v51 = vmul.f32 %v9255_v35, %v10826_v27  ;;  %v3888_v20 = vand.u32 2147483648, %v10830_v2  ;;  %vm3982_vm4 = vcmp.eq.f32.partialorder %v10832_v0, inf }
 0x3b9   :  { %v10844_v53 = vpop.f32.mrb[34].mxu0  ;;  %v4165_v14 = vsel %vm4163_vm6, %v4164_v43, %v4162_v57  ;;  %v9259_v21 = vpop.eup %9258  ;;  %v3886_v58 = vsel %vm3885_vm7, %v10830_v2, %v3884_v56  ;;  %v3895_v43 = vand.u32 2147483648, %v10826_v27  ;;  %vm3989_vm6 = vcmp.eq.f32.partialorder %v10828_v30, inf }
 0x3ba   :  { %v10847_v32 = vpop.f32.mrb[34].mxu1  ;;  %v10849_v55 = vpop.f32.mrb[35].mxu0  ;;  %v4173_v10 = vrot.slane %v4165_v14, %v9824_v11  ;;  %v3893_v57 = vsel %vm3892_vm8, %v10826_v27, %v3891_v51  ;;  %v10876_v14 = vsel %vm3887_vm9, %v3888_v20, %v3886_v58  ;;  %vm3991_vm7 = vcmp.eq.f32.partialorder %v10828_v30, 0.0 }
 0x3bb   :  { %9262 = vrsqrt.f32 %v10847_v32  ;;  %v8538_v39 = vpop.f32.mrb[35].mxu1  ;;  %12236 = vst [vmem:[#allocation31_spill] sm:$0xff] %v10876_v14  ;;  %v9261_v51 = vpop.eup %9260  ;;  %vm4374_vm11 = vcmp.eq.f32.partialorder %v10847_v32, inf  ;;  %vm4376_vm12 = vcmp.eq.f32.partialorder %v10847_v32, 0.0  ;;  %vm2956_vm8 = vcmp.eq.f32.partialorder %v10787_v59, inf }
 0x3bc   :  { %9264 = vrcp.f32 %v5631_v36  ;;  %v4174_v3 = vcombine.high %v4173_v10, %v4173_v10  ;;  %v4181_v36 = vrot.slane %v4173_v10, %v9824_v11  ;;  %vm2958_vm9 = vcmp.eq.f32.partialorder %v10787_v59, 0.0 }
 0x3bd   :  { %9266 = vrsqrt.f32 %v10828_v30 }
 0x3be   :  { %v5354_v34 = vpop.f32.mrb[36].mxu1  ;;  %9268 = vrcp.f32 %v5632_v60  ;;  %v4188_v2 = vrot.slane %v4174_v3, %v9824_v11  ;;  %v4192_v56 = vrot.slane %v4181_v36, %v9831_v25  ;;  %v10887_v3 = vsel %vm3894_vm10, %v3895_v43, %v3893_v57 }
 0x3bf   :  { %v10859_v9 = vmul.f32 %v9257_v22, %v5354_v34  ;;  %v8575_v46 = vpop.f32.mrb[37].mxu1  ;;  %12237 = vst [vmem:[#allocation32_spill] sm:$0xff] %v10887_v3  ;;  %v3981_v57 = vmul.f32 %v9261_v51, %v10832_v0  ;;  %vm3160_vm10 = vcmp.eq.f32.partialorder %v10808_v40, inf }
 0x3c0   :  { %v4196_v34 = vrot.slane %v4188_v2, %v9831_v25  ;;  %v4199_v46 = vmul.f32 %v4192_v56, %v10876_v14 }
 0x3c1   :  { %8594 = vmatmul.mubr.msk.f32.vlgmr.msra.gmra.mrb[44].mxu1 %vm1991_vm5, %v10859_v9  ;;  %v5783_v60 = vsel %vm1991_vm5, %v10859_v9, 0.0  ;;  %v5963_v35 = vrot.slane %v10859_v9, %v9839_v29  ;;  %v5970_v20 = vrot.slane %v10859_v9, %v9868_v52  ;;  %v5977_v51 = vrot.slane %v10859_v9, %v9886_v5 }
 0x3c2   :  { %5784 = vadd.xlane.f32.xlu0 %v5783_v60  ;;  %v5429_v39 = vpop.f32.mrb[38].mxu1  ;;  %8597 = vmatpush3.msra.mxu1 %v10439_v4  ;;  %v4201_v27 = vmax.f32 %v4199_v46, 1e-08 }
 0x3c3   :  { %v10878_v10 = vmul.f32 %v9259_v21, %v5429_v39  ;;  %5965 = vbcast.lane.b32.xlu1 %v5963_v35, 256  ;;  %8598 = vmatprep.mubr.msk.f32.mxu1 %vm9424_vm3, %v12227_v42  ;;  %v8580_v22 = vpop.f32.mrb[39].mxu1  ;;  %v4200_v35 = vmul.f32 %v4196_v34, %v10887_v3  ;;  %v4377_v39 = vand.u32 2147483648, %v10847_v32 }
 0x3c4   :  { %8601 = vmatprep.subr.mxu1 %v12227_v42  ;;  %9270 = vrcp.f32 %v4201_v27 }
 0x3c5   :  { %v9263_v60 = vpop.eup %9262  ;;  %8599 = vmatmul.mubr.msk.f32.vlgmr.msra.gmra.mrb[46].mxu1 %vm1991_vm5, %v10878_v10  ;;  %v4202_v34 = vmax.f32 %v4200_v35, 1e-08  ;;  %v3983_v35 = vsel %vm3982_vm4, %v10832_v0, %v3981_v57  ;;  %vm3440_vm4 = vcmp.eq.f32.partialorder %v10816_v38, 0.0 }
 0x3c6   :  { %v9265_v36 = vpop.eup %9264  ;;  %v4373_v21 = vmul.f32 %v9263_v60, %v10847_v32  ;;  %v5499_v58 = vpop.f32.mrb[40].mxu1  ;;  %8602 = vmatpush3.msra.mxu1 %v10404_v62  ;;  %8603 = vmatprep.mubr.msk.f32.mxu1 %vm9424_vm3, %v12227_v42 }
 0x3c7   :  { %v9267_v43 = vpop.eup %9266  ;;  %v10901_v2 = vmul.f32 %v9265_v36, %v5499_v58  ;;  %5972 = vbcast.lane.b32.xlu1 %v5970_v20, 256  ;;  %v8585_v56 = vpop.f32.mrb[41].mxu1  ;;  %8606 = vmatprep.subr.mxu1 %v12227_v42  ;;  %9272 = vrcp.f32 %v4202_v34 }
 0x3c8   :  { %v9269_v22 = vpop.eup %9268  ;;  %v4375_v60 = vsel %vm4374_vm11, %v10847_v32, %v4373_v21  ;;  %v3988_v36 = vmul.f32 %v9267_v43, %v10828_v30  ;;  %vm3162_vm11 = vcmp.eq.f32.partialorder %v10808_v40, 0.0 }
 0x3c9   :  { %v4378_v46 = vsel %vm4376_vm12, %v4377_v39, %v4375_v60  ;;  %8604 = vmatmul.mubr.msk.f32.vlgmr.msra.gmra.mrb[48].mxu1 %vm1991_vm5, %v10901_v2  ;;  %v3985_v39 = vand.u32 2147483648, %v10832_v0  ;;  %v3992_v60 = vand.u32 2147483648, %v10828_v30  ;;  %vm3438_vm12 = vcmp.eq.f32.partialorder %v10816_v38, inf }
 0x3ca   :  { %v4386_v20 = vrot.slane %v4378_v46, %v9824_v11  ;;  %v5569_v58 = vpop.f32.mrb[42].mxu1  ;;  %8607 = vmatpush3.msra.mxu1 %v10468_v41  ;;  %8608 = vmatprep.mubr.msk.f32.mxu1 %vm9424_vm3, %v12227_v42  ;;  %v5984_v42 = vrot.slane %v10859_v9, %v9905_v33  ;;  %v3990_v56 = vsel %vm3989_vm6, %v10828_v30, %v3988_v36  ;;  %vm3984_vm3 = vcmp.eq.f32.partialorder %v10832_v0, 0.0 }
 0x3cb   :  { %5979 = vbcast.lane.b32.xlu1 %v5977_v51, 256  ;;  %v10916_v32 = vmul.f32 %v9269_v22, %v5569_v58  ;;  %v8590_v21 = vpop.f32.mrb[43].mxu1  ;;  %9105 = vmatprep.subr.msk.bf16.mxu1 %vm9479_vm1, %v10594_v31  ;;  %v10934_v34 = vsel %vm3984_vm3, %v3985_v39, %v3983_v35  ;;  %v5991_v0 = vrot.slane %v10859_v9, %v9925_v47  ;;  %vm3716_vm6 = vcmp.eq.f32.partialorder %v10824_v49, inf }
 0x3cc   :  { %v4387_v27 = vcombine.high %v4386_v20, %v4386_v20  ;;  %v4394_v43 = vrot.slane %v4386_v20, %v9824_v11  ;;  %12238 = vst [vmem:[#allocation33_spill] sm:$0xff] %v10934_v34  ;;  %v10939_v20 = vsel %vm3991_vm7, %v3992_v60, %v3990_v56  ;;  %v5998_v39 = vrot.slane %v10859_v9, %v9947_v7 }
 0x3cd   :  { %8609 = vmatmul.mubr.msk.f32.vlgmr.msra.gmra.mrb[50].mxu1 %vm1991_vm5, %v10916_v32  ;;  %12239 = vst [vmem:[#allocation34_spill] sm:$0xff] %v10939_v20  ;;  %v6005_v56 = vrot.slane %v10859_v9, %v9677_v61  ;;  %vm2963_vm3 = vcmp.eq.f32.partialorder %v10779_v37, inf  ;;  %vm2965_vm7 = vcmp.eq.f32.partialorder %v10779_v37, 0.0 }
 0x3ce   :  { %v4401_v57 = vrot.slane %v4387_v27, %v9824_v11  ;;  %v4405_v22 = vrot.slane %v4394_v43, %v9831_v25  ;;  %v9271_v36 = vpop.eup %9270 }
 0x3cf   :  { %5986 = vbcast.lane.b32.xlu1 %v5984_v42, 256  ;;  %v10951_v30 = vmul.f32 %v9271_v36, %v10838_v24  ;;  %v5956_v42 = vrot.slane %v10859_v9, %v9831_v25  ;;  %v6019_v24 = vrot.slane %v10878_v10, %v9839_v29  ;;  %v6033_v9 = vrot.slane %v10878_v10, %v9886_v5 }
 0x3d0   :  { %v4409_v46 = vrot.slane %v4401_v57, %v9831_v25  ;;  %v4412_v51 = vmul.f32 %v4405_v22, %v10934_v34  ;;  %v4429_v36 = vrot.slane %v10404_v62, %v9824_v11 }
 0x3d1   :  { %9108 = vmatpush3.bf16.xpose.msk.msra.mxu1 %vm9479_vm1, %v10594_v31  ;;  %12240 = vst [vmem:[#allocation35_spill] sm:$0xff] %v10951_v30  ;;  %v9273_v35 = vpop.eup %9272 }
 0x3d2   :  { %v4413_v58 = vmul.f32 %v4409_v46, %v10939_v20  ;;  %v4414_v21 = vmax.f32 %v4412_v51, 1e-08  ;;  %9111 = vmatprep.subr.msk.bf16.mxu1 %vm9479_vm1, %v10614_v19  ;;  %v10954_v43 = vmul.f32 %v9273_v35, %v10835_v12  ;;  %v6026_v12 = vrot.slane %v10878_v10, %v9868_v52 }
 0x3d3   :  { %5993 = vbcast.lane.b32.xlu1 %v5991_v0, 256  ;;  %v6040_v51 = vrot.slane %v10878_v10, %v9905_v33  ;;  %v6047_v0 = vrot.slane %v10878_v10, %v9925_v47 }
 0x3d4   :  { %v4415_v27 = vmax.f32 %v4413_v58, 1e-08  ;;  %9274 = vrcp.f32 %v4414_v21  ;;  %12241 = vst [vmem:[#allocation36_spill] sm:$0xff] %v10954_v43  ;;  %v4437_v58 = vcombine.high %v4429_v36, %v4429_v36  ;;  %v5786_v21 = vsel %vm1991_vm5, %v10878_v10, 0.0 }
 0x3d6   :  { %9276 = vrcp.f32 %v4415_v27  ;;  %v4459_v27 = vrot.slane %v4437_v58, %v9824_v11 }
 0x3d7   :  { %6000 = vbcast.lane.b32.xlu1 %v5998_v39, 256  ;;  %9278 = vrsqrt.f32 %v10787_v59 }
 0x3d8   :  { %5958 = vbcast.lane.b32.xlu0 %v5956_v42, 256  ;;  %9280 = vrsqrt.f32 %v10808_v40 }
 0x3d9   :  { %9114 = vmatpush3.bf16.xpose.msk.msra.mxu1 %vm9479_vm1, %v10614_v19  ;;  %9282 = vrsqrt.f32 %v10816_v38 }
 0x3da   :  { %9129 = vmatprep.subr.msk.bf16.mxu1 %vm9479_vm1, %v10594_v31  ;;  %9284 = vrsqrt.f32 %v10824_v49 }
 0x3db   :  { %6007 = vbcast.lane.b32.xlu1 %v6005_v56, 256 }
 0x3dc   :  { %6021 = vbcast.lane.b32.xlu0 %v6019_v24, 256  ;;  %v4527_v24 = vrot.slane %v4459_v27, %v9831_v25 }
 0x3de   :  { %v9275_v57 = vpop.eup %9274 }
 0x3df   :  { %v10973_v22 = vmul.f32 %v9275_v57, %v10849_v55  ;;  %v6054_v55 = vrot.slane %v10878_v10, %v9947_v7  ;;  %v4422_v57 = vcombine.high %v10404_v62, %v10404_v62 }
 0x3e0   :  { %v9277_v60 = vpop.eup %9276  ;;  %6028 = vbcast.lane.b32.xlu0 %v6026_v12, 256  ;;  %v4469_v12 = vcombine.high %v4459_v27, %v4459_v27 }
 0x3e1   :  { %12242 = vst [vmem:[#allocation37_spill] sm:$0xff] %v10973_v22  ;;  %v10978_v46 = vmul.f32 %v9277_v60, %v10844_v53  ;;  %v4445_v53 = vrot.slane %v4429_v36, %v9824_v11  ;;  %v4601_v60 = vmul.f32 %v4527_v24, %v10416_v15 }
 0x3e3   :  { %12243 = vst [vmem:[#allocation38_spill] sm:$0xff] %v10978_v46  ;;  %v4523_v35 = vrot.slane %v4445_v53, %v9831_v25  ;;  %v4467_v39 = vcombine.high %v4445_v53, %v4445_v53 }
 0x3e4   :  { %6035 = vbcast.lane.b32.xlu0 %v6033_v9, 256 }
 0x3e5   :  { %v4600_v42 = vmul.f32 %v4523_v35, %v10416_v15  ;;  %v4531_v56 = vrot.slane %v4467_v39, %v9831_v25  ;;  %v4478_v35 = vrot.slane %v10468_v41, %v9824_v11 }
 0x3e7   :  { %8547 = vmatprep.mubr.msk.f32.mxu0 %vm96_vm0, %v4600_v42  ;;  %v4602_v9 = vmul.f32 %v4531_v56, %v10416_v15  ;;  %v4494_v56 = vrot.slane %v4478_v35, %v9824_v11 }
 0x3e8   :  { %6042 = vbcast.lane.b32.xlu0 %v6040_v51, 256  ;;  %v4535_v51 = vrot.slane %v4469_v12, %v9831_v25  ;;  %8548 = vmatmul.mubr.msk.f32.vlgmr.msra.gmra.mrb[36].mxu0 %vm96_vm0, %v4601_v60 }
 0x3e9   :  { %8550 = vmatprep.mubr.msk.f32.mxu0 %vm96_vm0, %v4602_v9  ;;  %9096 = vmatpush3.bf16.xpose.msk.msra.mxu0 %vm9479_vm1, %v10594_v31  ;;  %v4555_v9 = vrot.slane %v4494_v56, %v9831_v25 }
 0x3ea   :  { %9099 = vmatprep.subr.msk.bf16.mxu0 %vm9479_vm1, %v10614_v19 }
 0x3ec   :  { %6049 = vbcast.lane.b32.xlu0 %v6047_v0, 256  ;;  %v4436_v0 = vrot.slane %v4422_v57, %v9824_v11 }
 0x3ee   :  { %v4452_v36 = vrot.slane %v4436_v0, %v9824_v11  ;;  %v4438_v58 = vcombine.high %v4436_v0, %v4436_v0  ;;  %v6012_v0 = vrot.slane %v10878_v10, %v9831_v25 }
 0x3f0   :  { %6056 = vbcast.lane.b32.xlu0 %v6054_v55, 256  ;;  %v4603_v55 = vmul.f32 %v4535_v51, %v10416_v15  ;;  %v4539_v62 = vrot.slane %v4452_v36, %v9831_v25  ;;  %v4466_v53 = vrot.slane %v4438_v58, %v9824_v11  ;;  %v5941_v51 = vsel %vm1991_vm5, %v10901_v2, 0.0 }
 0x3f1   :  { %v4486_v58 = vcombine.high %v4478_v35, %v4478_v35  ;;  %9102 = vmatpush3.bf16.xpose.msk.msra.mxu0 %vm9479_vm1, %v10614_v19 }
 0x3f2   :  { %8551 = vmatmul.mubr.msk.f32.gmra.mrb[38].mxu0 %vm96_vm0, %v4603_v55  ;;  %v4604_v27 = vmul.f32 %v4539_v62, %v10416_v15  ;;  %v4543_v39 = vrot.slane %v4466_v53, %v9831_v25  ;;  %v4470_v24 = vcombine.high %v4466_v53, %v4466_v53  ;;  %v4516_v62 = vcombine.high %v4494_v56, %v4494_v56 }
 0x3f3   :  { %v4508_v53 = vrot.slane %v4486_v58, %v9824_v11  ;;  %9117 = vmatprep.subr.msk.bf16.mxu0 %vm9479_vm1, %v10594_v31  ;;  %v6231_v56 = vrot.slane %v10901_v2, %v9925_v47 }
 0x3f4   :  { %8553 = vmatprep.mubr.msk.f32.mxu0 %vm96_vm0, %v4604_v27  ;;  %v4605_v12 = vmul.f32 %v4543_v39, %v10416_v15  ;;  %v4551_v60 = vrot.slane %v4470_v24, %v9831_v25  ;;  %v6224_v24 = vrot.slane %v10901_v2, %v9905_v33 }
 0x3f5   :  { %v4559_v35 = vrot.slane %v4508_v53, %v9831_v25 }
 0x3f6   :  { %8554 = vmatmul.mubr.msk.f32.gmra.mrb[40].mxu0 %vm96_vm0, %v4605_v12  ;;  %v4607_v55 = vmul.f32 %v4551_v60, %v10416_v15  ;;  %v4518_v12 = vcombine.high %v4508_v53, %v4508_v53  ;;  %v6196_v60 = vrot.slane %v10901_v2, %v9831_v25 }
 0x3f7   :  { %v4609_v39 = vmul.f32 %v4559_v35, %v10439_v4 }
 0x3ff   :  { %5787 = vadd.xlane.f32.xlu1 %v5786_v21  ;;  %v4468_v21 = vcombine.high %v4452_v36, %v4452_v36  ;;  %v4608_v36 = vmul.f32 %v4555_v9, %v10439_v4  ;;  %v4567_v9 = vrot.slane %v4518_v12, %v9831_v25 }
 0x401   :  { %v4547_v42 = vrot.slane %v4468_v21, %v9831_v25  ;;  %v4563_v21 = vrot.slane %v4516_v62, %v9831_v25 }
 0x403   :  { %v4606_v57 = vmul.f32 %v4547_v42, %v10416_v15  ;;  %v6061_v15 = vrot.slane %v10878_v10, %v9677_v61  ;;  %v4610_v27 = vmul.f32 %v4563_v21, %v10439_v4  ;;  %v6203_v42 = vrot.slane %v10901_v2, %v9839_v29 }
 0x404   :  { %v6217_v10 = vrot.slane %v10901_v2, %v9886_v5 }
 0x405   :  { %8556 = vmatprep.mubr.msk.f32.mxu0 %vm96_vm0, %v4606_v57  ;;  %v4471_v57 = vcombine.high %v10468_v41, %v10468_v41  ;;  %v6210_v41 = vrot.slane %v10901_v2, %v9868_v52 }
 0x406   :  { %8557 = vmatmul.mubr.msk.f32.gmra.mrb[42].mxu0 %vm96_vm0, %v4607_v55  ;;  %v4611_v55 = vmul.f32 %v4567_v9, %v10439_v4 }
 0x407   :  { %8559 = vmatprep.mubr.msk.f32.mxu0 %vm96_vm0, %v4608_v36 }
 0x40a   :  { %8560 = vmatmul.mubr.msk.f32.gmra.mrb[44].mxu0 %vm96_vm0, %v4609_v39 }
 0x40b   :  { %8562 = vmatprep.mubr.msk.f32.mxu0 %vm96_vm0, %v4610_v27 }
 0x40e   :  { %8563 = vmatmul.mubr.msk.f32.gmra.mrb[46].mxu0 %vm96_vm0, %v4611_v55  ;;  %v6287_v55 = vrot.slane %v10916_v32, %v9925_v47 }
 0x40f   :  { %5942 = vadd.xlane.f32.xlu0 %v5941_v51  ;;  %v4485_v51 = vrot.slane %v4471_v57, %v9824_v11  ;;  %v6273_v57 = vrot.slane %v10916_v32, %v9886_v5 }
 0x410   :  { %6014 = vbcast.lane.b32.xlu1 %v6012_v0, 256  ;;  %v6238_v0 = vrot.slane %v10901_v2, %v9947_v7 }
 0x411   :  { %v4501_v36 = vrot.slane %v4485_v51, %v9824_v11  ;;  %v4487_v58 = vcombine.high %v4485_v51, %v4485_v51 }
 0x413   :  { %v4571_v62 = vrot.slane %v4501_v36, %v9831_v25  ;;  %v4515_v53 = vrot.slane %v4487_v58, %v9824_v11  ;;  %v4517_v21 = vcombine.high %v4501_v36, %v4501_v36 }
 0x414   :  { %6063 = vbcast.lane.b32.xlu1 %v6061_v15, 256 }
 0x415   :  { %v4612_v15 = vmul.f32 %v4571_v62, %v10439_v4  ;;  %v4575_v35 = vrot.slane %v4515_v53, %v9831_v25  ;;  %v4579_v27 = vrot.slane %v4517_v21, %v9831_v25  ;;  %v4519_v39 = vcombine.high %v4515_v53, %v4515_v53 }
 0x416   :  { %v6294_v53 = vrot.slane %v10916_v32, %v9947_v7 }
 0x417   :  { %8565 = vmatprep.mubr.msk.f32.mxu0 %vm96_vm0, %v4612_v15  ;;  %v4583_v4 = vrot.slane %v4519_v39, %v9831_v25  ;;  %v2959_v39 = vand.u32 2147483648, %v10787_v59 }
 0x418   :  { %6205 = vbcast.lane.b32.xlu1 %v6203_v42, 256  ;;  %v6259_v42 = vrot.slane %v10916_v32, %v9839_v29  ;;  %v6266_v29 = vrot.slane %v10916_v32, %v9868_v52  ;;  %v6280_v52 = vrot.slane %v10916_v32, %v9905_v33 }
 0x41c   :  { %6219 = vbcast.lane.b32.xlu1 %v6217_v10, 256  ;;  %v11084_v10 = vld [vmem:[%s12167_s3 + $0x8] sm:$0xff] }
 0x41d   :  { %v4615_v12 = vmul.f32 %v11084_v10, %v4583_v4 }
 0x420   :  { %6226 = vbcast.lane.b32.xlu1 %v6224_v24, 256  ;;  %v4613_v24 = vmul.f32 %v11084_v10, %v4575_v35 }
 0x422   :  { %8566 = vmatmul.mubr.msk.f32.gmra.mrb[48].mxu0 %vm96_vm0, %v4613_v24 }
 0x424   :  { %6233 = vbcast.lane.b32.xlu1 %v6231_v56, 256  ;;  %v4614_v56 = vmul.f32 %v11084_v10, %v4579_v27 }
 0x425   :  { %6198 = vbcast.lane.b32.xlu0 %v6196_v60, 256  ;;  %v12244_v60 = vld [vmem:[#allocation4_spill] sm:$0xff] }
 0x426   :  { %8568 = vmatprep.mubr.msk.f32.mxu0 %vm96_vm0, %v4614_v56  ;;  %v11101_v9 = vrot.slane %v12244_v60, %v9824_v11  ;;  %v1157_v51 = vcombine.high %v12244_v60, %v12244_v60  ;;  %v12246_v56 = vld [vmem:[#allocation5_spill] sm:$0xff] }
 0x427   :  { %8569 = vmatmul.mubr.msk.f32.gmra.mrb[50].mxu0 %vm96_vm0, %v4615_v12  ;;  %v11132_v4 = vrot.slane %v12246_v56, %v9824_v11 }
 0x428   :  { %6240 = vbcast.lane.b32.xlu1 %v6238_v0, 256  ;;  %v9279_v0 = vpop.eup %9278  ;;  %v1180_v5 = vrot.slane %v11101_v9, %v9824_v11  ;;  %v11114_v36 = vrot.slane %v1157_v51, %v9824_v11 }
 0x429   :  { %6212 = vbcast.lane.b32.xlu0 %v6210_v41, 256  ;;  %v2955_v33 = vmul.f32 %v9279_v0, %v10787_v59  ;;  %v9281_v58 = vpop.eup %9280 }
 0x42a   :  { %v1202_v41 = vcombine.high %v1180_v5, %v1180_v5  ;;  %v1258_v62 = vrot.slane %v1180_v5, %v9831_v25  ;;  %v1187_v47 = vrot.slane %v11114_v36, %v9824_v11  ;;  %v3159_v15 = vmul.f32 %v9281_v58, %v10808_v40  ;;  %v9283_v35 = vpop.eup %9282 }
 0x42b   :  { %v2957_v21 = vsel %vm2956_vm8, %v10787_v59, %v2955_v33  ;;  %v3163_v59 = vand.u32 2147483648, %v10808_v40  ;;  %v11144_v33 = vrot.slane %v11132_v4, %v9824_v11  ;;  %vm3167_vm8 = vcmp.eq.f32.partialorder %v10804_v44, inf }
 0x42c   :  { %v1266_v27 = vrot.slane %v1202_v41, %v9831_v25  ;;  %v2960_v7 = vsel %vm2958_vm9, %v2959_v39, %v2957_v21  ;;  %v1203_v12 = vcombine.high %v1187_v47, %v1187_v47  ;;  %v1274_v51 = vrot.slane %v1187_v47, %v9831_v25 }
 0x42d   :  { %6261 = vbcast.lane.b32.xlu0 %v6259_v42, 256  ;;  %v12245_v42 = vld [vmem:[#allocation6_spill] sm:$0xff]  ;;  %12247 = vst [vmem:[#allocation39_spill] sm:$0xff] %v11144_v33  ;;  %v5944_v21 = vsel %vm1991_vm5, %v10916_v32, 0.0  ;;  %v3719_v39 = vand.u32 2147483648, %v10824_v49  ;;  %vm3718_vm5 = vcmp.eq.f32.partialorder %v10824_v49, 0.0 }
 0x42e   :  { %v1335_v24 = vmul.f32 %v1258_v62, %v12245_v42  ;;  %v1337_v5 = vmul.f32 %v1266_v27, %v12245_v42  ;;  %v1282_v62 = vrot.slane %v1203_v12, %v9831_v25  ;;  %vm3169_vm9 = vcmp.eq.f32.partialorder %v10804_v44, 0.0 }
 0x430   :  { %v1351_v0 = vmax.f32 %v1335_v24, 1e-08  ;;  %v1353_v47 = vmax.f32 %v1337_v5, 1e-08 }
 0x431   :  { %6268 = vbcast.lane.b32.xlu0 %v6266_v29, 256  ;;  %v3161_v29 = vsel %vm3160_vm10, %v10808_v40, %v3159_v15  ;;  %v1339_v40 = vmul.f32 %v1274_v51, %v12245_v42  ;;  %vm3445_vm10 = vcmp.eq.f32.partialorder %v10812_v54, inf }
 0x432   :  { %9286 = vrcp.f32 %v1351_v0  ;;  %v6252_v0 = vrot.slane %v10916_v32, %v9831_v25 }
 0x433   :  { %9288 = vrcp.f32 %v1353_v47  ;;  %v1355_v24 = vmax.f32 %v1339_v40, 1e-08 }
 0x435   :  { %6275 = vbcast.lane.b32.xlu0 %v6273_v57, 256  ;;  %v3437_v57 = vmul.f32 %v9283_v35, %v10816_v38  ;;  %v1290_v35 = vrot.slane %v11144_v33, %v9831_v25  ;;  %9290 = vrcp.f32 %v1355_v24 }
 0x436   :  { %9292 = vrsqrt.f32 %v10779_v37 }
 0x437   :  { %v3439_v58 = vsel %vm3438_vm12, %v10816_v38, %v3437_v57  ;;  %vm3723_vm12 = vcmp.eq.f32.partialorder %v10820_v48, inf }
 0x439   :  { %6282 = vbcast.lane.b32.xlu0 %v6280_v52, 256  ;;  %v9285_v52 = vpop.eup %9284 }
 0x43a   :  { %v3715_v41 = vmul.f32 %v9285_v52, %v10824_v49 }
 0x43c   :  { %v3717_v27 = vsel %vm3716_vm6, %v10824_v49, %v3715_v41  ;;  %v9287_v52 = vpop.eup %9286  ;;  %v1172_v49 = vcombine.high %v11101_v9, %v11101_v9  ;;  %v6245_v41 = vrot.slane %v10901_v2, %v9677_v61  ;;  %v1173_v9 = vcombine.high %v11114_v36, %v11114_v36  ;;  %v11186_v2 = vpop.permute.xlu1 %5965 }
 0x43d   :  { %6289 = vbcast.lane.b32.xlu0 %v6287_v55, 256  ;;  %v3164_v55 = vsel %vm3162_vm11, %v3163_v59, %v3161_v29  ;;  %v12248_v29 = vld [vmem:[#allocation7_spill] sm:$0xff]  ;;  %v9289_v59 = vpop.eup %9288  ;;  %vm3447_vm11 = vcmp.eq.f32.partialorder %v10812_v54, 0.0  ;;  %vm12252_vm6 = vcmask 1045509  }
 0x43e   :  { %v1343_v57 = vmul.f32 %v1290_v35, %v12248_v29 }
 0x43f   :  { %v9291_v5 = vpop.eup %9290 }
 0x440   :  { %v1359_v51 = vmax.f32 %v1343_v57, 1e-08 }
 0x441   :  { %6296 = vbcast.lane.b32.xlu0 %v6294_v53, 256  ;;  %v3441_v53 = vand.u32 2147483648, %v10816_v38  ;;  %v3720_v38 = vsel %vm3718_vm5, %v3719_v39, %v3717_v27  ;;  %v1201_v27 = vrot.slane %v1173_v9, %v9824_v11  ;;  %vm12253_vm5 = vcmask 1046534  }
 0x443   :  { %v3442_v15 = vsel %vm3440_vm4, %v3441_v53, %v3439_v58  ;;  %v1194_v58 = vrot.slane %v1172_v49, %v9824_v11  ;;  %v1205_v49 = vcombine.high %v1201_v27, %v1201_v27  ;;  %vm3725_vm4 = vcmp.eq.f32.partialorder %v10820_v48, 0.0 }
 0x445   :  { %2970 = vrot.lane.b32.xlu0 %v2960_v7, %s9427_s10  ;;  %v1341_v7 = vmul.f32 %v1282_v62, %v12245_v42  ;;  %v1204_v40 = vcombine.high %v1194_v58, %v1194_v58 }
 0x447   :  { %v1357_v12 = vmax.f32 %v1341_v7, 1e-08  ;;  %v2966_v7 = vand.u32 2147483648, %v10779_v37 }
 0x449   :  { %3174 = vrot.lane.b32.xlu0 %v3164_v55, %s9427_s10  ;;  %9294 = vrcp.f32 %v1357_v12  ;;  %v9293_v55 = vpop.eup %9292  ;;  %v1221_v12 = vcombine.high %v11132_v4, %v11132_v4 }
 0x44a   :  { %9296 = vrsqrt.f32 %v10804_v44  ;;  %v2962_v53 = vmul.f32 %v9293_v55, %v10779_v37 }
 0x44b   :  { %9298 = vrcp.f32 %v1359_v51  ;;  %v1278_v51 = vrot.slane %v1201_v27, %v9831_v25 }
 0x44c   :  { %5945 = vadd.xlane.f32.xlu1 %v5944_v21  ;;  %9300 = vrsqrt.f32 %v10812_v54  ;;  %v1262_v21 = vrot.slane %v1194_v58, %v9831_v25  ;;  %v2964_v36 = vsel %vm2963_vm3, %v10779_v37, %v2962_v53  ;;  %v3170_v37 = vand.u32 2147483648, %v10804_v44  ;;  %vm12254_vm3 = vmmov %vm12252_vm6 }
 0x44d   :  { %3452 = vrot.lane.b32.xlu0 %v3442_v15, %s9428_s11  ;;  %9302 = vrsqrt.f32 %v10820_v48  ;;  %v6301_v15 = vrot.slane %v10916_v32, %v9677_v61  ;;  %v1270_v61 = vrot.slane %v1204_v40, %v9831_v25  ;;  %v2967_v32 = vsel %vm2965_vm7, %v2966_v7, %v2964_v36 }
 0x44e   :  { %v11211_v58 = vrot.slane %v1221_v12, %v9824_v11  ;;  %v1340_v9 = vmul.f32 %v1278_v51, %v12245_v42  ;;  %v3726_v36 = vand.u32 2147483648, %v10820_v48  ;;  %vm12255_vm7 = vcmask 1047559  }
 0x44f   :  { %v1338_v55 = vmul.f32 %v1270_v61, %v12245_v42  ;;  %v5785_v53 = vpop.xlane.xlu0 %5784 }
 0x450   :  { %12249 = vst [vmem:[#allocation40_spill] sm:$0xff] %v11211_v58 }
 0x451   :  { %3730 = vrot.lane.b32.xlu0 %v3720_v38, %s9428_s11  ;;  %v1336_v38 = vmul.f32 %v1262_v21, %v12245_v42  ;;  %v1354_v40 = vmax.f32 %v1338_v55, 1e-08  ;;  %v5789_v55 = vmax.f32 %v5785_v53, 1e-08 }
 0x453   :  { %v9295_v62 = vpop.eup %9294 }
 0x454   :  { %v9297_v47 = vpop.eup %9296 }
 0x455   :  { %1399 = vrot.lane.b32.xlu0 %v9287_v52, %s9428_s11  ;;  %v9299_v35 = vpop.eup %9298  ;;  %v3166_v39 = vmul.f32 %v9297_v47, %v10804_v44  ;;  %v3448_v47 = vand.u32 2147483648, %v10812_v54 }
 0x456   :  { %v9301_v24 = vpop.eup %9300 }
 0x457   :  { %v3168_v57 = vsel %vm3167_vm8, %v10804_v44, %v3166_v39  ;;  %v3444_v52 = vmul.f32 %v9301_v24, %v10812_v54  ;;  %v1286_v44 = vrot.slane %v1205_v49, %v9831_v25  ;;  %v1356_v39 = vmax.f32 %v1340_v9, 1e-08  ;;  %vm12256_vm8 = vmmov %vm12253_vm5 }
 0x458   :  { %v3171_v4 = vsel %vm3169_vm9, %v3170_v37, %v3168_v57  ;;  %vm12257_vm9 = vmmov %vm12254_vm3 }
 0x459   :  { %1403 = vrot.lane.b32.xlu0 %v9289_v59, %s9428_s11  ;;  %v9303_v59 = vpop.eup %9302  ;;  %v1342_v24 = vmul.f32 %v1286_v44, %v12245_v42  ;;  %v11250_v44 = vld [vmem:[%s12167_s3] sm:$0xff] }
 0x45a   :  { %12250 = vst [vmem:[#allocation41_spill] sm:$0xff] %v11250_v44  ;;  %v6066_v53 = vmul.f32 %v11250_v44, %v11186_v2 }
 0x45d   :  { %6254 = vbcast.lane.b32.xlu1 %v6252_v0, 256  ;;  %1407 = vrot.lane.b32.xlu0 %v9291_v5, %s9428_s11  ;;  %v11204_v0 = vpop.permute.xlu1 %5972  ;;  %v1352_v5 = vmax.f32 %v1336_v38, 1e-08 }
 0x45f   :  { %9304 = vrcp.f32 %v1352_v5 }
 0x460   :  { %9306 = vrcp.f32 %v1354_v40 }
 0x461   :  { %6247 = vbcast.lane.b32.xlu1 %v6245_v41, 256  ;;  %1411 = vrot.lane.b32.xlu0 %v9295_v62, %s9428_s11  ;;  %v3446_v41 = vsel %vm3445_vm10, %v10812_v54, %v3444_v52  ;;  %v3722_v62 = vmul.f32 %v9303_v59, %v10820_v48  ;;  %v5980_v21 = vpop.permute.xlu1 %5979  ;;  %v5959_v54 = vpop.permute.xlu0 %5958  ;;  %9308 = vrcp.f32 %v1356_v39  ;;  %vm12258_vm10 = vmmov %vm12255_vm7 }
 0x463   :  { %v3724_v27 = vsel %vm3723_vm12, %v10820_v48, %v3722_v62  ;;  %vm12260_vm12 = vmmov %vm12255_vm7 }
 0x464   :  { %v3727_v7 = vsel %vm3725_vm4, %v3726_v36, %v3724_v27  ;;  %vm12267_vm4 = vmmov %vm12254_vm3 }
 0x465   :  { %6303 = vbcast.lane.b32.xlu1 %v6301_v15, 256  ;;  %1415 = vrot.lane.b32.xlu0 %v9299_v35, %s9428_s11  ;;  %v3449_v15 = vsel %vm3447_vm11, %v3448_v47, %v3446_v41  ;;  %v1294_v35 = vrot.slane %v11211_v58, %v9831_v25  ;;  %v5987_v61 = vpop.permute.xlu1 %5986  ;;  %v11231_v57 = vpop.permute.xlu0 %6021  ;;  %vm12259_vm11 = vmmov %vm12253_vm5 }
 0x467   :  { %v1344_v38 = vmul.f32 %v1294_v35, %v12248_v29 }
 0x469   :  { %2972 = vrot.lane.b32.xlu1 %v2967_v32, %s9427_s10  ;;  %v1358_v32 = vmax.f32 %v1342_v24, 1e-08  ;;  %v9305_v12 = vpop.eup %9304  ;;  %v1360_v52 = vmax.f32 %v1344_v38, 1e-08  ;;  %v5994_v59 = vpop.permute.xlu1 %5993  ;;  %v6088_v24 = vsel %vm96_vm0, %v6066_v53, -inf  ;;  %v6065_v38 = vmul.f32 %v11250_v44, %v5959_v54 }
 0x46a   :  { %v9307_v51 = vpop.eup %9306  ;;  %v11234_v49 = vpop.permute.xlu0 %6028  ;;  %v6069_v54 = vmul.f32 %v11250_v44, %v5987_v61  ;;  %v6070_v53 = vmul.f32 %v11250_v44, %v5994_v59 }
 0x46b   :  { %9310 = vrcp.f32 %v1358_v32  ;;  %v9309_v48 = vpop.eup %9308  ;;  %v6068_v32 = vmul.f32 %v11250_v44, %v5980_v21 }
 0x46c   :  { %9312 = vrcp.f32 %v1360_v52  ;;  %v6116_v59 = vsel %vm96_vm0, %v6070_v53, -inf }
 0x46d   :  { %3176 = vrot.lane.b32.xlu1 %v3171_v4, %s9427_s10  ;;  %v11237_v37 = vpop.permute.xlu1 %6000  ;;  %9314 = vrcp.f32 %v5789_v55  ;;  %v6089_v55 = vrot.slane %v6088_v24, 4 }
 0x46e   :  { %v11240_v4 = vpop.permute.xlu0 %6035  ;;  %v6071_v43 = vmul.f32 %v11250_v44, %v11237_v37 }
 0x471   :  { %3454 = vrot.lane.b32.xlu1 %v3449_v15, %s9428_s11  ;;  %v11242_v62 = vpop.permute.xlu1 %6007 }
 0x472   :  { %v11245_v9 = vpop.permute.xlu0 %6042 }
 0x475   :  { %3732 = vrot.lane.b32.xlu1 %v3727_v7, %s9428_s11  ;;  %v9311_v5 = vpop.eup %9310  ;;  %v6067_v7 = vmul.f32 %v11250_v44, %v11204_v0 }
 0x476   :  { %v9313_v41 = vpop.eup %9312  ;;  %v11254_v15 = vpop.permute.xlu0 %6049 }
 0x477   :  { %v9315_v35 = vpop.eup %9314  ;;  %v6095_v21 = vsel %vm96_vm0, %v6067_v7, -inf }
 0x479   :  { %1401 = vrot.lane.b32.xlu1 %v9305_v12, %s9428_s11  ;;  %v11264_v12 = vld [vmem:[%s12166_s1] sm:$0xff] }
 0x47d   :  { %1405 = vrot.lane.b32.xlu1 %v9307_v51, %s9428_s11  ;;  %v11267_v51 = vpop.permute.xlu0 %6056 }
 0x481   :  { %1409 = vrot.lane.b32.xlu1 %v9309_v48, %s9428_s11 }
 0x485   :  { %1413 = vrot.lane.b32.xlu1 %v9311_v5, %s9428_s11 }
 0x489   :  { %1417 = vrot.lane.b32.xlu1 %v9313_v41, %s9428_s11  ;;  %v6081_v41 = vsel %vm96_vm0, %v6065_v38, -inf }
 0x48c   :  { %v5788_v47 = vpop.xlane.xlu1 %5787 }
 0x48d   :  { %v5790_v40 = vmax.f32 %v5788_v47, 1e-08 }
 0x48f   :  { %9316 = vrcp.f32 %v5790_v40  ;;  %v6102_v40 = vsel %vm96_vm0, %v6068_v32, -inf }
 0x490   :  { %v6103_v38 = vrot.slane %v6102_v40, 4 }
 0x494   :  { %v5706_v27 = vpop.f32.mrb[44].mxu1 }
 0x495   :  { %v5793_v36 = vmul.f32 %v9315_v35, %v5706_v27  ;;  %v8595_v39 = vpop.f32.mrb[45].mxu1  ;;  %v11279_v35 = vld [vmem:[%s12166_s1 + $0x8] sm:$0xff] }
 0x496   :  { %v6096_v39 = vrot.slane %v6095_v21, 4 }
 0x497   :  { %v6433_v2 = vmul.f32 %v11264_v12, %v5793_v36  ;;  %v6516_v52 = vmul.f32 %v5793_v36, %v5793_v36 }
 0x498   :  { %v5779_v48 = vpop.f32.mrb[46].mxu1 }
 0x499   :  { %v9317_v5 = vpop.eup %9316  ;;  %8619 = vmatprep.mubr.msk.f32.mxu0 %vm96_vm0, %v6433_v2  ;;  %8630 = vmatprep.mubr.msk.f32.mxu1 %vm96_vm0, %v6516_v52  ;;  %v8600_v0 = vpop.f32.mrb[47].mxu1  ;;  %v6082_v2 = vrot.slane %v6081_v41, 4 }
 0x49a   :  { %v5794_v47 = vmul.f32 %v9317_v5, %v5779_v48  ;;  %v6090_v0 = vmax.f32 %v6088_v24, %v6089_v55  ;;  %v6109_v48 = vsel %vm96_vm0, %v6069_v54, -inf  ;;  %v6015_v5 = vpop.permute.xlu1 %6014  ;;  %v6097_v24 = vmax.f32 %v6095_v21, %v6096_v39 }
 0x49b   :  { %v6110_v55 = vrot.slane %v6109_v48, 4  ;;  %v6083_v54 = vmax.f32 %v6081_v41, %v6082_v2  ;;  %v6074_v21 = vmul.f32 %v11084_v10, %v11231_v57 }
 0x49c   :  { %v6434_v27 = vmul.f32 %v11279_v35, %v5794_v47  ;;  %v5943_v36 = vpop.xlane.xlu0 %5942  ;;  %v6517_v7 = vmul.f32 %v5794_v47, %v5794_v47  ;;  %v5864_v61 = vpop.f32.mrb[48].mxu1  ;;  %v6091_v53 = vrot.slane %v6090_v0, 2  ;;  %v6098_v22 = vrot.slane %v6097_v24, 2 }
 0x49d   :  { %v5947_v52 = vmax.f32 %v5943_v36, 1e-08  ;;  %v8605_v32 = vpop.f32.mrb[49].mxu1  ;;  %v6104_v36 = vmax.f32 %v6102_v40, %v6103_v38  ;;  %v6111_v46 = vmax.f32 %v6109_v48, %v6110_v55  ;;  %v6084_v30 = vrot.slane %v6083_v54, 2 }
 0x49e   :  { %8620 = vmatmul.mubr.msk.f32.vlgmr.msra.gmra.mrb[52].mxu0 %vm96_vm0, %v6434_v27  ;;  %8631 = vmatmul.mubr.msk.f32.vlgmr.msra.gmra.mrb[52].mxu1 %vm96_vm0, %v6517_v7  ;;  %v6073_v32 = vmul.f32 %v11084_v10, %v6015_v5  ;;  %v6092_v41 = vmax.f32 %v6090_v0, %v6091_v53  ;;  %v6075_v40 = vmul.f32 %v11084_v10, %v11234_v49  ;;  %v11317_v5 = vpop.permute.xlu1 %6063  ;;  %v6144_v55 = vsel %vm96_vm0, %v6074_v21, -inf }
 0x49f   :  { %9318 = vrcp.f32 %v5947_v52  ;;  %9120 = vmatpush3.bf16.xpose.msk.msra.mxu0 %vm9479_vm1, %v10594_v31  ;;  %9132 = vmatpush3.bf16.xpose.msk.msra.mxu1 %vm9479_vm1, %v10594_v31  ;;  %v6117_v52 = vrot.slane %v6116_v59, 4  ;;  %v6105_v39 = vrot.slane %v6104_v36, 2  ;;  %v6072_v48 = vmul.f32 %v11250_v44, %v11242_v62 }
 0x4a0   :  { %v11289_v47 = vpop.permute.xlu0 %6198  ;;  %9123 = vmatprep.subr.msk.bf16.mxu0 %vm9479_vm1, %v10614_v19  ;;  %v11297_v27 = vpop.f32.mrb[50].mxu1  ;;  %9135 = vmatprep.subr.msk.bf16.mxu1 %vm9479_vm1, %v10614_v19  ;;  %v6137_v38 = vsel %vm96_vm0, %v6073_v32, -inf  ;;  %v6099_v37 = vmax.f32 %v6097_v24, %v6098_v22  ;;  %v6112_v0 = vrot.slane %v6111_v46, 2  ;;  %v6093_v62 = vrot.slane %v6092_v41, 1 }
 0x4a1   :  { %v8610_v7 = vpop.f32.mrb[51].mxu1  ;;  %v6118_v2 = vmax.f32 %v6116_v59, %v6117_v52  ;;  %v6085_v59 = vmax.f32 %v6083_v54, %v6084_v30  ;;  %v6106_v53 = vmax.f32 %v6104_v36, %v6105_v39  ;;  %v6151_v1 = vsel %vm96_vm0, %v6075_v40, -inf }
 0x4a2   :  { %v6138_v7 = vrot.slane %v6137_v38, 4  ;;  %v6076_v22 = vmul.f32 %v11084_v10, %v11240_v4  ;;  %v6130_v30 = vsel %vm96_vm0, %v6072_v48, -inf  ;;  %v6145_v24 = vrot.slane %v6144_v55, 4  ;;  %v6206_v42 = vpop.permute.xlu1 %6205 }
 0x4a3   :  { %v6119_v32 = vrot.slane %v6118_v2, 2  ;;  %v6100_v28 = vrot.slane %v6099_v37, 1  ;;  %v6113_v36 = vmax.f32 %v6111_v46, %v6112_v0  ;;  %v6086_v39 = vrot.slane %v6085_v59, 1 }
 0x4a4   :  { %v11303_v31 = vpop.permute.xlu0 %6212  ;;  %v6139_v40 = vmax.f32 %v6137_v38, %v6138_v7  ;;  %v6131_v60 = vrot.slane %v6130_v30, 4  ;;  %v6094_v29 = vmax.f32 %v6092_v41, %v6093_v62  ;;  %v6146_v20 = vmax.f32 %v6144_v55, %v6145_v24 }
 0x4a5   :  { %v6120_v4 = vmax.f32 %v6118_v2, %v6119_v32  ;;  %v6101_v0 = vmax.f32 %v6099_v37, %v6100_v28  ;;  %v6114_v58 = vrot.slane %v6113_v36, 1  ;;  %v6087_v34 = vmax.f32 %v6085_v59, %v6086_v39 }
 0x4a6   :  { %v6132_v25 = vmax.f32 %v6130_v30, %v6131_v60  ;;  %v6147_v41 = vrot.slane %v6146_v20, 2  ;;  %v6079_v55 = vmul.f32 %v11084_v10, %v11267_v51  ;;  %v6220_v28 = vpop.permute.xlu1 %6219 }
 0x4a7   :  { %9126 = vmatpush3.bf16.xpose.msk.msra.mxu0 %vm9479_vm1, %v10614_v19  ;;  %9138 = vmatpush3.bf16.xpose.msk.msra.mxu1 %vm9479_vm1, %v10614_v19  ;;  %v6123_v19 = vsel %vm96_vm0, %v6071_v43, -inf  ;;  %v6077_v43 = vmul.f32 %v11084_v10, %v11245_v9  ;;  %v6078_v9 = vmul.f32 %v11084_v10, %v11254_v15  ;;  %v6121_v32 = vrot.slane %v6120_v4, 1 }
 0x4a8   :  { %v11319_v57 = vpop.permute.xlu0 %6261  ;;  %9141 = vmatprep.subr.msk.bf16.mxu0 %vm9479_vm1, %v10634_v50  ;;  %9153 = vmatprep.subr.msk.bf16.mxu1 %vm9479_vm1, %v10634_v50  ;;  %v6124_v48 = vrot.slane %v6123_v19, 4  ;;  %v6958_v59 = vmul.f32 %v6101_v0, %v6101_v0  ;;  %v6115_v62 = vmax.f32 %v6113_v36, %v6114_v58  ;;  %v6857_v24 = vsel %vm430_vm2, %v6094_v29, %v6087_v34 }
 0x4a9   :  { %v9319_v49 = vpop.eup %9318  ;;  %v11355_v60 = vmax.f32 %v6120_v4, %v6121_v32  ;;  %v6080_v58 = vmul.f32 %v11084_v10, %v11317_v5  ;;  %v6306_v32 = vmul.f32 %v11264_v12, %v6206_v42  ;;  %v6308_v5 = vmul.f32 %v11264_v12, %v6220_v28 }
 0x4aa   :  { %v5951_v52 = vmul.f32 %v9319_v49, %v5864_v61  ;;  %v6107_v61 = vrot.slane %v6106_v53, 1  ;;  %v6152_v49 = vrot.slane %v6151_v1, 4  ;;  %v6125_v56 = vmax.f32 %v6123_v19, %v6124_v48 }
 0x4ab   :  { %v6179_v48 = vsel %vm96_vm0, %v6079_v55, -inf  ;;  %v6328_v28 = vsel %vm96_vm0, %v6306_v32, -inf }
 0x4ac   :  { %v6637_v54 = vmul.f32 %v11250_v44, %v5951_v52  ;;  %v6720_v21 = vmul.f32 %v5951_v52, %v5951_v52  ;;  %v11337_v26 = vpop.permute.xlu0 %6268  ;;  %v6158_v52 = vsel %vm96_vm0, %v6076_v22, -inf  ;;  %v6153_v38 = vmax.f32 %v6151_v1, %v6152_v49 }
 0x4ad   :  { %v6159_v7 = vrot.slane %v6158_v52, 4  ;;  %v6108_v2 = vmax.f32 %v6106_v53, %v6107_v61  ;;  %v6957_v22 = vmul.f32 %v6094_v29, %v6094_v29  ;;  %v6172_v1 = vsel %vm96_vm0, %v6078_v9, -inf }
 0x4ae   :  { %8641 = vmatprep.mubr.msk.f32.mxu0 %vm96_vm0, %v6637_v54  ;;  %8652 = vmatprep.mubr.msk.f32.mxu1 %vm96_vm0, %v6720_v21  ;;  %v6165_v54 = vsel %vm96_vm0, %v6077_v43, -inf  ;;  %v6140_v21 = vrot.slane %v6139_v40, 2  ;;  %v6154_v39 = vrot.slane %v6153_v38, 2  ;;  %v6126_v30 = vrot.slane %v6125_v56, 2 }
 0x4af   :  { %v6166_v15 = vrot.slane %v6165_v54, 4  ;;  %v6160_v53 = vmax.f32 %v6158_v52, %v6159_v7  ;;  %v6959_v19 = vmul.f32 %v6108_v2, %v6108_v2  ;;  %v6133_v49 = vrot.slane %v6132_v25, 2 }
 0x4b0   :  { %v11344_v46 = vpop.permute.xlu0 %6275  ;;  %v6141_v61 = vmax.f32 %v6139_v40, %v6140_v21  ;;  %v6148_v43 = vmax.f32 %v6146_v20, %v6147_v41  ;;  %v6173_v51 = vrot.slane %v6172_v1, 4  ;;  %v11362_v9 = vmul.f32 %v6115_v62, %v6115_v62  ;;  %v6227_v20 = vpop.permute.xlu1 %6226 }
 0x4b1   :  { %v6858_v29 = vsel %vm1931_vm13, %v6101_v0, %v6857_v24  ;;  %v6956_v52 = vmul.f32 %v6087_v34, %v6087_v34  ;;  %v6167_v40 = vmax.f32 %v6165_v54, %v6166_v15  ;;  %v6155_v7 = vmax.f32 %v6153_v38, %v6154_v39 }
 0x4b2   :  { %v6161_v4 = vrot.slane %v6160_v53, 2  ;;  %v6142_v21 = vrot.slane %v6141_v61, 1  ;;  %v11368_v41 = vmul.f32 %v11355_v60, %v11355_v60  ;;  %v6127_v55 = vmax.f32 %v6125_v56, %v6126_v30 }
 0x4b3   :  { %v6180_v10 = vrot.slane %v6179_v48, 4  ;;  %v6134_v33 = vmax.f32 %v6132_v25, %v6133_v49  ;;  %v6149_v3 = vrot.slane %v6148_v43, 1  ;;  %v6174_v14 = vmax.f32 %v6172_v1, %v6173_v51 }
 0x4b4   :  { %v11351_v37 = vpop.permute.xlu0 %6282  ;;  %v6186_v34 = vsel %vm96_vm0, %v6080_v58, -inf  ;;  %v6988_v38 = vsel %vm430_vm2, %v6957_v22, %v6956_v52  ;;  %v6168_v54 = vrot.slane %v6167_v40, 2  ;;  %v6309_v42 = vmul.f32 %v11264_v12, %v6227_v20  ;;  %v6234_v45 = vpop.permute.xlu1 %6233 }
 0x4b5   :  { %v6859_v15 = vsel %vm1933_vm14, %v6108_v2, %v6858_v29  ;;  %v6156_v24 = vrot.slane %v6155_v7, 1  ;;  %v6162_v39 = vmax.f32 %v6160_v53, %v6161_v4  ;;  %v11377_v56 = vmax.f32 %v6141_v61, %v6142_v21 }
 0x4b6   :  { %v6181_v25 = vmax.f32 %v6179_v48, %v6180_v10  ;;  %v6187_v30 = vrot.slane %v6186_v34, 4  ;;  %v6342_v1 = vsel %vm96_vm0, %v6308_v5, -inf  ;;  %v6305_v49 = vmul.f32 %v11264_v12, %v11289_v47 }
 0x4b7   :  { %v6128_v51 = vrot.slane %v6127_v55, 1  ;;  %v6135_v22 = vrot.slane %v6134_v33, 1  ;;  %v6150_v58 = vmax.f32 %v6148_v43, %v6149_v3  ;;  %v6175_v52 = vrot.slane %v6174_v14, 2 }
 0x4b8   :  { %v11360_v36 = vpop.permute.xlu0 %6289  ;;  %v6169_v2 = vmax.f32 %v6167_v40, %v6168_v54  ;;  %v6329_v29 = vrot.slane %v6328_v28, 4  ;;  %v6349_v53 = vsel %vm96_vm0, %v6309_v42, -inf  ;;  %v6989_v61 = vsel %vm1931_vm13, %v6958_v59, %v6988_v38 }
 0x4b9   :  { %v6163_v4 = vrot.slane %v6162_v39, 1  ;;  %v6864_v48 = vsel %vm430_vm2, %v6150_v58, %v11377_v56  ;;  %v6343_v21 = vrot.slane %v6342_v1, 4  ;;  %v6860_v32 = vsel %vm1935_vm15, %v6115_v62, %v6859_v15 }
 0x4ba   :  { %v6157_v47 = vmax.f32 %v6155_v7, %v6156_v24  ;;  %v6182_v10 = vrot.slane %v6181_v25, 2  ;;  %v6188_v5 = vmax.f32 %v6186_v34, %v6187_v30  ;;  %v6321_v3 = vsel %vm96_vm0, %v6305_v49, -inf }
 0x4bb   :  { %v6129_v43 = vmax.f32 %v6127_v55, %v6128_v51  ;;  %v6350_v40 = vrot.slane %v6349_v53, 4  ;;  %v6990_v42 = vsel %vm1933_vm14, %v6959_v19, %v6989_v61  ;;  %v6136_v59 = vmax.f32 %v6134_v33, %v6135_v22 }
 0x4bc   :  { %v11372_v0 = vpop.permute.xlu0 %6296  ;;  %v6170_v38 = vrot.slane %v6169_v2, 1  ;;  %v6865_v11 = vsel %vm1931_vm13, %v6157_v47, %v6864_v48  ;;  %v6330_v17 = vmax.f32 %v6328_v28, %v6329_v29  ;;  %v6164_v44 = vmax.f32 %v6162_v39, %v6163_v4 }
 0x4bd   :  { %v6344_v62 = vmax.f32 %v6342_v1, %v6343_v21  ;;  %v6322_v7 = vrot.slane %v6321_v3, 4  ;;  %v6861_v34 = vsel %vm12252_vm6, %v11355_v60, %v6860_v32  ;;  %v6183_v15 = vmax.f32 %v6181_v25, %v6182_v10  ;;  %vm12268_vm6 = vmmov %vm12253_vm5 }
 0x4be   :  { %v6189_v55 = vrot.slane %v6188_v5, 2  ;;  %v6991_v19 = vsel %vm1935_vm15, %v11362_v9, %v6990_v42  ;;  %v6866_v24 = vsel %vm1933_vm14, %v6164_v44, %v6865_v11  ;;  %v6351_v30 = vmax.f32 %v6349_v53, %v6350_v40 }
 0x4bf   :  { %v6310_v28 = vmul.f32 %v11264_v12, %v6234_v45  ;;  %v6171_v1 = vmax.f32 %v6169_v2, %v6170_v38  ;;  %v6331_v49 = vrot.slane %v6330_v17, 2  ;;  %v6962_v51 = vmul.f32 %v6129_v43, %v6129_v43 }
 0x4c0   :  { %v11383_v20 = vpop.permute.xlu0 %2970  ;;  %v6345_v60 = vrot.slane %v6344_v62, 2  ;;  %v6323_v25 = vmax.f32 %v6321_v3, %v6322_v7  ;;  %v6862_v22 = vsel %vm12253_vm5, %v6129_v43, %v6861_v34  ;;  %v6190_v9 = vmax.f32 %v6188_v5, %v6189_v55  ;;  %v6241_v43 = vpop.permute.xlu1 %6240  ;;  %vm12269_vm5 = vmmov %vm12254_vm3 }
 0x4c1   :  { %12251 = vst [vmem:[#allocation42_spill] sm:$0xff] %v11383_v20  ;;  %v6176_v20 = vmax.f32 %v6174_v14, %v6175_v52  ;;  %v6307_v14 = vmul.f32 %v11264_v12, %v11303_v31  ;;  %v6992_v31 = vsel %vm12254_vm3, %v11368_v41, %v6991_v19  ;;  %v6184_v52 = vrot.slane %v6183_v15, 1  ;;  %vm12270_vm3 = vmmov %vm12255_vm7 }
 0x4c2   :  { %v6867_v11 = vsel %vm1935_vm15, %v6171_v1, %v6866_v24  ;;  %v6352_v45 = vrot.slane %v6351_v30, 2  ;;  %v6356_v61 = vsel %vm96_vm0, %v6310_v28, -inf  ;;  %v6963_v4 = vmul.f32 %v6136_v59, %v6136_v59 }
 0x4c3   :  { %v6177_v33 = vrot.slane %v6176_v20, 1  ;;  %v6335_v29 = vsel %vm96_vm0, %v6307_v14, -inf  ;;  %v6965_v48 = vmul.f32 %v6150_v58, %v6150_v58  ;;  %v6332_v21 = vmax.f32 %v6330_v17, %v6331_v49 }
 0x4c4   :  { %v11391_v54 = vpop.permute.xlu0 %3174  ;;  %v6863_v32 = vsel %vm12255_vm7, %v6136_v59, %v6862_v22  ;;  %v6993_v10 = vsel %vm12256_vm8, %v6962_v51, %v6992_v31  ;;  %v6346_v41 = vmax.f32 %v6344_v62, %v6345_v60  ;;  %v6324_v3 = vrot.slane %v6323_v25, 2  ;;  %vm12271_vm7 = vmmov %vm12267_vm4 }
 0x4c5   :  { %v6178_v53 = vmax.f32 %v6176_v20, %v6177_v33  ;;  %v6336_v5 = vrot.slane %v6335_v29, 4  ;;  %v11416_v42 = vmul.f32 %v6157_v47, %v6157_v47  ;;  %v6185_v20 = vmax.f32 %v6183_v15, %v6184_v52  ;;  %vm12272_vm8 = vmmov %vm12268_vm6 }
 0x4c6   :  { %v6191_v38 = vrot.slane %v6190_v9, 1  ;;  %v6357_v7 = vrot.slane %v6356_v61, 4  ;;  %v6964_v34 = vmul.f32 %v11377_v56, %v11377_v56  ;;  %v6353_v58 = vmax.f32 %v6351_v30, %v6352_v45 }
 0x4c7   :  { %v6868_v40 = vsel %vm12257_vm9, %v6178_v53, %v6867_v11  ;;  %v11421_v59 = vmul.f32 %v11264_v12, %v6863_v32  ;;  %v11424_v62 = vsel %vm12258_vm10, %v6963_v4, %v6993_v10  ;;  %v6333_v55 = vrot.slane %v6332_v21, 1  ;;  %vm12273_vm9 = vmmov %vm12268_vm6 }
 0x4c8   :  { %v11403_v39 = vpop.permute.xlu0 %3452  ;;  %v6311_v14 = vmul.f32 %v11264_v12, %v6241_v43  ;;  %v6869_v15 = vsel %vm12259_vm11, %v6185_v20, %v6868_v40  ;;  %v6347_v19 = vrot.slane %v6346_v41, 1  ;;  %v6325_v33 = vmax.f32 %v6323_v25, %v6324_v3  ;;  %v11463_v3 = vpop.f32.mrb[36].mxu0  ;;  %vm12274_vm10 = vmmov %vm12270_vm3 }
 0x4c9   :  { %v6337_v24 = vmax.f32 %v6335_v29, %v6336_v5  ;;  %v6314_v56 = vmul.f32 %v11279_v35, %v11319_v57  ;;  %v11431_v30 = vmul.f32 %v6164_v44, %v6164_v44  ;;  %v11433_v28 = vmul.f32 %v6171_v1, %v6171_v1  ;;  %vm12277_vm11 = vmmov %vm12270_vm3 }
 0x4ca   :  { %v6192_v49 = vmax.f32 %v6190_v9, %v6191_v38  ;;  %v6358_v51 = vmax.f32 %v6356_v61, %v6357_v7  ;;  %v11435_v60 = vmul.f32 %v6178_v53, %v6178_v53  ;;  %v11437_v22 = vmul.f32 %v6185_v20, %v6185_v20  ;;  %v11468_v38 = vpop.f32.mrb[37].mxu0 }
 0x4cb   :  { %v6354_v31 = vrot.slane %v6353_v58, 1  ;;  %v6334_v25 = vmax.f32 %v6332_v21, %v6333_v55  ;;  %v6363_v29 = vsel %vm96_vm0, %v6311_v14, -inf  ;;  %v11445_v1 = vmax.f32 %v6346_v41, %v6347_v19 }
 0x4cc   :  { %v11411_v2 = vpop.permute.xlu0 %3730  ;;  %v6870_v44 = vsel %vm12260_vm12, %v6192_v49, %v6869_v15  ;;  %v6326_v9 = vrot.slane %v6325_v33, 1  ;;  %v6338_v11 = vrot.slane %v6337_v24, 2  ;;  %v6384_v53 = vsel %vm96_vm0, %v6314_v56, -inf  ;;  %vm12280_vm12 = vmmov %vm12267_vm4 }
 0x4cd   :  { %v6359_v45 = vrot.slane %v6358_v51, 2  ;;  %v6315_v61 = vmul.f32 %v11279_v35, %v11337_v26  ;;  %v11456_v21 = vmax.f32 %v6353_v58, %v6354_v31  ;;  %v11461_v41 = vmul.f32 %v11279_v35, %v6870_v44 }
 0x4ce   :  { %v7235_v5 = vmul.f32 %v6334_v25, %v6334_v25  ;;  %v6385_v26 = vrot.slane %v6384_v53, 4  ;;  %v6316_v43 = vmul.f32 %v11279_v35, %v11344_v46  ;;  %v11472_v7 = vmul.f32 %v11445_v1, %v11445_v1 }
 0x4cf   :  { %v6317_v58 = vmul.f32 %v11279_v35, %v11351_v37  ;;  %v6327_v55 = vmax.f32 %v6325_v33, %v6326_v9  ;;  %v6360_v14 = vmax.f32 %v6358_v51, %v6359_v45  ;;  %v11487_v56 = vmul.f32 %v6192_v49, %v6192_v49  ;;  %v11489_v37 = vpop.f32.mrb[38].mxu0 }
 0x4d0   :  { %v1400_v17 = vpop.permute.xlu0 %1399  ;;  %12261 = vst [vmem:[#allocation43_spill] sm:$0xff] %v11489_v37  ;;  %v6386_v33 = vmax.f32 %v6384_v53, %v6385_v26  ;;  %v6398_v51 = vsel %vm96_vm0, %v6316_v43, -inf  ;;  %v6318_v49 = vmul.f32 %v11279_v35, %v11360_v36  ;;  %v6319_v53 = vmul.f32 %v11279_v35, %v11372_v0 }
 0x4d1   :  { %v1447_v47 = vmul.f32 %v1400_v17, %v10332_v16  ;;  %v11440_v16 = vsel %vm430_vm2, %v6965_v48, %v6964_v34  ;;  %v6339_v34 = vmax.f32 %v6337_v24, %v6338_v11  ;;  %v6361_v45 = vrot.slane %v6360_v14, 1 }
 0x4d2   :  { %v7135_v26 = vsel %vm430_vm2, %v6334_v25, %v6327_v55  ;;  %v6387_v43 = vrot.slane %v6386_v33, 2  ;;  %v6412_v25 = vsel %vm96_vm0, %v6318_v49, -inf }
 0x4d3   :  { %v11451_v4 = vsel %vm96_vm0, %v1447_v47, -inf  ;;  %v6391_v47 = vsel %vm96_vm0, %v6315_v61, -inf  ;;  %v6340_v44 = vrot.slane %v6339_v34, 1  ;;  %v11515_v37 = vmax.f32 %v6360_v14, %v6361_v45 }
 0x4d4   :  { %v1404_v52 = vpop.permute.xlu0 %1403  ;;  %v6392_v9 = vrot.slane %v6391_v47, 4 }
 0x4d5   :  { %v1449_v57 = vmul.f32 %v1404_v52, %v10339_v63  ;;  %v6364_v63 = vrot.slane %v6363_v29, 4 }
 0x4d6   :  { %v6393_v0 = vmax.f32 %v6391_v47, %v6392_v9 }
 0x4d7   :  { %v11454_v48 = vsel %vm96_vm0, %v1449_v57, -inf  ;;  %v6365_v15 = vmax.f32 %v6363_v29, %v6364_v63  ;;  %v11493_v57 = vpop.f32.mrb[39].mxu0  ;;  %v6405_v29 = vsel %vm96_vm0, %v6317_v58, -inf }
 0x4d8   :  { %v1575_v32 = vmax.f32 %v11451_v4, %v11454_v48  ;;  %v1408_v10 = vpop.permute.xlu0 %1407  ;;  %12262 = vst [vmem:[#allocation44_spill] sm:$0xff] %v11493_v57  ;;  %v11508_v36 = vpop.f32.mrb[40].mxu0  ;;  %v6394_v49 = vrot.slane %v6393_v0, 2 }
 0x4d9   :  { %v1451_v40 = vmul.f32 %v1408_v10, %v10347_v18  ;;  %v5946_v20 = vpop.xlane.xlu1 %5945  ;;  %v11482_v18 = vmul.f32 %v11456_v21, %v11456_v21  ;;  %v6366_v63 = vrot.slane %v6365_v15, 2  ;;  %12263 = vst [vmem:[#allocation45_spill] sm:$0xff] %v11508_v36 }
 0x4da   :  { %v5948_v17 = vmax.f32 %v5946_v20, 1e-08 }
 0x4db   :  { %v11478_v46 = vsel %vm96_vm0, %v1451_v40, -inf  ;;  %v6406_v40 = vrot.slane %v6405_v29, 4  ;;  %v6367_v36 = vmax.f32 %v6365_v15, %v6366_v63  ;;  %v11531_v15 = vmul.f32 %v11515_v37, %v11515_v37 }
 0x4dc   :  { %v11485_v19 = vmax.f32 %v1575_v32, %v11478_v46  ;;  %v1412_v24 = vpop.permute.xlu0 %1411  ;;  %9320 = vrcp.f32 %v5948_v17  ;;  %v6399_v32 = vrot.slane %v6398_v51, 4  ;;  %v6341_v17 = vmax.f32 %v6339_v34, %v6340_v44 }
 0x4dd   :  { %v1453_v31 = vmul.f32 %v1412_v24, %v10365_v13  ;;  %v6255_v52 = vpop.permute.xlu1 %6254  ;;  %v7234_v13 = vmul.f32 %v6327_v55, %v6327_v55  ;;  %v6419_v55 = vsel %vm96_vm0, %v6319_v53, -inf  ;;  %v6388_v44 = vmax.f32 %v6386_v33, %v6387_v43 }
 0x4de   :  { %v6313_v11 = vmul.f32 %v11279_v35, %v6255_v52  ;;  %v11513_v52 = vpop.f32.mrb[41].mxu0  ;;  %v6400_v34 = vmax.f32 %v6398_v51, %v6399_v32  ;;  %v6407_v9 = vmax.f32 %v6405_v29, %v6406_v40  ;;  %v7136_v45 = vsel %vm1931_vm13, %v6341_v17, %v7135_v26 }
 0x4df   :  { %v11502_v61 = vsel %vm96_vm0, %v1453_v31, -inf  ;;  %v6996_v31 = vsel %vm1931_vm13, %v11416_v42, %v11440_v16  ;;  %12264 = vst [vmem:[#allocation46_spill] sm:$0xff] %v11513_v52  ;;  %v7266_v10 = vsel %vm430_vm2, %v7235_v5, %v7234_v13  ;;  %v11524_v14 = vpop.f32.mrb[42].mxu0  ;;  %v6413_v53 = vrot.slane %v6412_v25, 4 }
 0x4e0   :  { %v6377_v20 = vsel %vm96_vm0, %v6313_v11, -inf  ;;  %v6997_v16 = vsel %vm1933_vm14, %v11431_v30, %v6996_v31  ;;  %12265 = vst [vmem:[#allocation47_spill] sm:$0xff] %v11524_v14  ;;  %v7236_v33 = vmul.f32 %v6341_v17, %v6341_v17  ;;  %v6368_v13 = vrot.slane %v6367_v36, 1 }
 0x4e1   :  { %v6248_v58 = vpop.permute.xlu1 %6247  ;;  %v6378_v24 = vrot.slane %v6377_v20, 4  ;;  %v6401_v63 = vrot.slane %v6400_v34, 2  ;;  %v7137_v26 = vsel %vm1933_vm14, %v11445_v1, %v7136_v45  ;;  %v6389_v43 = vrot.slane %v6388_v44, 1 }
 0x4e2   :  { %v6312_v11 = vmul.f32 %v11264_v12, %v6248_v58  ;;  %v6420_v12 = vrot.slane %v6419_v55, 4  ;;  %v11527_v58 = vpop.f32.mrb[43].mxu0  ;;  %v6408_v40 = vrot.slane %v6407_v9, 2  ;;  %v6395_v31 = vmax.f32 %v6393_v0, %v6394_v49 }
 0x4e3   :  { %v6379_v47 = vmax.f32 %v6377_v20, %v6378_v24  ;;  %12266 = vst [vmem:[#allocation48_spill] sm:$0xff] %v11527_v58  ;;  %v6998_v17 = vsel %vm1935_vm15, %v11433_v28, %v6997_v16  ;;  %v11541_v58 = vpop.f32.mrb[44].mxu0  ;;  %v6369_v0 = vmax.f32 %v6367_v36, %v6368_v13  ;;  %v7267_v28 = vsel %vm1931_vm13, %v7236_v33, %v7266_v10 }
 0x4e4   :  { %v6370_v57 = vsel %vm96_vm0, %v6312_v11, -inf  ;;  %v6414_v11 = vmax.f32 %v6412_v25, %v6413_v53  ;;  %v6421_v14 = vmax.f32 %v6419_v55, %v6420_v12  ;;  %v6402_v25 = vmax.f32 %v6400_v34, %v6401_v63 }
 0x4e5   :  { %v6304_v42 = vpop.permute.xlu1 %6303  ;;  %v6380_v51 = vrot.slane %v6379_v47, 2  ;;  %v6371_v29 = vrot.slane %v6370_v57, 4  ;;  %v6409_v16 = vmax.f32 %v6407_v9, %v6408_v40  ;;  %v7138_v49 = vsel %vm1935_vm15, %v11456_v21, %v7137_v26 }
 0x4e6   :  { %v9321_v5 = vpop.eup %9320  ;;  %v6320_v32 = vmul.f32 %v11279_v35, %v6304_v42  ;;  %v11546_v35 = vld [vmem:[%s12167_s3 + $0x8] sm:$0xff]  ;;  %v11549_v42 = vpop.f32.mrb[45].mxu0  ;;  %v6396_v53 = vrot.slane %v6395_v31, 1  ;;  %v6415_v12 = vrot.slane %v6414_v11, 2  ;;  %v1464_v36 = vrot.slane %v11451_v4, 4  ;;  %s9429_s3 = smov 32  }
 0x4e7   :  { %v5952_v30 = vmul.f32 %v9321_v5, %v11297_v27  ;;  %v6372_v20 = vmax.f32 %v6370_v57, %v6371_v29  ;;  %v6381_v52 = vmax.f32 %v6379_v47, %v6380_v51  ;;  %v6999_v10 = vsel %vm12267_vm4, %v11435_v60, %v6998_v17  ;;  %vm12281_vm4 = vmmov %vm12268_vm6 }
 0x4e8   :  { %v6426_v55 = vsel %vm96_vm0, %v6320_v32, -inf  ;;  %v6422_v34 = vrot.slane %v6421_v14, 2  ;;  %v7268_v21 = vsel %vm1933_vm14, %v11472_v7, %v7267_v28  ;;  %v6390_v33 = vmax.f32 %v6388_v44, %v6389_v43 }
 0x4e9   :  { %v11537_v24 = vpop.permute.xlu1 %2972  ;;  %v6373_v27 = vrot.slane %v6372_v20, 2  ;;  %v6638_v1 = vmul.f32 %v11546_v35, %v5952_v30  ;;  %v6721_v57 = vmul.f32 %v5952_v30, %v5952_v30  ;;  %v6382_v9 = vrot.slane %v6381_v52, 1 }
 0x4ea   :  { %v6427_v5 = vrot.slane %v6426_v55, 4  ;;  %v6403_v51 = vrot.slane %v6402_v25, 1  ;;  %v1478_v29 = vrot.slane %v11454_v48, 4  ;;  %v1492_v13 = vrot.slane %v11478_v46, 4 }
 0x4eb   :  { %v6374_v45 = vmax.f32 %v6372_v20, %v6373_v27  ;;  %8642 = vmatmul.mubr.msk.f32.vlgmr.msra.gmra.mrb[54].mxu0 %vm96_vm0, %v6638_v1  ;;  %8653 = vmatmul.mubr.msk.f32.vlgmr.msra.gmra.mrb[54].mxu1 %vm96_vm0, %v6721_v57  ;;  %v6410_v60 = vrot.slane %v6409_v16, 1  ;;  %v7000_v7 = vsel %vm12268_vm6, %v11437_v22, %v6999_v10  ;;  %v6397_v44 = vmax.f32 %v6395_v31, %v6396_v53  ;;  %vm12283_vm6 = vmmov %vm12270_vm3 }
 0x4ec   :  { %9144 = vmatpush3.bf16.xpose.msk.msra.mxu0 %vm9479_vm1, %v10634_v50  ;;  %9156 = vmatpush3.bf16.xpose.msk.msra.mxu1 %vm9479_vm1, %v10634_v50  ;;  %v6416_v30 = vmax.f32 %v6414_v11, %v6415_v12  ;;  %v1465_v32 = vmax.f32 %v11451_v4, %v1464_v36  ;;  %v7269_v26 = vsel %vm1935_vm15, %v11482_v18, %v7268_v21  ;;  %v1506_v12 = vrot.slane %v11502_v61, 4  ;;  %v12275_v21 = vld [vmem:[#allocation12_spill] sm:$0xff] }
 0x4ed   :  { %v11555_v47 = vpop.permute.xlu1 %3176  ;;  %8663 = vmatprep.mubr.msk.f32.mxu0 %vm96_vm0, %v11421_v59  ;;  %8674 = vmatprep.mubr.msk.f32.mxu1 %vm96_vm0, %v11424_v62  ;;  %v7240_v59 = vmul.f32 %v6369_v0, %v6369_v0  ;;  %v6375_v62 = vrot.slane %v6374_v45, 1  ;;  %v6423_v43 = vmax.f32 %v6421_v14, %v6422_v34  ;;  %v6383_v40 = vmax.f32 %v6381_v52, %v6382_v9 }
 0x4ee   :  { %9147 = vmatprep.subr.msk.bf16.mxu0 %vm9479_vm1, %v10654_v8  ;;  %9159 = vmatprep.subr.msk.bf16.mxu1 %vm9479_vm1, %v10654_v8  ;;  %v6428_v20 = vmax.f32 %v6426_v55, %v6427_v5  ;;  %v7139_v17 = vsel %vm12269_vm5, %v11515_v37, %v7138_v49  ;;  %v7243_v27 = vmul.f32 %v6390_v33, %v6390_v33  ;;  %v6417_v14 = vrot.slane %v6416_v30, 1  ;;  %v1416_v55 = vpop.permute.xlu0 %1415 }
 0x4ef   :  { %v6404_v1 = vmax.f32 %v6402_v25, %v6403_v51  ;;  %v1479_v57 = vmax.f32 %v11454_v48, %v1478_v29  ;;  %v1493_v28 = vmax.f32 %v11478_v46, %v1492_v13  ;;  %v11593_v22 = vmax.f32 %v6409_v16, %v6410_v60 }
 0x4f0   :  { %v6376_v31 = vmax.f32 %v6374_v45, %v6375_v62  ;;  %v7001_v4 = vsel %vm12270_vm3, %v11487_v56, %v7000_v7  ;;  %v7270_v18 = vsel %vm12271_vm7, %v11531_v15, %v7269_v26  ;;  %v7244_v52 = vmul.f32 %v6397_v44, %v6397_v44  ;;  %v11626_v62 = vpop.f32.mrb[46].mxu0  ;;  %vm12287_vm7 = vmmov %vm12269_vm5 }
 0x4f1   :  { %v11582_v63 = vpop.permute.xlu1 %3454  ;;  %v1466_v37 = vrot.slane %v1465_v32, 2  ;;  %v7140_v48 = vsel %vm12272_vm8, %v6369_v0, %v7139_v17  ;;  %v6424_v46 = vrot.slane %v6423_v43, 1  ;;  %v7142_v56 = vsel %vm430_vm2, %v6390_v33, %v6383_v40 }
 0x4f2   :  { %v7242_v25 = vmul.f32 %v6383_v40, %v6383_v40  ;;  %v6429_v16 = vrot.slane %v6428_v20, 2  ;;  %v7245_v15 = vmul.f32 %v6404_v1, %v6404_v1  ;;  %v1480_v45 = vrot.slane %v1479_v57, 2  ;;  %v12276_v40 = vld [vmem:[#allocation41_spill] sm:$0xff] }
 0x4f3   :  { %v1494_v49 = vrot.slane %v1493_v28, 2  ;;  %v7271_v53 = vsel %vm12273_vm9, %v7240_v59, %v7270_v18  ;;  %v11618_v0 = vmul.f32 %v11593_v22, %v11593_v22  ;;  %v1455_v36 = vmul.f32 %v1416_v55, %v10381_v23  ;;  %v11630_v18 = vpop.f32.mrb[47].mxu0  ;;  %vm12289_vm9 = vmmov %vm12270_vm3 }
 0x4f4   :  { %9150 = vmatpush3.bf16.xpose.msk.msra.mxu0 %vm9479_vm1, %v10654_v8  ;;  %9162 = vmatpush3.bf16.xpose.msk.msra.mxu1 %vm9479_vm1, %v10654_v8  ;;  %v7141_v34 = vsel %vm12274_vm10, %v6376_v31, %v7140_v48  ;;  %v1467_v9 = vmax.f32 %v1465_v32, %v1466_v37  ;;  %v7143_v5 = vsel %vm1931_vm13, %v6397_v44, %v7142_v56 }
 0x4f5   :  { %v11595_v11 = vpop.permute.xlu1 %3732  ;;  %9165 = vmatprep.subr.msk.bf16.mxu0 %vm9479_vm1, %v10634_v50  ;;  %9177 = vmatprep.subr.msk.bf16.mxu1 %vm9479_vm1, %v10634_v50  ;;  %v7241_v51 = vmul.f32 %v6376_v31, %v6376_v31  ;;  %v6418_v29 = vmax.f32 %v6416_v30, %v6417_v14  ;;  %v6425_v13 = vmax.f32 %v6423_v43, %v6424_v46  ;;  %v11635_v30 = vsel %vm96_vm0, %v1455_v36, -inf  ;;  %v12279_v36 = vld [vmem:[#allocation14_spill] sm:$0xff] }
 0x4f6   :  { %v7273_v59 = vsel %vm430_vm2, %v7243_v27, %v7242_v25  ;;  %v6430_v60 = vmax.f32 %v6428_v20, %v6429_v16  ;;  %v1481_v7 = vmax.f32 %v1479_v57, %v1480_v45  ;;  %v1495_v26 = vmax.f32 %v1493_v28, %v1494_v49  ;;  %v12278_v28 = vld [vmem:[#allocation13_spill] sm:$0xff]  ;;  %v11664_v49 = vpop.f32.mrb[48].mxu0 }
 0x4f7   :  { %v7151_v17 = vmul.f32 %v12276_v40, %v7141_v34  ;;  %v1507_v44 = vmax.f32 %v11502_v61, %v1506_v12  ;;  %v7144_v32 = vsel %vm1933_vm14, %v6404_v1, %v7143_v5  ;;  %v1468_v27 = vrot.slane %v1467_v9, 1  ;;  %v11667_v34 = vpop.f32.mrb[49].mxu0 }
 0x4f8   :  { %v7274_v57 = vsel %vm1931_vm13, %v7244_v52, %v7273_v59  ;;  %v7272_v1 = vsel %vm12277_vm11, %v7241_v51, %v7271_v53  ;;  %v7247_v14 = vmul.f32 %v6418_v29, %v6418_v29  ;;  %v11647_v37 = vmul.f32 %v6425_v13, %v6425_v13 }
 0x4f9   :  { %v1402_v10 = vpop.permute.xlu1 %1401  ;;  %v1520_v52 = vrot.slane %v11635_v30, 4  ;;  %v7145_v48 = vsel %vm1935_vm15, %v11593_v22, %v7144_v32  ;;  %v7275_v45 = vsel %vm1933_vm14, %v7245_v15, %v7274_v57  ;;  %v1469_v53 = vmax.f32 %v1467_v9, %v1468_v27 }
 0x4fa   :  { %v1448_v33 = vmul.f32 %v12275_v21, %v1402_v10  ;;  %v1496_v22 = vrot.slane %v1495_v26, 1  ;;  %v1508_v12 = vrot.slane %v1507_v44, 2  ;;  %v7146_v5 = vsel %vm12280_vm12, %v6418_v29, %v7145_v48  ;;  %v11674_v27 = vpop.f32.mrb[50].mxu0 }
 0x4fb   :  { %8664 = vmatmul.mubr.msk.f32.vlgmr.msra.gmra.mrb[56].mxu0 %vm96_vm0, %v11461_v41  ;;  %8675 = vmatmul.mubr.msk.f32.vlgmr.msra.gmra.mrb[56].mxu1 %vm96_vm0, %v7001_v4  ;;  %v6431_v41 = vrot.slane %v6430_v60, 1  ;;  %v1482_v4 = vrot.slane %v1481_v7, 1  ;;  %v7276_v15 = vsel %vm1935_vm15, %v11618_v0, %v7275_v45 }
 0x4fc   :  { %v1470_v23 = vsel %vm96_vm0, %v1448_v33, -inf  ;;  %9168 = vmatpush3.bf16.xpose.msk.msra.mxu0 %vm9479_vm1, %v10634_v50  ;;  %8685 = vmatprep.mubr.msk.f32.mxu0 %vm96_vm0, %v7151_v17  ;;  %v1497_v57 = vmax.f32 %v1495_v26, %v1496_v22  ;;  %v1509_v29 = vmax.f32 %v1507_v44, %v1508_v12 }
 0x4fd   :  { %v1471_v43 = vrot.slane %v1470_v23, 4  ;;  %v1406_v20 = vpop.permute.xlu1 %1405  ;;  %9180 = vmatpush3.bf16.xpose.msk.msra.mxu1 %vm9479_vm1, %v10634_v50  ;;  %8696 = vmatprep.mubr.msk.f32.mxu1 %vm96_vm0, %v7272_v1  ;;  %v6432_v21 = vmax.f32 %v6430_v60, %v6431_v41  ;;  %v1483_v59 = vmax.f32 %v1481_v7, %v1482_v4  ;;  %v7147_v60 = vsel %vm12281_vm4, %v6425_v13, %v7146_v5  ;;  %v12282_v7 = vld [vmem:[#allocation15_spill] sm:$0xff] }
 0x4fe   :  { %v1450_v31 = vmul.f32 %v12278_v28, %v1406_v20  ;;  %9171 = vmatprep.subr.msk.bf16.mxu0 %vm9479_vm1, %v10654_v8  ;;  %9183 = vmatprep.subr.msk.bf16.mxu1 %vm9479_vm1, %v10654_v8  ;;  %v11681_v28 = vpop.f32.mrb[51].mxu0  ;;  %v7277_v4 = vsel %vm12269_vm5, %v7247_v14, %v7276_v15  ;;  %v1510_v14 = vrot.slane %v1509_v29, 1 }
 0x4ff   :  { %v1472_v55 = vmax.f32 %v1470_v23, %v1471_v43  ;;  %v7148_v0 = vsel %vm12283_vm6, %v6432_v21, %v7147_v60  ;;  %v7249_v44 = vmul.f32 %v6432_v21, %v6432_v21 }
 0x500   :  { %v1484_v46 = vsel %vm96_vm0, %v1450_v31, -inf  ;;  %v7152_v22 = vmul.f32 %v11546_v35, %v7148_v0 }
 0x501   :  { %v1473_v56 = vrot.slane %v1472_v55, 2  ;;  %v1485_v50 = vrot.slane %v1484_v46, 4  ;;  %v1576_v25 = vmax.f32 %v1470_v23, %v1484_v46  ;;  %v1410_v16 = vpop.permute.xlu1 %1409  ;;  %v1521_v23 = vmax.f32 %v11635_v30, %v1520_v52 }
 0x502   :  { %v1452_v10 = vmul.f32 %v12279_v36, %v1410_v16  ;;  %v12284_v16 = vld [vmem:[#allocation16_spill] sm:$0xff] }
 0x503   :  { %v1474_v33 = vmax.f32 %v1472_v55, %v1473_v56  ;;  %v1486_v51 = vmax.f32 %v1484_v46, %v1485_v50  ;;  %v1522_v26 = vrot.slane %v1521_v23, 2 }
 0x504   :  { %v1498_v40 = vsel %vm96_vm0, %v1452_v10, -inf  ;;  %9174 = vmatpush3.bf16.xpose.msk.msra.mxu0 %vm9479_vm1, %v10654_v8 }
 0x505   :  { %v1475_v9 = vrot.slane %v1474_v33, 1  ;;  %v1487_v17 = vrot.slane %v1486_v51, 2  ;;  %v1499_v32 = vrot.slane %v1498_v40, 4  ;;  %v1578_v43 = vmax.f32 %v1576_v25, %v1498_v40  ;;  %v1414_v20 = vpop.permute.xlu1 %1413  ;;  %9186 = vmatpush3.bf16.xpose.msk.msra.mxu1 %vm9479_vm1, %v10654_v8  ;;  %vm12285_vm1 = vmmov %vm12281_vm4 }
 0x506   :  { %v1454_v1 = vmul.f32 %v12282_v7, %v1414_v20  ;;  %v7278_v10 = vsel %vm12285_vm1, %v11647_v37, %v7277_v4  ;;  %vm12288_vm8 = vmmov %vm12285_vm1 }
 0x507   :  { %v1476_v31 = vmax.f32 %v1474_v33, %v1475_v9  ;;  %v1488_v41 = vmax.f32 %v1486_v51, %v1487_v17  ;;  %v1500_v55 = vmax.f32 %v1498_v40, %v1499_v32  ;;  %v7279_v33 = vsel %vm12270_vm3, %v7249_v44, %v7278_v10 }
 0x508   :  { %v1512_v13 = vsel %vm96_vm0, %v1454_v1, -inf  ;;  %v1511_v17 = vmax.f32 %v1509_v29, %v1510_v14 }
 0x509   :  { %v7413_v52 = vsel %vm430_vm2, %v1476_v31, %v1469_v53  ;;  %v1489_v48 = vrot.slane %v1488_v41, 1  ;;  %v1501_v46 = vrot.slane %v1500_v55, 2  ;;  %v1513_v56 = vrot.slane %v1512_v13, 4  ;;  %v1418_v50 = vpop.permute.xlu1 %1417 }
 0x50a   :  { %v1580_v25 = vmax.f32 %v1578_v43, %v1512_v13  ;;  %v1456_v45 = vmul.f32 %v12284_v16, %v1418_v50  ;;  %v7414_v6 = vsel %vm1931_vm13, %v1483_v59, %v7413_v52  ;;  %v12286_v53 = vmax.f32 %v11485_v19, %v11502_v61 }
 0x50b   :  { %v1490_v8 = vmax.f32 %v1488_v41, %v1489_v48  ;;  %v1502_v12 = vmax.f32 %v1500_v55, %v1501_v46  ;;  %v1514_v36 = vmax.f32 %v1512_v13, %v1513_v56  ;;  %8686 = vmatmul.mubr.msk.f32.vlgmr.msra.gmra.mrb[58].mxu0 %vm96_vm0, %v7152_v22  ;;  %v1523_v19 = vmax.f32 %v1521_v23, %v1522_v26 }
 0x50c   :  { %v11698_v5 = vmax.f32 %v12286_v53, %v1580_v25  ;;  %v11701_v21 = vsel %vm96_vm0, %v1456_v45, -inf  ;;  %8697 = vmatmul.mubr.msk.f32.vlgmr.msra.gmra.mrb[58].mxu1 %vm96_vm0, %v7279_v33 }
 0x50d   :  { %v1503_v35 = vrot.slane %v1502_v12, 1  ;;  %v1515_v51 = vrot.slane %v1514_v36, 2  ;;  %v1527_v59 = vrot.slane %v11701_v21, 4  ;;  %v7415_v40 = vsel %vm1933_vm14, %v1490_v8, %v7414_v6 }
 0x50e   :  { %v7416_v37 = vsel %vm1935_vm15, %v1497_v57, %v7415_v40  ;;  %v1524_v7 = vrot.slane %v1523_v19, 1 }
 0x50f   :  { %v1504_v61 = vmax.f32 %v1502_v12, %v1503_v35  ;;  %v1516_v15 = vmax.f32 %v1514_v36, %v1515_v51  ;;  %v1528_v9 = vmax.f32 %v11701_v21, %v1527_v59 }
 0x510   :  { %v1525_v57 = vmax.f32 %v1523_v19, %v1524_v7 }
 0x511   :  { %v1517_v32 = vrot.slane %v1516_v15, 1  ;;  %v1529_v43 = vrot.slane %v1528_v9, 2  ;;  %v7417_v20 = vsel %vm12287_vm7, %v1504_v61, %v7416_v37 }
 0x512   :  { %v7418_v60 = vsel %vm12288_vm8, %v1511_v17, %v7417_v20  ;;  %v12291_v17 = vld [vmem:[#allocation31_spill] sm:$0xff] }
 0x513   :  { %v1530_v1 = vmax.f32 %v1528_v9, %v1529_v43  ;;  %v1518_v0 = vmax.f32 %v1516_v15, %v1517_v32  ;;  %v12290_v9 = vld [vmem:[#allocation2_spill] sm:$0xff] }
 0x514   :  { %v4818_v32 = vrot.slane %v12291_v17, %v12290_v9 }
 0x515   :  { %v1531_v31 = vrot.slane %v1530_v1, 1  ;;  %v11713_v41 = vsel %vm12289_vm9, %v1518_v0, %v7418_v60  ;;  %v12292_v60 = vld [vmem:[#allocation32_spill] sm:$0xff] }
 0x516   :  { %v4867_v7 = vrot.slane %v12292_v60, %v12290_v9 }
 0x517   :  { %v1532_v23 = vmax.f32 %v1530_v1, %v1531_v31  ;;  %v4826_v1 = vcombine.high %v4818_v32, %v4818_v32 }
 0x518   :  { %v4875_v0 = vcombine.high %v4867_v7, %v4867_v7 }
 0x519   :  { %v11716_v55 = vsel %vm430_vm2, %v1532_v23, %v1525_v57  ;;  %v11739_v31 = vrot.slane %v4826_v1, %v12290_v9  ;;  %v4834_v23 = vrot.slane %v4818_v32, %v12290_v9 }
 0x571   :  { %v11718_v26 = vpop.f32.mrb[52].mxu0  ;;  %v8632_v29 = vpop.f32.mrb[52].mxu1 }
 0x572   :  { %v11720_v44 = vpop.f32.mrb[53].mxu0  ;;  %9322 = vrsqrt.f32 %v8632_v29  ;;  %v6590_v13 = vpop.f32.mrb[53].mxu1  ;;  %vm6608_vm10 = vcmp.eq.f32.partialorder %v8632_v29, inf  ;;  %v6611_v46 = vand.u32 2147483648, %v8632_v29  ;;  %vm6610_vm11 = vcmp.eq.f32.partialorder %v8632_v29, 0.0 }
 0x573   :  { %9324 = vrsqrt.f32 %v6590_v13  ;;  %vm6601_vm12 = vcmp.eq.f32.partialorder %v6590_v13, inf  ;;  %v6604_v25 = vand.u32 2147483648, %v6590_v13  ;;  %vm6603_vm4 = vcmp.eq.f32.partialorder %v6590_v13, 0.0 }
 0x57c   :  { %v9323_v4 = vpop.eup %9322 }
 0x57d   :  { %v9325_v52 = vpop.eup %9324  ;;  %v6607_v48 = vmul.f32 %v9323_v4, %v8632_v29 }
 0x57e   :  { %v6600_v56 = vmul.f32 %v9325_v52, %v6590_v13  ;;  %v4883_v52 = vrot.slane %v4867_v7, %v12290_v9  ;;  %v12298_v7 = vld [vmem:[#allocation40_spill] sm:$0xff] }
 0x57f   :  { %v6609_v50 = vsel %vm6608_vm10, %v8632_v29, %v6607_v48  ;;  %v4897_v48 = vrot.slane %v4875_v0, %v12290_v9  ;;  %v1253_v1 = vcombine.high %v12298_v7, %v12298_v7 }
 0x580   :  { %v6612_v16 = vsel %vm6610_vm11, %v6611_v46, %v6609_v50  ;;  %v6602_v45 = vsel %vm6601_vm12, %v6590_v13, %v6600_v56  ;;  %v12293_v13 = vld [vmem:[#allocation39_spill] sm:$0xff] }
 0x581   :  { %6617 = vrot.lane.b32.xlu1 %v6612_v16, %s9427_s10  ;;  %v6605_v22 = vsel %vm6603_vm4, %v6604_v25, %v6602_v45  ;;  %v1251_v4 = vcombine.high %v12293_v13, %v12293_v13  ;;  %v12294_v56 = vld [vmem:[#allocation3_spill] sm:$0xff]  ;;  %v12299_v13 = vld [vmem:[#allocation34_spill] sm:$0xff] }
 0x582   :  { %6615 = vrot.lane.b32.xlu0 %v6605_v22, %s9427_s10  ;;  %v4916_v50 = vrot.slane %v11739_v31, %v12294_v56 }
 0x583   :  { %v1298_v0 = vrot.slane %v1251_v4, %v12294_v56 }
 0x5be   :  { %v11724_v6 = vpop.f32.mrb[54].mxu0  ;;  %v8654_v8 = vpop.f32.mrb[54].mxu1 }
 0x5bf   :  { %9326 = vrsqrt.f32 %v8654_v8  ;;  %v11726_v12 = vpop.f32.mrb[55].mxu0  ;;  %v6794_v36 = vpop.f32.mrb[55].mxu1  ;;  %vm6812_vm6 = vcmp.eq.f32.partialorder %v8654_v8, inf  ;;  %v6815_v33 = vand.u32 2147483648, %v8654_v8  ;;  %vm6814_vm5 = vcmp.eq.f32.partialorder %v8654_v8, 0.0 }
 0x5c0   :  { %9328 = vrsqrt.f32 %v6794_v36  ;;  %vm6805_vm1 = vcmp.eq.f32.partialorder %v6794_v36, inf  ;;  %v6808_v59 = vand.u32 2147483648, %v6794_v36  ;;  %vm6807_vm3 = vcmp.eq.f32.partialorder %v6794_v36, 0.0 }
 0x5c9   :  { %v9327_v10 = vpop.eup %9326 }
 0x5ca   :  { %v9329_v14 = vpop.eup %9328  ;;  %v6811_v53 = vmul.f32 %v9327_v10, %v8654_v8 }
 0x5cb   :  { %v6804_v35 = vmul.f32 %v9329_v14, %v6794_v36 }
 0x5cc   :  { %v6813_v51 = vsel %vm6812_vm6, %v8654_v8, %v6811_v53  ;;  %v4912_v8 = vrot.slane %v4834_v23, %v12294_v56 }
 0x5cd   :  { %v6816_v40 = vsel %vm6814_vm5, %v6815_v33, %v6813_v51  ;;  %v6806_v37 = vsel %vm6805_vm1, %v6794_v36, %v6804_v35  ;;  %v4948_v33 = vrot.slane %v4897_v48, %v12294_v56  ;;  %v4856_v35 = vcombine.high %v4834_v23, %v4834_v23 }
 0x5ce   :  { %v11728_v19 = vpop.f32.mrb[56].mxu0  ;;  %v8676_v61 = vpop.f32.mrb[56].mxu1  ;;  %6821 = vrot.lane.b32.xlu1 %v6816_v40, %s9427_s10  ;;  %v6809_v15 = vsel %vm6807_vm3, %v6808_v59, %v6806_v37  ;;  %v12296_v40 = vld [vmem:[#allocation5_spill] sm:$0xff]  ;;  %v4905_v23 = vcombine.high %v4883_v52, %v4883_v52  ;;  %vm12318_vm5 = vcmask 1047559  }
 0x5cf   :  { %9330 = vrsqrt.f32 %v8676_v61  ;;  %v11733_v43 = vpop.f32.mrb[57].mxu0  ;;  %v7072_v20 = vpop.f32.mrb[57].mxu1  ;;  %6819 = vrot.lane.b32.xlu0 %v6809_v15, %s9427_s10  ;;  %vm7090_vm7 = vcmp.eq.f32.partialorder %v8676_v61, inf  ;;  %v7093_v25 = vand.u32 2147483648, %v8676_v61  ;;  %vm7092_vm8 = vcmp.eq.f32.partialorder %v8676_v61, 0.0  ;;  %v12297_v15 = vld [vmem:[#allocation33_spill] sm:$0xff] }
 0x5d0   :  { %9332 = vrsqrt.f32 %v7072_v20  ;;  %vm7083_vm9 = vcmp.eq.f32.partialorder %v7072_v20, inf  ;;  %v7086_v22 = vand.u32 2147483648, %v7072_v20  ;;  %vm7085_vm10 = vcmp.eq.f32.partialorder %v7072_v20, 0.0 }
 0x5d1   :  { %v1206_v37 = vcombine.high %v12296_v40, %v12296_v40  ;;  %v4990_v32 = vmul.f32 %v4916_v50, %v12297_v15 }
 0x5d3   :  { %v1220_v50 = vrot.slane %v1206_v37, %v12290_v9 }
 0x5d9   :  { %v9331_v57 = vpop.eup %9330 }
 0x5da   :  { %v9333_v29 = vpop.eup %9332  ;;  %v7089_v46 = vmul.f32 %v9331_v57, %v8676_v61  ;;  %v4989_v57 = vmul.f32 %v4912_v8, %v12297_v15  ;;  %v4907_v8 = vcombine.high %v4897_v48, %v4897_v48 }
 0x5db   :  { %v7082_v16 = vmul.f32 %v9333_v29, %v7072_v20  ;;  %v4811_v29 = vcombine.high %v12291_v17, %v12291_v17 }
 0x5dc   :  { %v7091_v45 = vsel %vm7090_vm7, %v8676_v61, %v7089_v46  ;;  %v4944_v61 = vrot.slane %v4883_v52, %v12294_v56  ;;  %v4998_v46 = vmul.f32 %v4948_v33, %v12299_v13  ;;  %v4860_v52 = vcombine.high %v12292_v60, %v12292_v60 }
 0x5dd   :  { %v7094_v36 = vsel %vm7092_vm8, %v7093_v25, %v7091_v45  ;;  %v7084_v10 = vsel %vm7083_vm9, %v7072_v20, %v7082_v16  ;;  %v4920_v25 = vrot.slane %v4856_v35, %v12294_v56  ;;  %v5006_v45 = vmax.f32 %v4990_v32, 1e-08  ;;  %vm12324_vm9 = vmmov %vm12318_vm5 }
 0x5de   :  { %v11749_v14 = vpop.f32.mrb[58].mxu0  ;;  %7099 = vrot.lane.b32.xlu1 %v7094_v36, %s9428_s11  ;;  %v7087_v53 = vsel %vm7085_vm10, %v7086_v22, %v7084_v10  ;;  %v4997_v16 = vmul.f32 %v4944_v61, %v12299_v13  ;;  %v1302_v22 = vrot.slane %v1253_v1, %v12294_v56  ;;  %v12300_v36 = vld [vmem:[#allocation7_spill] sm:$0xff]  ;;  %v5005_v10 = vmax.f32 %v4989_v57, 1e-08 }
 0x5df   :  { %v8698_v51 = vpop.f32.mrb[58].mxu1  ;;  %v11753_v59 = vpop.f32.mrb[59].mxu0  ;;  %7097 = vrot.lane.b32.xlu0 %v7087_v53, %s9428_s11  ;;  %v1345_v4 = vmul.f32 %v1298_v0, %v12300_v36  ;;  %v4952_v53 = vrot.slane %v4905_v23, %v12294_v56  ;;  %v4825_v33 = vrot.slane %v4811_v29, %v12290_v9  ;;  %v4858_v35 = vcombine.high %v11739_v31, %v11739_v31 }
 0x5e0   :  { %12295 = vst [vmem:[#allocation12_spill] sm:$0xff] %v11753_v59  ;;  %9334 = vrsqrt.f32 %v8698_v51  ;;  %v7350_v20 = vpop.f32.mrb[59].mxu1  ;;  %v4991_v37 = vmul.f32 %v4920_v25, %v12297_v15  ;;  %v5014_v61 = vmax.f32 %v4998_v46, 1e-08  ;;  %v1222_v32 = vcombine.high %v1220_v50, %v1220_v50 }
 0x5e1   :  { %9336 = vrsqrt.f32 %v7350_v20  ;;  %v5013_v7 = vmax.f32 %v4997_v16, 1e-08  ;;  %v11780_v1 = vrot.slane %v1220_v50, %v12290_v9  ;;  %v1346_v0 = vmul.f32 %v1302_v22, %v12300_v36 }
 0x5e2   :  { %9338 = vrcp.f32 %v5006_v45  ;;  %v1361_v48 = vmax.f32 %v1345_v4, 1e-08  ;;  %v4874_v23 = vrot.slane %v4860_v52, %v12290_v9  ;;  %v4956_v29 = vrot.slane %v4907_v8, %v12294_v56 }
 0x5e3   :  { %9340 = vrcp.f32 %v5005_v10  ;;  %v4999_v31 = vmul.f32 %v4952_v53, %v12299_v13  ;;  %v11787_v25 = vrot.slane %v4825_v33, %v12290_v9  ;;  %v4924_v16 = vrot.slane %v4858_v35, %v12294_v56 }
 0x5e4   :  { %9342 = vrcp.f32 %v5014_v61  ;;  %v5007_v50 = vmax.f32 %v4991_v37, 1e-08  ;;  %vm7368_vm11 = vcmp.eq.f32.partialorder %v8698_v51, inf  ;;  %v7371_v22 = vand.u32 2147483648, %v8698_v51 }
 0x5e5   :  { %9344 = vrcp.f32 %v5013_v7  ;;  %vm7370_vm12 = vcmp.eq.f32.partialorder %v8698_v51, 0.0  ;;  %vm7361_vm4 = vcmp.eq.f32.partialorder %v7350_v20, inf  ;;  %v7364_v10 = vand.u32 2147483648, %v7350_v20 }
 0x5e6   :  { %v11791_v52 = vrot.slane %v1222_v32, %v12290_v9  ;;  %vm7363_vm6 = vcmp.eq.f32.partialorder %v7350_v20, 0.0  ;;  %v1306_v35 = vrot.slane %v11780_v1, %v12294_v56  ;;  %9346 = vrcp.f32 %v1361_v48 }
 0x5e7   :  { %v1362_v61 = vmax.f32 %v1346_v0, 1e-08  ;;  %v5000_v7 = vmul.f32 %v4956_v29, %v12299_v13  ;;  %9348 = vrcp.f32 %v5007_v50  ;;  %v4992_v32 = vmul.f32 %v4924_v16, %v12297_v15 }
 0x5e8   :  { %v1310_v0 = vrot.slane %v11791_v52, %v12294_v56  ;;  %v1347_v48 = vmul.f32 %v1306_v35, %v12300_v36  ;;  %vm7506_vm10 = vcmask 785408  }
 0x5e9   :  { %9350 = vrcp.f32 %v1362_v61  ;;  %v5008_v50 = vmax.f32 %v4992_v32, 1e-08 }
 0x5ea   :  { %v9335_v57 = vpop.eup %9334 }
 0x5eb   :  { %v9337_v46 = vpop.eup %9336  ;;  %v7367_v45 = vmul.f32 %v9335_v57, %v8698_v51  ;;  %v4876_v57 = vcombine.high %v4874_v23, %v4874_v23 }
 0x5ec   :  { %v7360_v59 = vmul.f32 %v9337_v46, %v7350_v20  ;;  %v5015_v46 = vmax.f32 %v4999_v31, 1e-08 }
 0x5ed   :  { %v7369_v4 = vsel %vm7368_vm11, %v8698_v51, %v7367_v45  ;;  %v4928_v51 = vrot.slane %v11787_v25, %v12294_v56  ;;  %v9339_v45 = vpop.eup %9338  ;;  %v4904_v29 = vrot.slane %v4876_v57, %v12290_v9 }
 0x5ee   :  { %v7372_v8 = vsel %vm7370_vm12, %v7371_v22, %v7369_v4  ;;  %v7362_v53 = vsel %vm7361_vm4, %v7350_v20, %v7360_v59  ;;  %v4890_v59 = vrot.slane %v4874_v23, %v12290_v9  ;;  %v4827_v20 = vcombine.high %v4825_v33, %v4825_v33  ;;  %v9341_v22 = vpop.eup %9340 }
 0x5ef   :  { %7377 = vrot.lane.b32.xlu1 %v7372_v8, %s9428_s11  ;;  %v7365_v37 = vsel %vm7363_vm6, %v7364_v10, %v7362_v53  ;;  %v4993_v4 = vmul.f32 %v4928_v51, %v12297_v15  ;;  %v5016_v33 = vmax.f32 %v5000_v7, 1e-08  ;;  %v9343_v23 = vpop.eup %9342  ;;  %9352 = vrcp.f32 %v5015_v46 }
 0x5f0   :  { %7375 = vrot.lane.b32.xlu0 %v7365_v37, %s9428_s11  ;;  %v4960_v31 = vrot.slane %v4890_v59, %v12294_v56  ;;  %v4855_v16 = vrot.slane %v4827_v20, %v12290_v9  ;;  %v9345_v10 = vpop.eup %9344  ;;  %v1252_v8 = vcombine.high %v11780_v1, %v11780_v1  ;;  %v1348_v53 = vmul.f32 %v1310_v0, %v12300_v36 }
 0x5f1   :  { %v4964_v35 = vrot.slane %v4904_v29, %v12294_v56  ;;  %v4857_v37 = vcombine.high %v11787_v25, %v11787_v25  ;;  %9354 = vrcp.f32 %v5016_v33  ;;  %v5009_v61 = vmax.f32 %v4993_v4, 1e-08  ;;  %v9347_v9 = vpop.eup %9346 }
 0x5f2   :  { %v5001_v57 = vmul.f32 %v4960_v31, %v12299_v13  ;;  %v4932_v7 = vrot.slane %v4855_v16, %v12294_v56  ;;  %9356 = vrcp.f32 %v5008_v50  ;;  %v1363_v1 = vmax.f32 %v1347_v48, 1e-08  ;;  %v9349_v51 = vpop.eup %9348 }
 0x5f3   :  { %5055 = vrot.lane.b32.xlu1 %v9339_v45, %s9428_s11  ;;  %v1254_v20 = vcombine.high %v11791_v52, %v11791_v52  ;;  %v1314_v32 = vrot.slane %v1252_v8, %v12294_v56  ;;  %v5002_v25 = vmul.f32 %v4964_v35, %v12299_v13  ;;  %v4936_v46 = vrot.slane %v4857_v37, %v12294_v56  ;;  %v9351_v4 = vpop.eup %9350 }
 0x5f4   :  { %5053 = vrot.lane.b32.xlu0 %v9341_v22, %s9428_s11  ;;  %9358 = vrcp.f32 %v5009_v61  ;;  %v1364_v45 = vmax.f32 %v1348_v53, 1e-08  ;;  %v4906_v22 = vcombine.high %v4890_v59, %v4890_v59  ;;  %v4994_v0 = vmul.f32 %v4932_v7, %v12297_v15 }
 0x5f5   :  { %9360 = vrcp.f32 %v1363_v1  ;;  %v5017_v48 = vmax.f32 %v5001_v57, 1e-08  ;;  %v1318_v52 = vrot.slane %v1254_v20, %v12294_v56  ;;  %v4908_v31 = vcombine.high %v4904_v29, %v4904_v29 }
 0x5f6   :  { %v4995_v50 = vmul.f32 %v4936_v46, %v12297_v15  ;;  %9362 = vrcp.f32 %v1364_v45  ;;  %v4968_v59 = vrot.slane %v4906_v22, %v12294_v56  ;;  %v4859_v8 = vcombine.high %v4855_v16, %v4855_v16 }
 0x5f7   :  { %5071 = vrot.lane.b32.xlu1 %v9343_v23, %s9428_s11  ;;  %v1349_v23 = vmul.f32 %v1314_v32, %v12300_v36  ;;  %9364 = vrcp.f32 %v5017_v48  ;;  %v5010_v53 = vmax.f32 %v4994_v0, 1e-08  ;;  %v1350_v61 = vmul.f32 %v1318_v52, %v12300_v36  ;;  %v12301_v48 = vld [vmem:[#allocation4_spill] sm:$0xff] }
 0x5f8   :  { %5069 = vrot.lane.b32.xlu0 %v9345_v10, %s9428_s11  ;;  %v5018_v10 = vmax.f32 %v5002_v25, 1e-08  ;;  %v5011_v29 = vmax.f32 %v4995_v50, 1e-08  ;;  %v5003_v57 = vmul.f32 %v4968_v59, %v12299_v13  ;;  %v4940_v7 = vrot.slane %v4859_v8, %v12294_v56  ;;  %v12303_v59 = vld [vmem:[#allocation6_spill] sm:$0xff] }
 0x5f9   :  { %v9353_v33 = vpop.eup %9352  ;;  %v1365_v16 = vmax.f32 %v1349_v23, 1e-08  ;;  %v1366_v32 = vmax.f32 %v1350_v61, 1e-08  ;;  %v3180_v8 = vmul.f32 %v11391_v54, %v12303_v59  ;;  %v3459_v61 = vmul.f32 %v11582_v63, %v12296_v40 }
 0x5fa   :  { %9366 = vrcp.f32 %v5018_v10  ;;  %v4996_v25 = vmul.f32 %v4940_v7, %v12297_v15  ;;  %v5019_v46 = vmax.f32 %v5003_v57, 1e-08  ;;  %v3181_v10 = vmul.f32 %v11555_v47, %v12300_v36 }
 0x5fb   :  { %5057 = vrot.lane.b32.xlu1 %v9349_v51, %s9428_s11  ;;  %v9355_v35 = vpop.eup %9354  ;;  %9368 = vrcp.f32 %v5010_v53  ;;  %v3182_v47 = vmax.f32 %v3180_v8, 1e-08  ;;  %v3461_v54 = vmax.f32 %v3459_v61, 1e-08  ;;  %v3737_v7 = vmul.f32 %v11595_v11, %v12300_v36 }
 0x5fc   :  { %1419 = vrot.lane.b32.xlu0 %v9347_v9, %s9428_s11  ;;  %v9357_v37 = vpop.eup %9356  ;;  %v4972_v9 = vrot.slane %v4908_v31, %v12294_v56  ;;  %9370 = vrcp.f32 %v5011_v29  ;;  %v2977_v56 = vmul.f32 %v11537_v24, %v12296_v40  ;;  %v5012_v52 = vmax.f32 %v4996_v25, 1e-08 }
 0x5fd   :  { %9372 = vrcp.f32 %v1365_v16  ;;  %v3736_v40 = vmul.f32 %v11411_v2, %v12303_v59  ;;  %v6618_v16 = vpop.permute.xlu1 %6617 }
 0x5fe   :  { %v9359_v1 = vpop.eup %9358  ;;  %v5004_v20 = vmul.f32 %v4972_v9, %v12299_v13  ;;  %9374 = vrcp.f32 %v1366_v32  ;;  %v2979_v50 = vmax.f32 %v2977_v56, 1e-08  ;;  %v3458_v9 = vmul.f32 %v11403_v39, %v12301_v48 }
 0x5ff   :  { %1421 = vrot.lane.b32.xlu1 %v9351_v4, %s9428_s11  ;;  %v9361_v51 = vpop.eup %9360  ;;  %v12302_v4 = vld [vmem:[#allocation42_spill] sm:$0xff]  ;;  %9376 = vrcp.f32 %v5019_v46  ;;  %v6622_v32 = vmul.f32 %v6618_v16, %v12292_v60  ;;  %v3738_v11 = vmax.f32 %v3736_v40, 1e-08 }
 0x600   :  { %5073 = vrot.lane.b32.xlu0 %v9353_v33, %s9428_s11  ;;  %v9363_v45 = vpop.eup %9362  ;;  %v5020_v0 = vmax.f32 %v5004_v20, 1e-08  ;;  %v2976_v33 = vmul.f32 %v12302_v4, %v12301_v48  ;;  %v3460_v63 = vmax.f32 %v3458_v9, 1e-08  ;;  %v3739_v20 = vmax.f32 %v3737_v7, 1e-08 }
 0x601   :  { %v9365_v22 = vpop.eup %9364  ;;  %v6624_v2 = vmax.f32 %v6622_v32, 1e-08 }
 0x602   :  { %9378 = vrcp.f32 %v5020_v0  ;;  %v2978_v24 = vmax.f32 %v2976_v33, 1e-08 }
 0x603   :  { %5075 = vrot.lane.b32.xlu1 %v9355_v35, %s9428_s11  ;;  %9380 = vrcp.f32 %v5012_v52 }
 0x604   :  { %5059 = vrot.lane.b32.xlu0 %v9357_v37, %s9428_s11  ;;  %v9367_v23 = vpop.eup %9366  ;;  %9382 = vrcp.f32 %v2979_v50  ;;  %v3183_v37 = vmax.f32 %v3181_v10, 1e-08 }
 0x605   :  { %v9369_v31 = vpop.eup %9368  ;;  %9384 = vrcp.f32 %v2978_v24 }
 0x606   :  { %v9371_v53 = vpop.eup %9370  ;;  %9386 = vrcp.f32 %v3183_v37 }
 0x607   :  { %5061 = vrot.lane.b32.xlu1 %v9359_v1, %s9428_s11  ;;  %v9373_v35 = vpop.eup %9372  ;;  %9388 = vrcp.f32 %v3182_v47 }
 0x608   :  { %1423 = vrot.lane.b32.xlu0 %v9361_v51, %s9428_s11  ;;  %v9375_v29 = vpop.eup %9374  ;;  %v6616_v51 = vpop.permute.xlu0 %6615  ;;  %9390 = vrcp.f32 %v3461_v54 }
 0x609   :  { %v9377_v57 = vpop.eup %9376  ;;  %9392 = vrcp.f32 %v3460_v63  ;;  %v6621_v36 = vmul.f32 %v6616_v51, %v12291_v17 }
 0x60a   :  { %9394 = vrcp.f32 %v3739_v20 }
 0x60b   :  { %1425 = vrot.lane.b32.xlu1 %v9363_v45, %s9428_s11  ;;  %9396 = vrcp.f32 %v3738_v11  ;;  %v6623_v45 = vmax.f32 %v6621_v36, 1e-08 }
 0x60c   :  { %5077 = vrot.lane.b32.xlu0 %v9365_v22, %s9428_s11  ;;  %v9379_v1 = vpop.eup %9378  ;;  %9398 = vrcp.f32 %v6624_v2 }
 0x60d   :  { %v9381_v39 = vpop.eup %9380  ;;  %9400 = vrcp.f32 %v6623_v45 }
 0x60e   :  { %v9383_v25 = vpop.eup %9382 }
 0x60f   :  { %5079 = vrot.lane.b32.xlu1 %v9367_v23, %s9428_s11  ;;  %v9385_v46 = vpop.eup %9384 }
 0x610   :  { %5063 = vrot.lane.b32.xlu0 %v9369_v31, %s9428_s11  ;;  %v9387_v22 = vpop.eup %9386 }
 0x611   :  { %v9389_v56 = vpop.eup %9388 }
 0x612   :  { %v9391_v0 = vpop.eup %9390 }
 0x613   :  { %5065 = vrot.lane.b32.xlu1 %v9371_v53, %s9428_s11  ;;  %v9393_v48 = vpop.eup %9392 }
 0x614   :  { %1427 = vrot.lane.b32.xlu0 %v9373_v35, %s9428_s11  ;;  %v9395_v4 = vpop.eup %9394 }
 0x615   :  { %v9397_v33 = vpop.eup %9396 }
 0x616   :  { %v9399_v52 = vpop.eup %9398 }
 0x617   :  { %1429 = vrot.lane.b32.xlu1 %v9375_v29, %s9428_s11  ;;  %v9401_v23 = vpop.eup %9400 }
 0x618   :  { %5081 = vrot.lane.b32.xlu0 %v9377_v57, %s9428_s11 }
 0x61b   :  { %5083 = vrot.lane.b32.xlu1 %v9379_v1, %s9428_s11 }
 0x61c   :  { %5067 = vrot.lane.b32.xlu0 %v9381_v39, %s9428_s11 }
 0x61f   :  { %2986 = vrot.lane.b32.xlu1 %v9383_v25, %s9427_s10 }
 0x620   :  { %2984 = vrot.lane.b32.xlu0 %v9385_v46, %s9427_s10 }
 0x623   :  { %3190 = vrot.lane.b32.xlu1 %v9387_v22, %s9427_s10 }
 0x624   :  { %3188 = vrot.lane.b32.xlu0 %v9389_v56, %s9427_s10 }
 0x627   :  { %3468 = vrot.lane.b32.xlu1 %v9391_v0, %s9429_s3 }
 0x628   :  { %3466 = vrot.lane.b32.xlu0 %v9393_v48, %s9429_s3 }
 0x62b   :  { %3746 = vrot.lane.b32.xlu1 %v9395_v4, %s9429_s3 }
 0x62c   :  { %3744 = vrot.lane.b32.xlu0 %v9397_v33, %s9429_s3 }
 0x62f   :  { %6631 = vrot.lane.b32.xlu1 %v9399_v52, %s9427_s10  ;;  %v12304_v52 = vld [vmem:[#allocation44_spill] sm:$0xff] }
 0x630   :  { %6629 = vrot.lane.b32.xlu0 %v9401_v23, %s9427_s10 }
 0x640   :  { %v6822_v31 = vpop.permute.xlu1 %6821 }
 0x641   :  { %v6826_v50 = vmul.f32 %v6822_v31, %v12299_v13  ;;  %v6820_v10 = vpop.permute.xlu0 %6819 }
 0x642   :  { %v6825_v24 = vmul.f32 %v6820_v10, %v12297_v15  ;;  %v12305_v10 = vld [vmem:[#allocation18_spill] sm:$0xff] }
 0x643   :  { %v6828_v59 = vmax.f32 %v6826_v50, 1e-08 }
 0x644   :  { %v6827_v8 = vmax.f32 %v6825_v24, 1e-08 }
 0x645   :  { %9402 = vrcp.f32 %v6828_v59 }
 0x646   :  { %9404 = vrcp.f32 %v6827_v8 }
 0x64f   :  { %v9403_v53 = vpop.eup %9402 }
 0x650   :  { %v9405_v35 = vpop.eup %9404  ;;  %v7100_v37 = vpop.permute.xlu1 %7099  ;;  %6835 = vrot.lane.b32.xlu1 %v9403_v53, %s9427_s10 }
 0x651   :  { %v7104_v61 = vmul.f32 %v7100_v37, %v12292_v60  ;;  %v7098_v47 = vpop.permute.xlu0 %7097  ;;  %6833 = vrot.lane.b32.xlu0 %v9405_v35, %s9427_s10 }
 0x652   :  { %v7103_v9 = vmul.f32 %v7098_v47, %v12291_v17 }
 0x653   :  { %v7106_v29 = vmax.f32 %v7104_v61, 1e-08 }
 0x654   :  { %v7105_v57 = vmax.f32 %v7103_v9, 1e-08 }
 0x655   :  { %9406 = vrcp.f32 %v7106_v29 }
 0x656   :  { %9408 = vrcp.f32 %v7105_v57 }
 0x65f   :  { %v9407_v54 = vpop.eup %9406 }
 0x660   :  { %v9409_v7 = vpop.eup %9408  ;;  %7113 = vrot.lane.b32.xlu1 %v9407_v54, %s9429_s3 }
 0x661   :  { %v7378_v63 = vpop.permute.xlu1 %7377  ;;  %7111 = vrot.lane.b32.xlu0 %v9409_v7, %s9429_s3 }
 0x662   :  { %v7382_v40 = vmul.f32 %v7378_v63, %v12299_v13  ;;  %v7376_v16 = vpop.permute.xlu0 %7375 }
 0x663   :  { %v7381_v60 = vmul.f32 %v7376_v16, %v12297_v15 }
 0x664   :  { %v7384_v1 = vmax.f32 %v7382_v40, 1e-08  ;;  %v12306_v40 = vld [vmem:[#allocation17_spill] sm:$0xff] }
 0x665   :  { %v7383_v51 = vmax.f32 %v7381_v60, 1e-08  ;;  %v5056_v39 = vpop.permute.xlu1 %5055 }
 0x666   :  { %9410 = vrcp.f32 %v7384_v1  ;;  %v5102_v17 = vmul.f32 %v11463_v3, %v5056_v39  ;;  %v5054_v20 = vpop.permute.xlu0 %5053 }
 0x667   :  { %9412 = vrcp.f32 %v7383_v51  ;;  %v5101_v32 = vmul.f32 %v5054_v20, %v11468_v38 }
 0x668   :  { %v11896_v11 = vsel %vm96_vm0, %v5102_v17, -inf }
 0x669   :  { %v5125_v36 = vrot.slane %v11896_v11, 4  ;;  %v11900_v13 = vsel %vm96_vm0, %v5101_v32, -inf  ;;  %v5072_v25 = vpop.permute.xlu1 %5071 }
 0x66a   :  { %v5118_v15 = vrot.slane %v11900_v13, 4  ;;  %v5110_v46 = vmul.f32 %v11541_v58, %v5072_v25  ;;  %v5070_v2 = vpop.permute.xlu0 %5069 }
 0x66b   :  { %v5126_v3 = vmax.f32 %v11896_v11, %v5125_v36  ;;  %v5109_v45 = vmul.f32 %v5070_v2, %v11549_v42 }
 0x66c   :  { %v5119_v38 = vmax.f32 %v11900_v13, %v5118_v15  ;;  %v11908_v22 = vsel %vm96_vm0, %v5110_v46, -inf }
 0x66d   :  { %v5127_v56 = vrot.slane %v5126_v3, 2  ;;  %v5181_v0 = vrot.slane %v11908_v22, 4  ;;  %v11912_v48 = vsel %vm96_vm0, %v5109_v45, -inf  ;;  %v5058_v4 = vpop.permute.xlu1 %5057 }
 0x66e   :  { %v5120_v33 = vrot.slane %v5119_v38, 2  ;;  %v5174_v58 = vrot.slane %v11912_v48, 4  ;;  %v5103_v23 = vmul.f32 %v5058_v4, %v12304_v52  ;;  %v1420_v31 = vpop.permute.xlu0 %1419 }
 0x66f   :  { %v5128_v50 = vmax.f32 %v5126_v3, %v5127_v56  ;;  %v5182_v42 = vmax.f32 %v11908_v22, %v5181_v0  ;;  %v1457_v24 = vmul.f32 %v1420_v31, %v12305_v10 }
 0x670   :  { %v9411_v59 = vpop.eup %9410  ;;  %v5121_v8 = vmax.f32 %v5119_v38, %v5120_v33  ;;  %v5175_v53 = vmax.f32 %v11912_v48, %v5174_v58  ;;  %v11920_v35 = vsel %vm96_vm0, %v5103_v23, -inf }
 0x671   :  { %v9413_v37 = vpop.eup %9412  ;;  %v5129_v61 = vrot.slane %v5128_v50, 1  ;;  %v5183_v47 = vrot.slane %v5182_v42, 2  ;;  %v5132_v9 = vrot.slane %v11920_v35, 4  ;;  %v5229_v29 = vmax.f32 %v11900_v13, %v11920_v35  ;;  %7391 = vrot.lane.b32.xlu1 %v9411_v59, %s9429_s3  ;;  %v1422_v57 = vpop.permute.xlu1 %1421 }
 0x672   :  { %v5122_v54 = vrot.slane %v5121_v8, 1  ;;  %v5176_v7 = vrot.slane %v5175_v53, 2  ;;  %v11927_v63 = vsel %vm96_vm0, %v1457_v24, -inf  ;;  %v1458_v16 = vmul.f32 %v12306_v40, %v1422_v57  ;;  %7389 = vrot.lane.b32.xlu0 %v9413_v37, %s9429_s3  ;;  %v5074_v60 = vpop.permute.xlu0 %5073 }
 0x673   :  { %v5130_v1 = vmax.f32 %v5128_v50, %v5129_v61  ;;  %v5184_v51 = vmax.f32 %v5182_v42, %v5183_v47  ;;  %v5133_v39 = vmax.f32 %v11920_v35, %v5132_v9  ;;  %v1534_v17 = vrot.slane %v11927_v63, 4  ;;  %v12307_v42 = vld [vmem:[#allocation43_spill] sm:$0xff] }
 0x674   :  { %v5123_v20 = vmax.f32 %v5121_v8, %v5122_v54  ;;  %v5177_v32 = vmax.f32 %v5175_v53, %v5176_v7  ;;  %v1582_v36 = vmax.f32 %v11635_v30, %v11927_v63  ;;  %v11936_v25 = vsel %vm96_vm0, %v1458_v16, -inf }
 0x675   :  { %v5185_v15 = vrot.slane %v5184_v51, 1  ;;  %v5134_v46 = vrot.slane %v5133_v39, 2  ;;  %v1535_v2 = vmax.f32 %v11927_v63, %v1534_v17  ;;  %v1541_v3 = vrot.slane %v11936_v25, 4  ;;  %v5076_v45 = vpop.permute.xlu1 %5075 }
 0x676   :  { %v7465_v38 = vsel %vm430_vm2, %v5130_v1, %v5123_v20  ;;  %v5178_v56 = vrot.slane %v5177_v32, 1  ;;  %v1583_v0 = vmax.f32 %v11701_v21, %v11936_v25  ;;  %v5111_v4 = vmul.f32 %v5074_v60, %v11630_v18  ;;  %v5060_v33 = vpop.permute.xlu0 %5059  ;;  %7427 = vrot.lane.b32.xlu0 %v11713_v41, %s9429_s3  ;;  %v12308_v20 = vld [vmem:[#allocation46_spill] sm:$0xff] }
 0x677   :  { %v5186_v30 = vmax.f32 %v5184_v51, %v5185_v15  ;;  %v5135_v58 = vmax.f32 %v5133_v39, %v5134_v46  ;;  %v1536_v52 = vrot.slane %v1535_v2, 2  ;;  %v5112_v50 = vmul.f32 %v11626_v62, %v5076_v45 }
 0x678   :  { %v5179_v23 = vmax.f32 %v5177_v32, %v5178_v56  ;;  %v11947_v31 = vsel %vm96_vm0, %v5111_v4, -inf  ;;  %v5104_v10 = vmul.f32 %v12307_v42, %v5060_v33  ;;  %v1542_v21 = vmax.f32 %v11936_v25, %v1541_v3  ;;  %v12309_v25 = vld [vmem:[#allocation20_spill] sm:$0xff]  ;;  %v12310_v3 = vld [vmem:[#allocation19_spill] sm:$0xff] }
 0x679   :  { %v5136_v24 = vrot.slane %v5135_v58, 1  ;;  %v1537_v59 = vmax.f32 %v1535_v2, %v1536_v52  ;;  %v5188_v18 = vrot.slane %v11947_v31, 4  ;;  %v5062_v8 = vpop.permute.xlu1 %5061  ;;  %v5236_v53 = vmax.f32 %v11912_v48, %v11947_v31 }
 0x67a   :  { %v7472_v41 = vsel %vm430_vm2, %v5186_v30, %v5179_v23  ;;  %v11957_v37 = vsel %vm96_vm0, %v5112_v50, -inf  ;;  %v11960_v61 = vsel %vm96_vm0, %v5104_v10, -inf  ;;  %v1424_v62 = vpop.permute.xlu0 %1423  ;;  %v1543_v60 = vrot.slane %v1542_v21, 2 }
 0x67b   :  { %v5137_v47 = vmax.f32 %v5135_v58, %v5136_v24  ;;  %v1538_v9 = vrot.slane %v1537_v59, 1  ;;  %v5189_v57 = vmax.f32 %v11947_v31, %v5188_v18  ;;  %v5195_v54 = vrot.slane %v11957_v37, 4 }
 0x67c   :  { %v5237_v7 = vmax.f32 %v11908_v22, %v11957_v37  ;;  %v5139_v63 = vrot.slane %v11960_v61, 4  ;;  %v5230_v48 = vmax.f32 %v11896_v11, %v11960_v61  ;;  %v5105_v32 = vmul.f32 %v5062_v8, %v12308_v20 }
 0x67d   :  { %v11970_v40 = vsel %vm1931_vm13, %v5137_v47, %v7465_v38  ;;  %v1539_v16 = vmax.f32 %v1537_v59, %v1538_v9  ;;  %v5190_v1 = vrot.slane %v5189_v57, 2  ;;  %v1426_v51 = vpop.permute.xlu1 %1425  ;;  %v5196_v39 = vmax.f32 %v11957_v37, %v5195_v54 }
 0x67e   :  { %v5140_v17 = vmax.f32 %v11960_v61, %v5139_v63  ;;  %v1459_v22 = vmul.f32 %v1424_v62, %v12309_v25  ;;  %v5078_v15 = vpop.permute.xlu0 %5077  ;;  %v1460_v45 = vmul.f32 %v12310_v3, %v1426_v51  ;;  %v5145_v56 = vsel %vm96_vm0, %v5105_v32, -inf }
 0x67f   :  { %v11978_v46 = vsel %vm1931_vm13, %v1539_v16, %v11716_v55  ;;  %v5191_v2 = vmax.f32 %v5189_v57, %v5190_v1  ;;  %v5197_v38 = vrot.slane %v5196_v39, 2  ;;  %v5146_v30 = vrot.slane %v5145_v56, 4 }
 0x680   :  { %v1547_v4 = vsel %vm96_vm0, %v1459_v22, -inf  ;;  %v11986_v58 = vmax.f32 %v5229_v29, %v5145_v56  ;;  %v1544_v31 = vmax.f32 %v1542_v21, %v1543_v60  ;;  %v5141_v55 = vrot.slane %v5140_v17, 2 }
 0x681   :  { %v5192_v33 = vrot.slane %v5191_v2, 1  ;;  %v1548_v52 = vrot.slane %v1547_v4, 4  ;;  %v5080_v23 = vpop.permute.xlu1 %5079  ;;  %v11988_v50 = vmax.f32 %v1582_v36, %v1547_v4  ;;  %v1554_v42 = vsel %vm96_vm0, %v1460_v45, -inf }
 0x682   :  { %v5064_v10 = vpop.permute.xlu0 %5063  ;;  %v5147_v59 = vmax.f32 %v5145_v56, %v5146_v30  ;;  %v1555_v8 = vrot.slane %v1554_v42, 4  ;;  %v11991_v37 = vmax.f32 %v1583_v0, %v1554_v42  ;;  %v5113_v62 = vmul.f32 %v5078_v15, %v11667_v34 }
 0x683   :  { %v5193_v24 = vmax.f32 %v5191_v2, %v5192_v33  ;;  %v1549_v18 = vmax.f32 %v1547_v4, %v1548_v52  ;;  %v5198_v35 = vmax.f32 %v5196_v39, %v5197_v38  ;;  %v1545_v36 = vrot.slane %v1544_v31, 1  ;;  %v12312_v39 = vld [vmem:[#allocation48_spill] sm:$0xff] }
 0x684   :  { %v5148_v29 = vrot.slane %v5147_v59, 2  ;;  %v5201_v9 = vsel %vm96_vm0, %v5113_v62, -inf  ;;  %v5114_v57 = vmul.f32 %v11664_v49, %v5080_v23  ;;  %v5142_v63 = vmax.f32 %v5140_v17, %v5141_v55 }
 0x685   :  { %v11995_v13 = vsel %vm1931_vm13, %v5193_v24, %v7472_v41  ;;  %v1550_v21 = vrot.slane %v1549_v18, 2  ;;  %v5066_v47 = vpop.permute.xlu1 %5065  ;;  %v1556_v60 = vmax.f32 %v1554_v42, %v1555_v8  ;;  %v5202_v0 = vrot.slane %v5201_v9, 4  ;;  %v12311_v41 = vld [vmem:[#allocation45_spill] sm:$0xff]  ;;  %v12313_v42 = vld [vmem:[#allocation22_spill] sm:$0xff] }
 0x686   :  { %v1428_v54 = vpop.permute.xlu0 %1427  ;;  %v5149_v16 = vmax.f32 %v5147_v59, %v5148_v29  ;;  %v11999_v1 = vmax.f32 %v5236_v53, %v5201_v9  ;;  %v5208_v34 = vsel %vm96_vm0, %v5114_v57, -inf  ;;  %v5106_v51 = vmul.f32 %v12311_v41, %v5064_v10  ;;  %v12314_v8 = vld [vmem:[#allocation21_spill] sm:$0xff] }
 0x687   :  { %v5107_v20 = vmul.f32 %v5066_v47, %v12312_v39  ;;  %v5199_v32 = vrot.slane %v5198_v35, 1  ;;  %v1551_v25 = vmax.f32 %v1549_v18, %v1550_v21  ;;  %v5203_v22 = vmax.f32 %v5201_v9, %v5202_v0 }
 0x688   :  { %v5209_v2 = vrot.slane %v5208_v34, 4  ;;  %v12004_v3 = vmax.f32 %v5237_v7, %v5208_v34  ;;  %v5152_v49 = vsel %vm96_vm0, %v5106_v51, -inf  ;;  %v12010_v53 = vmax.f32 %v1544_v31, %v1545_v36 }
 0x689   :  { %v1430_v15 = vpop.permute.xlu1 %1429  ;;  %v12008_v17 = vsel %vm96_vm0, %v5107_v20, -inf  ;;  %v5143_v45 = vrot.slane %v5142_v63, 1  ;;  %v5150_v38 = vrot.slane %v5149_v16, 1  ;;  %v1557_v56 = vrot.slane %v1556_v60, 2 }
 0x68a   :  { %v5210_v4 = vmax.f32 %v5208_v34, %v5209_v2  ;;  %v5153_v33 = vrot.slane %v5152_v49, 4  ;;  %v12015_v30 = vmax.f32 %v5230_v48, %v5152_v49  ;;  %v5160_v7 = vrot.slane %v12008_v17, 4  ;;  %v5082_v52 = vpop.permute.xlu0 %5081 }
 0x68b   :  { %v12018_v23 = vmax.f32 %v5198_v35, %v5199_v32  ;;  %v1552_v55 = vrot.slane %v1551_v25, 1  ;;  %v5233_v31 = vmax.f32 %v11986_v58, %v12008_v17  ;;  %v1461_v10 = vmul.f32 %v1428_v54, %v12313_v42  ;;  %v12315_v42 = vld [vmem:[#allocation47_spill] sm:$0xff] }
 0x68c   :  { %v5204_v24 = vrot.slane %v5203_v22, 2  ;;  %v5154_v59 = vmax.f32 %v5152_v49, %v5153_v33  ;;  %v5161_v18 = vmax.f32 %v12008_v17, %v5160_v7  ;;  %v1462_v62 = vmul.f32 %v12314_v8, %v1430_v15 }
 0x68d   :  { %v5084_v11 = vpop.permute.xlu1 %5083  ;;  %v12025_v61 = vmax.f32 %v5142_v63, %v5143_v45  ;;  %v1558_v48 = vmax.f32 %v1556_v60, %v1557_v56  ;;  %v1561_v29 = vsel %vm96_vm0, %v1461_v10, -inf  ;;  %v5115_v35 = vmul.f32 %v5082_v52, %v11681_v28 }
 0x68e   :  { %v12029_v21 = vmax.f32 %v5149_v16, %v5150_v38  ;;  %v5211_v47 = vrot.slane %v5210_v4, 2  ;;  %v5155_v36 = vrot.slane %v5154_v59, 2  ;;  %v1562_v9 = vrot.slane %v1561_v29, 4  ;;  %v5068_v49 = vpop.permute.xlu0 %5067 }
 0x68f   :  { %v1586_v57 = vmax.f32 %v11988_v50, %v1561_v29  ;;  %v1568_v54 = vsel %vm96_vm0, %v1462_v62, -inf  ;;  %v5215_v0 = vsel %vm96_vm0, %v5115_v35, -inf  ;;  %v5116_v34 = vmul.f32 %v11674_v27, %v5084_v11 }
 0x690   :  { %v1553_v63 = vmax.f32 %v1551_v25, %v1552_v55  ;;  %v5205_v41 = vmax.f32 %v5203_v22, %v5204_v24  ;;  %v5162_v60 = vrot.slane %v5161_v18, 2  ;;  %v1563_v51 = vmax.f32 %v1561_v29, %v1562_v9 }
 0x691   :  { %v1569_v39 = vrot.slane %v1568_v54, 4  ;;  %v1587_v28 = vmax.f32 %v11991_v37, %v1568_v54  ;;  %v5216_v16 = vrot.slane %v5215_v0, 4  ;;  %v5240_v20 = vmax.f32 %v11999_v1, %v5215_v0 }
 0x692   :  { %v1559_v32 = vrot.slane %v1558_v48, 1  ;;  %v5212_v15 = vmax.f32 %v5210_v4, %v5211_v47  ;;  %v5156_v2 = vmax.f32 %v5154_v59, %v5155_v36  ;;  %v1564_v50 = vrot.slane %v1563_v51, 2 }
 0x693   :  { %v1570_v45 = vmax.f32 %v1568_v54, %v1569_v39  ;;  %v1588_v38 = vmax.f32 %v1586_v57, %v1587_v28  ;;  %v5217_v56 = vmax.f32 %v5215_v0, %v5216_v16  ;;  %v5222_v27 = vsel %vm96_vm0, %v5116_v34, -inf }
 0x694   :  { %v5206_v25 = vrot.slane %v5205_v41, 1  ;;  %v5163_v22 = vmax.f32 %v5161_v18, %v5162_v60  ;;  %v1565_v33 = vmax.f32 %v1563_v51, %v1564_v50  ;;  %v5223_v7 = vrot.slane %v5222_v27, 4 }
 0x695   :  { %v1571_v52 = vrot.slane %v1570_v45, 2  ;;  %v5218_v55 = vrot.slane %v5217_v56, 2  ;;  %v5241_v37 = vmax.f32 %v12004_v3, %v5222_v27  ;;  %v5108_v1 = vmul.f32 %v12315_v42, %v5068_v49 }
 0x696   :  { %v5213_v10 = vrot.slane %v5212_v15, 1  ;;  %v5157_v4 = vrot.slane %v5156_v2, 1  ;;  %v1566_v24 = vrot.slane %v1565_v33, 1  ;;  %v5224_v59 = vmax.f32 %v5222_v27, %v5223_v7 }
 0x697   :  { %v1572_v8 = vmax.f32 %v1570_v45, %v1571_v52  ;;  %v5219_v62 = vmax.f32 %v5217_v56, %v5218_v55  ;;  %v5242_v11 = vmax.f32 %v5240_v20, %v5241_v37  ;;  %v5166_v29 = vsel %vm96_vm0, %v5108_v1, -inf  ;;  %v12325_v52 = vld [vmem:[#allocation23_spill] sm:$0xff]  ;;  %v12326_v37 = vld [vmem:[#allocation24_spill] sm:$0xff] }
 0x698   :  { %v1560_v35 = vmax.f32 %v1558_v48, %v1559_v32  ;;  %v5225_v47 = vrot.slane %v5224_v59, 2  ;;  %v5167_v18 = vrot.slane %v5166_v29, 4  ;;  %v5234_v36 = vmax.f32 %v12015_v30, %v5166_v29 }
 0x699   :  { %v5207_v9 = vmax.f32 %v5205_v41, %v5206_v25  ;;  %v5164_v57 = vrot.slane %v5163_v22, 1  ;;  %v1573_v54 = vrot.slane %v1572_v8, 1  ;;  %v5220_v3 = vrot.slane %v5219_v62, 1  ;;  %v2987_v25 = vpop.permute.xlu1 %2986 }
 0x69a   :  { %v1567_v0 = vmax.f32 %v1565_v33, %v1566_v24  ;;  %v5226_v34 = vmax.f32 %v5224_v59, %v5225_v47  ;;  %v5168_v60 = vmax.f32 %v5166_v29, %v5167_v18  ;;  %v5235_v51 = vmax.f32 %v5233_v31, %v5234_v36  ;;  %v12328_v24 = vld [vmem:[#allocation26_spill] sm:$0xff]  ;;  %v12330_v29 = vld [vmem:[#allocation28_spill] sm:$0xff]  ;;  %v12331_v47 = vld [vmem:[#allocation29_spill] sm:$0xff] }
 0x69b   :  { %v5214_v39 = vmax.f32 %v5212_v15, %v5213_v10  ;;  %v5158_v28 = vmax.f32 %v5156_v2, %v5157_v4  ;;  %v1574_v16 = vmax.f32 %v1572_v8, %v1573_v54  ;;  %v7422_v48 = vsel %vm1933_vm14, %v12010_v53, %v11978_v46  ;;  %v12329_v8 = vld [vmem:[#allocation27_spill] sm:$0xff]  ;;  %v12332_v36 = vld [vmem:[#allocation30_spill] sm:$0xff] }
 0x69c   :  { %v5221_v20 = vmax.f32 %v5219_v62, %v5220_v3  ;;  %v5227_v30 = vrot.slane %v5226_v34, 1  ;;  %v5169_v41 = vrot.slane %v5168_v60, 2  ;;  %v7423_v32 = vsel %vm1935_vm15, %v1553_v63, %v7422_v48 }
 0x69d   :  { %v5165_v50 = vmax.f32 %v5163_v22, %v5164_v57  ;;  %vm12316_vm2 = vcmask 1045509   ;;  %v7474_v58 = vsel %vm1933_vm14, %v12018_v23, %v11995_v13  ;;  %v7467_v17 = vsel %vm1933_vm14, %v12025_v61, %v11970_v40  ;;  %vm12322_vm14 = vmmov %vm12318_vm5  ;;  %v2985_v22 = vpop.permute.xlu0 %2984 }
 0x69e   :  { %v7424_v49 = vsel %vm12316_vm2, %v1560_v35, %v7423_v32  ;;  %v5170_v31 = vmax.f32 %v5168_v60, %v5169_v41  ;;  %vm12317_vm13 = vcmask 1046534   ;;  %v5228_v46 = vmax.f32 %v5226_v34, %v5227_v30  ;;  %vm12319_vm1 = vmmov %vm12316_vm2  ;;  %v12333_v30 = vld [vmem:[#allocation12_spill] sm:$0xff] }
 0x69f   :  { %v7425_v15 = vsel %vm12317_vm13, %v1567_v0, %v7424_v49  ;;  %v7475_v53 = vsel %vm1935_vm15, %v5207_v9, %v7474_v58  ;;  %v7468_v45 = vsel %vm1935_vm15, %v12029_v21, %v7467_v17  ;;  %vm12320_vm3 = vmmov %vm12317_vm13  ;;  %v3191_v21 = vpop.permute.xlu1 %3190  ;;  %v2991_v55 = vmul.f32 %v12325_v52, %v2987_v25  ;;  %v12336_v25 = vld [vmem:[#allocation11_spill] sm:$0xff] }
 0x6a0   :  { %v7426_v2 = vsel %vm12318_vm5, %v1574_v16, %v7425_v15  ;;  %v7476_v63 = vsel %vm12319_vm1, %v5214_v39, %v7475_v53  ;;  %v5171_v56 = vrot.slane %v5170_v31, 1  ;;  %vm12321_vm7 = vmmov %vm12319_vm1  ;;  %v2990_v42 = vmul.f32 %v2985_v22, %v12326_v37  ;;  %v12334_v53 = vld [vmem:[#allocation9_spill] sm:$0xff] }
 0x6a1   :  { %7429 = vrot.lane.b32.xlu1 %v7426_v2, %s9429_s3  ;;  %v7477_v13 = vsel %vm12320_vm3, %v5221_v20, %v7476_v63  ;;  %v7469_v40 = vsel %vm12321_vm7, %v5158_v28, %v7468_v45  ;;  %vm12323_vm8 = vmmov %vm12320_vm3  ;;  %v3189_v7 = vpop.permute.xlu0 %3188  ;;  %vm7503_vm15 = vcmask 523264   ;;  %v12335_v63 = vld [vmem:[#allocation8_spill] sm:$0xff] }
 0x6a2   :  { %v7478_v23 = vsel %vm12322_vm14, %v5228_v46, %v7477_v13  ;;  %v7470_v61 = vsel %vm12323_vm8, %v5165_v50, %v7469_v40  ;;  %v5172_v27 = vmax.f32 %v5170_v31, %v5171_v56  ;;  %v3194_v59 = vmul.f32 %v3189_v7, %v12328_v24 }
 0x6a3   :  { %v3469_v1 = vpop.permute.xlu1 %3468 }
 0x6a4   :  { %v7471_v33 = vsel %vm12324_vm9, %v5172_v27, %v7470_v61  ;;  %v3473_v62 = vmul.f32 %v12329_v8, %v3469_v1  ;;  %v12339_v8 = vld [vmem:[#allocation35_spill] sm:$0xff] }
 0x6a5   :  { %7481 = vrot.lane.b32.xlu1 %v7478_v23, %s9429_s3  ;;  %7479 = vrot.lane.b32.xlu0 %v7471_v33, %s9429_s3  ;;  %v3467_v10 = vpop.permute.xlu0 %3466  ;;  %v12337_v33 = vld [vmem:[#allocation10_spill] sm:$0xff] }
 0x6a6   :  { %v3472_v35 = vmul.f32 %v3467_v10, %v12330_v29 }
 0x6a9   :  { %7523 = vrot.lane.b32.xlu1 %v1588_v38, %s9429_s3  ;;  %7521 = vrot.lane.b32.xlu0 %v11698_v5, %s9429_s3  ;;  %v12327_v38 = vld [vmem:[#allocation25_spill] sm:$0xff]  ;;  %v3747_v5 = vpop.permute.xlu1 %3746 }
 0x6aa   :  { %v3195_v4 = vmul.f32 %v12327_v38, %v3191_v21  ;;  %v3751_v18 = vmul.f32 %v12331_v47, %v3747_v5 }
 0x6ad   :  { %7547 = vrot.lane.b32.xlu1 %v5242_v11, %s9429_s3  ;;  %7545 = vrot.lane.b32.xlu0 %v5235_v51, %s9429_s3  ;;  %v3745_v11 = vpop.permute.xlu0 %3744  ;;  %v6632_v57 = vpop.permute.xlu1 %6631 }
 0x6ae   :  { %v3750_v9 = vmul.f32 %v3745_v11, %v12332_v36  ;;  %v6636_v3 = vmul.f32 %v11718_v26, %v6632_v57 }
 0x6b1   :  { %7437 = vrot.lane.b32.xlu1 %v2991_v55, %s9427_s10  ;;  %7435 = vrot.lane.b32.xlu0 %v2990_v42, %s9427_s10  ;;  %v6630_v54 = vpop.permute.xlu0 %6629 }
 0x6b2   :  { %v6635_v0 = vmul.f32 %v6630_v54, %v11720_v44  ;;  %v12341_v54 = vld [vmem:[#allocation37_spill] sm:$0xff] }
 0x6b5   :  { %7531 = vrot.lane.b32.xlu1 %v3195_v4, %s9427_s10  ;;  %7529 = vrot.lane.b32.xlu0 %v3194_v59, %s9427_s10  ;;  %v12338_v59 = vld [vmem:[#allocation36_spill] sm:$0xff] }
 0x6b9   :  { %7445 = vrot.lane.b32.xlu1 %v3473_v62, %s9428_s11  ;;  %7443 = vrot.lane.b32.xlu0 %v3472_v35, %s9428_s11 }
 0x6bd   :  { %7539 = vrot.lane.b32.xlu1 %v3751_v18, %s9428_s11  ;;  %7537 = vrot.lane.b32.xlu0 %v3750_v9, %s9428_s11  ;;  %v12340_v9 = vld [vmem:[#allocation38_spill] sm:$0xff] }
 0x6c1   :  { %7489 = vrot.lane.b32.xlu1 %v6636_v3, %s9427_s10  ;;  %7487 = vrot.lane.b32.xlu0 %v6635_v0, %s9427_s10 }
 0x6c2   :  { %v6836_v34 = vpop.permute.xlu1 %6835 }
 0x6c3   :  { %v6840_v60 = vmul.f32 %v11724_v6, %v6836_v34  ;;  %v6834_v51 = vpop.permute.xlu0 %6833 }
 0x6c4   :  { %v6839_v39 = vmul.f32 %v6834_v51, %v11726_v12 }
 0x6c5   :  { %7555 = vrot.lane.b32.xlu1 %v6840_v60, %s9427_s10 }
 0x6c6   :  { %7553 = vrot.lane.b32.xlu0 %v6839_v39, %s9427_s10 }
 0x6d2   :  { %v7114_v28 = vpop.permute.xlu1 %7113 }
 0x6d3   :  { %v7118_v16 = vmul.f32 %v11728_v19, %v7114_v28  ;;  %v7112_v26 = vpop.permute.xlu0 %7111 }
 0x6d4   :  { %v7117_v44 = vmul.f32 %v7112_v26, %v11733_v43 }
 0x6d5   :  { %7497 = vrot.lane.b32.xlu1 %v7118_v16, %s9428_s11 }
 0x6d6   :  { %7495 = vrot.lane.b32.xlu0 %v7117_v44, %s9428_s11 }
 0x6e3   :  { %v7392_v48 = vpop.permute.xlu1 %7391 }
 0x6e4   :  { %v7396_v6 = vmul.f32 %v11749_v14, %v7392_v48  ;;  %v7390_v20 = vpop.permute.xlu0 %7389 }
 0x6e5   :  { %v7395_v12 = vmul.f32 %v7390_v20, %v12333_v30 }
 0x6e6   :  { %7563 = vrot.lane.b32.xlu1 %v7396_v6, %s9428_s11 }
 0x6e7   :  { %7561 = vrot.lane.b32.xlu0 %v7395_v12, %s9428_s11 }
 0x6e8   :  { %v7428_v32 = vpop.permute.xlu0 %7427 }
 0x6e9   :  { %v7501_v45 = vsel %vm96_vm0, %v12335_v63, %v7428_v32 }
 0x713   :  { %v7430_v41 = vpop.permute.xlu1 %7429 }
 0x714   :  { %v7502_v2 = vsel %vm96_vm0, %v12334_v53, %v7430_v41 }
 0x717   :  { %v7482_v19 = vpop.permute.xlu1 %7481  ;;  %v7480_v50 = vpop.permute.xlu0 %7479 }
 0x718   :  { %v7510_v5 = vsel %vm96_vm0, %v12338_v59, %v7482_v19  ;;  %v7509_v62 = vsel %vm96_vm0, %v12339_v8, %v7480_v50 }
 0x71b   :  { %v7524_v49 = vpop.permute.xlu1 %7523  ;;  %v7522_v43 = vpop.permute.xlu0 %7521 }
 0x71c   :  { %v7568_v22 = vsel %vm96_vm0, %v12336_v25, %v7524_v49  ;;  %v7567_v21 = vsel %vm96_vm0, %v12337_v33, %v7522_v43 }
 0x71f   :  { %v7548_v58 = vpop.permute.xlu1 %7547  ;;  %v7546_v17 = vpop.permute.xlu0 %7545 }
 0x720   :  { %v7574_v57 = vsel %vm96_vm0, %v12340_v9, %v7548_v58  ;;  %v7573_v3 = vsel %vm96_vm0, %v12341_v54, %v7546_v17 }
 0x723   :  { %v7438_v31 = vpop.permute.xlu1 %7437  ;;  %v7436_v15 = vpop.permute.xlu0 %7435 }
 0x724   :  { %v7505_v56 = vsel %vm7503_vm15, %v7502_v2, %v7438_v31  ;;  %v7504_v40 = vsel %vm7503_vm15, %v7501_v45, %v7436_v15 }
 0x727   :  { %v7532_v46 = vpop.permute.xlu1 %7531  ;;  %v7530_v14 = vpop.permute.xlu0 %7529 }
 0x728   :  { %v7570_v7 = vsel %vm7503_vm15, %v7568_v22, %v7532_v46  ;;  %v7569_v55 = vsel %vm7503_vm15, %v7567_v21, %v7530_v14 }
 0x72b   :  { %v7446_v13 = vpop.permute.xlu1 %7445  ;;  %v7444_v61 = vpop.permute.xlu0 %7443 }
 0x72c   :  { %v7508_v23 = vsel %vm7506_vm10, %v7505_v56, %v7446_v13  ;;  %v7507_v27 = vsel %vm7506_vm10, %v7504_v40, %v7444_v61 }
 0x72d   :  { %7517 = vst [vmem:[%s12168_s5 + $0x10] sm:$0xff] %v7508_v23  ;;  %7515 = vst [vmem:[%s12168_s5] sm:$0xff] %v7507_v27 }
 0x72f   :  { %v7540_v52 = vpop.permute.xlu1 %7539  ;;  %v7538_v42 = vpop.permute.xlu0 %7537 }
 0x730   :  { %v7572_v37 = vsel %vm7506_vm10, %v7570_v7, %v7540_v52  ;;  %v7571_v1 = vsel %vm7506_vm10, %v7569_v55, %v7538_v42 }
 0x731   :  { %7581 = vst [vmem:[%s12169_s6 + $0x10] sm:$0xff] %v7572_v37  ;;  %7579 = vst [vmem:[%s12169_s6] sm:$0xff] %v7571_v1 }
 0x733   :  { %v7490_v10 = vpop.permute.xlu1 %7489  ;;  %v7488_v38 = vpop.permute.xlu0 %7487 }
 0x734   :  { %v7512_v11 = vsel %vm7503_vm15, %v7510_v5, %v7490_v10  ;;  %v7511_v35 = vsel %vm7503_vm15, %v7509_v62, %v7488_v38 }
 0x737   :  { %v7556_v4 = vpop.permute.xlu1 %7555 }
 0x738   :  { %v7554_v24 = vpop.permute.xlu0 %7553  ;;  %v7576_v0 = vsel %vm7503_vm15, %v7574_v57, %v7556_v4 }
 0x739   :  { %v7575_v60 = vsel %vm7503_vm15, %v7573_v3, %v7554_v24 }
 0x747   :  { %v7498_v29 = vpop.permute.xlu1 %7497 }
 0x748   :  { %v7514_v47 = vsel %vm7506_vm10, %v7512_v11, %v7498_v29  ;;  %v7496_v18 = vpop.permute.xlu0 %7495 }
 0x749   :  { %7518 = vst [vmem:[%s12168_s5 + $0x18] sm:$0xff] %v7514_v47  ;;  %v7513_v36 = vsel %vm7506_vm10, %v7511_v35, %v7496_v18 }
 0x74a   :  { %7516 = vst [vmem:[%s12168_s5 + $0x8] sm:$0xff] %v7513_v36 }
 0x758   :  { %v7564_v34 = vpop.permute.xlu1 %7563 }
 0x759   :  { %v7578_v51 = vsel %vm7506_vm10, %v7576_v0, %v7564_v34  ;;  %v7562_v39 = vpop.permute.xlu0 %7561 }
 0x75a   :  { %7582 = vst [vmem:[%s12169_s6 + $0x18] sm:$0xff] %v7578_v51  ;;  %v7577_v28 = vsel %vm7506_vm10, %v7575_v60, %v7562_v39 }
 0x75b   :  { %7580 = vst [vmem:[%s12169_s6 + $0x8] sm:$0xff] %v7577_v28 }

</bundles_post_ra>
